<compile_context>
chip_gen: v7x
topology: tpu7x:2x2x1
jax: 0.10.0
libtpu: 0.0.40
codegen_flags: <defaults>
</compile_context>

<pallas_src>
import functools

import numpy as np
import jax
import jax.numpy as jnp
from jax import lax
from jax.experimental import pallas as pl
from jax.experimental.pallas import tpu as pltpu

KS = 3                 # kernel_size
N_TAP = KS * KS        # 9 taps
PAD = 1                # padding
SQRT2 = 2.0 ** 0.5
MXU_DTYPE = jnp.bfloat16   # conv / x_r operands (f32 accumulation everywhere)

# per-angle (offset_x, offset_y) tables, exactly as in _get_p_offset
_ANGLE_OFFSETS = {
    0: ([0.0] * 9, [0.0] * 9),
    1: ([1 - SQRT2, 1 - SQRT2 * 0.5, 1, -SQRT2 * 0.5, 0, SQRT2 * 0.5,
         -1, SQRT2 * 0.5 - 1, SQRT2 - 1],
        [1, SQRT2 * 0.5, SQRT2 - 1, 1 - SQRT2 * 0.5, 0, SQRT2 * 0.5 - 1,
         1 - SQRT2, -SQRT2 * 0.5, -1]),
    2: ([0, 1, 2, -1, 0, 1, -2, -1, 0],
        [2, 1, 0, 1, 0, -1, 0, -1, -2]),
    3: ([1, 1 + SQRT2 * 0.5, 1 + SQRT2, -SQRT2 * 0.5, 0, SQRT2 * 0.5,
         -1 - SQRT2, -1 - SQRT2 * 0.5, -1],
        [1 + SQRT2, SQRT2 * 0.5, -1, 1 + SQRT2 * 0.5, 0, -1 - SQRT2 * 0.5,
         1, -SQRT2 * 0.5, 1 + SQRT2]),
    4: ([2, 2, 2, 0, 0, 0, -2, -2, -2],
        [2, 0, -2, 2, 0, -2, 2, 0, -2]),
}


def _round_up(n, m):
    return ((n + m - 1) // m) * m


def _largest_divisor_leq(n, cap):
    for d in range(min(cap, n), 0, -1):
        if n % d == 0:
            return d
    return 1


# ----------------------- host-side constant operators ----------------------

def _line_operator(n_out, n_pad, pos):
    """(n_out, n_pad) operator L so that (L @ v)[i] bilinearly samples v at pos[i]
    with the reference's independent clamping of floor(p), floor(p)+1 and p."""
    pos = pos.astype(np.float32)
    q0 = np.clip(np.floor(pos), 0, n_pad - 1)
    q1 = np.clip(np.floor(pos) + 1, 0, n_pad - 1)
    pc = np.clip(pos, 0, n_pad - 1)
    w0 = (1.0 + (q0 - pc)).astype(np.float32)
    w1 = (1.0 - (q1 - pc)).astype(np.float32)
    L = np.zeros((n_out, n_pad), np.float32)
    rows = np.arange(n_out)
    np.add.at(L, (rows, q0.astype(np.int64)), w0)   # accumulate (corners can clamp
    np.add.at(L, (rows, q1.astype(np.int64)), w1)   #  onto the same border index)
    return L


def _build_sampling_operators(h, w, wr_pad, angle_list):
    """Constant per-angle, per-tap operators with the interleaved
    _reshape_x_offset layout folded in:
       x_r[b, c, 3i+u, 3j+v] = sum_t (A[a,t] @ x_pad[b,c] @ B[a,t])[3i+u, 3j+v]
    A: (NA, 9, 3h, h+2)  f32,   B: (NA, 9, w+2, wr_pad) f32 (zero lane padding)."""
    hp, wp = h + 2 * PAD, w + 2 * PAD
    na = len(angle_list)
    A = np.zeros((na, N_TAP, KS * h, hp), np.float32)
    B = np.zeros((na, N_TAP, wp, wr_pad), np.float32)
    pnx = np.repeat(np.arange(-1, 2), KS).astype(np.float32)   # meshgrid-ij flatten
    pny = np.tile(np.arange(-1, 2), KS).astype(np.float32)
    for ai, angle in enumerate(angle_list):
        n = angle // 45
        off_x = np.asarray(_ANGLE_OFFSETS[n][0], np.float32)
        off_y = np.asarray(_ANGLE_OFFSETS[n][1], np.float32)
        for t in range(N_TAP):
            u, v = t // KS, t % KS
            p_rows = np.arange(1, h + 1, dtype=np.float32) + pnx[t] + off_x[t]
            p_cols = np.arange(1, w + 1, dtype=np.float32) + pny[t] + off_y[t]
            row_op = _line_operator(h, hp, p_rows)           # (h, hp)
            col_op = _line_operator(w, wp, p_cols)           # (w, wp)
            A[ai, t, u::KS, :] = row_op                      # rows 3i+u
            B[ai, t, :, v:KS * w:KS] = col_op.T              # cols 3j+v
    return A, B


# ------------------------------- kernels -----------------------------------

def _sample_kernel(a_ref, b_ref, x_ref, o_ref):
    """Fused gather + bilinear + reshape for ONE (angle, image).

    a_ref : (1, 9, 3H, Hp)     f32   row operators for this angle
    b_ref : (1, 9, Wp, WRp)    f32   col operators (lane-padded, zeros beyond 3W)
    x_ref : (1, C, Hp, Wp)     f32   zero-padded input image
    o_ref : (1, 1, 3H, C*WRp)  bf16  x_offset in its (3H, 3W) layout, one 128-wide
                                     lane block per channel (aligned, unmasked stores)
    """
    n_tap = a_ref.shape[1]
    c_dim = x_ref.shape[1]
    hr = a_ref.shape[2]
    wrp = b_ref.shape[3]
    xs = [x_ref[0, c] for c in range(c_dim)]
    accs = [jnp.zeros((hr, wrp), jnp.float32) for _ in range(c_dim)]
    for t in range(n_tap):
        a_t = a_ref[0, t]                                    # (3H, Hp)
        b_t = b_ref[0, t]                                    # (Wp, WRp)
        for c in range(c_dim):
            t1 = jnp.dot(a_t, xs[c], preferred_element_type=jnp.float32)
            accs[c] = accs[c] + jnp.dot(t1, b_t, preferred_element_type=jnp.float32)
    for c in range(c_dim):
        o_ref[0, 0, :, c * wrp:(c + 1) * wrp] = accs[c].astype(o_ref.dtype)


def _conv_kernel(w_ref, x_ref, o_ref, *, wo):
    """Shared 3x3 / stride-1 / pad-0 conv as 9 accumulated matmuls (implicit im2col).

    w_ref : (9, OC, C)               bf16  per-tap weights, resident across the grid
    x_ref : (1, 1, 3H, C, WRp)       bf16  x_r for one (angle, image)
    o_ref : (1, 1, TILE_HO, OC, WOP) f32   one row-tile of the lane-padded output
    """
    tile_ho = o_ref.shape[2]
    oc = o_ref.shape[3]
    wop = o_ref.shape[4]
    c_dim = x_ref.shape[3]
    r0 = pl.program_id(2) * tile_ho
    acc = jnp.zeros((tile_ho, oc, wo), jnp.float32)
    for dr in range(KS):
        for dc in range(KS):
            # shifted window of x_r (stays in VMEM, no HBM patches tensor)
            xsl = x_ref[0, 0, pl.ds(r0 + dr, tile_ho), :, dc:dc + wo]   # (T, C, wo)
            w2 = w_ref[dr * KS + dc]                                    # (OC, C)
            wb = jnp.broadcast_to(w2[None], (tile_ho, oc, c_dim))
            acc = acc + lax.dot_general(
                wb, xsl,
                dimension_numbers=(((2,), (1,)), ((0,), (0,))),
                preferred_element_type=jnp.float32)                     # (T, OC, wo)
    if wop > wo:   # pad lanes to a full 128-multiple -> unmasked full-block store
        acc = jnp.concatenate(
            [acc, jnp.zeros((tile_ho, oc, wop - wo), jnp.float32)], axis=-1)
    o_ref[0, 0] = acc.astype(o_ref.dtype)


# ------------------------------- forward -----------------------------------

def adaptive_angle_conv_forward(x, weight, angle_list=(0, 45, 90, 135, 180)):
    """x: (B, C, H, W) f32, weight: (OC, C, 3, 3) f32 (no bias).
    Returns a list of len(angle_list) outputs, each (B, OC, 3H-2, 3W-2) f32."""
    B, C, H, W = x.shape
    OC = weight.shape[0]
    Hp, Wp = H + 2 * PAD, W + 2 * PAD
    HR, WR = KS * H, KS * W
    Ho, Wo = HR - (KS - 1), WR - (KS - 1)
    WRp = _round_up(WR, 128)          # lane-dense x_r intermediate
    WOP = _round_up(Wo, 128)          # lane-dense conv output
    NA = len(angle_list)
    TILE_HO = _largest_divisor_leq(Ho, 32)
    n_h = Ho // TILE_HO

    a_np, b_np = _build_sampling_operators(H, W, WRp, angle_list)
    a_const = jnp.asarray(a_np)
    b_const = jnp.asarray(b_np)
    x_pad = jnp.pad(x, ((0, 0), (0, 0), (PAD, PAD), (PAD, PAD)))

    # ---- kernel 1: sampling (gather + bilinear + reshape fused), all 5 angles ----
    x_r = pl.pallas_call(
        _sample_kernel,
        out_shape=jax.ShapeDtypeStruct((NA, B, HR, C * WRp), MXU_DTYPE),
        grid=(NA, B),
        in_specs=[
            pl.BlockSpec((1, N_TAP, HR, Hp), lambda a, b: (a, 0, 0, 0)),
            pl.BlockSpec((1, N_TAP, Wp, WRp), lambda a, b: (a, 0, 0, 0)),
            pl.BlockSpec((1, C, Hp, Wp), lambda a, b: (b, 0, 0, 0)),
        ],
        out_specs=pl.BlockSpec((1, 1, HR, C * WRp), lambda a, b: (a, b, 0, 0)),
        compiler_params=pltpu.CompilerParams(
            dimension_semantics=("parallel", "parallel")),
    )(a_const, b_const, x_pad)

    # free metadata reshape (split of the contiguous trailing dim)
    x_r5 = x_r.reshape(NA, B, HR, C, WRp)

    # ---- kernel 2: shared 3x3 conv, weights resident, all 5 angles, tiled rows ----
    w_tap = jnp.transpose(weight, (2, 3, 0, 1)).reshape(N_TAP, OC, C)
    w_tap = w_tap.astype(MXU_DTYPE)
    y_pad = pl.pallas_call(
        functools.partial(_conv_kernel, wo=Wo),
        out_shape=jax.ShapeDtypeStruct((NA, B, Ho, OC, WOP), jnp.float32),
        grid=(NA, B, n_h),
        in_specs=[
            pl.BlockSpec((N_TAP, OC, C), lambda a, b, h: (0, 0, 0)),
            pl.BlockSpec((1, 1, HR, C, WRp), lambda a, b, h: (a, b, 0, 0, 0)),
        ],
        out_specs=pl.BlockSpec((1, 1, TILE_HO, OC, WOP),
                               lambda a, b, h: (a, b, h, 0, 0)),
        compiler_params=pltpu.CompilerParams(
            dimension_semantics=("parallel", "parallel", "arbitrary")),
    )(w_tap, x_r5)

    # XLA plumbing only: drop lane padding, go back to NCHW, split per angle.
    y = jnp.transpose(y_pad[..., :Wo], (0, 1, 3, 2, 4))   # (NA, B, OC, Ho, Wo)
    return [y[a] for a in range(NA)]


# ---------------------- pure-numpy reference (validation) ------------------

def _reference_forward_np(x, weight, angle_list):
    """Numpy transliteration of the PyTorch module (f32)."""
    B, C, H, W = x.shape
    OC = weight.shape[0]
    Hp, Wp = H + 2, W + 2
    xp = np.pad(x, ((0, 0), (0, 0), (1, 1), (1, 1))).astype(np.float32)
    xf = xp.reshape(B, C, Hp * Wp)
    pnx = np.repeat(np.arange(-1, 2), 3).astype(np.float32)
    pny = np.tile(np.arange(-1, 2), 3).astype(np.float32)
    outs = []
    for angle in angle_list:
        n = angle // 45
        off_x = np.asarray(_ANGLE_OFFSETS[n][0], np.float32)
        off_y = np.asarray(_ANGLE_OFFSETS[n][1], np.float32)
        p_r = (np.arange(1, H + 1, dtype=np.float32)[:, None, None]
               + (pnx + off_x)[None, None, :])
        p_c = (np.arange(1, W + 1, dtype=np.float32)[None, :, None]
               + (pny + off_y)[None, None, :])
        p_r = np.broadcast_to(p_r, (H, W, 9))
        p_c = np.broadcast_to(p_c, (H, W, 9))
        q_lt_r = np.clip(np.floor(p_r), 0, Hp - 1)
        q_lt_c = np.clip(np.floor(p_c), 0, Wp - 1)
        q_rb_r = np.clip(np.floor(p_r) + 1, 0, Hp - 1)
        q_rb_c = np.clip(np.floor(p_c) + 1, 0, Wp - 1)
        pr = np.clip(p_r, 0, Hp - 1)
        pc = np.clip(p_c, 0, Wp - 1)
        g_lt = (1 + (q_lt_r - pr)) * (1 + (q_lt_c - pc))
        g_rb = (1 - (q_rb_r - pr)) * (1 - (q_rb_c - pc))
        g_lb = (1 + (q_lt_r - pr)) * (1 - (q_rb_c - pc))
        g_rt = (1 - (q_rb_r - pr)) * (1 + (q_lt_c - pc))

        def gather(qr, qc):
            idx = (qr.astype(np.int64) * Wp + qc.astype(np.int64)).reshape(-1)
            return xf[:, :, idx].reshape(B, C, H, W, 9)

        x_off = (g_lt * gather(q_lt_r, q_lt_c) + g_rb * gather(q_rb_r, q_rb_c)
                 + g_lb * gather(q_lt_r, q_rb_c) + g_rt * gather(q_rb_r, q_lt_c))
        x_r = (x_off.reshape(B, C, H, W, 3, 3)
               .transpose(0, 1, 2, 4, 3, 5).reshape(B, C, 3 * H, 3 * W))
        Ho, Wo = 3 * H - 2, 3 * W - 2
        y = np.zeros((B, OC, Ho, Wo), np.float32)
        for dr in range(3):
            for dc in range(3):
                y += np.einsum('oc,bchw->bohw', weight[:, :, dr, dc],
                               x_r[:, :, dr:dr + Ho, dc:dc + Wo])
        outs.append(y)
    return outs


if __name__ == "__main__":
    B, C, OC, H, W = 2, 4, 8, 16, 16        # the module hard-codes batch = 2
    key = jax.random.PRNGKey(0)
    kx, kw = jax.random.split(key)
    x = jax.random.normal(kx, (B, C, H, W), dtype=jnp.float32)
    weight = jax.random.normal(kw, (OC, C, KS, KS), dtype=jnp.float32) * 0.1

    fwd = jax.jit(adaptive_angle_conv_forward)
    outs = fwd(x, weight)
    outs = [jax.block_until_ready(o) for o in outs]

    expected = (B, OC, KS * H - 2, KS * W - 2)
    assert len(outs) == 5 and all(o.shape == expected for o in outs)
    assert all(bool(jnp.isfinite(o).all()) for o in outs)

    # numerical check against a pure-numpy transliteration of the PyTorch module
    refs = _reference_forward_np(np.asarray(x, np.float32),
                                 np.asarray(weight, np.float32),
                                 (0, 45, 90, 135, 180))
    for got, want in zip(outs, refs):
        np.testing.assert_allclose(np.asarray(got, np.float32), want,
                                   rtol=5e-2, atol=5e-2)   # bf16 MXU operands

    print("KERNEL_OK")
</pallas_src>

<mosaic_0001>
module attributes {stable_mosaic.version = 11 : i64} {
  func.func @_sample_kernel(%arg0: i32, %arg1: i32, %arg2: memref<1x9x48x18xf32, #tpu.memory_space<vmem>>, %arg3: memref<1x9x18x128xf32, #tpu.memory_space<vmem>>, %arg4: memref<1x4x18x18xf32, #tpu.memory_space<vmem>>, %arg5: memref<1x1x48x512xbf16, #tpu.memory_space<vmem>>) attributes {dimension_semantics = [#tpu.dimension_semantics<parallel>, #tpu.dimension_semantics<parallel>], iteration_bounds = array<i64: 5, 2>, scalar_prefetch = 0 : i64, scratch_operands = 0 : i64, tpu.core_type = #tpu.core_type<tc>, window_params = [{transform_indices = @transform_0, window_bounds = array<i64: 1, 9, 48, 18>}, {transform_indices = @transform_1, window_bounds = array<i64: 1, 9, 18, 128>}, {transform_indices = @transform_2, window_bounds = array<i64: 1, 4, 18, 18>}, {transform_indices = @transform_3, window_bounds = array<i64: 1, 1, 48, 512>}]} {
    %c0 = arith.constant 0 : index
    %c0_0 = arith.constant 0 : index
    %c0_1 = arith.constant 0 : index
    %c0_2 = arith.constant 0 : index
    %0 = vector.load %arg4[%c0, %c0_0, %c0_1, %c0_2] : memref<1x4x18x18xf32, #tpu.memory_space<vmem>>, vector<1x1x18x18xf32>
    %1 = vector.shape_cast %0 : vector<1x1x18x18xf32> to vector<18x18xf32>
    %c0_3 = arith.constant 0 : index
    %c1 = arith.constant 1 : index
    %c0_4 = arith.constant 0 : index
    %c0_5 = arith.constant 0 : index
    %2 = vector.load %arg4[%c0_3, %c1, %c0_4, %c0_5] : memref<1x4x18x18xf32, #tpu.memory_space<vmem>>, vector<1x1x18x18xf32>
    %3 = vector.shape_cast %2 : vector<1x1x18x18xf32> to vector<18x18xf32>
    %c0_6 = arith.constant 0 : index
    %c2 = arith.constant 2 : index
    %c0_7 = arith.constant 0 : index
    %c0_8 = arith.constant 0 : index
    %4 = vector.load %arg4[%c0_6, %c2, %c0_7, %c0_8] : memref<1x4x18x18xf32, #tpu.memory_space<vmem>>, vector<1x1x18x18xf32>
    %5 = vector.shape_cast %4 : vector<1x1x18x18xf32> to vector<18x18xf32>
    %c0_9 = arith.constant 0 : index
    %c3 = arith.constant 3 : index
    %c0_10 = arith.constant 0 : index
    %c0_11 = arith.constant 0 : index
    %6 = vector.load %arg4[%c0_9, %c3, %c0_10, %c0_11] : memref<1x4x18x18xf32, #tpu.memory_space<vmem>>, vector<1x1x18x18xf32>
    %7 = vector.shape_cast %6 : vector<1x1x18x18xf32> to vector<18x18xf32>
    %cst = arith.constant 0.000000e+00 : f32
    %8 = vector.broadcast %cst : f32 to vector<48x128xf32>
    %cst_12 = arith.constant 0.000000e+00 : f32
    %9 = vector.broadcast %cst_12 : f32 to vector<48x128xf32>
    %cst_13 = arith.constant 0.000000e+00 : f32
    %10 = vector.broadcast %cst_13 : f32 to vector<48x128xf32>
    %cst_14 = arith.constant 0.000000e+00 : f32
    %11 = vector.broadcast %cst_14 : f32 to vector<48x128xf32>
    %c0_15 = arith.constant 0 : index
    %c0_16 = arith.constant 0 : index
    %c0_17 = arith.constant 0 : index
    %c0_18 = arith.constant 0 : index
    %12 = vector.load %arg2[%c0_15, %c0_16, %c0_17, %c0_18] : memref<1x9x48x18xf32, #tpu.memory_space<vmem>>, vector<1x1x48x18xf32>
    %13 = vector.shape_cast %12 : vector<1x1x48x18xf32> to vector<48x18xf32>
    %c0_19 = arith.constant 0 : index
    %c0_20 = arith.constant 0 : index
    %c0_21 = arith.constant 0 : index
    %c0_22 = arith.constant 0 : index
    %14 = vector.load %arg3[%c0_19, %c0_20, %c0_21, %c0_22] : memref<1x9x18x128xf32, #tpu.memory_space<vmem>>, vector<1x1x18x128xf32>
    %15 = vector.shape_cast %14 : vector<1x1x18x128xf32> to vector<18x128xf32>
    %cst_23 = arith.constant dense<0.000000e+00> : vector<48x18xf32>
    %16 = tpu.matmul %13, %1, %cst_23 {dimension_numbers = #tpu.dot_dimension_numbers<[1], [0], [0], [1], [0, 0, 1, 1], [], []>} : vector<48x18xf32>, vector<18x18xf32>, vector<48x18xf32> -> vector<48x18xf32>
    %cst_24 = arith.constant dense<0.000000e+00> : vector<48x128xf32>
    %17 = tpu.matmul %16, %15, %cst_24 {dimension_numbers = #tpu.dot_dimension_numbers<[1], [0], [0], [1], [0, 0, 1, 1], [], []>} : vector<48x18xf32>, vector<18x128xf32>, vector<48x128xf32> -> vector<48x128xf32>
    %18 = arith.addf %8, %17 : vector<48x128xf32>
    %cst_25 = arith.constant dense<0.000000e+00> : vector<48x18xf32>
    %19 = tpu.matmul %13, %3, %cst_25 {dimension_numbers = #tpu.dot_dimension_numbers<[1], [0], [0], [1], [0, 0, 1, 1], [], []>} : vector<48x18xf32>, vector<18x18xf32>, vector<48x18xf32> -> vector<48x18xf32>
    %cst_26 = arith.constant dense<0.000000e+00> : vector<48x128xf32>
    %20 = tpu.matmul %19, %15, %cst_26 {dimension_numbers = #tpu.dot_dimension_numbers<[1], [0], [0], [1], [0, 0, 1, 1], [], []>} : vector<48x18xf32>, vector<18x128xf32>, vector<48x128xf32> -> vector<48x128xf32>
    %21 = arith.addf %9, %20 : vector<48x128xf32>
    %cst_27 = arith.constant dense<0.000000e+00> : vector<48x18xf32>
    %22 = tpu.matmul %13, %5, %cst_27 {dimension_numbers = #tpu.dot_dimension_numbers<[1], [0], [0], [1], [0, 0, 1, 1], [], []>} : vector<48x18xf32>, vector<18x18xf32>, vector<48x18xf32> -> vector<48x18xf32>
    %cst_28 = arith.constant dense<0.000000e+00> : vector<48x128xf32>
    %23 = tpu.matmul %22, %15, %cst_28 {dimension_numbers = #tpu.dot_dimension_numbers<[1], [0], [0], [1], [0, 0, 1, 1], [], []>} : vector<48x18xf32>, vector<18x128xf32>, vector<48x128xf32> -> vector<48x128xf32>
    %24 = arith.addf %10, %23 : vector<48x128xf32>
    %cst_29 = arith.constant dense<0.000000e+00> : vector<48x18xf32>
    %25 = tpu.matmul %13, %7, %cst_29 {dimension_numbers = #tpu.dot_dimension_numbers<[1], [0], [0], [1], [0, 0, 1, 1], [], []>} : vector<48x18xf32>, vector<18x18xf32>, vector<48x18xf32> -> vector<48x18xf32>
    %cst_30 = arith.constant dense<0.000000e+00> : vector<48x128xf32>
    %26 = tpu.matmul %25, %15, %cst_30 {dimension_numbers = #tpu.dot_dimension_numbers<[1], [0], [0], [1], [0, 0, 1, 1], [], []>} : vector<48x18xf32>, vector<18x128xf32>, vector<48x128xf32> -> vector<48x128xf32>
    %27 = arith.addf %11, %26 : vector<48x128xf32>
    %c0_31 = arith.constant 0 : index
    %c1_32 = arith.constant 1 : index
    %c0_33 = arith.constant 0 : index
    %c0_34 = arith.constant 0 : index
    %28 = vector.load %arg2[%c0_31, %c1_32, %c0_33, %c0_34] : memref<1x9x48x18xf32, #tpu.memory_space<vmem>>, vector<1x1x48x18xf32>
    %29 = vector.shape_cast %28 : vector<1x1x48x18xf32> to vector<48x18xf32>
    %c0_35 = arith.constant 0 : index
    %c1_36 = arith.constant 1 : index
    %c0_37 = arith.constant 0 : index
    %c0_38 = arith.constant 0 : index
    %30 = vector.load %arg3[%c0_35, %c1_36, %c0_37, %c0_38] : memref<1x9x18x128xf32, #tpu.memory_space<vmem>>, vector<1x1x18x128xf32>
    %31 = vector.shape_cast %30 : vector<1x1x18x128xf32> to vector<18x128xf32>
    %cst_39 = arith.constant dense<0.000000e+00> : vector<48x18xf32>
    %32 = tpu.matmul %29, %1, %cst_39 {dimension_numbers = #tpu.dot_dimension_numbers<[1], [0], [0], [1], [0, 0, 1, 1], [], []>} : vector<48x18xf32>, vector<18x18xf32>, vector<48x18xf32> -> vector<48x18xf32>
    %cst_40 = arith.constant dense<0.000000e+00> : vector<48x128xf32>
    %33 = tpu.matmul %32, %31, %cst_40 {dimension_numbers = #tpu.dot_dimension_numbers<[1], [0], [0], [1], [0, 0, 1, 1], [], []>} : vector<48x18xf32>, vector<18x128xf32>, vector<48x128xf32> -> vector<48x128xf32>
    %34 = arith.addf %18, %33 : vector<48x128xf32>
    %cst_41 = arith.constant dense<0.000000e+00> : vector<48x18xf32>
    %35 = tpu.matmul %29, %3, %cst_41 {dimension_numbers = #tpu.dot_dimension_numbers<[1], [0], [0], [1], [0, 0, 1, 1], [], []>} : vector<48x18xf32>, vector<18x18xf32>, vector<48x18xf32> -> vector<48x18xf32>
    %cst_42 = arith.constant dense<0.000000e+00> : vector<48x128xf32>
    %36 = tpu.matmul %35, %31, %cst_42 {dimension_numbers = #tpu.dot_dimension_numbers<[1], [0], [0], [1], [0, 0, 1, 1], [], []>} : vector<48x18xf32>, vector<18x128xf32>, vector<48x128xf32> -> vector<48x128xf32>
    %37 = arith.addf %21, %36 : vector<48x128xf32>
    %cst_43 = arith.constant dense<0.000000e+00> : vector<48x18xf32>
    %38 = tpu.matmul %29, %5, %cst_43 {dimension_numbers = #tpu.dot_dimension_numbers<[1], [0], [0], [1], [0, 0, 1, 1], [], []>} : vector<48x18xf32>, vector<18x18xf32>, vector<48x18xf32> -> vector<48x18xf32>
    %cst_44 = arith.constant dense<0.000000e+00> : vector<48x128xf32>
    %39 = tpu.matmul %38, %31, %cst_44 {dimension_numbers = #tpu.dot_dimension_numbers<[1], [0], [0], [1], [0, 0, 1, 1], [], []>} : vector<48x18xf32>, vector<18x128xf32>, vector<48x128xf32> -> vector<48x128xf32>
    %40 = arith.addf %24, %39 : vector<48x128xf32>
    %cst_45 = arith.constant dense<0.000000e+00> : vector<48x18xf32>
    %41 = tpu.matmul %29, %7, %cst_45 {dimension_numbers = #tpu.dot_dimension_numbers<[1], [0], [0], [1], [0, 0, 1, 1], [], []>} : vector<48x18xf32>, vector<18x18xf32>, vector<48x18xf32> -> vector<48x18xf32>
    %cst_46 = arith.constant dense<0.000000e+00> : vector<48x128xf32>
    %42 = tpu.matmul %41, %31, %cst_46 {dimension_numbers = #tpu.dot_dimension_numbers<[1], [0], [0], [1], [0, 0, 1, 1], [], []>} : vector<48x18xf32>, vector<18x128xf32>, vector<48x128xf32> -> vector<48x128xf32>
    %43 = arith.addf %27, %42 : vector<48x128xf32>
    %c0_47 = arith.constant 0 : index
    %c2_48 = arith.constant 2 : index
    %c0_49 = arith.constant 0 : index
    %c0_50 = arith.constant 0 : index
    %44 = vector.load %arg2[%c0_47, %c2_48, %c0_49, %c0_50] : memref<1x9x48x18xf32, #tpu.memory_space<vmem>>, vector<1x1x48x18xf32>
    %45 = vector.shape_cast %44 : vector<1x1x48x18xf32> to vector<48x18xf32>
    %c0_51 = arith.constant 0 : index
    %c2_52 = arith.constant 2 : index
    %c0_53 = arith.constant 0 : index
    %c0_54 = arith.constant 0 : index
    %46 = vector.load %arg3[%c0_51, %c2_52, %c0_53, %c0_54] : memref<1x9x18x128xf32, #tpu.memory_space<vmem>>, vector<1x1x18x128xf32>
    %47 = vector.shape_cast %46 : vector<1x1x18x128xf32> to vector<18x128xf32>
    %cst_55 = arith.constant dense<0.000000e+00> : vector<48x18xf32>
    %48 = tpu.matmul %45, %1, %cst_55 {dimension_numbers = #tpu.dot_dimension_numbers<[1], [0], [0], [1], [0, 0, 1, 1], [], []>} : vector<48x18xf32>, vector<18x18xf32>, vector<48x18xf32> -> vector<48x18xf32>
    %cst_56 = arith.constant dense<0.000000e+00> : vector<48x128xf32>
    %49 = tpu.matmul %48, %47, %cst_56 {dimension_numbers = #tpu.dot_dimension_numbers<[1], [0], [0], [1], [0, 0, 1, 1], [], []>} : vector<48x18xf32>, vector<18x128xf32>, vector<48x128xf32> -> vector<48x128xf32>
    %50 = arith.addf %34, %49 : vector<48x128xf32>
    %cst_57 = arith.constant dense<0.000000e+00> : vector<48x18xf32>
    %51 = tpu.matmul %45, %3, %cst_57 {dimension_numbers = #tpu.dot_dimension_numbers<[1], [0], [0], [1], [0, 0, 1, 1], [], []>} : vector<48x18xf32>, vector<18x18xf32>, vector<48x18xf32> -> vector<48x18xf32>
    %cst_58 = arith.constant dense<0.000000e+00> : vector<48x128xf32>
    %52 = tpu.matmul %51, %47, %cst_58 {dimension_numbers = #tpu.dot_dimension_numbers<[1], [0], [0], [1], [0, 0, 1, 1], [], []>} : vector<48x18xf32>, vector<18x128xf32>, vector<48x128xf32> -> vector<48x128xf32>
    %53 = arith.addf %37, %52 : vector<48x128xf32>
    %cst_59 = arith.constant dense<0.000000e+00> : vector<48x18xf32>
    %54 = tpu.matmul %45, %5, %cst_59 {dimension_numbers = #tpu.dot_dimension_numbers<[1], [0], [0], [1], [0, 0, 1, 1], [], []>} : vector<48x18xf32>, vector<18x18xf32>, vector<48x18xf32> -> vector<48x18xf32>
    %cst_60 = arith.constant dense<0.000000e+00> : vector<48x128xf32>
    %55 = tpu.matmul %54, %47, %cst_60 {dimension_numbers = #tpu.dot_dimension_numbers<[1], [0], [0], [1], [0, 0, 1, 1], [], []>} : vector<48x18xf32>, vector<18x128xf32>, vector<48x128xf32> -> vector<48x128xf32>
    %56 = arith.addf %40, %55 : vector<48x128xf32>
    %cst_61 = arith.constant dense<0.000000e+00> : vector<48x18xf32>
    %57 = tpu.matmul %45, %7, %cst_61 {dimension_numbers = #tpu.dot_dimension_numbers<[1], [0], [0], [1], [0, 0, 1, 1], [], []>} : vector<48x18xf32>, vector<18x18xf32>, vector<48x18xf32> -> vector<48x18xf32>
    %cst_62 = arith.constant dense<0.000000e+00> : vector<48x128xf32>
    %58 = tpu.matmul %57, %47, %cst_62 {dimension_numbers = #tpu.dot_dimension_numbers<[1], [0], [0], [1], [0, 0, 1, 1], [], []>} : vector<48x18xf32>, vector<18x128xf32>, vector<48x128xf32> -> vector<48x128xf32>
    %59 = arith.addf %43, %58 : vector<48x128xf32>
    %c0_63 = arith.constant 0 : index
    %c3_64 = arith.constant 3 : index
    %c0_65 = arith.constant 0 : index
    %c0_66 = arith.constant 0 : index
    %60 = vector.load %arg2[%c0_63, %c3_64, %c0_65, %c0_66] : memref<1x9x48x18xf32, #tpu.memory_space<vmem>>, vector<1x1x48x18xf32>
    %61 = vector.shape_cast %60 : vector<1x1x48x18xf32> to vector<48x18xf32>
    %c0_67 = arith.constant 0 : index
    %c3_68 = arith.constant 3 : index
    %c0_69 = arith.constant 0 : index
    %c0_70 = arith.constant 0 : index
    %62 = vector.load %arg3[%c0_67, %c3_68, %c0_69, %c0_70] : memref<1x9x18x128xf32, #tpu.memory_space<vmem>>, vector<1x1x18x128xf32>
    %63 = vector.shape_cast %62 : vector<1x1x18x128xf32> to vector<18x128xf32>
    %cst_71 = arith.constant dense<0.000000e+00> : vector<48x18xf32>
    %64 = tpu.matmul %61, %1, %cst_71 {dimension_numbers = #tpu.dot_dimension_numbers<[1], [0], [0], [1], [0, 0, 1, 1], [], []>} : vector<48x18xf32>, vector<18x18xf32>, vector<48x18xf32> -> vector<48x18xf32>
    %cst_72 = arith.constant dense<0.000000e+00> : vector<48x128xf32>
    %65 = tpu.matmul %64, %63, %cst_72 {dimension_numbers = #tpu.dot_dimension_numbers<[1], [0], [0], [1], [0, 0, 1, 1], [], []>} : vector<48x18xf32>, vector<18x128xf32>, vector<48x128xf32> -> vector<48x128xf32>
    %66 = arith.addf %50, %65 : vector<48x128xf32>
    %cst_73 = arith.constant dense<0.000000e+00> : vector<48x18xf32>
    %67 = tpu.matmul %61, %3, %cst_73 {dimension_numbers = #tpu.dot_dimension_numbers<[1], [0], [0], [1], [0, 0, 1, 1], [], []>} : vector<48x18xf32>, vector<18x18xf32>, vector<48x18xf32> -> vector<48x18xf32>
    %cst_74 = arith.constant dense<0.000000e+00> : vector<48x128xf32>
    %68 = tpu.matmul %67, %63, %cst_74 {dimension_numbers = #tpu.dot_dimension_numbers<[1], [0], [0], [1], [0, 0, 1, 1], [], []>} : vector<48x18xf32>, vector<18x128xf32>, vector<48x128xf32> -> vector<48x128xf32>
    %69 = arith.addf %53, %68 : vector<48x128xf32>
    %cst_75 = arith.constant dense<0.000000e+00> : vector<48x18xf32>
    %70 = tpu.matmul %61, %5, %cst_75 {dimension_numbers = #tpu.dot_dimension_numbers<[1], [0], [0], [1], [0, 0, 1, 1], [], []>} : vector<48x18xf32>, vector<18x18xf32>, vector<48x18xf32> -> vector<48x18xf32>
    %cst_76 = arith.constant dense<0.000000e+00> : vector<48x128xf32>
    %71 = tpu.matmul %70, %63, %cst_76 {dimension_numbers = #tpu.dot_dimension_numbers<[1], [0], [0], [1], [0, 0, 1, 1], [], []>} : vector<48x18xf32>, vector<18x128xf32>, vector<48x128xf32> -> vector<48x128xf32>
    %72 = arith.addf %56, %71 : vector<48x128xf32>
    %cst_77 = arith.constant dense<0.000000e+00> : vector<48x18xf32>
    %73 = tpu.matmul %61, %7, %cst_77 {dimension_numbers = #tpu.dot_dimension_numbers<[1], [0], [0], [1], [0, 0, 1, 1], [], []>} : vector<48x18xf32>, vector<18x18xf32>, vector<48x18xf32> -> vector<48x18xf32>
    %cst_78 = arith.constant dense<0.000000e+00> : vector<48x128xf32>
    %74 = tpu.matmul %73, %63, %cst_78 {dimension_numbers = #tpu.dot_dimension_numbers<[1], [0], [0], [1], [0, 0, 1, 1], [], []>} : vector<48x18xf32>, vector<18x128xf32>, vector<48x128xf32> -> vector<48x128xf32>
    %75 = arith.addf %59, %74 : vector<48x128xf32>
    %c0_79 = arith.constant 0 : index
    %c4 = arith.constant 4 : index
    %c0_80 = arith.constant 0 : index
    %c0_81 = arith.constant 0 : index
    %76 = vector.load %arg2[%c0_79, %c4, %c0_80, %c0_81] : memref<1x9x48x18xf32, #tpu.memory_space<vmem>>, vector<1x1x48x18xf32>
    %77 = vector.shape_cast %76 : vector<1x1x48x18xf32> to vector<48x18xf32>
    %c0_82 = arith.constant 0 : index
    %c4_83 = arith.constant 4 : index
    %c0_84 = arith.constant 0 : index
    %c0_85 = arith.constant 0 : index
    %78 = vector.load %arg3[%c0_82, %c4_83, %c0_84, %c0_85] : memref<1x9x18x128xf32, #tpu.memory_space<vmem>>, vector<1x1x18x128xf32>
    %79 = vector.shape_cast %78 : vector<1x1x18x128xf32> to vector<18x128xf32>
    %cst_86 = arith.constant dense<0.000000e+00> : vector<48x18xf32>
    %80 = tpu.matmul %77, %1, %cst_86 {dimension_numbers = #tpu.dot_dimension_numbers<[1], [0], [0], [1], [0, 0, 1, 1], [], []>} : vector<48x18xf32>, vector<18x18xf32>, vector<48x18xf32> -> vector<48x18xf32>
    %cst_87 = arith.constant dense<0.000000e+00> : vector<48x128xf32>
    %81 = tpu.matmul %80, %79, %cst_87 {dimension_numbers = #tpu.dot_dimension_numbers<[1], [0], [0], [1], [0, 0, 1, 1], [], []>} : vector<48x18xf32>, vector<18x128xf32>, vector<48x128xf32> -> vector<48x128xf32>
    %82 = arith.addf %66, %81 : vector<48x128xf32>
    %cst_88 = arith.constant dense<0.000000e+00> : vector<48x18xf32>
    %83 = tpu.matmul %77, %3, %cst_88 {dimension_numbers = #tpu.dot_dimension_numbers<[1], [0], [0], [1], [0, 0, 1, 1], [], []>} : vector<48x18xf32>, vector<18x18xf32>, vector<48x18xf32> -> vector<48x18xf32>
    %cst_89 = arith.constant dense<0.000000e+00> : vector<48x128xf32>
    %84 = tpu.matmul %83, %79, %cst_89 {dimension_numbers = #tpu.dot_dimension_numbers<[1], [0], [0], [1], [0, 0, 1, 1], [], []>} : vector<48x18xf32>, vector<18x128xf32>, vector<48x128xf32> -> vector<48x128xf32>
    %85 = arith.addf %69, %84 : vector<48x128xf32>
    %cst_90 = arith.constant dense<0.000000e+00> : vector<48x18xf32>
    %86 = tpu.matmul %77, %5, %cst_90 {dimension_numbers = #tpu.dot_dimension_numbers<[1], [0], [0], [1], [0, 0, 1, 1], [], []>} : vector<48x18xf32>, vector<18x18xf32>, vector<48x18xf32> -> vector<48x18xf32>
    %cst_91 = arith.constant dense<0.000000e+00> : vector<48x128xf32>
    %87 = tpu.matmul %86, %79, %cst_91 {dimension_numbers = #tpu.dot_dimension_numbers<[1], [0], [0], [1], [0, 0, 1, 1], [], []>} : vector<48x18xf32>, vector<18x128xf32>, vector<48x128xf32> -> vector<48x128xf32>
    %88 = arith.addf %72, %87 : vector<48x128xf32>
    %cst_92 = arith.constant dense<0.000000e+00> : vector<48x18xf32>
    %89 = tpu.matmul %77, %7, %cst_92 {dimension_numbers = #tpu.dot_dimension_numbers<[1], [0], [0], [1], [0, 0, 1, 1], [], []>} : vector<48x18xf32>, vector<18x18xf32>, vector<48x18xf32> -> vector<48x18xf32>
    %cst_93 = arith.constant dense<0.000000e+00> : vector<48x128xf32>
    %90 = tpu.matmul %89, %79, %cst_93 {dimension_numbers = #tpu.dot_dimension_numbers<[1], [0], [0], [1], [0, 0, 1, 1], [], []>} : vector<48x18xf32>, vector<18x128xf32>, vector<48x128xf32> -> vector<48x128xf32>
    %91 = arith.addf %75, %90 : vector<48x128xf32>
    %c0_94 = arith.constant 0 : index
    %c5 = arith.constant 5 : index
    %c0_95 = arith.constant 0 : index
    %c0_96 = arith.constant 0 : index
    %92 = vector.load %arg2[%c0_94, %c5, %c0_95, %c0_96] : memref<1x9x48x18xf32, #tpu.memory_space<vmem>>, vector<1x1x48x18xf32>
    %93 = vector.shape_cast %92 : vector<1x1x48x18xf32> to vector<48x18xf32>
    %c0_97 = arith.constant 0 : index
    %c5_98 = arith.constant 5 : index
    %c0_99 = arith.constant 0 : index
    %c0_100 = arith.constant 0 : index
    %94 = vector.load %arg3[%c0_97, %c5_98, %c0_99, %c0_100] : memref<1x9x18x128xf32, #tpu.memory_space<vmem>>, vector<1x1x18x128xf32>
    %95 = vector.shape_cast %94 : vector<1x1x18x128xf32> to vector<18x128xf32>
    %cst_101 = arith.constant dense<0.000000e+00> : vector<48x18xf32>
    %96 = tpu.matmul %93, %1, %cst_101 {dimension_numbers = #tpu.dot_dimension_numbers<[1], [0], [0], [1], [0, 0, 1, 1], [], []>} : vector<48x18xf32>, vector<18x18xf32>, vector<48x18xf32> -> vector<48x18xf32>
    %cst_102 = arith.constant dense<0.000000e+00> : vector<48x128xf32>
    %97 = tpu.matmul %96, %95, %cst_102 {dimension_numbers = #tpu.dot_dimension_numbers<[1], [0], [0], [1], [0, 0, 1, 1], [], []>} : vector<48x18xf32>, vector<18x128xf32>, vector<48x128xf32> -> vector<48x128xf32>
    %98 = arith.addf %82, %97 : vector<48x128xf32>
    %cst_103 = arith.constant dense<0.000000e+00> : vector<48x18xf32>
    %99 = tpu.matmul %93, %3, %cst_103 {dimension_numbers = #tpu.dot_dimension_numbers<[1], [0], [0], [1], [0, 0, 1, 1], [], []>} : vector<48x18xf32>, vector<18x18xf32>, vector<48x18xf32> -> vector<48x18xf32>
    %cst_104 = arith.constant dense<0.000000e+00> : vector<48x128xf32>
    %100 = tpu.matmul %99, %95, %cst_104 {dimension_numbers = #tpu.dot_dimension_numbers<[1], [0], [0], [1], [0, 0, 1, 1], [], []>} : vector<48x18xf32>, vector<18x128xf32>, vector<48x128xf32> -> vector<48x128xf32>
    %101 = arith.addf %85, %100 : vector<48x128xf32>
    %cst_105 = arith.constant dense<0.000000e+00> : vector<48x18xf32>
    %102 = tpu.matmul %93, %5, %cst_105 {dimension_numbers = #tpu.dot_dimension_numbers<[1], [0], [0], [1], [0, 0, 1, 1], [], []>} : vector<48x18xf32>, vector<18x18xf32>, vector<48x18xf32> -> vector<48x18xf32>
    %cst_106 = arith.constant dense<0.000000e+00> : vector<48x128xf32>
    %103 = tpu.matmul %102, %95, %cst_106 {dimension_numbers = #tpu.dot_dimension_numbers<[1], [0], [0], [1], [0, 0, 1, 1], [], []>} : vector<48x18xf32>, vector<18x128xf32>, vector<48x128xf32> -> vector<48x128xf32>
    %104 = arith.addf %88, %103 : vector<48x128xf32>
    %cst_107 = arith.constant dense<0.000000e+00> : vector<48x18xf32>
    %105 = tpu.matmul %93, %7, %cst_107 {dimension_numbers = #tpu.dot_dimension_numbers<[1], [0], [0], [1], [0, 0, 1, 1], [], []>} : vector<48x18xf32>, vector<18x18xf32>, vector<48x18xf32> -> vector<48x18xf32>
    %cst_108 = arith.constant dense<0.000000e+00> : vector<48x128xf32>
    %106 = tpu.matmul %105, %95, %cst_108 {dimension_numbers = #tpu.dot_dimension_numbers<[1], [0], [0], [1], [0, 0, 1, 1], [], []>} : vector<48x18xf32>, vector<18x128xf32>, vector<48x128xf32> -> vector<48x128xf32>
    %107 = arith.addf %91, %106 : vector<48x128xf32>
    %c0_109 = arith.constant 0 : index
    %c6 = arith.constant 6 : index
    %c0_110 = arith.constant 0 : index
    %c0_111 = arith.constant 0 : index
    %108 = vector.load %arg2[%c0_109, %c6, %c0_110, %c0_111] : memref<1x9x48x18xf32, #tpu.memory_space<vmem>>, vector<1x1x48x18xf32>
    %109 = vector.shape_cast %108 : vector<1x1x48x18xf32> to vector<48x18xf32>
    %c0_112 = arith.constant 0 : index
    %c6_113 = arith.constant 6 : index
    %c0_114 = arith.constant 0 : index
    %c0_115 = arith.constant 0 : index
    %110 = vector.load %arg3[%c0_112, %c6_113, %c0_114, %c0_115] : memref<1x9x18x128xf32, #tpu.memory_space<vmem>>, vector<1x1x18x128xf32>
    %111 = vector.shape_cast %110 : vector<1x1x18x128xf32> to vector<18x128xf32>
    %cst_116 = arith.constant dense<0.000000e+00> : vector<48x18xf32>
    %112 = tpu.matmul %109, %1, %cst_116 {dimension_numbers = #tpu.dot_dimension_numbers<[1], [0], [0], [1], [0, 0, 1, 1], [], []>} : vector<48x18xf32>, vector<18x18xf32>, vector<48x18xf32> -> vector<48x18xf32>
    %cst_117 = arith.constant dense<0.000000e+00> : vector<48x128xf32>
    %113 = tpu.matmul %112, %111, %cst_117 {dimension_numbers = #tpu.dot_dimension_numbers<[1], [0], [0], [1], [0, 0, 1, 1], [], []>} : vector<48x18xf32>, vector<18x128xf32>, vector<48x128xf32> -> vector<48x128xf32>
    %114 = arith.addf %98, %113 : vector<48x128xf32>
    %cst_118 = arith.constant dense<0.000000e+00> : vector<48x18xf32>
    %115 = tpu.matmul %109, %3, %cst_118 {dimension_numbers = #tpu.dot_dimension_numbers<[1], [0], [0], [1], [0, 0, 1, 1], [], []>} : vector<48x18xf32>, vector<18x18xf32>, vector<48x18xf32> -> vector<48x18xf32>
    %cst_119 = arith.constant dense<0.000000e+00> : vector<48x128xf32>
    %116 = tpu.matmul %115, %111, %cst_119 {dimension_numbers = #tpu.dot_dimension_numbers<[1], [0], [0], [1], [0, 0, 1, 1], [], []>} : vector<48x18xf32>, vector<18x128xf32>, vector<48x128xf32> -> vector<48x128xf32>
    %117 = arith.addf %101, %116 : vector<48x128xf32>
    %cst_120 = arith.constant dense<0.000000e+00> : vector<48x18xf32>
    %118 = tpu.matmul %109, %5, %cst_120 {dimension_numbers = #tpu.dot_dimension_numbers<[1], [0], [0], [1], [0, 0, 1, 1], [], []>} : vector<48x18xf32>, vector<18x18xf32>, vector<48x18xf32> -> vector<48x18xf32>
    %cst_121 = arith.constant dense<0.000000e+00> : vector<48x128xf32>
    %119 = tpu.matmul %118, %111, %cst_121 {dimension_numbers = #tpu.dot_dimension_numbers<[1], [0], [0], [1], [0, 0, 1, 1], [], []>} : vector<48x18xf32>, vector<18x128xf32>, vector<48x128xf32> -> vector<48x128xf32>
    %120 = arith.addf %104, %119 : vector<48x128xf32>
    %cst_122 = arith.constant dense<0.000000e+00> : vector<48x18xf32>
    %121 = tpu.matmul %109, %7, %cst_122 {dimension_numbers = #tpu.dot_dimension_numbers<[1], [0], [0], [1], [0, 0, 1, 1], [], []>} : vector<48x18xf32>, vector<18x18xf32>, vector<48x18xf32> -> vector<48x18xf32>
    %cst_123 = arith.constant dense<0.000000e+00> : vector<48x128xf32>
    %122 = tpu.matmul %121, %111, %cst_123 {dimension_numbers = #tpu.dot_dimension_numbers<[1], [0], [0], [1], [0, 0, 1, 1], [], []>} : vector<48x18xf32>, vector<18x128xf32>, vector<48x128xf32> -> vector<48x128xf32>
    %123 = arith.addf %107, %122 : vector<48x128xf32>
    %c0_124 = arith.constant 0 : index
    %c7 = arith.constant 7 : index
    %c0_125 = arith.constant 0 : index
    %c0_126 = arith.constant 0 : index
    %124 = vector.load %arg2[%c0_124, %c7, %c0_125, %c0_126] : memref<1x9x48x18xf32, #tpu.memory_space<vmem>>, vector<1x1x48x18xf32>
    %125 = vector.shape_cast %124 : vector<1x1x48x18xf32> to vector<48x18xf32>
    %c0_127 = arith.constant 0 : index
    %c7_128 = arith.constant 7 : index
    %c0_129 = arith.constant 0 : index
    %c0_130 = arith.constant 0 : index
    %126 = vector.load %arg3[%c0_127, %c7_128, %c0_129, %c0_130] : memref<1x9x18x128xf32, #tpu.memory_space<vmem>>, vector<1x1x18x128xf32>
    %127 = vector.shape_cast %126 : vector<1x1x18x128xf32> to vector<18x128xf32>
    %cst_131 = arith.constant dense<0.000000e+00> : vector<48x18xf32>
    %128 = tpu.matmul %125, %1, %cst_131 {dimension_numbers = #tpu.dot_dimension_numbers<[1], [0], [0], [1], [0, 0, 1, 1], [], []>} : vector<48x18xf32>, vector<18x18xf32>, vector<48x18xf32> -> vector<48x18xf32>
    %cst_132 = arith.constant dense<0.000000e+00> : vector<48x128xf32>
    %129 = tpu.matmul %128, %127, %cst_132 {dimension_numbers = #tpu.dot_dimension_numbers<[1], [0], [0], [1], [0, 0, 1, 1], [], []>} : vector<48x18xf32>, vector<18x128xf32>, vector<48x128xf32> -> vector<48x128xf32>
    %130 = arith.addf %114, %129 : vector<48x128xf32>
    %cst_133 = arith.constant dense<0.000000e+00> : vector<48x18xf32>
    %131 = tpu.matmul %125, %3, %cst_133 {dimension_numbers = #tpu.dot_dimension_numbers<[1], [0], [0], [1], [0, 0, 1, 1], [], []>} : vector<48x18xf32>, vector<18x18xf32>, vector<48x18xf32> -> vector<48x18xf32>
    %cst_134 = arith.constant dense<0.000000e+00> : vector<48x128xf32>
    %132 = tpu.matmul %131, %127, %cst_134 {dimension_numbers = #tpu.dot_dimension_numbers<[1], [0], [0], [1], [0, 0, 1, 1], [], []>} : vector<48x18xf32>, vector<18x128xf32>, vector<48x128xf32> -> vector<48x128xf32>
    %133 = arith.addf %117, %132 : vector<48x128xf32>
    %cst_135 = arith.constant dense<0.000000e+00> : vector<48x18xf32>
    %134 = tpu.matmul %125, %5, %cst_135 {dimension_numbers = #tpu.dot_dimension_numbers<[1], [0], [0], [1], [0, 0, 1, 1], [], []>} : vector<48x18xf32>, vector<18x18xf32>, vector<48x18xf32> -> vector<48x18xf32>
    %cst_136 = arith.constant dense<0.000000e+00> : vector<48x128xf32>
    %135 = tpu.matmul %134, %127, %cst_136 {dimension_numbers = #tpu.dot_dimension_numbers<[1], [0], [0], [1], [0, 0, 1, 1], [], []>} : vector<48x18xf32>, vector<18x128xf32>, vector<48x128xf32> -> vector<48x128xf32>
    %136 = arith.addf %120, %135 : vector<48x128xf32>
    %cst_137 = arith.constant dense<0.000000e+00> : vector<48x18xf32>
    %137 = tpu.matmul %125, %7, %cst_137 {dimension_numbers = #tpu.dot_dimension_numbers<[1], [0], [0], [1], [0, 0, 1, 1], [], []>} : vector<48x18xf32>, vector<18x18xf32>, vector<48x18xf32> -> vector<48x18xf32>
    %cst_138 = arith.constant dense<0.000000e+00> : vector<48x128xf32>
    %138 = tpu.matmul %137, %127, %cst_138 {dimension_numbers = #tpu.dot_dimension_numbers<[1], [0], [0], [1], [0, 0, 1, 1], [], []>} : vector<48x18xf32>, vector<18x128xf32>, vector<48x128xf32> -> vector<48x128xf32>
    %139 = arith.addf %123, %138 : vector<48x128xf32>
    %c0_139 = arith.constant 0 : index
    %c8 = arith.constant 8 : index
    %c0_140 = arith.constant 0 : index
    %c0_141 = arith.constant 0 : index
    %140 = vector.load %arg2[%c0_139, %c8, %c0_140, %c0_141] : memref<1x9x48x18xf32, #tpu.memory_space<vmem>>, vector<1x1x48x18xf32>
    %141 = vector.shape_cast %140 : vector<1x1x48x18xf32> to vector<48x18xf32>
    %c0_142 = arith.constant 0 : index
    %c8_143 = arith.constant 8 : index
    %c0_144 = arith.constant 0 : index
    %c0_145 = arith.constant 0 : index
    %142 = vector.load %arg3[%c0_142, %c8_143, %c0_144, %c0_145] : memref<1x9x18x128xf32, #tpu.memory_space<vmem>>, vector<1x1x18x128xf32>
    %143 = vector.shape_cast %142 : vector<1x1x18x128xf32> to vector<18x128xf32>
    %cst_146 = arith.constant dense<0.000000e+00> : vector<48x18xf32>
    %144 = tpu.matmul %141, %1, %cst_146 {dimension_numbers = #tpu.dot_dimension_numbers<[1], [0], [0], [1], [0, 0, 1, 1], [], []>} : vector<48x18xf32>, vector<18x18xf32>, vector<48x18xf32> -> vector<48x18xf32>
    %cst_147 = arith.constant dense<0.000000e+00> : vector<48x128xf32>
    %145 = tpu.matmul %144, %143, %cst_147 {dimension_numbers = #tpu.dot_dimension_numbers<[1], [0], [0], [1], [0, 0, 1, 1], [], []>} : vector<48x18xf32>, vector<18x128xf32>, vector<48x128xf32> -> vector<48x128xf32>
    %146 = arith.addf %130, %145 : vector<48x128xf32>
    %cst_148 = arith.constant dense<0.000000e+00> : vector<48x18xf32>
    %147 = tpu.matmul %141, %3, %cst_148 {dimension_numbers = #tpu.dot_dimension_numbers<[1], [0], [0], [1], [0, 0, 1, 1], [], []>} : vector<48x18xf32>, vector<18x18xf32>, vector<48x18xf32> -> vector<48x18xf32>
    %cst_149 = arith.constant dense<0.000000e+00> : vector<48x128xf32>
    %148 = tpu.matmul %147, %143, %cst_149 {dimension_numbers = #tpu.dot_dimension_numbers<[1], [0], [0], [1], [0, 0, 1, 1], [], []>} : vector<48x18xf32>, vector<18x128xf32>, vector<48x128xf32> -> vector<48x128xf32>
    %149 = arith.addf %133, %148 : vector<48x128xf32>
    %cst_150 = arith.constant dense<0.000000e+00> : vector<48x18xf32>
    %150 = tpu.matmul %141, %5, %cst_150 {dimension_numbers = #tpu.dot_dimension_numbers<[1], [0], [0], [1], [0, 0, 1, 1], [], []>} : vector<48x18xf32>, vector<18x18xf32>, vector<48x18xf32> -> vector<48x18xf32>
    %cst_151 = arith.constant dense<0.000000e+00> : vector<48x128xf32>
    %151 = tpu.matmul %150, %143, %cst_151 {dimension_numbers = #tpu.dot_dimension_numbers<[1], [0], [0], [1], [0, 0, 1, 1], [], []>} : vector<48x18xf32>, vector<18x128xf32>, vector<48x128xf32> -> vector<48x128xf32>
    %152 = arith.addf %136, %151 : vector<48x128xf32>
    %cst_152 = arith.constant dense<0.000000e+00> : vector<48x18xf32>
    %153 = tpu.matmul %141, %7, %cst_152 {dimension_numbers = #tpu.dot_dimension_numbers<[1], [0], [0], [1], [0, 0, 1, 1], [], []>} : vector<48x18xf32>, vector<18x18xf32>, vector<48x18xf32> -> vector<48x18xf32>
    %cst_153 = arith.constant dense<0.000000e+00> : vector<48x128xf32>
    %154 = tpu.matmul %153, %143, %cst_153 {dimension_numbers = #tpu.dot_dimension_numbers<[1], [0], [0], [1], [0, 0, 1, 1], [], []>} : vector<48x18xf32>, vector<18x128xf32>, vector<48x128xf32> -> vector<48x128xf32>
    %155 = arith.addf %139, %154 : vector<48x128xf32>
    %156 = arith.truncf %146 : vector<48x128xf32> to vector<48x128xbf16>
    %c0_154 = arith.constant 0 : index
    %c0_155 = arith.constant 0 : index
    %c0_156 = arith.constant 0 : index
    %c0_157 = arith.constant 0 : index
    %157 = vector.load %arg5[%c0_154, %c0_155, %c0_156, %c0_157] : memref<1x1x48x512xbf16, #tpu.memory_space<vmem>>, vector<1x1x48x128xbf16>
    %158 = vector.shape_cast %157 : vector<1x1x48x128xbf16> to vector<48x128xbf16>
    %159 = vector.shape_cast %156 : vector<48x128xbf16> to vector<1x1x48x128xbf16>
    tpu.vector_store %arg5[%c0_154, %c0_155, %c0_156, %c0_157], %159 {strides = array<i32>} : memref<1x1x48x512xbf16, #tpu.memory_space<vmem>>, vector<1x1x48x128xbf16>,
    %160 = arith.truncf %149 : vector<48x128xf32> to vector<48x128xbf16>
    %c0_158 = arith.constant 0 : index
    %c0_159 = arith.constant 0 : index
    %c0_160 = arith.constant 0 : index
    %c128 = arith.constant 128 : index
    %161 = vector.load %arg5[%c0_158, %c0_159, %c0_160, %c128] : memref<1x1x48x512xbf16, #tpu.memory_space<vmem>>, vector<1x1x48x128xbf16>
    %162 = vector.shape_cast %161 : vector<1x1x48x128xbf16> to vector<48x128xbf16>
    %163 = vector.shape_cast %160 : vector<48x128xbf16> to vector<1x1x48x128xbf16>
    tpu.vector_store %arg5[%c0_158, %c0_159, %c0_160, %c128], %163 {strides = array<i32>} : memref<1x1x48x512xbf16, #tpu.memory_space<vmem>>, vector<1x1x48x128xbf16>,
    %164 = arith.truncf %152 : vector<48x128xf32> to vector<48x128xbf16>
    %c0_161 = arith.constant 0 : index
    %c0_162 = arith.constant 0 : index
    %c0_163 = arith.constant 0 : index
    %c256 = arith.constant 256 : index
    %165 = vector.load %arg5[%c0_161, %c0_162, %c0_163, %c256] : memref<1x1x48x512xbf16, #tpu.memory_space<vmem>>, vector<1x1x48x128xbf16>
    %166 = vector.shape_cast %165 : vector<1x1x48x128xbf16> to vector<48x128xbf16>
    %167 = vector.shape_cast %164 : vector<48x128xbf16> to vector<1x1x48x128xbf16>
    tpu.vector_store %arg5[%c0_161, %c0_162, %c0_163, %c256], %167 {strides = array<i32>} : memref<1x1x48x512xbf16, #tpu.memory_space<vmem>>, vector<1x1x48x128xbf16>,
    %168 = arith.truncf %155 : vector<48x128xf32> to vector<48x128xbf16>
    %c0_164 = arith.constant 0 : index
    %c0_165 = arith.constant 0 : index
    %c0_166 = arith.constant 0 : index
    %c384 = arith.constant 384 : index
    %169 = vector.load %arg5[%c0_164, %c0_165, %c0_166, %c384] : memref<1x1x48x512xbf16, #tpu.memory_space<vmem>>, vector<1x1x48x128xbf16>
    %170 = vector.shape_cast %169 : vector<1x1x48x128xbf16> to vector<48x128xbf16>
    %171 = vector.shape_cast %168 : vector<48x128xbf16> to vector<1x1x48x128xbf16>
    tpu.vector_store %arg5[%c0_164, %c0_165, %c0_166, %c384], %171 {strides = array<i32>} : memref<1x1x48x512xbf16, #tpu.memory_space<vmem>>, vector<1x1x48x128xbf16>,
    return
  }
  func.func @transform_0(%arg0: i32, %arg1: i32) -> (i32, i32, i32, i32) {
    %c0_i32 = arith.constant 0 : i32
    %c0_i32_0 = arith.constant 0 : i32
    %c0_i32_1 = arith.constant 0 : i32
    %c0_i32_2 = arith.constant 0 : i32
    return %arg0, %c0_i32, %c0_i32_0, %c0_i32_1 : i32, i32, i32, i32
  }
  func.func @transform_1(%arg0: i32, %arg1: i32) -> (i32, i32, i32, i32) {
    %c0_i32 = arith.constant 0 : i32
    %c0_i32_0 = arith.constant 0 : i32
    %c0_i32_1 = arith.constant 0 : i32
    %c0_i32_2 = arith.constant 0 : i32
    return %arg0, %c0_i32, %c0_i32_0, %c0_i32_1 : i32, i32, i32, i32
  }
  func.func @transform_2(%arg0: i32, %arg1: i32) -> (i32, i32, i32, i32) {
    %c0_i32 = arith.constant 0 : i32
    %c0_i32_0 = arith.constant 0 : i32
    %c0_i32_1 = arith.constant 0 : i32
    %c0_i32_2 = arith.constant 0 : i32
    return %arg1, %c0_i32, %c0_i32_0, %c0_i32_1 : i32, i32, i32, i32
  }
  func.func @transform_3(%arg0: i32, %arg1: i32) -> (i32, i32, i32, i32) {
    %c0_i32 = arith.constant 0 : i32
    %c0_i32_0 = arith.constant 0 : i32
    %c0_i32_1 = arith.constant 0 : i32
    return %arg0, %arg1, %c0_i32, %c0_i32_0 : i32, i32, i32, i32
  }
}

module attributes {stable_mosaic.version = 11 : i64} {
  func.func @_conv_kernel(%arg0: i32, %arg1: i32, %arg2: i32, %arg3: memref<9x8x4xbf16, #tpu.memory_space<vmem>>, %arg4: memref<1x1x48x4x128xbf16, #tpu.memory_space<vmem>>, %arg5: memref<1x1x23x8x128xf32, #tpu.memory_space<vmem>>) attributes {dimension_semantics = [#tpu.dimension_semantics<parallel>, #tpu.dimension_semantics<parallel>, #tpu.dimension_semantics<arbitrary>], iteration_bounds = array<i64: 5, 2, 2>, scalar_prefetch = 0 : i64, scratch_operands = 0 : i64, tpu.core_type = #tpu.core_type<tc>, window_params = [{pipeline_mode = #tpu.pipeline_mode<synchronous>, transform_indices = @transform_0, window_bounds = array<i64: 9, 8, 4>}, {transform_indices = @transform_1, window_bounds = array<i64: 1, 1, 48, 4, 128>}, {transform_indices = @transform_2, window_bounds = array<i64: 1, 1, 23, 8, 128>}]} {
    %c23_i32 = arith.constant 23 : i32
    %0 = arith.muli %arg2, %c23_i32 : i32
    %cst = arith.constant 0.000000e+00 : f32
    %1 = vector.broadcast %cst : f32 to vector<23x8x46xf32>
    %c0_i32 = arith.constant 0 : i32
    %2 = arith.addi %0, %c0_i32 : i32
    %c0 = arith.constant 0 : index
    %c0_0 = arith.constant 0 : index
    %3 = arith.index_cast %2 : i32 to index
    %c0_1 = arith.constant 0 : index
    %c0_2 = arith.constant 0 : index
    %4 = vector.load %arg4[%c0, %c0_0, %3, %c0_1, %c0_2] : memref<1x1x48x4x128xbf16, #tpu.memory_space<vmem>>, vector<1x1x23x4x46xbf16>
    %5 = vector.shape_cast %4 : vector<1x1x23x4x46xbf16> to vector<23x4x46xbf16>
    %c0_3 = arith.constant 0 : index
    %c0_4 = arith.constant 0 : index
    %c0_5 = arith.constant 0 : index
    %6 = vector.load %arg3[%c0_3, %c0_4, %c0_5] : memref<9x8x4xbf16, #tpu.memory_space<vmem>>, vector<1x8x4xbf16>
    %7 = vector.shape_cast %6 : vector<1x8x4xbf16> to vector<8x4xbf16>
    %8 = vector.shape_cast %7 : vector<8x4xbf16> to vector<1x8x4xbf16>
    %9 = vector.shape_cast %8 : vector<1x8x4xbf16> to vector<1x8x4xbf16>
    %10 = vector.broadcast %9 : vector<1x8x4xbf16> to vector<23x8x4xbf16>
    %cst_6 = arith.constant dense<0.000000e+00> : vector<23x8x46xf32>
    %11 = tpu.matmul %10, %5, %cst_6 {dimension_numbers = #tpu.dot_dimension_numbers<[2], [1], [1], [2], [0, 0, 0, 1, 1, 2], [0], [0]>} : vector<23x8x4xbf16>, vector<23x4x46xbf16>, vector<23x8x46xf32> -> vector<23x8x46xf32>
    %12 = arith.addf %1, %11 : vector<23x8x46xf32>
    %c0_i32_7 = arith.constant 0 : i32
    %13 = arith.addi %0, %c0_i32_7 : i32
    %c0_8 = arith.constant 0 : index
    %c0_9 = arith.constant 0 : index
    %14 = arith.index_cast %13 : i32 to index
    %c0_10 = arith.constant 0 : index
    %c1 = arith.constant 1 : index
    %15 = vector.load %arg4[%c0_8, %c0_9, %14, %c0_10, %c1] : memref<1x1x48x4x128xbf16, #tpu.memory_space<vmem>>, vector<1x1x23x4x46xbf16>
    %16 = vector.shape_cast %15 : vector<1x1x23x4x46xbf16> to vector<23x4x46xbf16>
    %c1_11 = arith.constant 1 : index
    %c0_12 = arith.constant 0 : index
    %c0_13 = arith.constant 0 : index
    %17 = vector.load %arg3[%c1_11, %c0_12, %c0_13] : memref<9x8x4xbf16, #tpu.memory_space<vmem>>, vector<1x8x4xbf16>
    %18 = vector.shape_cast %17 : vector<1x8x4xbf16> to vector<8x4xbf16>
    %19 = vector.shape_cast %18 : vector<8x4xbf16> to vector<1x8x4xbf16>
    %20 = vector.shape_cast %19 : vector<1x8x4xbf16> to vector<1x8x4xbf16>
    %21 = vector.broadcast %20 : vector<1x8x4xbf16> to vector<23x8x4xbf16>
    %cst_14 = arith.constant dense<0.000000e+00> : vector<23x8x46xf32>
    %22 = tpu.matmul %21, %16, %cst_14 {dimension_numbers = #tpu.dot_dimension_numbers<[2], [1], [1], [2], [0, 0, 0, 1, 1, 2], [0], [0]>} : vector<23x8x4xbf16>, vector<23x4x46xbf16>, vector<23x8x46xf32> -> vector<23x8x46xf32>
    %23 = arith.addf %12, %22 : vector<23x8x46xf32>
    %c0_i32_15 = arith.constant 0 : i32
    %24 = arith.addi %0, %c0_i32_15 : i32
    %c0_16 = arith.constant 0 : index
    %c0_17 = arith.constant 0 : index
    %25 = arith.index_cast %24 : i32 to index
    %c0_18 = arith.constant 0 : index
    %c2 = arith.constant 2 : index
    %26 = vector.load %arg4[%c0_16, %c0_17, %25, %c0_18, %c2] : memref<1x1x48x4x128xbf16, #tpu.memory_space<vmem>>, vector<1x1x23x4x46xbf16>
    %27 = vector.shape_cast %26 : vector<1x1x23x4x46xbf16> to vector<23x4x46xbf16>
    %c2_19 = arith.constant 2 : index
    %c0_20 = arith.constant 0 : index
    %c0_21 = arith.constant 0 : index
    %28 = vector.load %arg3[%c2_19, %c0_20, %c0_21] : memref<9x8x4xbf16, #tpu.memory_space<vmem>>, vector<1x8x4xbf16>
    %29 = vector.shape_cast %28 : vector<1x8x4xbf16> to vector<8x4xbf16>
    %30 = vector.shape_cast %29 : vector<8x4xbf16> to vector<1x8x4xbf16>
    %31 = vector.shape_cast %30 : vector<1x8x4xbf16> to vector<1x8x4xbf16>
    %32 = vector.broadcast %31 : vector<1x8x4xbf16> to vector<23x8x4xbf16>
    %cst_22 = arith.constant dense<0.000000e+00> : vector<23x8x46xf32>
    %33 = tpu.matmul %32, %27, %cst_22 {dimension_numbers = #tpu.dot_dimension_numbers<[2], [1], [1], [2], [0, 0, 0, 1, 1, 2], [0], [0]>} : vector<23x8x4xbf16>, vector<23x4x46xbf16>, vector<23x8x46xf32> -> vector<23x8x46xf32>
    %34 = arith.addf %23, %33 : vector<23x8x46xf32>
    %c1_i32 = arith.constant 1 : i32
    %35 = arith.addi %0, %c1_i32 : i32
    %c0_23 = arith.constant 0 : index
    %c0_24 = arith.constant 0 : index
    %36 = arith.index_cast %35 : i32 to index
    %c0_25 = arith.constant 0 : index
    %c0_26 = arith.constant 0 : index
    %37 = vector.load %arg4[%c0_23, %c0_24, %36, %c0_25, %c0_26] : memref<1x1x48x4x128xbf16, #tpu.memory_space<vmem>>, vector<1x1x23x4x46xbf16>
    %38 = vector.shape_cast %37 : vector<1x1x23x4x46xbf16> to vector<23x4x46xbf16>
    %c3 = arith.constant 3 : index
    %c0_27 = arith.constant 0 : index
    %c0_28 = arith.constant 0 : index
    %39 = vector.load %arg3[%c3, %c0_27, %c0_28] : memref<9x8x4xbf16, #tpu.memory_space<vmem>>, vector<1x8x4xbf16>
    %40 = vector.shape_cast %39 : vector<1x8x4xbf16> to vector<8x4xbf16>
    %41 = vector.shape_cast %40 : vector<8x4xbf16> to vector<1x8x4xbf16>
    %42 = vector.shape_cast %41 : vector<1x8x4xbf16> to vector<1x8x4xbf16>
    %43 = vector.broadcast %42 : vector<1x8x4xbf16> to vector<23x8x4xbf16>
    %cst_29 = arith.constant dense<0.000000e+00> : vector<23x8x46xf32>
    %44 = tpu.matmul %43, %38, %cst_29 {dimension_numbers = #tpu.dot_dimension_numbers<[2], [1], [1], [2], [0, 0, 0, 1, 1, 2], [0], [0]>} : vector<23x8x4xbf16>, vector<23x4x46xbf16>, vector<23x8x46xf32> -> vector<23x8x46xf32>
    %45 = arith.addf %34, %44 : vector<23x8x46xf32>
    %c1_i32_30 = arith.constant 1 : i32
    %46 = arith.addi %0, %c1_i32_30 : i32
    %c0_31 = arith.constant 0 : index
    %c0_32 = arith.constant 0 : index
    %47 = arith.index_cast %46 : i32 to index
    %c0_33 = arith.constant 0 : index
    %c1_34 = arith.constant 1 : index
    %48 = vector.load %arg4[%c0_31, %c0_32, %47, %c0_33, %c1_34] : memref<1x1x48x4x128xbf16, #tpu.memory_space<vmem>>, vector<1x1x23x4x46xbf16>
    %49 = vector.shape_cast %48 : vector<1x1x23x4x46xbf16> to vector<23x4x46xbf16>
    %c4 = arith.constant 4 : index
    %c0_35 = arith.constant 0 : index
    %c0_36 = arith.constant 0 : index
    %50 = vector.load %arg3[%c4, %c0_35, %c0_36] : memref<9x8x4xbf16, #tpu.memory_space<vmem>>, vector<1x8x4xbf16>
    %51 = vector.shape_cast %50 : vector<1x8x4xbf16> to vector<8x4xbf16>
    %52 = vector.shape_cast %51 : vector<8x4xbf16> to vector<1x8x4xbf16>
    %53 = vector.shape_cast %52 : vector<1x8x4xbf16> to vector<1x8x4xbf16>
    %54 = vector.broadcast %53 : vector<1x8x4xbf16> to vector<23x8x4xbf16>
    %cst_37 = arith.constant dense<0.000000e+00> : vector<23x8x46xf32>
    %55 = tpu.matmul %54, %49, %cst_37 {dimension_numbers = #tpu.dot_dimension_numbers<[2], [1], [1], [2], [0, 0, 0, 1, 1, 2], [0], [0]>} : vector<23x8x4xbf16>, vector<23x4x46xbf16>, vector<23x8x46xf32> -> vector<23x8x46xf32>
    %56 = arith.addf %45, %55 : vector<23x8x46xf32>
    %c1_i32_38 = arith.constant 1 : i32
    %57 = arith.addi %0, %c1_i32_38 : i32
    %c0_39 = arith.constant 0 : index
    %c0_40 = arith.constant 0 : index
    %58 = arith.index_cast %57 : i32 to index
    %c0_41 = arith.constant 0 : index
    %c2_42 = arith.constant 2 : index
    %59 = vector.load %arg4[%c0_39, %c0_40, %58, %c0_41, %c2_42] : memref<1x1x48x4x128xbf16, #tpu.memory_space<vmem>>, vector<1x1x23x4x46xbf16>
    %60 = vector.shape_cast %59 : vector<1x1x23x4x46xbf16> to vector<23x4x46xbf16>
    %c5 = arith.constant 5 : index
    %c0_43 = arith.constant 0 : index
    %c0_44 = arith.constant 0 : index
    %61 = vector.load %arg3[%c5, %c0_43, %c0_44] : memref<9x8x4xbf16, #tpu.memory_space<vmem>>, vector<1x8x4xbf16>
    %62 = vector.shape_cast %61 : vector<1x8x4xbf16> to vector<8x4xbf16>
    %63 = vector.shape_cast %62 : vector<8x4xbf16> to vector<1x8x4xbf16>
    %64 = vector.shape_cast %63 : vector<1x8x4xbf16> to vector<1x8x4xbf16>
    %65 = vector.broadcast %64 : vector<1x8x4xbf16> to vector<23x8x4xbf16>
    %cst_45 = arith.constant dense<0.000000e+00> : vector<23x8x46xf32>
    %66 = tpu.matmul %65, %60, %cst_45 {dimension_numbers = #tpu.dot_dimension_numbers<[2], [1], [1], [2], [0, 0, 0, 1, 1, 2], [0], [0]>} : vector<23x8x4xbf16>, vector<23x4x46xbf16>, vector<23x8x46xf32> -> vector<23x8x46xf32>
    %67 = arith.addf %56, %66 : vector<23x8x46xf32>
    %c2_i32 = arith.constant 2 : i32
    %68 = arith.addi %0, %c2_i32 : i32
    %c0_46 = arith.constant 0 : index
    %c0_47 = arith.constant 0 : index
    %69 = arith.index_cast %68 : i32 to index
    %c0_48 = arith.constant 0 : index
    %c0_49 = arith.constant 0 : index
    %70 = vector.load %arg4[%c0_46, %c0_47, %69, %c0_48, %c0_49] : memref<1x1x48x4x128xbf16, #tpu.memory_space<vmem>>, vector<1x1x23x4x46xbf16>
    %71 = vector.shape_cast %70 : vector<1x1x23x4x46xbf16> to vector<23x4x46xbf16>
    %c6 = arith.constant 6 : index
    %c0_50 = arith.constant 0 : index
    %c0_51 = arith.constant 0 : index
    %72 = vector.load %arg3[%c6, %c0_50, %c0_51] : memref<9x8x4xbf16, #tpu.memory_space<vmem>>, vector<1x8x4xbf16>
    %73 = vector.shape_cast %72 : vector<1x8x4xbf16> to vector<8x4xbf16>
    %74 = vector.shape_cast %73 : vector<8x4xbf16> to vector<1x8x4xbf16>
    %75 = vector.shape_cast %74 : vector<1x8x4xbf16> to vector<1x8x4xbf16>
    %76 = vector.broadcast %75 : vector<1x8x4xbf16> to vector<23x8x4xbf16>
    %cst_52 = arith.constant dense<0.000000e+00> : vector<23x8x46xf32>
    %77 = tpu.matmul %76, %71, %cst_52 {dimension_numbers = #tpu.dot_dimension_numbers<[2], [1], [1], [2], [0, 0, 0, 1, 1, 2], [0], [0]>} : vector<23x8x4xbf16>, vector<23x4x46xbf16>, vector<23x8x46xf32> -> vector<23x8x46xf32>
    %78 = arith.addf %67, %77 : vector<23x8x46xf32>
    %c2_i32_53 = arith.constant 2 : i32
    %79 = arith.addi %0, %c2_i32_53 : i32
    %c0_54 = arith.constant 0 : index
    %c0_55 = arith.constant 0 : index
    %80 = arith.index_cast %79 : i32 to index
    %c0_56 = arith.constant 0 : index
    %c1_57 = arith.constant 1 : index
    %81 = vector.load %arg4[%c0_54, %c0_55, %80, %c0_56, %c1_57] : memref<1x1x48x4x128xbf16, #tpu.memory_space<vmem>>, vector<1x1x23x4x46xbf16>
    %82 = vector.shape_cast %81 : vector<1x1x23x4x46xbf16> to vector<23x4x46xbf16>
    %c7 = arith.constant 7 : index
    %c0_58 = arith.constant 0 : index
    %c0_59 = arith.constant 0 : index
    %83 = vector.load %arg3[%c7, %c0_58, %c0_59] : memref<9x8x4xbf16, #tpu.memory_space<vmem>>, vector<1x8x4xbf16>
    %84 = vector.shape_cast %83 : vector<1x8x4xbf16> to vector<8x4xbf16>
    %85 = vector.shape_cast %84 : vector<8x4xbf16> to vector<1x8x4xbf16>
    %86 = vector.shape_cast %85 : vector<1x8x4xbf16> to vector<1x8x4xbf16>
    %87 = vector.broadcast %86 : vector<1x8x4xbf16> to vector<23x8x4xbf16>
    %cst_60 = arith.constant dense<0.000000e+00> : vector<23x8x46xf32>
    %88 = tpu.matmul %87, %82, %cst_60 {dimension_numbers = #tpu.dot_dimension_numbers<[2], [1], [1], [2], [0, 0, 0, 1, 1, 2], [0], [0]>} : vector<23x8x4xbf16>, vector<23x4x46xbf16>, vector<23x8x46xf32> -> vector<23x8x46xf32>
    %89 = arith.addf %78, %88 : vector<23x8x46xf32>
    %c2_i32_61 = arith.constant 2 : i32
    %90 = arith.addi %0, %c2_i32_61 : i32
    %c0_62 = arith.constant 0 : index
    %c0_63 = arith.constant 0 : index
    %91 = arith.index_cast %90 : i32 to index
    %c0_64 = arith.constant 0 : index
    %c2_65 = arith.constant 2 : index
    %92 = vector.load %arg4[%c0_62, %c0_63, %91, %c0_64, %c2_65] : memref<1x1x48x4x128xbf16, #tpu.memory_space<vmem>>, vector<1x1x23x4x46xbf16>
    %93 = vector.shape_cast %92 : vector<1x1x23x4x46xbf16> to vector<23x4x46xbf16>
    %c8 = arith.constant 8 : index
    %c0_66 = arith.constant 0 : index
    %c0_67 = arith.constant 0 : index
    %94 = vector.load %arg3[%c8, %c0_66, %c0_67] : memref<9x8x4xbf16, #tpu.memory_space<vmem>>, vector<1x8x4xbf16>
    %95 = vector.shape_cast %94 : vector<1x8x4xbf16> to vector<8x4xbf16>
    %96 = vector.shape_cast %95 : vector<8x4xbf16> to vector<1x8x4xbf16>
    %97 = vector.shape_cast %96 : vector<1x8x4xbf16> to vector<1x8x4xbf16>
    %98 = vector.broadcast %97 : vector<1x8x4xbf16> to vector<23x8x4xbf16>
    %cst_68 = arith.constant dense<0.000000e+00> : vector<23x8x46xf32>
    %99 = tpu.matmul %98, %93, %cst_68 {dimension_numbers = #tpu.dot_dimension_numbers<[2], [1], [1], [2], [0, 0, 0, 1, 1, 2], [0], [0]>} : vector<23x8x4xbf16>, vector<23x4x46xbf16>, vector<23x8x46xf32> -> vector<23x8x46xf32>
    %100 = arith.addf %89, %99 : vector<23x8x46xf32>
    %cst_69 = arith.constant 0.000000e+00 : f32
    %101 = vector.broadcast %cst_69 : f32 to vector<23x8x82xf32>
    %102 = tpu.concatenate %100, %101 in 2 : vector<23x8x46xf32>, vector<23x8x82xf32> -> vector<23x8x128xf32>
    %c0_70 = arith.constant 0 : index
    %c0_71 = arith.constant 0 : index
    %c0_72 = arith.constant 0 : index
    %c0_73 = arith.constant 0 : index
    %c0_74 = arith.constant 0 : index
    %103 = vector.load %arg5[%c0_70, %c0_71, %c0_72, %c0_73, %c0_74] : memref<1x1x23x8x128xf32, #tpu.memory_space<vmem>>, vector<1x1x23x8x128xf32>
    %104 = vector.shape_cast %103 : vector<1x1x23x8x128xf32> to vector<23x8x128xf32>
    %105 = vector.shape_cast %102 : vector<23x8x128xf32> to vector<1x1x23x8x128xf32>
    tpu.vector_store %arg5[%c0_70, %c0_71, %c0_72, %c0_73, %c0_74], %105 {strides = array<i32>} : memref<1x1x23x8x128xf32, #tpu.memory_space<vmem>>, vector<1x1x23x8x128xf32>,
    return
  }
  func.func @transform_0(%arg0: i32, %arg1: i32, %arg2: i32) -> (i32, i32, i32) {
    %c0_i32 = arith.constant 0 : i32
    %c0_i32_0 = arith.constant 0 : i32
    %c0_i32_1 = arith.constant 0 : i32
    %c0_i32_2 = arith.constant 0 : i32
    return %c0_i32, %c0_i32_0, %c0_i32_1 : i32, i32, i32
  }
  func.func @transform_1(%arg0: i32, %arg1: i32, %arg2: i32) -> (i32, i32, i32, i32, i32) {
    %c0_i32 = arith.constant 0 : i32
    %c0_i32_0 = arith.constant 0 : i32
    %c0_i32_1 = arith.constant 0 : i32
    %c0_i32_2 = arith.constant 0 : i32
    return %arg0, %arg1, %c0_i32, %c0_i32_0, %c0_i32_1 : i32, i32, i32, i32, i32
  }
  func.func @transform_2(%arg0: i32, %arg1: i32, %arg2: i32) -> (i32, i32, i32, i32, i32) {
    %c0_i32 = arith.constant 0 : i32
    %c0_i32_0 = arith.constant 0 : i32
    %c0_i32_1 = arith.constant 0 : i32
    return %arg0, %arg1, %arg2, %c0_i32, %c0_i32_0 : i32, i32, i32, i32, i32
  }
}

</mosaic_0001>

<bundles_post_ra>
// kernel: adaptive_angle_conv_forward.2
= control target key start
LH: loop header
LB: loop body
LE: loop exit
PB: predicated region body
PF: predicated region fallthrough
CT: control target
= control target key end

     0   :  { %8 = vsyncpa [#allocation3], 0  ;;  %s13110_s0 = inlined_call_operand.hbm [shape: f32[5,9,48,18], index: 0, kind: input, shape index: {}]   ;;  %s13111_s1 = inlined_call_operand.hbm [shape: f32[5,9,18,128], index: 1, kind: input, shape index: {}]   ;;  %s13112_s2 = inlined_call_operand.vmem [shape: f32[2,4,18,18], index: 2, kind: input, shape index: {}]   ;;  %s13113_s3 = inlined_call_operand.vmem [shape: bf16[5,2,48,512], index: 3, kind: output, shape index: {}]  }
   0x1   :  { %10 = vsyncpa [#allocation3 + $0x1], 0 }
   0x2   :  { %11 = vsyncpa [#allocation5], 0 }
   0x3   :  { %13 = vsyncpa [#allocation5 + $0x1], 0  ;;  %s11596_s12 = smov 0   ;;  %s11598_s13 = smov 0  }
   0x4   :  { %s11600_s14 = smov 0   ;;  %s11602_s15 = smov 0  }
   0x5   :  { %s11604_s16 = smov 0   ;;  %s11606_s17 = smov 0  }
   0x6   :  { %s11608_s18 = smov 0   ;;  %s11610_s19 = smov 0  }
   0x7 LB: > { %s8497_s20 = sadd.s32 4294967295, %s11570_s19   ;;  %s28_s21 = sadd.s32 1, %s11562_s17  ;;  %s11570_s19 = sphi %s11610_s19, %s19_s19   ;;  %s11566_s18 = sphi %s11608_s18, %s13125_s18   ;;  %s11562_s17 = sphi %s11606_s17, %s13124_s17   ;;  %s11558_s16 = sphi %s11604_s16, %s13123_s16   ;;  %s11554_s15 = sphi %s11602_s15, %s13122_s15   ;;  %s11550_s14 = sphi %s11600_s14, %s13121_s14   ;;  %s11546_s13 = sphi %s11598_s13, %s13120_s13   ;;  %s11542_s12 = sphi %s11596_s12, %s13119_s12  }
   0x8   : > { %p29_p0 = scmp.ge.s32.totalorder %s28_s21, 2  ;;  %s31_s22 = sadd.s32 1, %s11566_s18 }
   0x9   : > { %s38_s23 = sadd.s32 1, %s11550_s14  ;;  %p45_p1 = scmp.ne.s32.totalorder %s11550_s14, %s11546_s13 }
   0xa   : > { %s13127_s21 = smov (%p29_p0, %s28_s21), 0  ;;  %s13129_s22 = smov (!%p29_p0, %s31_s22), %s11566_s18 }
   0xb   : > { %p46_p2 = scmp.eq.s32.totalorder %s11570_s19, 0  ;;  %p51_p3 = scmp.ne.s32.totalorder %s11546_s13, %s11542_s12 }
   0xc   : > { %p33_p4 = scmp.ge.s32.totalorder %s13129_s22, 5  ;;  %p52_p5 = scmp.eq.s32.totalorder %s8497_s20, 0 }
   0xd   : > { %p47_p6 = por %p46_p2, %p45_p1  ;;  %p11369_p8 = scmp.lt.s32.totalorder %s11570_s19, 10 }
   0xe   : > { %s13131_s22 = smov (%p33_p4, %s13129_s22), 0  ;;  %p11647_p7 = por %p52_p5, %p51_p3 }
   0xf   : > { %s35_s25 = ssub.s32 %s11566_s18, %s13131_s22  ;;  %s11655_s26 = sand.u32 1, %s11550_s14  }
  0x10   : > { %s13115_s24 = scalar_select %p11647_p7, 1, 0 }
  0x11   : > { %p36_p9 = scmp.eq.s32.totalorder %s35_s25, 0  ;;  %s11349_s27 = smul.u32 432, %s11655_s26 }
  0x12   : > { %p11658_p10 = pnand %p11369_p8, %p47_p6  ;;  %s11350_s30 = smul.u32 6912, %s11566_s18 }
  0x13   : > { %s11663_s29 = scalar_select %p36_p9, %s11550_s14, %s38_s23  }
  0x14   : > { %s159_s4 = scalar_lea.vmem [#allocation2], %s11349_s27  ;;  %s11669_s8 = scalar_lea.hbm %s13110_s0, %s11350_s30 }
  0x15   : > { %s166_s5 = sshll.u32 %s159_s4, 4  ;;  %s156_s9 = scalar_lea.sflag [#allocation3], %s11655_s26  ;;  %s11671_s5 = int_to_ptr.vmem [resolvable:$true] %s166_s5 }
  0x16   : > { %s11440_s10 = scalar_lea.hbm %s11669_s8, 6912  ;;  %p11442_p12 = pneg %p11658_p10 }
  0x17   : > { %p11441_p11 = scmp.ne.s32.totalorder %s11669_s8, %s11440_s10  ;;  %s11445_s20 = scalar_lea.hbm %s13110_s0, 34560 }
  0x18   : > { %p11446_p1 = scmp.lt.u32.totalorder %s11669_s8, %s13110_s0  ;;  %p11447_p2 = scmp.lt.u32.totalorder %s11445_s20, %s11440_s10 }
  0x19   : > { %p11443_p13 = pnand %p11442_p12, %p11441_p11  ;;  %p11449_p4 = scmp.lt.u32.totalorder %s11440_s10, %s11669_s8 }
  0x1a   : > { %p11448_p3 = por %p11447_p2, %p11446_p1 }
  0x1b   : > { %p11444_p0 = pneg %p11443_p13 }
  0x1c   : > { %p11450_p5 = por %p11449_p4, %p11448_p3 }
  0x1e   : > { %p11451_p6 = pnand %p11450_p5, %p11444_p0 }
  0x20   : > { %11454 = shalt.err (!%p11451_p6)
}
  0x21   : > { %s11455_s27 = scalar_lea.vmem %s11671_s5, 6912  ;;  %s11572_s30 = smov [#allocation2]  }
  0x22   : > { %p11456_p8 = scmp.ne.s32.totalorder %s11671_s5, %s11455_s27  ;;  %s11460_s4 = sshll.u32 %s11572_s30, 4  ;;  %s11461_s4 = int_to_ptr.vmem [resolvable:$false] %s11460_s4 }
  0x23   : > { %s11462_s6 = scalar_lea.vmem %s11461_s4, 13824  ;;  %p11463_p13 = scmp.lt.s32.totalorder %s11671_s5, %s11461_s4 }
  0x24   : > { %p11458_p9 = pnand %p11456_p8, %p11442_p12  ;;  %p11464_p1 = scmp.lt.s32.totalorder %s11462_s6, %s11455_s27 }
  0x26   : > { %p11459_p11 = pneg %p11458_p9  ;;  %p11465_p2 = por %p11464_p1, %p11463_p13 }
  0x28   : > { %p11466_p3 = pnand %p11465_p2, %p11459_p11 }
  0x2a   : > { %11469 = shalt.err (!%p11466_p3)
}
  0x2b   : > { %s11573_s7 = smov 128   ;;  %s11574_s10 = smov 8  }
  0x2c   : > { %11365 = dma.hbm_to_vmem [thread:$0]  (!%p11658_p10), %s11669_s8, 6912, %s11671_s5, %s156_s9, %s11573_s7, %s11573_s7, %s11574_s10  }
  0x2d   : > { %p8503_p0 = scmp.ge.s32.totalorder %s11570_s19, 1  ;;  %p203_p4 = scmp.lt.s32.totalorder %s11570_s19, 11 }
  0x2e   : > { %s11351_s11 = smul.u32 216, %s11655_s26  ;;  %s177_s5 = scalar_lea.sflag [#allocation5], %s11655_s26 }
  0x2f   : > { %p11707_p5 = pnand %p8503_p0, %p203_p4  ;;  %s11352_s20 = smul.u32 3456, %s11566_s18 }
  0x30   : > { %s180_s30 = scalar_lea.vmem [#allocation4], %s11351_s11 }
  0x31   : > { %s11715_s27 = scalar_lea.hbm %s13111_s1, %s11352_s20  ;;  %s187_s4 = sshll.u32 %s180_s30, 4  ;;  %s11717_s4 = int_to_ptr.vmem [resolvable:$true] %s187_s4 }
  0x32   : > { %s11470_s8 = scalar_lea.hbm %s11715_s27, 3456  ;;  %s11475_s20 = scalar_lea.hbm %s13111_s1, 17280 }
  0x33   : > { %p11471_p6 = scmp.ne.s32.totalorder %s11715_s27, %s11470_s8  ;;  %p11476_p11 = scmp.lt.u32.totalorder %s11715_s27, %s13111_s1 }
  0x34   : > { %p11477_p13 = scmp.lt.u32.totalorder %s11475_s20, %s11470_s8  ;;  %p11479_p2 = scmp.lt.u32.totalorder %s11470_s8, %s11715_s27 }
  0x35   : > { %p11473_p8 = pnand %p11471_p6, %p11442_p12 }
  0x36   : > { %p11478_p1 = por %p11477_p13, %p11476_p11 }
  0x37   : > { %p11474_p9 = pneg %p11473_p8 }
  0x38   : > { %p11480_p3 = por %p11479_p2, %p11478_p1 }
  0x3a   : > { %p11481_p0 = pnand %p11480_p3, %p11474_p9 }
  0x3c   : > { %11484 = shalt.err (!%p11481_p0)
}
  0x3d   : > { %s11485_s11 = scalar_lea.vmem %s11717_s4, 3456  ;;  %s11575_s30 = smov [#allocation4]  }
  0x3e   : > { %p11486_p4 = scmp.ne.s32.totalorder %s11717_s4, %s11485_s11  ;;  %s11490_s9 = sshll.u32 %s11575_s30, 4  ;;  %s11491_s9 = int_to_ptr.vmem [resolvable:$false] %s11490_s9 }
  0x3f   : > { %s11492_s6 = scalar_lea.vmem %s11491_s9, 6912  ;;  %p11493_p7 = scmp.lt.s32.totalorder %s11717_s4, %s11491_s9 }
  0x40   : > { %p11488_p6 = pnand %p11486_p4, %p11442_p12  ;;  %p11494_p11 = scmp.lt.s32.totalorder %s11492_s6, %s11485_s11 }
  0x42   : > { %p11489_p8 = pneg %p11488_p6  ;;  %p11495_p13 = por %p11494_p11, %p11493_p7 }
  0x44   : > { %p11496_p1 = pnand %p11495_p13, %p11489_p8 }
  0x46   : > { %11499 = shalt.err (!%p11496_p1)
}
  0x47   : > { %11368 = dma.hbm_to_vmem [thread:$0]  (!%p11658_p10), %s11715_s27, 3456, %s11717_s4, %s177_s5, %s11573_s7, %s11573_s7, %s11574_s10  }
  0x48   : > { %207 = sbr.rel (%p11707_p5) target bundleno = 3975 (0xf87), region = 32  ;;  %s209_s8 = sand.u32 (!%p11707_p5), 1, %s11546_s13  }
  0x49   : > { %s11353_s20 = smul.u32 (!%p11707_p5), 432, %s209_s8  ;;  %s210_s23 = scalar_lea.sflag (!%p11707_p5), [#allocation3], %s209_s8 }
  0x4a   : > { %p13118_p7 = scmp.ne.s32.totalorder (!%p11707_p5), %s13115_s24, 0 }
  0x4b   : > { %s11751_s25 = scalar_lea.vmem (!%p11707_p5), [#allocation2], %s11353_s20 }
  0x4f   : > { %11533 = dma.done.wait (%p13118_p7), %s210_s23, 6912  }
  0x50   : > { %11535 = vsyncadd (%p13118_p7), %s210_s23, 4294960384  ;;  %s11354_s26 = smul.u32 216, %s209_s8  ;;  %s219_s28 = scalar_lea.sflag [#allocation5], %s209_s8 }
  0x52   : > { %s11757_s11 = scalar_lea.vmem [#allocation4], %s11354_s26 }
  0x53   : > { %11537 = dma.done.wait (%p13118_p7), %s219_s28, 3456  }
  0x54   : > { %11539 = vsyncadd (%p13118_p7), %s219_s28, 4294963840  ;;  %p259_p10 = scmp.lt.s32.totalorder %s11554_s15, 1  ;;  %vm297_vm0 = vcmask 146432   ;;  %v11778_v3 = vld [vmem:[%s11751_s25] sm:$0xff]  ;;  %vm316_vm1 = vcmask 1041408   ;;  %v11797_v8 = vld [vmem:[%s11751_s25 + $0x8] sm:$0xff] }
  0x55   : > { %9825 = vmatprep.mubr.msk.f32.mxu0 %vm297_vm0, %v11778_v3  ;;  %9795 = vmatprep.mubr.msk.f32.mxu1 %vm297_vm0, %v11778_v3  ;;  %v11804_v10 = vld [vmem:[%s11751_s25 + $0x10] sm:$0xff]  ;;  %v291_v13 = vld [vmem:[%s11751_s25 + $0x18] sm:$0xff]  ;;  %v292_v15 = vld [vmem:[%s11751_s25 + $0x20] sm:$0xff]  ;;  %p264_p12 = scmp.lt.s32.totalorder %s11558_s16, 4 }
  0x56   : > { %s13133_s15 = smov (!%p259_p10, %s11554_s15), 1  ;;  %v293_v18 = vld [vmem:[%s11751_s25 + $0x28] sm:$0xff]  ;;  %v11838_v19 = vld [vmem:[%s11751_s25 + $0x30] sm:$0xff]  ;;  %v11856_v22 = vld [vmem:[%s11751_s25 + $0x38] sm:$0xff] }
  0x57   : > { %s11355_s7 = smul.u32 96, %s13133_s15  ;;  %v11861_v23 = vld [vmem:[%s11751_s25 + $0x40] sm:$0xff]  ;;  %v11873_v24 = vld [vmem:[%s11751_s25 + $0x48] sm:$0xff]  ;;  %v11878_v25 = vld [vmem:[%s11751_s25 + $0x50] sm:$0xff]  ;;  %s13135_s16 = smov (!%p264_p12, %s11558_s16), 4 }
  0x58   : > { %v11891_v26 = vld [vmem:[%s11751_s25 + $0x58] sm:$0xff]  ;;  %v8550_v29 = vld [vmem:[%s11757_s11 + $0x20] sm:$0xff]  ;;  %v11936_v31 = vld [vmem:[%s11757_s11 + $0x28] sm:$0x3]  ;;  %s11356_s24 = smul.u32 24, %s13133_s15 }
  0x59   : > { %s11771_s27 = scalar_lea.vmem %s13112_s2, %s11355_s7  ;;  %v8549_v28 = vld [vmem:[%s11757_s11 + $0x18] sm:$0xff]  ;;  %v294_v32 = vld [vmem:[%s11757_s11] sm:$0xff]  ;;  %v295_v33 = vld [vmem:[%s11757_s11 + $0x8] sm:$0xff]  ;;  %s11357_s4 = smul.u32 48, %s13135_s16 }
  0x5a   : > { %v8509_v0 = vld [vmem:[%s11771_s27 + $0x30] sm:$0xff]  ;;  %v8510_v1 = vld [vmem:[%s11771_s27 + $0x38] sm:$0xff]  ;;  %v273_v4 = vld [vmem:[%s11771_s27] sm:$0xff]  ;;  %v11927_v30 = vpack.c.bf16 %v8550_v29, %v8549_v28  ;;  %v11948_v34 = vpack.c.bf16 %v295_v33, %v294_v32 }
  0x5b   : > { %v11775_v2 = vpack.c.bf16 %v8510_v1, %v8509_v0  ;;  %v11782_v5 = vld [vmem:[%s11771_s27 + $0x40] sm:$0x3]  ;;  %v274_v6 = vld [vmem:[%s11771_s27 + $0x8] sm:$0xff]  ;;  %v11800_v9 = vld [vmem:[%s11771_s27 + $0x10] sm:$0x3]  ;;  %s270_s5 = sadd.s32 %s11357_s4, %s11356_s24 }
  0x5c   : > { %v11790_v7 = vpack.c.bf16 %v274_v6, %v273_v4  ;;  %v8506_v11 = vld [vmem:[%s11771_s27 + $0x18] sm:$0xff]  ;;  %v8507_v12 = vld [vmem:[%s11771_s27 + $0x20] sm:$0xff]  ;;  %v8512_v16 = vld [vmem:[%s11771_s27 + $0x48] sm:$0xff]  ;;  %s8505_s30 = sshll.u32 %s270_s5, 2 }
  0x5d   : > { %10878 = vmatprep.subr.bf16.mxu0 %v11775_v2  ;;  %v11819_v14 = vpack.c.bf16 %v8507_v12, %v8506_v11  ;;  %v8513_v17 = vld [vmem:[%s11771_s27 + $0x50] sm:$0xff]  ;;  %v11842_v20 = vld [vmem:[%s11771_s27 + $0x28] sm:$0x3]  ;;  %v11914_v27 = vld [vmem:[%s11771_s27 + $0x58] sm:$0x3]  ;;  %s13048_s8 = scalar_lea.vmem %s13113_s3, %s8505_s30 }
  0x5e   : > { %10880 = vmatpush3.bf16.msra.mxu0 %v11775_v2  ;;  %10870 = vmatprep.subr.bf16.mxu1 %v11790_v7  ;;  %v11846_v21 = vpack.c.bf16 %v8513_v17, %v8512_v16  ;;  %v11966_v49 = vld [vmem:[%s11757_s11 + $0x10] sm:$0x3]  ;;  %v12108_v32 = vld [vmem:[%s11751_s25 + $0x68] sm:$0xff] }
  0x5f   : > { %9823 = vmatprep.subr.msk.mxu0 %vm316_vm1, %v11782_v5  ;;  %10872 = vmatpush3.bf16.msra.mxu1 %v11790_v7  ;;  %v12111_v33 = vld [vmem:[%s11751_s25 + $0x70] sm:$0xff] }
  0x60   : > { %9793 = vmatprep.subr.msk.mxu1 %vm316_vm1, %v11800_v9 }
  0x62   : > { %9824 = vmatpush3.msk.msra.mxu0 %vm316_vm1, %v11782_v5 }
  0x63   : > { %9826 = vmatmul.mubr.msk.f32.vlgmr.msra.gmra.mrb[0].mxu0 %vm297_vm0, %v11797_v8  ;;  %10886 = vmatprep.subr.bf16.mxu0 %v11790_v7 }
  0x64   : > { %10888 = vmatpush3.bf16.msra.mxu0 %v11790_v7  ;;  %9828 = vmatprep.mubr.msk.f32.mxu0 %vm297_vm0, %v11804_v10 }
  0x65   : > { %9853 = vmatprep.subr.msk.mxu0 %vm316_vm1, %v11800_v9  ;;  %9794 = vmatpush3.msk.msra.mxu1 %vm316_vm1, %v11800_v9 }
  0x66   : > { %9796 = vmatmul.mubr.msk.f32.vlgmr.msra.gmra.mrb[0].mxu1 %vm297_vm0, %v11797_v8  ;;  %10874 = vmatprep.subr.bf16.mxu1 %v11819_v14 }
  0x67   : > { %9829 = vmatmul.mubr.msk.f32.gmra.mrb[2].mxu0 %vm297_vm0, %v291_v13  ;;  %10876 = vmatpush3.bf16.msra.mxu1 %v11819_v14 }
  0x68   : > { %9831 = vmatprep.mubr.msk.f32.mxu0 %vm297_vm0, %v292_v15  ;;  %9854 = vmatpush3.msk.msra.mxu0 %vm316_vm1, %v11800_v9 }
  0x69   : > { %10898 = vmatprep.subr.bf16.mxu0 %v11819_v14  ;;  %9798 = vmatprep.mubr.msk.f32.mxu1 %vm297_vm0, %v11804_v10 }
  0x6a   : > { %9799 = vmatmul.mubr.msk.f32.gmra.mrb[2].mxu1 %vm297_vm0, %v291_v13  ;;  %9808 = vmatprep.subr.msk.mxu1 %vm316_vm1, %v11842_v20 }
  0x6b   : > { %9832 = vmatmul.mubr.msk.f32.gmra.mrb[4].mxu0 %vm297_vm0, %v293_v18  ;;  %9801 = vmatprep.mubr.msk.f32.mxu1 %vm297_vm0, %v292_v15 }
  0x6c   : > { %9855 = vmatprep.mubr.msk.f32.mxu0 %vm297_vm0, %v11838_v19  ;;  %9809 = vmatpush3.msk.msra.mxu1 %vm316_vm1, %v11842_v20 }
  0x6d   : > { %10882 = vmatprep.subr.bf16.mxu1 %v11846_v21 }
  0x6e   : > { %9802 = vmatmul.mubr.msk.f32.gmra.mrb[4].mxu1 %vm297_vm0, %v293_v18 }
  0x6f   : > { %9856 = vmatmul.mubr.msk.f32.vlgmr.msra.gmra.mrb[6].mxu0 %vm297_vm0, %v11856_v22  ;;  %9810 = vmatprep.mubr.msk.f32.mxu1 %vm297_vm0, %v11778_v3 }
  0x70   : > { %10900 = vmatpush3.bf16.msra.mxu0 %v11819_v14  ;;  %9858 = vmatprep.mubr.msk.f32.mxu0 %vm297_vm0, %v11861_v23 }
  0x71   : > { %9898 = vmatprep.subr.msk.mxu0 %vm316_vm1, %v11842_v20 }
  0x72   : > { %9811 = vmatmul.mubr.msk.f32.vlgmr.msra.gmra.mrb[6].mxu1 %vm297_vm0, %v11797_v8 }
  0x73   : > { %9859 = vmatmul.mubr.msk.f32.gmra.mrb[8].mxu0 %vm297_vm0, %v11873_v24  ;;  %9813 = vmatprep.mubr.msk.f32.mxu1 %vm297_vm0, %v11804_v10 }
  0x74   : > { %9861 = vmatprep.mubr.msk.f32.mxu0 %vm297_vm0, %v11878_v25  ;;  %9899 = vmatpush3.msk.msra.mxu0 %vm316_vm1, %v11842_v20 }
  0x75   : > { %10884 = vmatpush3.bf16.msra.mxu1 %v11846_v21  ;;  %10902 = vmatprep.subr.bf16.mxu0 %v11927_v30 }
  0x76   : > { %9814 = vmatmul.mubr.msk.f32.gmra.mrb[8].mxu1 %vm297_vm0, %v291_v13  ;;  %9838 = vmatprep.subr.msk.mxu1 %vm316_vm1, %v11914_v27 }
  0x77   : > { %9862 = vmatmul.mubr.msk.f32.gmra.mrb[10].mxu0 %vm297_vm0, %v11891_v26  ;;  %9816 = vmatprep.mubr.msk.f32.mxu1 %vm297_vm0, %v292_v15 }
  0x78   : > { %9900 = vmatprep.mubr.msk.f32.mxu0 %vm297_vm0, %v11838_v19 }
  0x79   : > { %9839 = vmatpush3.msk.msra.mxu1 %vm316_vm1, %v11914_v27 }
  0x7a   : > { %9817 = vmatmul.mubr.msk.f32.gmra.mrb[10].mxu1 %vm297_vm0, %v293_v18  ;;  %10890 = vmatprep.subr.bf16.mxu1 %v11927_v30 }
  0x7b   : > { %9901 = vmatmul.mubr.msk.f32.vlgmr.msra.gmra.mrb[12].mxu0 %vm297_vm0, %v11856_v22  ;;  %9840 = vmatprep.mubr.msk.f32.mxu1 %vm297_vm0, %v11778_v3 }
  0x7c   : > { %9903 = vmatprep.mubr.msk.f32.mxu0 %vm297_vm0, %v11861_v23  ;;  %10904 = vmatpush3.bf16.msra.mxu0 %v11927_v30 }
  0x7d   : > { %9913 = vmatprep.subr.msk.mxu0 %vm316_vm1, %v11936_v31 }
  0x7e   : > { %9841 = vmatmul.mubr.msk.f32.vlgmr.msra.gmra.mrb[12].mxu1 %vm297_vm0, %v11797_v8 }
  0x7f   : > { %9904 = vmatmul.mubr.msk.f32.gmra.mrb[14].mxu0 %vm297_vm0, %v11873_v24  ;;  %9843 = vmatprep.mubr.msk.f32.mxu1 %vm297_vm0, %v11804_v10 }
  0x80   : > { %9906 = vmatprep.mubr.msk.f32.mxu0 %vm297_vm0, %v11878_v25  ;;  %10892 = vmatpush3.bf16.msra.mxu1 %v11927_v30 }
  0x81   : > { %9868 = vmatprep.subr.msk.mxu1 %vm316_vm1, %v11936_v31  ;;  %9914 = vmatpush3.msk.msra.mxu0 %vm316_vm1, %v11936_v31 }
  0x82   : > { %9844 = vmatmul.mubr.msk.f32.gmra.mrb[14].mxu1 %vm297_vm0, %v291_v13  ;;  %10906 = vmatprep.subr.bf16.mxu0 %v11948_v34 }
  0x83   : > { %9907 = vmatmul.mubr.msk.f32.gmra.mrb[16].mxu0 %vm297_vm0, %v11891_v26  ;;  %9846 = vmatprep.mubr.msk.f32.mxu1 %vm297_vm0, %v292_v15 }
  0x84   : > { %9869 = vmatpush3.msk.msra.mxu1 %vm316_vm1, %v11936_v31 }
  0x85   : > { %10894 = vmatprep.subr.bf16.mxu1 %v11948_v34 }
  0x86   : > { %9847 = vmatmul.mubr.msk.f32.gmra.mrb[16].mxu1 %vm297_vm0, %v293_v18 }
 0x136   : > { %v11952_v35 = vpop.f32.mrb[0].mxu0 }
 0x137   : > { %v11954_v36 = vpop.f32.mrb[1].mxu0 }
 0x139   : > { %v9797_v37 = vpop.f32.mrb[0].mxu1 }
 0x13a   : > { %v11956_v38 = vpop.f32.mrb[2].mxu0  ;;  %v386_v39 = vpop.f32.mrb[1].mxu1 }
 0x13b   : > { %v11958_v40 = vpop.f32.mrb[3].mxu0 }
 0x13d   : > { %v9800_v41 = vpop.f32.mrb[2].mxu1 }
 0x13e   : > { %v11960_v42 = vpop.f32.mrb[4].mxu0  ;;  %v396_v43 = vpop.f32.mrb[3].mxu1 }
 0x13f   : > { %v11962_v44 = vpop.f32.mrb[5].mxu0 }
 0x141   : > { %v9803_v45 = vpop.f32.mrb[4].mxu1 }
 0x142   : > { %v9857_v46 = vpop.f32.mrb[6].mxu0  ;;  %v406_v47 = vpop.f32.mrb[5].mxu1 }
 0x143   : > { %v804_v48 = vpop.f32.mrb[7].mxu0 }
 0x144   : > { %9870 = vmatprep.mubr.msk.f32.mxu1 %vm297_vm0, %v804_v48 }
 0x145   : > { %9871 = vmatmul.mubr.msk.f32.vlgmr.msra.gmra.mrb[18].mxu1 %vm297_vm0, %v9857_v46  ;;  %v9812_v50 = vpop.f32.mrb[6].mxu1 }
 0x146   : > { %v9860_v51 = vpop.f32.mrb[8].mxu0  ;;  %10896 = vmatpush3.bf16.msra.mxu1 %v11948_v34  ;;  %v484_v52 = vpop.f32.mrb[7].mxu1 }
 0x147   : > { %v814_v53 = vpop.f32.mrb[9].mxu0  ;;  %9883 = vmatprep.subr.msk.mxu1 %vm316_vm1, %v11966_v49 }
 0x148   : > { %9873 = vmatprep.mubr.msk.f32.mxu1 %vm297_vm0, %v814_v53  ;;  %v8708_v53 = vld [vmem:[%s11757_s11 + $0x50] sm:$0xff] }
 0x149   : > { %9874 = vmatmul.mubr.msk.f32.gmra.mrb[20].mxu1 %vm297_vm0, %v9860_v51  ;;  %v9815_v54 = vpop.f32.mrb[8].mxu1 }
 0x14a   : > { %v9863_v55 = vpop.f32.mrb[10].mxu0  ;;  %9884 = vmatpush3.msk.msra.mxu1 %vm316_vm1, %v11966_v49  ;;  %v494_v56 = vpop.f32.mrb[9].mxu1 }
 0x14b   : > { %v824_v57 = vpop.f32.mrb[11].mxu0  ;;  %10910 = vmatprep.subr.bf16.mxu1 %v11775_v2 }
 0x14c   : > { %9876 = vmatprep.mubr.msk.f32.mxu1 %vm297_vm0, %v824_v57 }
 0x14d   : > { %9877 = vmatmul.mubr.msk.f32.gmra.mrb[22].mxu1 %vm297_vm0, %v9863_v55  ;;  %v9818_v58 = vpop.f32.mrb[10].mxu1 }
 0x14e   : > { %v9902_v59 = vpop.f32.mrb[12].mxu0  ;;  %9885 = vmatprep.mubr.msk.f32.mxu1 %vm297_vm0, %v386_v39  ;;  %v504_v60 = vpop.f32.mrb[11].mxu1 }
 0x14f   : > { %v1131_v61 = vpop.f32.mrb[13].mxu0 }
 0x150   : > { %9915 = vmatprep.mubr.msk.f32.mxu0 %vm297_vm0, %v1131_v61  ;;  %v12244_v61 = vld [vmem:[%s11751_s25 + $0x98] sm:$0xff] }
 0x151   : > { %9886 = vmatmul.mubr.msk.f32.vlgmr.msra.gmra.mrb[18].mxu1 %vm297_vm0, %v9797_v37  ;;  %9916 = vmatmul.mubr.msk.f32.vlgmr.msra.gmra.mrb[18].mxu0 %vm297_vm0, %v9902_v59  ;;  %v9842_v3 = vpop.f32.mrb[12].mxu1  ;;  %v8644_v37 = vld [vmem:[%s11757_s11 + $0x40] sm:$0x3]  ;;  %v12236_v59 = vld [vmem:[%s11751_s25 + $0x90] sm:$0xff] }
 0x152   : > { %v9905_v62 = vpop.f32.mrb[14].mxu0  ;;  %10908 = vmatpush3.bf16.msra.mxu0 %v11948_v34  ;;  %9888 = vmatprep.mubr.msk.f32.mxu1 %vm297_vm0, %v396_v43  ;;  %v680_v4 = vpop.f32.mrb[13].mxu1 }
 0x153   : > { %v1141_v63 = vpop.f32.mrb[15].mxu0  ;;  %9928 = vmatprep.subr.msk.mxu0 %vm316_vm1, %v11966_v49  ;;  %10912 = vmatpush3.bf16.msra.mxu1 %v11775_v2 }
 0x154   : > { %9918 = vmatprep.mubr.msk.f32.mxu0 %vm297_vm0, %v1141_v63  ;;  %9943 = vmatprep.subr.msk.mxu1 %vm316_vm1, %v11782_v5  ;;  %v12247_v63 = vld [vmem:[%s11751_s25 + $0xa0] sm:$0xff] }
 0x155   : > { %9889 = vmatmul.mubr.msk.f32.gmra.mrb[20].mxu1 %vm297_vm0, %v9800_v41  ;;  %9919 = vmatmul.mubr.msk.f32.gmra.mrb[20].mxu0 %vm297_vm0, %v9905_v62  ;;  %v12051_v6 = vpop.f32.mrb[14].mxu1 }
 0x156   : > { %v9908_v0 = vpop.f32.mrb[16].mxu0  ;;  %9891 = vmatprep.mubr.msk.f32.mxu1 %vm297_vm0, %v406_v47  ;;  %9929 = vmatpush3.msk.msra.mxu0 %vm316_vm1, %v11966_v49  ;;  %v690_v8 = vpop.f32.mrb[15].mxu1 }
 0x157   : > { %v1151_v1 = vpop.f32.mrb[17].mxu0  ;;  %9944 = vmatpush3.msk.msra.mxu1 %vm316_vm1, %v11782_v5  ;;  %10922 = vmatprep.subr.bf16.mxu0 %v11846_v21 }
 0x158   : > { %9921 = vmatprep.mubr.msk.f32.mxu0 %vm297_vm0, %v1151_v1  ;;  %10914 = vmatprep.subr.bf16.mxu1 %v11927_v30  ;;  %v12257_v1 = vld [vmem:[%s11751_s25 + $0xa8] sm:$0xff] }
 0x159   : > { %9892 = vmatmul.mubr.msk.f32.gmra.mrb[22].mxu1 %vm297_vm0, %v9803_v45  ;;  %9922 = vmatmul.mubr.msk.f32.gmra.mrb[22].mxu0 %vm297_vm0, %v9908_v0  ;;  %v12053_v10 = vpop.f32.mrb[16].mxu1 }
 0x15a   : > { %9930 = vmatprep.mubr.msk.f32.mxu0 %vm297_vm0, %v484_v52  ;;  %9945 = vmatprep.mubr.msk.f32.mxu1 %vm297_vm0, %v11838_v19  ;;  %v700_v11 = vpop.f32.mrb[17].mxu1  ;;  %v8707_v52 = vld [vmem:[%s11757_s11 + $0x48] sm:$0xff] }
 0x15d   : > { %9931 = vmatmul.mubr.msk.f32.vlgmr.msra.gmra.mrb[18].mxu0 %vm297_vm0, %v9812_v50  ;;  %9946 = vmatmul.mubr.msk.f32.vlgmr.msra.gmra.mrb[24].mxu1 %vm297_vm0, %v11856_v22 }
 0x15e   : > { %10924 = vmatpush3.bf16.msra.mxu0 %v11846_v21  ;;  %9933 = vmatprep.mubr.msk.f32.mxu0 %vm297_vm0, %v494_v56  ;;  %v12229_v56 = vpack.c.bf16 %v8708_v53, %v8707_v52 }
 0x15f   : > { %9948 = vmatprep.mubr.msk.f32.mxu1 %vm297_vm0, %v11861_v23  ;;  %9988 = vmatprep.subr.msk.mxu0 %vm316_vm1, %v11914_v27 }
 0x160   : > { %10916 = vmatpush3.bf16.msra.mxu1 %v11927_v30 }
 0x161   : > { %9934 = vmatmul.mubr.msk.f32.gmra.mrb[20].mxu0 %vm297_vm0, %v9815_v54  ;;  %9949 = vmatmul.mubr.msk.f32.gmra.mrb[26].mxu1 %vm297_vm0, %v11873_v24 }
 0x162   : > { %9936 = vmatprep.mubr.msk.f32.mxu0 %vm297_vm0, %v504_v60  ;;  %9951 = vmatprep.mubr.msk.f32.mxu1 %vm297_vm0, %v11878_v25 }
 0x163   : > { %9989 = vmatpush3.msk.msra.mxu0 %vm316_vm1, %v11914_v27  ;;  %9958 = vmatprep.subr.msk.mxu1 %vm316_vm1, %v11936_v31 }
 0x164   : > { %9959 = vmatpush3.msk.msra.mxu1 %vm316_vm1, %v11936_v31  ;;  %10926 = vmatprep.subr.bf16.mxu0 %v11927_v30 }
 0x165   : > { %9937 = vmatmul.mubr.msk.f32.gmra.mrb[22].mxu0 %vm297_vm0, %v9818_v58  ;;  %9952 = vmatmul.mubr.msk.f32.gmra.mrb[28].mxu1 %vm297_vm0, %v11891_v26 }
 0x166   : > { %9990 = vmatprep.mubr.msk.f32.mxu0 %vm297_vm0, %v11838_v19  ;;  %10918 = vmatprep.subr.bf16.mxu1 %v11948_v34 }
 0x169   : > { %9991 = vmatmul.mubr.msk.f32.vlgmr.msra.gmra.mrb[24].mxu0 %vm297_vm0, %v11856_v22 }
 0x16a   : > { %9993 = vmatprep.mubr.msk.f32.mxu0 %vm297_vm0, %v11861_v23  ;;  %10928 = vmatpush3.bf16.msra.mxu0 %v11927_v30  ;;  %v8642_v23 = vld [vmem:[%s11757_s11 + $0x30] sm:$0xff] }
 0x16b   : > { %10003 = vmatprep.subr.msk.mxu0 %vm316_vm1, %v11936_v31 }
 0x16d   : > { %9994 = vmatmul.mubr.msk.f32.gmra.mrb[26].mxu0 %vm297_vm0, %v11873_v24  ;;  %v8643_v24 = vld [vmem:[%s11757_s11 + $0x38] sm:$0xff] }
 0x16e   : > { %9996 = vmatprep.mubr.msk.f32.mxu0 %vm297_vm0, %v11878_v25  ;;  %10004 = vmatpush3.msk.msra.mxu0 %vm316_vm1, %v11936_v31  ;;  %v12084_v28 = vpack.c.bf16 %v8643_v24, %v8642_v23  ;;  %v12096_v31 = vld [vmem:[%s11751_s25 + $0x60] sm:$0xff] }
 0x16f   : > { %10930 = vmatprep.subr.bf16.mxu0 %v11948_v34 }
 0x171   : > { %9997 = vmatmul.mubr.msk.f32.gmra.mrb[28].mxu0 %vm297_vm0, %v11891_v26 }
 0x230   : > { %v9947_v12 = vpop.f32.mrb[24].mxu1 }
 0x231   : > { %v1452_v13 = vpop.f32.mrb[25].mxu1 }
 0x232   : > { %9960 = vmatprep.mubr.msk.f32.mxu1 %vm297_vm0, %v1452_v13 }
 0x233   : > { %9961 = vmatmul.mubr.msk.f32.vlgmr.msra.gmra.mrb[30].mxu1 %vm297_vm0, %v9947_v12 }
 0x234   : > { %v9950_v15 = vpop.f32.mrb[26].mxu1  ;;  %10920 = vmatpush3.bf16.msra.mxu1 %v11948_v34 }
 0x235   : > { %v1462_v16 = vpop.f32.mrb[27].mxu1  ;;  %9973 = vmatprep.subr.msk.mxu1 %vm316_vm1, %v11966_v49 }
 0x236   : > { %9963 = vmatprep.mubr.msk.f32.mxu1 %vm297_vm0, %v1462_v16 }
 0x237   : > { %9964 = vmatmul.mubr.msk.f32.gmra.mrb[32].mxu1 %vm297_vm0, %v9950_v15 }
 0x238   : > { %v9953_v17 = vpop.f32.mrb[28].mxu1  ;;  %9974 = vmatpush3.msk.msra.mxu1 %vm316_vm1, %v11966_v49 }
 0x239   : > { %v1472_v18 = vpop.f32.mrb[29].mxu1  ;;  %10934 = vmatprep.subr.bf16.mxu1 %v11790_v7 }
 0x23a   : > { %9966 = vmatprep.mubr.msk.f32.mxu1 %vm297_vm0, %v1472_v18 }
 0x23b   : > { %9967 = vmatmul.mubr.msk.f32.gmra.mrb[34].mxu1 %vm297_vm0, %v9953_v17 }
 0x23c   : > { %9975 = vmatprep.mubr.msk.f32.mxu1 %vm297_vm0, %v11954_v36  ;;  %v9992_v19 = vpop.f32.mrb[24].mxu0  ;;  %v12137_v36 = vld [vmem:[%s11751_s25 + $0x88] sm:$0xff] }
 0x23d   : > { %v1773_v22 = vpop.f32.mrb[25].mxu0 }
 0x23e   : > { %10005 = vmatprep.mubr.msk.f32.mxu0 %vm297_vm0, %v1773_v22 }
 0x23f   : > { %9976 = vmatmul.mubr.msk.f32.vlgmr.msra.gmra.mrb[30].mxu1 %vm297_vm0, %v11952_v35  ;;  %10006 = vmatmul.mubr.msk.f32.vlgmr.msra.gmra.mrb[30].mxu0 %vm297_vm0, %v9992_v19  ;;  %v12126_v35 = vld [vmem:[%s11751_s25 + $0x80] sm:$0xff] }
 0x240   : > { %9978 = vmatprep.mubr.msk.f32.mxu1 %vm297_vm0, %v11958_v40  ;;  %v9995_v25 = vpop.f32.mrb[26].mxu0  ;;  %10932 = vmatpush3.bf16.msra.mxu0 %v11948_v34  ;;  %v12119_v34 = vld [vmem:[%s11751_s25 + $0x78] sm:$0xff] }
 0x241   : > { %v1783_v26 = vpop.f32.mrb[27].mxu0  ;;  %10018 = vmatprep.subr.msk.mxu0 %vm316_vm1, %v11966_v49  ;;  %10936 = vmatpush3.bf16.msra.mxu1 %v11790_v7 }
 0x242   : > { %10008 = vmatprep.mubr.msk.f32.mxu0 %vm297_vm0, %v1783_v26  ;;  %10033 = vmatprep.subr.msk.mxu1 %vm316_vm1, %v11800_v9 }
 0x243   : > { %9979 = vmatmul.mubr.msk.f32.gmra.mrb[32].mxu1 %vm297_vm0, %v11956_v38  ;;  %10009 = vmatmul.mubr.msk.f32.gmra.mrb[32].mxu0 %vm297_vm0, %v9995_v25 }
 0x244   : > { %9981 = vmatprep.mubr.msk.f32.mxu1 %vm297_vm0, %v11962_v44  ;;  %v9998_v29 = vpop.f32.mrb[28].mxu0  ;;  %10019 = vmatpush3.msk.msra.mxu0 %vm316_vm1, %v11966_v49 }
 0x245   : > { %v1793_v30 = vpop.f32.mrb[29].mxu0  ;;  %10034 = vmatpush3.msk.msra.mxu1 %vm316_vm1, %v11800_v9  ;;  %10942 = vmatprep.subr.bf16.mxu0 %v11819_v14 }
 0x246   : > { %10011 = vmatprep.mubr.msk.f32.mxu0 %vm297_vm0, %v1793_v30  ;;  %10938 = vmatprep.subr.bf16.mxu1 %v12084_v28  ;;  %v8773_v30 = vld [vmem:[%s11757_s11 + $0x68] sm:$0xff] }
 0x247   : > { %9982 = vmatmul.mubr.msk.f32.gmra.mrb[34].mxu1 %vm297_vm0, %v11960_v42  ;;  %10012 = vmatmul.mubr.msk.f32.gmra.mrb[34].mxu0 %vm297_vm0, %v9998_v29  ;;  %v8772_v29 = vld [vmem:[%s11757_s11 + $0x60] sm:$0xff] }
 0x248   : > { %10020 = vmatprep.mubr.msk.f32.mxu0 %vm297_vm0, %v680_v4  ;;  %10035 = vmatprep.mubr.msk.f32.mxu1 %vm297_vm0, %v12096_v31  ;;  %v12262_v4 = vld [vmem:[%s11751_s25 + $0xb0] sm:$0xff] }
 0x24b   : > { %10021 = vmatmul.mubr.msk.f32.vlgmr.msra.gmra.mrb[30].mxu0 %vm297_vm0, %v9842_v3  ;;  %10036 = vmatmul.mubr.msk.f32.vlgmr.msra.gmra.mrb[36].mxu1 %vm297_vm0, %v12108_v32 }
 0x24c   : > { %10023 = vmatprep.mubr.msk.f32.mxu0 %vm297_vm0, %v690_v8  ;;  %10944 = vmatpush3.bf16.msra.mxu0 %v11819_v14  ;;  %v12274_v8 = vld [vmem:[%s11751_s25 + $0xb8] sm:$0xff] }
 0x24d   : > { %10038 = vmatprep.mubr.msk.f32.mxu1 %vm297_vm0, %v12111_v33  ;;  %10063 = vmatprep.subr.msk.mxu0 %vm316_vm1, %v11842_v20 }
 0x24e   : > { %10940 = vmatpush3.bf16.msra.mxu1 %v12084_v28 }
 0x24f   : > { %10024 = vmatmul.mubr.msk.f32.gmra.mrb[32].mxu0 %vm297_vm0, %v12051_v6  ;;  %10039 = vmatmul.mubr.msk.f32.gmra.mrb[38].mxu1 %vm297_vm0, %v12119_v34 }
 0x250   : > { %10026 = vmatprep.mubr.msk.f32.mxu0 %vm297_vm0, %v700_v11  ;;  %10041 = vmatprep.mubr.msk.f32.mxu1 %vm297_vm0, %v12126_v35  ;;  %v8709_v11 = vld [vmem:[%s11757_s11 + $0x58] sm:$0x3] }
 0x251   : > { %10064 = vmatpush3.msk.msra.mxu0 %vm316_vm1, %v11842_v20  ;;  %10048 = vmatprep.subr.msk.mxu1 %vm316_vm1, %v8644_v37 }
 0x252   : > { %10946 = vmatprep.subr.bf16.mxu0 %v12084_v28  ;;  %10049 = vmatpush3.msk.msra.mxu1 %vm316_vm1, %v8644_v37 }
 0x253   : > { %10027 = vmatmul.mubr.msk.f32.gmra.mrb[34].mxu0 %vm297_vm0, %v12053_v10  ;;  %10042 = vmatmul.mubr.msk.f32.gmra.mrb[40].mxu1 %vm297_vm0, %v12137_v36 }
 0x254   : > { %10065 = vmatprep.mubr.msk.f32.mxu0 %vm297_vm0, %v12096_v31  ;;  %10950 = vmatprep.subr.bf16.mxu1 %v11775_v2 }
 0x257   : > { %10066 = vmatmul.mubr.msk.f32.vlgmr.msra.gmra.mrb[36].mxu0 %vm297_vm0, %v12108_v32 }
 0x258   : > { %10068 = vmatprep.mubr.msk.f32.mxu0 %vm297_vm0, %v12111_v33  ;;  %10948 = vmatpush3.bf16.msra.mxu0 %v12084_v28 }
 0x259   : > { %10078 = vmatprep.subr.msk.mxu0 %vm316_vm1, %v8644_v37 }
 0x25b   : > { %10069 = vmatmul.mubr.msk.f32.gmra.mrb[38].mxu0 %vm297_vm0, %v12119_v34 }
 0x25c   : > { %10071 = vmatprep.mubr.msk.f32.mxu0 %vm297_vm0, %v12126_v35  ;;  %10079 = vmatpush3.msk.msra.mxu0 %vm316_vm1, %v8644_v37 }
 0x25d   : > { %10958 = vmatprep.subr.bf16.mxu0 %v11846_v21 }
 0x25f   : > { %10072 = vmatmul.mubr.msk.f32.gmra.mrb[40].mxu0 %vm297_vm0, %v12137_v36 }
 0x31e   : > { %v10037_v38 = vpop.f32.mrb[36].mxu1 }
 0x31f   : > { %v2123_v39 = vpop.f32.mrb[37].mxu1 }
 0x320   : > { %10050 = vmatprep.mubr.msk.f32.mxu1 %vm297_vm0, %v2123_v39 }
 0x321   : > { %10051 = vmatmul.mubr.msk.f32.vlgmr.msra.gmra.mrb[18].mxu1 %vm297_vm0, %v10037_v38  ;;  %v12379_v38 = vld [vmem:[%s11751_s25 + $0xc8] sm:$0xff] }
 0x322   : > { %v10040_v40 = vpop.f32.mrb[38].mxu1  ;;  %10952 = vmatpush3.bf16.msra.mxu1 %v11775_v2 }
 0x323   : > { %v2133_v41 = vpop.f32.mrb[39].mxu1  ;;  %10093 = vmatprep.subr.msk.mxu1 %vm316_vm1, %v11782_v5 }
 0x324   : > { %10053 = vmatprep.mubr.msk.f32.mxu1 %vm297_vm0, %v2133_v41  ;;  %v12392_v41 = vld [vmem:[%s11751_s25 + $0xd8] sm:$0xff] }
 0x325   : > { %10054 = vmatmul.mubr.msk.f32.gmra.mrb[20].mxu1 %vm297_vm0, %v10040_v40  ;;  %v12382_v40 = vld [vmem:[%s11751_s25 + $0xd0] sm:$0xff] }
 0x326   : > { %v10043_v42 = vpop.f32.mrb[40].mxu1  ;;  %10094 = vmatpush3.msk.msra.mxu1 %vm316_vm1, %v11782_v5 }
 0x327   : > { %v2143_v43 = vpop.f32.mrb[41].mxu1  ;;  %10954 = vmatprep.subr.bf16.mxu1 %v12084_v28 }
 0x328   : > { %10056 = vmatprep.mubr.msk.f32.mxu1 %vm297_vm0, %v2143_v43  ;;  %v12397_v43 = vld [vmem:[%s11751_s25 + $0xe0] sm:$0xff] }
 0x329   : > { %10057 = vmatmul.mubr.msk.f32.gmra.mrb[22].mxu1 %vm297_vm0, %v10043_v42 }
 0x32a   : > { %v10067_v44 = vpop.f32.mrb[36].mxu0  ;;  %10095 = vmatprep.mubr.msk.f32.mxu1 %vm297_vm0, %v12096_v31 }
 0x32b   : > { %v2340_v45 = vpop.f32.mrb[37].mxu0 }
 0x32c   : > { %10080 = vmatprep.mubr.msk.f32.mxu0 %vm297_vm0, %v2340_v45  ;;  %v12409_v45 = vld [vmem:[%s11751_s25 + $0xe8] sm:$0xff] }
 0x32d   : > { %10081 = vmatmul.mubr.msk.f32.vlgmr.msra.gmra.mrb[18].mxu0 %vm297_vm0, %v10067_v44  ;;  %10096 = vmatmul.mubr.msk.f32.vlgmr.msra.gmra.mrb[42].mxu1 %vm297_vm0, %v12108_v32 }
 0x32e   : > { %v10070_v46 = vpop.f32.mrb[38].mxu0  ;;  %10960 = vmatpush3.bf16.msra.mxu0 %v11846_v21  ;;  %10098 = vmatprep.mubr.msk.f32.mxu1 %vm297_vm0, %v12111_v33 }
 0x32f   : > { %v2350_v47 = vpop.f32.mrb[39].mxu0  ;;  %10123 = vmatprep.subr.msk.mxu0 %vm316_vm1, %v11914_v27  ;;  %10956 = vmatpush3.bf16.msra.mxu1 %v12084_v28 }
 0x330   : > { %10083 = vmatprep.mubr.msk.f32.mxu0 %vm297_vm0, %v2350_v47  ;;  %10108 = vmatprep.subr.msk.mxu1 %vm316_vm1, %v8644_v37 }
 0x331   : > { %10084 = vmatmul.mubr.msk.f32.gmra.mrb[20].mxu0 %vm297_vm0, %v10070_v46  ;;  %10099 = vmatmul.mubr.msk.f32.gmra.mrb[44].mxu1 %vm297_vm0, %v12119_v34 }
 0x332   : > { %v10073_v48 = vpop.f32.mrb[40].mxu0  ;;  %10101 = vmatprep.mubr.msk.f32.mxu1 %vm297_vm0, %v12126_v35  ;;  %10124 = vmatpush3.msk.msra.mxu0 %vm316_vm1, %v11914_v27 }
 0x333   : > { %v2360_v49 = vpop.f32.mrb[41].mxu0  ;;  %10109 = vmatpush3.msk.msra.mxu1 %vm316_vm1, %v8644_v37  ;;  %10962 = vmatprep.subr.bf16.mxu0 %v12084_v28 }
 0x334   : > { %10086 = vmatprep.mubr.msk.f32.mxu0 %vm297_vm0, %v2360_v49  ;;  %10966 = vmatprep.subr.bf16.mxu1 %v11790_v7 }
 0x335   : > { %10087 = vmatmul.mubr.msk.f32.gmra.mrb[22].mxu0 %vm297_vm0, %v10073_v48  ;;  %10102 = vmatmul.mubr.msk.f32.gmra.mrb[46].mxu1 %vm297_vm0, %v12137_v36 }
 0x336   : > { %10125 = vmatprep.mubr.msk.f32.mxu0 %vm297_vm0, %v12096_v31 }
 0x339   : > { %10126 = vmatmul.mubr.msk.f32.vlgmr.msra.gmra.mrb[42].mxu0 %vm297_vm0, %v12108_v32 }
 0x33a   : > { %10128 = vmatprep.mubr.msk.f32.mxu0 %vm297_vm0, %v12111_v33  ;;  %10964 = vmatpush3.bf16.msra.mxu0 %v12084_v28  ;;  %v12364_v33 = vpack.c.bf16 %v8773_v30, %v8772_v29 }
 0x33b   : > { %10138 = vmatprep.subr.msk.mxu0 %vm316_vm1, %v8644_v37 }
 0x33d   : > { %10129 = vmatmul.mubr.msk.f32.gmra.mrb[44].mxu0 %vm297_vm0, %v12119_v34 }
 0x33e   : > { %10131 = vmatprep.mubr.msk.f32.mxu0 %vm297_vm0, %v12126_v35  ;;  %10139 = vmatpush3.msk.msra.mxu0 %vm316_vm1, %v8644_v37 }
 0x33f   : > { %10974 = vmatprep.subr.bf16.mxu0 %v11819_v14 }
 0x341   : > { %10132 = vmatmul.mubr.msk.f32.gmra.mrb[46].mxu0 %vm297_vm0, %v12137_v36  ;;  %v12371_v36 = vld [vmem:[%s11751_s25 + $0xc0] sm:$0xff] }
 0x400   : > { %v10097_v50 = vpop.f32.mrb[42].mxu1 }
 0x401   : > { %v2554_v51 = vpop.f32.mrb[43].mxu1 }
 0x402   : > { %10110 = vmatprep.mubr.msk.f32.mxu1 %vm297_vm0, %v2554_v51  ;;  %v12440_v51 = vld [vmem:[%s11771_s27 + $0x40] sm:$0x3] }
 0x403   : > { %10111 = vmatmul.mubr.msk.f32.vlgmr.msra.gmra.mrb[30].mxu1 %vm297_vm0, %v10097_v50 }
 0x404   : > { %v10100_v54 = vpop.f32.mrb[44].mxu1  ;;  %10968 = vmatpush3.bf16.msra.mxu1 %v11790_v7 }
 0x405   : > { %v2564_v55 = vpop.f32.mrb[45].mxu1  ;;  %10153 = vmatprep.subr.msk.mxu1 %vm316_vm1, %v11800_v9 }
 0x406   : > { %10113 = vmatprep.mubr.msk.f32.mxu1 %vm297_vm0, %v2564_v55 }
 0x407   : > { %10114 = vmatmul.mubr.msk.f32.gmra.mrb[32].mxu1 %vm297_vm0, %v10100_v54 }
 0x408   : > { %v10103_v57 = vpop.f32.mrb[46].mxu1  ;;  %10154 = vmatpush3.msk.msra.mxu1 %vm316_vm1, %v11800_v9 }
 0x409   : > { %v2574_v58 = vpop.f32.mrb[47].mxu1  ;;  %10970 = vmatprep.subr.bf16.mxu1 %v12229_v56 }
 0x40a   : > { %10116 = vmatprep.mubr.msk.f32.mxu1 %vm297_vm0, %v2574_v58 }
 0x40b   : > { %10117 = vmatmul.mubr.msk.f32.gmra.mrb[34].mxu1 %vm297_vm0, %v10103_v57 }
 0x40c   : > { %v10127_v60 = vpop.f32.mrb[42].mxu0  ;;  %10155 = vmatprep.mubr.msk.f32.mxu1 %vm297_vm0, %v12236_v59 }
 0x40d   : > { %v2768_v62 = vpop.f32.mrb[43].mxu0 }
 0x40e   : > { %10140 = vmatprep.mubr.msk.f32.mxu0 %vm297_vm0, %v2768_v62  ;;  %v8838_v62 = vld [vmem:[%s11757_s11 + $0x80] sm:$0xff] }
 0x40f   : > { %10141 = vmatmul.mubr.msk.f32.vlgmr.msra.gmra.mrb[30].mxu0 %vm297_vm0, %v10127_v60  ;;  %10156 = vmatmul.mubr.msk.f32.vlgmr.msra.gmra.mrb[48].mxu1 %vm297_vm0, %v12244_v61 }
 0x410   : > { %v10130_v0 = vpop.f32.mrb[44].mxu0  ;;  %10976 = vmatpush3.bf16.msra.mxu0 %v11819_v14  ;;  %10158 = vmatprep.mubr.msk.f32.mxu1 %vm297_vm0, %v12247_v63 }
 0x411   : > { %v2778_v3 = vpop.f32.mrb[45].mxu0  ;;  %10183 = vmatprep.subr.msk.mxu0 %vm316_vm1, %v11842_v20  ;;  %10972 = vmatpush3.bf16.msra.mxu1 %v12229_v56 }
 0x412   : > { %10143 = vmatprep.mubr.msk.f32.mxu0 %vm297_vm0, %v2778_v3  ;;  %10168 = vmatprep.subr.msk.mxu1 %vm316_vm1, %v8709_v11 }
 0x413   : > { %10144 = vmatmul.mubr.msk.f32.gmra.mrb[32].mxu0 %vm297_vm0, %v10130_v0  ;;  %10159 = vmatmul.mubr.msk.f32.gmra.mrb[50].mxu1 %vm297_vm0, %v12257_v1 }
 0x414   : > { %v10133_v6 = vpop.f32.mrb[46].mxu0  ;;  %10161 = vmatprep.mubr.msk.f32.mxu1 %vm297_vm0, %v12262_v4  ;;  %10184 = vmatpush3.msk.msra.mxu0 %vm316_vm1, %v11842_v20 }
 0x415   : > { %v2788_v10 = vpop.f32.mrb[47].mxu0  ;;  %10978 = vmatprep.subr.bf16.mxu0 %v12229_v56  ;;  %10169 = vmatpush3.msk.msra.mxu1 %vm316_vm1, %v8709_v11 }
 0x416   : > { %10146 = vmatprep.mubr.msk.f32.mxu0 %vm297_vm0, %v2788_v10  ;;  %10982 = vmatprep.subr.bf16.mxu1 %v11775_v2 }
 0x417   : > { %10147 = vmatmul.mubr.msk.f32.gmra.mrb[34].mxu0 %vm297_vm0, %v10133_v6  ;;  %10162 = vmatmul.mubr.msk.f32.gmra.mrb[52].mxu1 %vm297_vm0, %v12274_v8 }
 0x418   : > { %10185 = vmatprep.mubr.msk.f32.mxu0 %vm297_vm0, %v12236_v59 }
 0x41b   : > { %10186 = vmatmul.mubr.msk.f32.vlgmr.msra.gmra.mrb[48].mxu0 %vm297_vm0, %v12244_v61 }
 0x41c   : > { %10188 = vmatprep.mubr.msk.f32.mxu0 %vm297_vm0, %v12247_v63  ;;  %10980 = vmatpush3.bf16.msra.mxu0 %v12229_v56 }
 0x41d   : > { %10198 = vmatprep.subr.msk.mxu0 %vm316_vm1, %v8709_v11 }
 0x41f   : > { %10189 = vmatmul.mubr.msk.f32.gmra.mrb[50].mxu0 %vm297_vm0, %v12257_v1 }
 0x420   : > { %10191 = vmatprep.mubr.msk.f32.mxu0 %vm297_vm0, %v12262_v4  ;;  %10199 = vmatpush3.msk.msra.mxu0 %vm316_vm1, %v8709_v11 }
 0x421   : > { %10990 = vmatprep.subr.bf16.mxu0 %v11846_v21 }
 0x423   : > { %10192 = vmatmul.mubr.msk.f32.gmra.mrb[52].mxu0 %vm297_vm0, %v12274_v8 }
 0x4e2   : > { %v10157_v12 = vpop.f32.mrb[48].mxu1 }
 0x4e3   : > { %v3011_v13 = vpop.f32.mrb[49].mxu1 }
 0x4e4   : > { %10170 = vmatprep.mubr.msk.f32.mxu1 %vm297_vm0, %v3011_v13  ;;  %v12523_v13 = vld [vmem:[%s11751_s25 + $0x100] sm:$0xff] }
 0x4e5   : > { %10171 = vmatmul.mubr.msk.f32.vlgmr.msra.gmra.mrb[18].mxu1 %vm297_vm0, %v10157_v12 }
 0x4e6   : > { %v10160_v15 = vpop.f32.mrb[50].mxu1  ;;  %10984 = vmatpush3.bf16.msra.mxu1 %v11775_v2 }
 0x4e7   : > { %v3021_v16 = vpop.f32.mrb[51].mxu1  ;;  %10213 = vmatprep.subr.msk.mxu1 %vm316_vm1, %v11782_v5 }
 0x4e8   : > { %10173 = vmatprep.mubr.msk.f32.mxu1 %vm297_vm0, %v3021_v16  ;;  %v12533_v16 = vld [vmem:[%s11751_s25 + $0x108] sm:$0xff] }
 0x4e9   : > { %10174 = vmatmul.mubr.msk.f32.gmra.mrb[20].mxu1 %vm297_vm0, %v10160_v15 }
 0x4ea   : > { %v10163_v17 = vpop.f32.mrb[52].mxu1  ;;  %10214 = vmatpush3.msk.msra.mxu1 %vm316_vm1, %v11782_v5 }
 0x4eb   : > { %v3031_v18 = vpop.f32.mrb[53].mxu1  ;;  %10986 = vmatprep.subr.bf16.mxu1 %v12229_v56 }
 0x4ec   : > { %10176 = vmatprep.mubr.msk.f32.mxu1 %vm297_vm0, %v3031_v18  ;;  %v12536_v18 = vld [vmem:[%s11771_s27 + $0x28] sm:$0x3] }
 0x4ed   : > { %10177 = vmatmul.mubr.msk.f32.gmra.mrb[22].mxu1 %vm297_vm0, %v10163_v17 }
 0x4ee   : > { %v10187_v19 = vpop.f32.mrb[48].mxu0  ;;  %10215 = vmatprep.mubr.msk.f32.mxu1 %vm297_vm0, %v12236_v59 }
 0x4ef   : > { %v3228_v22 = vpop.f32.mrb[49].mxu0 }
 0x4f0   : > { %10200 = vmatprep.mubr.msk.f32.mxu0 %vm297_vm0, %v3228_v22 }
 0x4f1   : > { %10201 = vmatmul.mubr.msk.f32.vlgmr.msra.gmra.mrb[18].mxu0 %vm297_vm0, %v10187_v19  ;;  %10216 = vmatmul.mubr.msk.f32.vlgmr.msra.gmra.mrb[54].mxu1 %vm297_vm0, %v12244_v61  ;;  %v12541_v19 = vld [vmem:[%s11751_s25 + $0x110] sm:$0xff] }
 0x4f2   : > { %v10190_v5 = vpop.f32.mrb[50].mxu0  ;;  %10992 = vmatpush3.bf16.msra.mxu0 %v11846_v21  ;;  %10218 = vmatprep.mubr.msk.f32.mxu1 %vm297_vm0, %v12247_v63 }
 0x4f3   : > { %v3238_v23 = vpop.f32.mrb[51].mxu0  ;;  %10243 = vmatprep.subr.msk.mxu0 %vm316_vm1, %v11914_v27  ;;  %10988 = vmatpush3.bf16.msra.mxu1 %v12229_v56 }
 0x4f4   : > { %10203 = vmatprep.mubr.msk.f32.mxu0 %vm297_vm0, %v3238_v23  ;;  %10228 = vmatprep.subr.msk.mxu1 %vm316_vm1, %v8709_v11 }
 0x4f5   : > { %10204 = vmatmul.mubr.msk.f32.gmra.mrb[20].mxu0 %vm297_vm0, %v10190_v5  ;;  %10219 = vmatmul.mubr.msk.f32.gmra.mrb[56].mxu1 %vm297_vm0, %v12257_v1  ;;  %v12553_v5 = vld [vmem:[%s11751_s25 + $0x118] sm:$0xff] }
 0x4f6   : > { %v10193_v24 = vpop.f32.mrb[52].mxu0  ;;  %10221 = vmatprep.mubr.msk.f32.mxu1 %vm297_vm0, %v12262_v4  ;;  %10244 = vmatpush3.msk.msra.mxu0 %vm316_vm1, %v11914_v27 }
 0x4f7   : > { %v3248_v25 = vpop.f32.mrb[53].mxu0  ;;  %10229 = vmatpush3.msk.msra.mxu1 %vm316_vm1, %v8709_v11  ;;  %10994 = vmatprep.subr.bf16.mxu0 %v12229_v56 }
 0x4f8   : > { %10206 = vmatprep.mubr.msk.f32.mxu0 %vm297_vm0, %v3248_v25  ;;  %10998 = vmatprep.subr.bf16.mxu1 %v11790_v7 }
 0x4f9   : > { %10207 = vmatmul.mubr.msk.f32.gmra.mrb[22].mxu0 %vm297_vm0, %v10193_v24  ;;  %10222 = vmatmul.mubr.msk.f32.gmra.mrb[58].mxu1 %vm297_vm0, %v12274_v8  ;;  %v8839_v24 = vld [vmem:[%s11757_s11 + $0x88] sm:$0x3] }
 0x4fa   : > { %10245 = vmatprep.mubr.msk.f32.mxu0 %vm297_vm0, %v12236_v59 }
 0x4fd   : > { %10246 = vmatmul.mubr.msk.f32.vlgmr.msra.gmra.mrb[54].mxu0 %vm297_vm0, %v12244_v61  ;;  %v8837_v61 = vld [vmem:[%s11757_s11 + $0x78] sm:$0xff] }
 0x4fe   : > { %10248 = vmatprep.mubr.msk.f32.mxu0 %vm297_vm0, %v12247_v63  ;;  %10996 = vmatpush3.bf16.msra.mxu0 %v12229_v56  ;;  %v12505_v3 = vpack.c.bf16 %v8838_v62, %v8837_v61 }
 0x4ff   : > { %10258 = vmatprep.subr.msk.mxu0 %vm316_vm1, %v8709_v11 }
 0x501   : > { %10249 = vmatmul.mubr.msk.f32.gmra.mrb[56].mxu0 %vm297_vm0, %v12257_v1  ;;  %v12501_v1 = vld [vmem:[%s11771_s27 + $0x10] sm:$0x3] }
 0x502   : > { %10251 = vmatprep.mubr.msk.f32.mxu0 %vm297_vm0, %v12262_v4  ;;  %10259 = vmatpush3.msk.msra.mxu0 %vm316_vm1, %v8709_v11  ;;  %v12520_v11 = vld [vmem:[%s11751_s25 + $0xf8] sm:$0xff] }
 0x503   : > { %11006 = vmatprep.subr.bf16.mxu0 %v11819_v14 }
 0x505   : > { %10252 = vmatmul.mubr.msk.f32.gmra.mrb[58].mxu0 %vm297_vm0, %v12274_v8  ;;  %v12512_v8 = vld [vmem:[%s11751_s25 + $0xf0] sm:$0xff] }
 0x5c4   : > { %v10217_v26 = vpop.f32.mrb[54].mxu1 }
 0x5c5   : > { %v3442_v28 = vpop.f32.mrb[55].mxu1 }
 0x5c6   : > { %10230 = vmatprep.mubr.msk.f32.mxu1 %vm297_vm0, %v3442_v28 }
 0x5c7   : > { %10231 = vmatmul.mubr.msk.f32.vlgmr.msra.gmra.mrb[30].mxu1 %vm297_vm0, %v10217_v26 }
 0x5c8   : > { %v10220_v31 = vpop.f32.mrb[56].mxu1  ;;  %11000 = vmatpush3.bf16.msra.mxu1 %v11790_v7 }
 0x5c9   : > { %v3452_v32 = vpop.f32.mrb[57].mxu1  ;;  %10273 = vmatprep.subr.msk.mxu1 %vm316_vm1, %v11800_v9 }
 0x5ca   : > { %10233 = vmatprep.mubr.msk.f32.mxu1 %vm297_vm0, %v3452_v32 }
 0x5cb   : > { %10234 = vmatmul.mubr.msk.f32.gmra.mrb[32].mxu1 %vm297_vm0, %v10220_v31 }
 0x5cc   : > { %v10223_v34 = vpop.f32.mrb[58].mxu1  ;;  %10274 = vmatpush3.msk.msra.mxu1 %vm316_vm1, %v11800_v9 }
 0x5cd   : > { %v3462_v35 = vpop.f32.mrb[59].mxu1  ;;  %11002 = vmatprep.subr.bf16.mxu1 %v12364_v33 }
 0x5ce   : > { %10236 = vmatprep.mubr.msk.f32.mxu1 %vm297_vm0, %v3462_v35 }
 0x5cf   : > { %10237 = vmatmul.mubr.msk.f32.gmra.mrb[34].mxu1 %vm297_vm0, %v10223_v34 }
 0x5d0   : > { %v10247_v37 = vpop.f32.mrb[54].mxu0  ;;  %10275 = vmatprep.mubr.msk.f32.mxu1 %vm297_vm0, %v12371_v36 }
 0x5d1   : > { %v3656_v39 = vpop.f32.mrb[55].mxu0 }
 0x5d2   : > { %10260 = vmatprep.mubr.msk.f32.mxu0 %vm297_vm0, %v3656_v39 }
 0x5d3   : > { %10261 = vmatmul.mubr.msk.f32.vlgmr.msra.gmra.mrb[30].mxu0 %vm297_vm0, %v10247_v37  ;;  %10276 = vmatmul.mubr.msk.f32.vlgmr.msra.gmra.mrb[60].mxu1 %vm297_vm0, %v12379_v38 }
 0x5d4   : > { %v10250_v9 = vpop.f32.mrb[56].mxu0  ;;  %11008 = vmatpush3.bf16.msra.mxu0 %v11819_v14  ;;  %10278 = vmatprep.mubr.msk.f32.mxu1 %vm297_vm0, %v12382_v40 }
 0x5d5   : > { %v3666_v42 = vpop.f32.mrb[57].mxu0  ;;  %10303 = vmatprep.subr.msk.mxu0 %vm316_vm1, %v11842_v20  ;;  %11004 = vmatpush3.bf16.msra.mxu1 %v12364_v33 }
 0x5d6   : > { %10263 = vmatprep.mubr.msk.f32.mxu0 %vm297_vm0, %v3666_v42 }
 0x5d7   : > { %10264 = vmatmul.mubr.msk.f32.gmra.mrb[32].mxu0 %vm297_vm0, %v10250_v9  ;;  %10279 = vmatmul.mubr.msk.f32.gmra.mrb[62].mxu1 %vm297_vm0, %v12392_v41  ;;  %v8902_v9 = vld [vmem:[%s11757_s11 + $0x90] sm:$0xff] }
 0x5d8   : > { %v10253_v44 = vpop.f32.mrb[58].mxu0  ;;  %10281 = vmatprep.mubr.msk.f32.mxu1 %vm297_vm0, %v12397_v43  ;;  %10304 = vmatpush3.msk.msra.mxu0 %vm316_vm1, %v11842_v20  ;;  %v8774_v20 = vld [vmem:[%s11757_s11 + $0x70] sm:$0x3] }
 0x5d9   : > { %v3676_v46 = vpop.f32.mrb[59].mxu0  ;;  %11010 = vmatprep.subr.bf16.mxu0 %v12364_v33  ;;  %10288 = vmatprep.subr.msk.mxu1 %vm316_vm1, %v8774_v20 }
 0x5da   : > { %10266 = vmatprep.mubr.msk.f32.mxu0 %vm297_vm0, %v3676_v46  ;;  %10289 = vmatpush3.msk.msra.mxu1 %vm316_vm1, %v8774_v20 }
 0x5db   : > { %10267 = vmatmul.mubr.msk.f32.gmra.mrb[34].mxu0 %vm297_vm0, %v10253_v44  ;;  %10282 = vmatmul.mubr.msk.f32.gmra.mrb[64].mxu1 %vm297_vm0, %v12409_v45 }
 0x5dc   : > { %10305 = vmatprep.mubr.msk.f32.mxu0 %vm297_vm0, %v12371_v36  ;;  %11014 = vmatprep.subr.bf16.mxu1 %v11775_v2 }
 0x5df   : > { %10306 = vmatmul.mubr.msk.f32.vlgmr.msra.gmra.mrb[60].mxu0 %vm297_vm0, %v12379_v38 }
 0x5e0   : > { %10308 = vmatprep.mubr.msk.f32.mxu0 %vm297_vm0, %v12382_v40  ;;  %11012 = vmatpush3.bf16.msra.mxu0 %v12364_v33 }
 0x5e1   : > { %10318 = vmatprep.subr.msk.mxu0 %vm316_vm1, %v8774_v20 }
 0x5e3   : > { %10309 = vmatmul.mubr.msk.f32.gmra.mrb[62].mxu0 %vm297_vm0, %v12392_v41 }
 0x5e4   : > { %10311 = vmatprep.mubr.msk.f32.mxu0 %vm297_vm0, %v12397_v43  ;;  %10319 = vmatpush3.msk.msra.mxu0 %vm316_vm1, %v8774_v20 }
 0x5e5   : > { %11022 = vmatprep.subr.bf16.mxu0 %v11846_v21 }
 0x5e7   : > { %10312 = vmatmul.mubr.msk.f32.gmra.mrb[64].mxu0 %vm297_vm0, %v12409_v45 }
 0x6a6   : > { %v10277_v47 = vpop.f32.mrb[60].mxu1 }
 0x6a7   : > { %v3899_v48 = vpop.f32.mrb[61].mxu1 }
 0x6a8   : > { %10290 = vmatprep.mubr.msk.f32.mxu1 %vm297_vm0, %v3899_v48  ;;  %v12661_v48 = vld [vmem:[%s11751_s25 + $0x128] sm:$0xff] }
 0x6a9   : > { %10291 = vmatmul.mubr.msk.f32.vlgmr.msra.gmra.mrb[18].mxu1 %vm297_vm0, %v10277_v47 }
 0x6aa   : > { %v10280_v49 = vpop.f32.mrb[62].mxu1  ;;  %11016 = vmatpush3.bf16.msra.mxu1 %v11775_v2 }
 0x6ab   : > { %v3909_v50 = vpop.f32.mrb[63].mxu1  ;;  %10333 = vmatprep.subr.msk.mxu1 %vm316_vm1, %v12440_v51 }
 0x6ac   : > { %10293 = vmatprep.mubr.msk.f32.mxu1 %vm297_vm0, %v3909_v50  ;;  %v12664_v50 = vld [vmem:[%s11751_s25 + $0x130] sm:$0xff] }
 0x6ad   : > { %10294 = vmatmul.mubr.msk.f32.gmra.mrb[20].mxu1 %vm297_vm0, %v10280_v49 }
 0x6ae   : > { %v10283_v52 = vpop.f32.mrb[64].mxu1  ;;  %10334 = vmatpush3.msk.msra.mxu1 %vm316_vm1, %v12440_v51 }
 0x6af   : > { %v3919_v53 = vpop.f32.mrb[65].mxu1  ;;  %11018 = vmatprep.subr.bf16.mxu1 %v12364_v33 }
 0x6b0   : > { %10296 = vmatprep.mubr.msk.f32.mxu1 %vm297_vm0, %v3919_v53  ;;  %v12674_v53 = vld [vmem:[%s11751_s25 + $0x138] sm:$0xff] }
 0x6b1   : > { %10297 = vmatmul.mubr.msk.f32.gmra.mrb[22].mxu1 %vm297_vm0, %v10283_v52 }
 0x6b2   : > { %v10307_v54 = vpop.f32.mrb[60].mxu0  ;;  %10335 = vmatprep.mubr.msk.f32.mxu1 %vm297_vm0, %v12371_v36 }
 0x6b3   : > { %v4116_v55 = vpop.f32.mrb[61].mxu0 }
 0x6b4   : > { %10320 = vmatprep.mubr.msk.f32.mxu0 %vm297_vm0, %v4116_v55  ;;  %v12679_v55 = vld [vmem:[%s11751_s25 + $0x140] sm:$0xff] }
 0x6b5   : > { %10321 = vmatmul.mubr.msk.f32.vlgmr.msra.gmra.mrb[18].mxu0 %vm297_vm0, %v10307_v54  ;;  %10336 = vmatmul.mubr.msk.f32.vlgmr.msra.gmra.mrb[66].mxu1 %vm297_vm0, %v12379_v38 }
 0x6b6   : > { %v10310_v56 = vpop.f32.mrb[62].mxu0  ;;  %11024 = vmatpush3.bf16.msra.mxu0 %v11846_v21  ;;  %10338 = vmatprep.mubr.msk.f32.mxu1 %vm297_vm0, %v12382_v40 }
 0x6b7   : > { %v4126_v57 = vpop.f32.mrb[63].mxu0  ;;  %10363 = vmatprep.subr.msk.mxu0 %vm316_vm1, %v11914_v27  ;;  %11020 = vmatpush3.bf16.msra.mxu1 %v12364_v33 }
 0x6b8   : > { %10323 = vmatprep.mubr.msk.f32.mxu0 %vm297_vm0, %v4126_v57  ;;  %10348 = vmatprep.subr.msk.mxu1 %vm316_vm1, %v8774_v20  ;;  %v12691_v57 = vld [vmem:[%s11751_s25 + $0x148] sm:$0xff] }
 0x6b9   : > { %10324 = vmatmul.mubr.msk.f32.gmra.mrb[20].mxu0 %vm297_vm0, %v10310_v56  ;;  %10339 = vmatmul.mubr.msk.f32.gmra.mrb[68].mxu1 %vm297_vm0, %v12392_v41 }
 0x6ba   : > { %v10313_v58 = vpop.f32.mrb[64].mxu0  ;;  %10341 = vmatprep.mubr.msk.f32.mxu1 %vm297_vm0, %v12397_v43  ;;  %10364 = vmatpush3.msk.msra.mxu0 %vm316_vm1, %v11914_v27 }
 0x6bb   : > { %v4136_v59 = vpop.f32.mrb[65].mxu0  ;;  %10349 = vmatpush3.msk.msra.mxu1 %vm316_vm1, %v8774_v20  ;;  %11026 = vmatprep.subr.bf16.mxu0 %v12364_v33 }
 0x6bc   : > { %10326 = vmatprep.mubr.msk.f32.mxu0 %vm297_vm0, %v4136_v59  ;;  %11030 = vmatprep.subr.bf16.mxu1 %v11790_v7  ;;  %v8904_v59 = vld [vmem:[%s11757_s11 + $0xa0] sm:$0x3] }
 0x6bd   : > { %10327 = vmatmul.mubr.msk.f32.gmra.mrb[22].mxu0 %vm297_vm0, %v10313_v58  ;;  %10342 = vmatmul.mubr.msk.f32.gmra.mrb[70].mxu1 %vm297_vm0, %v12409_v45 }
 0x6be   : > { %10365 = vmatprep.mubr.msk.f32.mxu0 %vm297_vm0, %v12371_v36  ;;  %v12602_v36 = vld [vmem:[%s11771_s27 + $0x58] sm:$0x3] }
 0x6c1   : > { %10366 = vmatmul.mubr.msk.f32.vlgmr.msra.gmra.mrb[66].mxu0 %vm297_vm0, %v12379_v38 }
 0x6c2   : > { %10368 = vmatprep.mubr.msk.f32.mxu0 %vm297_vm0, %v12382_v40  ;;  %11028 = vmatpush3.bf16.msra.mxu0 %v12364_v33 }
 0x6c3   : > { %10378 = vmatprep.subr.msk.mxu0 %vm316_vm1, %v8774_v20 }
 0x6c5   : > { %10369 = vmatmul.mubr.msk.f32.gmra.mrb[68].mxu0 %vm297_vm0, %v12392_v41  ;;  %v8903_v41 = vld [vmem:[%s11757_s11 + $0x98] sm:$0xff] }
 0x6c6   : > { %10371 = vmatprep.mubr.msk.f32.mxu0 %vm297_vm0, %v12397_v43  ;;  %10379 = vmatpush3.msk.msra.mxu0 %vm316_vm1, %v8774_v20  ;;  %v12646_v44 = vpack.c.bf16 %v8903_v41, %v8902_v9  ;;  %v12653_v20 = vld [vmem:[%s11751_s25 + $0x120] sm:$0xff] }
 0x6c7   : > { %11038 = vmatprep.subr.bf16.mxu0 %v11819_v14 }
 0x6c9   : > { %10372 = vmatmul.mubr.msk.f32.gmra.mrb[70].mxu0 %vm297_vm0, %v12409_v45 }
 0x788   : > { %v10337_v27 = vpop.f32.mrb[66].mxu1 }
 0x789   : > { %v4330_v60 = vpop.f32.mrb[67].mxu1 }
 0x78a   : > { %10350 = vmatprep.mubr.msk.f32.mxu1 %vm297_vm0, %v4330_v60 }
 0x78b   : > { %10351 = vmatmul.mubr.msk.f32.vlgmr.msra.gmra.mrb[30].mxu1 %vm297_vm0, %v10337_v27 }
 0x78c   : > { %v10340_v63 = vpop.f32.mrb[68].mxu1  ;;  %11032 = vmatpush3.bf16.msra.mxu1 %v11790_v7 }
 0x78d   : > { %v4340_v0 = vpop.f32.mrb[69].mxu1  ;;  %10393 = vmatprep.subr.msk.mxu1 %vm316_vm1, %v12501_v1 }
 0x78e   : > { %10353 = vmatprep.mubr.msk.f32.mxu1 %vm297_vm0, %v4340_v0 }
 0x78f   : > { %10354 = vmatmul.mubr.msk.f32.gmra.mrb[32].mxu1 %vm297_vm0, %v10340_v63 }
 0x790   : > { %v10343_v4 = vpop.f32.mrb[70].mxu1  ;;  %10394 = vmatpush3.msk.msra.mxu1 %vm316_vm1, %v12501_v1 }
 0x791   : > { %v4350_v6 = vpop.f32.mrb[71].mxu1  ;;  %11034 = vmatprep.subr.bf16.mxu1 %v12505_v3 }
 0x792   : > { %10356 = vmatprep.mubr.msk.f32.mxu1 %vm297_vm0, %v4350_v6 }
 0x793   : > { %10357 = vmatmul.mubr.msk.f32.gmra.mrb[34].mxu1 %vm297_vm0, %v10343_v4 }
 0x794   : > { %v10367_v10 = vpop.f32.mrb[66].mxu0  ;;  %10395 = vmatprep.mubr.msk.f32.mxu1 %vm297_vm0, %v12512_v8 }
 0x795   : > { %v4544_v12 = vpop.f32.mrb[67].mxu0 }
 0x796   : > { %10380 = vmatprep.mubr.msk.f32.mxu0 %vm297_vm0, %v4544_v12 }
 0x797   : > { %10381 = vmatmul.mubr.msk.f32.vlgmr.msra.gmra.mrb[30].mxu0 %vm297_vm0, %v10367_v10  ;;  %10396 = vmatmul.mubr.msk.f32.vlgmr.msra.gmra.mrb[72].mxu1 %vm297_vm0, %v12520_v11 }
 0x798   : > { %v10370_v15 = vpop.f32.mrb[68].mxu0  ;;  %11040 = vmatpush3.bf16.msra.mxu0 %v11819_v14  ;;  %10398 = vmatprep.mubr.msk.f32.mxu1 %vm297_vm0, %v12523_v13 }
 0x799   : > { %v4554_v17 = vpop.f32.mrb[69].mxu0  ;;  %10423 = vmatprep.subr.msk.mxu0 %vm316_vm1, %v12536_v18  ;;  %11036 = vmatpush3.bf16.msra.mxu1 %v12505_v3 }
 0x79a   : > { %10383 = vmatprep.mubr.msk.f32.mxu0 %vm297_vm0, %v4554_v17  ;;  %10408 = vmatprep.subr.msk.mxu1 %vm316_vm1, %v8839_v24 }
 0x79b   : > { %10384 = vmatmul.mubr.msk.f32.gmra.mrb[32].mxu0 %vm297_vm0, %v10370_v15  ;;  %10399 = vmatmul.mubr.msk.f32.gmra.mrb[74].mxu1 %vm297_vm0, %v12533_v16  ;;  %v8967_v15 = vld [vmem:[%s11757_s11 + $0xa8] sm:$0xff] }
 0x79c   : > { %v10373_v22 = vpop.f32.mrb[70].mxu0  ;;  %10401 = vmatprep.mubr.msk.f32.mxu1 %vm297_vm0, %v12541_v19  ;;  %10424 = vmatpush3.msk.msra.mxu0 %vm316_vm1, %v12536_v18 }
 0x79d   : > { %v4564_v23 = vpop.f32.mrb[71].mxu0  ;;  %11042 = vmatprep.subr.bf16.mxu0 %v12505_v3  ;;  %10409 = vmatpush3.msk.msra.mxu1 %vm316_vm1, %v8839_v24 }
 0x79e   : > { %10386 = vmatprep.mubr.msk.f32.mxu0 %vm297_vm0, %v4564_v23  ;;  %11046 = vmatprep.subr.bf16.mxu1 %v11775_v2 }
 0x79f   : > { %10387 = vmatmul.mubr.msk.f32.gmra.mrb[34].mxu0 %vm297_vm0, %v10373_v22  ;;  %10402 = vmatmul.mubr.msk.f32.gmra.mrb[76].mxu1 %vm297_vm0, %v12553_v5 }
 0x7a0   : > { %10425 = vmatprep.mubr.msk.f32.mxu0 %vm297_vm0, %v12512_v8 }
 0x7a3   : > { %10426 = vmatmul.mubr.msk.f32.vlgmr.msra.gmra.mrb[72].mxu0 %vm297_vm0, %v12520_v11 }
 0x7a4   : > { %10428 = vmatprep.mubr.msk.f32.mxu0 %vm297_vm0, %v12523_v13  ;;  %11044 = vmatpush3.bf16.msra.mxu0 %v12505_v3 }
 0x7a5   : > { %10438 = vmatprep.subr.msk.mxu0 %vm316_vm1, %v8839_v24 }
 0x7a7   : > { %10429 = vmatmul.mubr.msk.f32.gmra.mrb[74].mxu0 %vm297_vm0, %v12533_v16 }
 0x7a8   : > { %10431 = vmatprep.mubr.msk.f32.mxu0 %vm297_vm0, %v12541_v19  ;;  %10439 = vmatpush3.msk.msra.mxu0 %vm316_vm1, %v8839_v24 }
 0x7a9   : > { %11054 = vmatprep.subr.bf16.mxu0 %v11846_v21 }
 0x7ab   : > { %10432 = vmatmul.mubr.msk.f32.gmra.mrb[76].mxu0 %vm297_vm0, %v12553_v5 }
 0x86a   : > { %v10397_v25 = vpop.f32.mrb[72].mxu1 }
 0x86b   : > { %v4787_v26 = vpop.f32.mrb[73].mxu1 }
 0x86c   : > { %10410 = vmatprep.mubr.msk.f32.mxu1 %vm297_vm0, %v4787_v26  ;;  %v12796_v26 = vld [vmem:[%s11751_s25 + $0x158] sm:$0xff] }
 0x86d   : > { %10411 = vmatmul.mubr.msk.f32.vlgmr.msra.gmra.mrb[18].mxu1 %vm297_vm0, %v10397_v25 }
 0x86e   : > { %v10400_v28 = vpop.f32.mrb[74].mxu1  ;;  %11048 = vmatpush3.bf16.msra.mxu1 %v11775_v2 }
 0x86f   : > { %v4797_v29 = vpop.f32.mrb[75].mxu1  ;;  %10453 = vmatprep.subr.msk.mxu1 %vm316_vm1, %v12440_v51 }
 0x870   : > { %10413 = vmatprep.mubr.msk.f32.mxu1 %vm297_vm0, %v4797_v29  ;;  %v12799_v29 = vld [vmem:[%s11751_s25 + $0x160] sm:$0xff] }
 0x871   : > { %10414 = vmatmul.mubr.msk.f32.gmra.mrb[20].mxu1 %vm297_vm0, %v10400_v28 }
 0x872   : > { %v10403_v30 = vpop.f32.mrb[76].mxu1  ;;  %10454 = vmatpush3.msk.msra.mxu1 %vm316_vm1, %v12440_v51 }
 0x873   : > { %v4807_v31 = vpop.f32.mrb[77].mxu1  ;;  %11050 = vmatprep.subr.bf16.mxu1 %v12505_v3 }
 0x874   : > { %10416 = vmatprep.mubr.msk.f32.mxu1 %vm297_vm0, %v4807_v31  ;;  %v12809_v31 = vld [vmem:[%s11751_s25 + $0x168] sm:$0xff] }
 0x875   : > { %10417 = vmatmul.mubr.msk.f32.gmra.mrb[22].mxu1 %vm297_vm0, %v10403_v30 }
 0x876   : > { %v10427_v32 = vpop.f32.mrb[72].mxu0  ;;  %10455 = vmatprep.mubr.msk.f32.mxu1 %vm297_vm0, %v12512_v8 }
 0x877   : > { %v5004_v33 = vpop.f32.mrb[73].mxu0 }
 0x878   : > { %10440 = vmatprep.mubr.msk.f32.mxu0 %vm297_vm0, %v5004_v33  ;;  %v12814_v33 = vld [vmem:[%s11751_s25 + $0x170] sm:$0xff] }
 0x879   : > { %10441 = vmatmul.mubr.msk.f32.vlgmr.msra.gmra.mrb[18].mxu0 %vm297_vm0, %v10427_v32  ;;  %10456 = vmatmul.mubr.msk.f32.vlgmr.msra.gmra.mrb[78].mxu1 %vm297_vm0, %v12520_v11 }
 0x87a   : > { %v10430_v34 = vpop.f32.mrb[74].mxu0  ;;  %11056 = vmatpush3.bf16.msra.mxu0 %v11846_v21  ;;  %10458 = vmatprep.mubr.msk.f32.mxu1 %vm297_vm0, %v12523_v13 }
 0x87b   : > { %v5014_v35 = vpop.f32.mrb[75].mxu0  ;;  %10483 = vmatprep.subr.msk.mxu0 %vm316_vm1, %v12602_v36  ;;  %11052 = vmatpush3.bf16.msra.mxu1 %v12505_v3 }
 0x87c   : > { %10443 = vmatprep.mubr.msk.f32.mxu0 %vm297_vm0, %v5014_v35  ;;  %10468 = vmatprep.subr.msk.mxu1 %vm316_vm1, %v8839_v24  ;;  %v12826_v35 = vld [vmem:[%s11751_s25 + $0x178] sm:$0xff] }
 0x87d   : > { %10444 = vmatmul.mubr.msk.f32.gmra.mrb[20].mxu0 %vm297_vm0, %v10430_v34  ;;  %10459 = vmatmul.mubr.msk.f32.gmra.mrb[80].mxu1 %vm297_vm0, %v12533_v16 }
 0x87e   : > { %v10433_v37 = vpop.f32.mrb[76].mxu0  ;;  %10461 = vmatprep.mubr.msk.f32.mxu1 %vm297_vm0, %v12541_v19  ;;  %10484 = vmatpush3.msk.msra.mxu0 %vm316_vm1, %v12602_v36 }
 0x87f   : > { %v5024_v38 = vpop.f32.mrb[77].mxu0  ;;  %10469 = vmatpush3.msk.msra.mxu1 %vm316_vm1, %v8839_v24  ;;  %11058 = vmatprep.subr.bf16.mxu0 %v12505_v3 }
 0x880   : > { %10446 = vmatprep.mubr.msk.f32.mxu0 %vm297_vm0, %v5024_v38  ;;  %11062 = vmatprep.subr.bf16.mxu1 %v11790_v7  ;;  %v8969_v38 = vld [vmem:[%s11757_s11 + $0xb8] sm:$0x3] }
 0x881   : > { %10447 = vmatmul.mubr.msk.f32.gmra.mrb[22].mxu0 %vm297_vm0, %v10433_v37  ;;  %10462 = vmatmul.mubr.msk.f32.gmra.mrb[82].mxu1 %vm297_vm0, %v12553_v5 }
 0x882   : > { %10485 = vmatprep.mubr.msk.f32.mxu0 %vm297_vm0, %v12512_v8 }
 0x885   : > { %10486 = vmatmul.mubr.msk.f32.vlgmr.msra.gmra.mrb[78].mxu0 %vm297_vm0, %v12520_v11 }
 0x886   : > { %10488 = vmatprep.mubr.msk.f32.mxu0 %vm297_vm0, %v12523_v13  ;;  %11060 = vmatpush3.bf16.msra.mxu0 %v12505_v3 }
 0x887   : > { %10498 = vmatprep.subr.msk.mxu0 %vm316_vm1, %v8839_v24 }
 0x889   : > { %10489 = vmatmul.mubr.msk.f32.gmra.mrb[80].mxu0 %vm297_vm0, %v12533_v16  ;;  %v8968_v16 = vld [vmem:[%s11757_s11 + $0xb0] sm:$0xff] }
 0x88a   : > { %10491 = vmatprep.mubr.msk.f32.mxu0 %vm297_vm0, %v12541_v19  ;;  %10499 = vmatpush3.msk.msra.mxu0 %vm316_vm1, %v8839_v24  ;;  %v12781_v22 = vpack.c.bf16 %v8968_v16, %v8967_v15  ;;  %v12788_v24 = vld [vmem:[%s11751_s25 + $0x150] sm:$0xff] }
 0x88b   : > { %11070 = vmatprep.subr.bf16.mxu0 %v11819_v14 }
 0x88d   : > { %10492 = vmatmul.mubr.msk.f32.gmra.mrb[82].mxu0 %vm297_vm0, %v12553_v5 }
 0x94c   : > { %v10457_v39 = vpop.f32.mrb[78].mxu1 }
 0x94d   : > { %v5218_v40 = vpop.f32.mrb[79].mxu1 }
 0x94e   : > { %10470 = vmatprep.mubr.msk.f32.mxu1 %vm297_vm0, %v5218_v40 }
 0x94f   : > { %10471 = vmatmul.mubr.msk.f32.vlgmr.msra.gmra.mrb[30].mxu1 %vm297_vm0, %v10457_v39 }
 0x950   : > { %v10460_v42 = vpop.f32.mrb[80].mxu1  ;;  %11064 = vmatpush3.bf16.msra.mxu1 %v11790_v7 }
 0x951   : > { %v5228_v43 = vpop.f32.mrb[81].mxu1  ;;  %10513 = vmatprep.subr.msk.mxu1 %vm316_vm1, %v12501_v1 }
 0x952   : > { %10473 = vmatprep.mubr.msk.f32.mxu1 %vm297_vm0, %v5228_v43 }
 0x953   : > { %10474 = vmatmul.mubr.msk.f32.gmra.mrb[32].mxu1 %vm297_vm0, %v10460_v42 }
 0x954   : > { %v10463_v45 = vpop.f32.mrb[82].mxu1  ;;  %10514 = vmatpush3.msk.msra.mxu1 %vm316_vm1, %v12501_v1 }
 0x955   : > { %v5238_v46 = vpop.f32.mrb[83].mxu1  ;;  %11066 = vmatprep.subr.bf16.mxu1 %v12646_v44 }
 0x956   : > { %10476 = vmatprep.mubr.msk.f32.mxu1 %vm297_vm0, %v5238_v46 }
 0x957   : > { %10477 = vmatmul.mubr.msk.f32.gmra.mrb[34].mxu1 %vm297_vm0, %v10463_v45 }
 0x958   : > { %v10487_v47 = vpop.f32.mrb[78].mxu0  ;;  %10515 = vmatprep.mubr.msk.f32.mxu1 %vm297_vm0, %v12653_v20 }
 0x959   : > { %v5432_v49 = vpop.f32.mrb[79].mxu0 }
 0x95a   : > { %10500 = vmatprep.mubr.msk.f32.mxu0 %vm297_vm0, %v5432_v49 }
 0x95b   : > { %10501 = vmatmul.mubr.msk.f32.vlgmr.msra.gmra.mrb[30].mxu0 %vm297_vm0, %v10487_v47  ;;  %10516 = vmatmul.mubr.msk.f32.vlgmr.msra.gmra.mrb[84].mxu1 %vm297_vm0, %v12661_v48 }
 0x95c   : > { %v10490_v52 = vpop.f32.mrb[80].mxu0  ;;  %11072 = vmatpush3.bf16.msra.mxu0 %v11819_v14  ;;  %10518 = vmatprep.mubr.msk.f32.mxu1 %vm297_vm0, %v12664_v50 }
 0x95d   : > { %v5442_v54 = vpop.f32.mrb[81].mxu0  ;;  %10543 = vmatprep.subr.msk.mxu0 %vm316_vm1, %v12536_v18  ;;  %11068 = vmatpush3.bf16.msra.mxu1 %v12646_v44 }
 0x95e   : > { %10503 = vmatprep.mubr.msk.f32.mxu0 %vm297_vm0, %v5442_v54  ;;  %10528 = vmatprep.subr.msk.mxu1 %vm316_vm1, %v8904_v59 }
 0x95f   : > { %10504 = vmatmul.mubr.msk.f32.gmra.mrb[32].mxu0 %vm297_vm0, %v10490_v52  ;;  %10519 = vmatmul.mubr.msk.f32.gmra.mrb[86].mxu1 %vm297_vm0, %v12674_v53  ;;  %v9032_v52 = vld [vmem:[%s11757_s11 + $0xc0] sm:$0xff] }
 0x960   : > { %v10493_v56 = vpop.f32.mrb[82].mxu0  ;;  %10521 = vmatprep.mubr.msk.f32.mxu1 %vm297_vm0, %v12679_v55  ;;  %10544 = vmatpush3.msk.msra.mxu0 %vm316_vm1, %v12536_v18 }
 0x961   : > { %v5452_v58 = vpop.f32.mrb[83].mxu0  ;;  %11074 = vmatprep.subr.bf16.mxu0 %v12646_v44  ;;  %10529 = vmatpush3.msk.msra.mxu1 %vm316_vm1, %v8904_v59 }
 0x962   : > { %10506 = vmatprep.mubr.msk.f32.mxu0 %vm297_vm0, %v5452_v58  ;;  %11078 = vmatprep.subr.bf16.mxu1 %v11775_v2 }
 0x963   : > { %10507 = vmatmul.mubr.msk.f32.gmra.mrb[34].mxu0 %vm297_vm0, %v10493_v56  ;;  %10522 = vmatmul.mubr.msk.f32.gmra.mrb[88].mxu1 %vm297_vm0, %v12691_v57 }
 0x964   : > { %10545 = vmatprep.mubr.msk.f32.mxu0 %vm297_vm0, %v12653_v20 }
 0x967   : > { %10546 = vmatmul.mubr.msk.f32.vlgmr.msra.gmra.mrb[84].mxu0 %vm297_vm0, %v12661_v48 }
 0x968   : > { %10548 = vmatprep.mubr.msk.f32.mxu0 %vm297_vm0, %v12664_v50  ;;  %11076 = vmatpush3.bf16.msra.mxu0 %v12646_v44 }
 0x969   : > { %10558 = vmatprep.subr.msk.mxu0 %vm316_vm1, %v8904_v59 }
 0x96b   : > { %10549 = vmatmul.mubr.msk.f32.gmra.mrb[86].mxu0 %vm297_vm0, %v12674_v53 }
 0x96c   : > { %10551 = vmatprep.mubr.msk.f32.mxu0 %vm297_vm0, %v12679_v55  ;;  %10559 = vmatpush3.msk.msra.mxu0 %vm316_vm1, %v8904_v59 }
 0x96d   : > { %11086 = vmatprep.subr.bf16.mxu0 %v11846_v21 }
 0x96f   : > { %10552 = vmatmul.mubr.msk.f32.gmra.mrb[88].mxu0 %vm297_vm0, %v12691_v57 }
 0xa2e   : > { %v10517_v27 = vpop.f32.mrb[84].mxu1 }
 0xa2f   : > { %v5675_v60 = vpop.f32.mrb[85].mxu1 }
 0xa30   : > { %10530 = vmatprep.mubr.msk.f32.mxu1 %vm297_vm0, %v5675_v60 }
 0xa31   : > { %10531 = vmatmul.mubr.msk.f32.vlgmr.msra.gmra.mrb[18].mxu1 %vm297_vm0, %v10517_v27  ;;  %v12931_v27 = vld [vmem:[%s11751_s25 + $0x188] sm:$0xff] }
 0xa32   : > { %v10520_v61 = vpop.f32.mrb[86].mxu1  ;;  %11080 = vmatpush3.bf16.msra.mxu1 %v11775_v2 }
 0xa33   : > { %v5685_v62 = vpop.f32.mrb[87].mxu1  ;;  %10573 = vmatprep.subr.msk.mxu1 %vm316_vm1, %v12440_v51 }
 0xa34   : > { %10533 = vmatprep.mubr.msk.f32.mxu1 %vm297_vm0, %v5685_v62  ;;  %v12944_v62 = vld [vmem:[%s11751_s25 + $0x198] sm:$0xff] }
 0xa35   : > { %10534 = vmatmul.mubr.msk.f32.gmra.mrb[20].mxu1 %vm297_vm0, %v10520_v61  ;;  %v12934_v61 = vld [vmem:[%s11751_s25 + $0x190] sm:$0xff] }
 0xa36   : > { %v10523_v63 = vpop.f32.mrb[88].mxu1  ;;  %10574 = vmatpush3.msk.msra.mxu1 %vm316_vm1, %v12440_v51 }
 0xa37   : > { %v5695_v0 = vpop.f32.mrb[89].mxu1  ;;  %11082 = vmatprep.subr.bf16.mxu1 %v12646_v44 }
 0xa38   : > { %10536 = vmatprep.mubr.msk.f32.mxu1 %vm297_vm0, %v5695_v0  ;;  %v12949_v0 = vld [vmem:[%s11751_s25 + $0x1a0] sm:$0xff] }
 0xa39   : > { %10537 = vmatmul.mubr.msk.f32.gmra.mrb[22].mxu1 %vm297_vm0, %v10523_v63 }
 0xa3a   : > { %v10547_v3 = vpop.f32.mrb[84].mxu0  ;;  %10575 = vmatprep.mubr.msk.f32.mxu1 %vm297_vm0, %v12653_v20 }
 0xa3b   : > { %v5892_v4 = vpop.f32.mrb[85].mxu0 }
 0xa3c   : > { %10560 = vmatprep.mubr.msk.f32.mxu0 %vm297_vm0, %v5892_v4 }
 0xa3d   : > { %10561 = vmatmul.mubr.msk.f32.vlgmr.msra.gmra.mrb[18].mxu0 %vm297_vm0, %v10547_v3  ;;  %10576 = vmatmul.mubr.msk.f32.vlgmr.msra.gmra.mrb[90].mxu1 %vm297_vm0, %v12661_v48  ;;  %v12961_v3 = vld [vmem:[%s11751_s25 + $0x1a8] sm:$0xff] }
 0xa3e   : > { %v10550_v6 = vpop.f32.mrb[86].mxu0  ;;  %11088 = vmatpush3.bf16.msra.mxu0 %v11846_v21  ;;  %10578 = vmatprep.mubr.msk.f32.mxu1 %vm297_vm0, %v12664_v50 }
 0xa3f   : > { %v5902_v8 = vpop.f32.mrb[87].mxu0  ;;  %10603 = vmatprep.subr.msk.mxu0 %vm316_vm1, %v12602_v36  ;;  %11084 = vmatpush3.bf16.msra.mxu1 %v12646_v44 }
 0xa40   : > { %10563 = vmatprep.mubr.msk.f32.mxu0 %vm297_vm0, %v5902_v8  ;;  %10588 = vmatprep.subr.msk.mxu1 %vm316_vm1, %v8904_v59 }
 0xa41   : > { %10564 = vmatmul.mubr.msk.f32.gmra.mrb[20].mxu0 %vm297_vm0, %v10550_v6  ;;  %10579 = vmatmul.mubr.msk.f32.gmra.mrb[92].mxu1 %vm297_vm0, %v12674_v53 }
 0xa42   : > { %v10553_v10 = vpop.f32.mrb[88].mxu0  ;;  %10581 = vmatprep.mubr.msk.f32.mxu1 %vm297_vm0, %v12679_v55  ;;  %10604 = vmatpush3.msk.msra.mxu0 %vm316_vm1, %v12602_v36 }
 0xa43   : > { %v5912_v11 = vpop.f32.mrb[89].mxu0  ;;  %10589 = vmatpush3.msk.msra.mxu1 %vm316_vm1, %v8904_v59  ;;  %11090 = vmatprep.subr.bf16.mxu0 %v12646_v44 }
 0xa44   : > { %10566 = vmatprep.mubr.msk.f32.mxu0 %vm297_vm0, %v5912_v11  ;;  %11094 = vmatprep.subr.bf16.mxu1 %v11790_v7 }
 0xa45   : > { %10567 = vmatmul.mubr.msk.f32.gmra.mrb[22].mxu0 %vm297_vm0, %v10553_v10  ;;  %10582 = vmatmul.mubr.msk.f32.gmra.mrb[94].mxu1 %vm297_vm0, %v12691_v57 }
 0xa46   : > { %10605 = vmatprep.mubr.msk.f32.mxu0 %vm297_vm0, %v12653_v20 }
 0xa49   : > { %10606 = vmatmul.mubr.msk.f32.vlgmr.msra.gmra.mrb[90].mxu0 %vm297_vm0, %v12661_v48 }
 0xa4a   : > { %10608 = vmatprep.mubr.msk.f32.mxu0 %vm297_vm0, %v12664_v50  ;;  %11092 = vmatpush3.bf16.msra.mxu0 %v12646_v44 }
 0xa4b   : > { %10618 = vmatprep.subr.msk.mxu0 %vm316_vm1, %v8904_v59 }
 0xa4d   : > { %10609 = vmatmul.mubr.msk.f32.gmra.mrb[92].mxu0 %vm297_vm0, %v12674_v53  ;;  %v9033_v53 = vld [vmem:[%s11757_s11 + $0xc8] sm:$0xff] }
 0xa4e   : > { %10611 = vmatprep.mubr.msk.f32.mxu0 %vm297_vm0, %v12679_v55  ;;  %10619 = vmatpush3.msk.msra.mxu0 %vm316_vm1, %v8904_v59  ;;  %v12916_v56 = vpack.c.bf16 %v9033_v53, %v9032_v52  ;;  %v12923_v59 = vld [vmem:[%s11751_s25 + $0x180] sm:$0xff] }
 0xa4f   : > { %11102 = vmatprep.subr.bf16.mxu0 %v11819_v14 }
 0xa51   : > { %10612 = vmatmul.mubr.msk.f32.gmra.mrb[94].mxu0 %vm297_vm0, %v12691_v57 }
 0xb10   : > { %v10577_v12 = vpop.f32.mrb[90].mxu1 }
 0xb11   : > { %v6106_v13 = vpop.f32.mrb[91].mxu1 }
 0xb12   : > { %10590 = vmatprep.mubr.msk.f32.mxu1 %vm297_vm0, %v6106_v13 }
 0xb13   : > { %10591 = vmatmul.mubr.msk.f32.vlgmr.msra.gmra.mrb[30].mxu1 %vm297_vm0, %v10577_v12 }
 0xb14   : > { %v10580_v17 = vpop.f32.mrb[92].mxu1  ;;  %11096 = vmatpush3.bf16.msra.mxu1 %v11790_v7 }
 0xb15   : > { %v6116_v19 = vpop.f32.mrb[93].mxu1  ;;  %10633 = vmatprep.subr.msk.mxu1 %vm316_vm1, %v12501_v1 }
 0xb16   : > { %10593 = vmatprep.mubr.msk.f32.mxu1 %vm297_vm0, %v6116_v19 }
 0xb17   : > { %10594 = vmatmul.mubr.msk.f32.gmra.mrb[32].mxu1 %vm297_vm0, %v10580_v17 }
 0xb18   : > { %v10583_v5 = vpop.f32.mrb[94].mxu1  ;;  %10634 = vmatpush3.msk.msra.mxu1 %vm316_vm1, %v12501_v1 }
 0xb19   : > { %v6126_v23 = vpop.f32.mrb[95].mxu1  ;;  %11098 = vmatprep.subr.bf16.mxu1 %v12781_v22 }
 0xb1a   : > { %10596 = vmatprep.mubr.msk.f32.mxu1 %vm297_vm0, %v6126_v23 }
 0xb1b   : > { %10597 = vmatmul.mubr.msk.f32.gmra.mrb[34].mxu1 %vm297_vm0, %v10583_v5 }
 0xb1c   : > { %v10607_v25 = vpop.f32.mrb[90].mxu0  ;;  %10635 = vmatprep.mubr.msk.f32.mxu1 %vm297_vm0, %v12788_v24 }
 0xb1d   : > { %v6320_v28 = vpop.f32.mrb[91].mxu0 }
 0xb1e   : > { %10620 = vmatprep.mubr.msk.f32.mxu0 %vm297_vm0, %v6320_v28 }
 0xb1f   : > { %10621 = vmatmul.mubr.msk.f32.vlgmr.msra.gmra.mrb[30].mxu0 %vm297_vm0, %v10607_v25  ;;  %10636 = vmatmul.mubr.msk.f32.vlgmr.msra.gmra.mrb[96].mxu1 %vm297_vm0, %v12796_v26 }
 0xb20   : > { %v10610_v30 = vpop.f32.mrb[92].mxu0  ;;  %11104 = vmatpush3.bf16.msra.mxu0 %v11819_v14  ;;  %10638 = vmatprep.mubr.msk.f32.mxu1 %vm297_vm0, %v12799_v29 }
 0xb21   : > { %v6330_v32 = vpop.f32.mrb[93].mxu0  ;;  %10663 = vmatprep.subr.msk.mxu0 %vm316_vm1, %v12536_v18  ;;  %11100 = vmatpush3.bf16.msra.mxu1 %v12781_v22 }
 0xb22   : > { %10623 = vmatprep.mubr.msk.f32.mxu0 %vm297_vm0, %v6330_v32  ;;  %10648 = vmatprep.subr.msk.mxu1 %vm316_vm1, %v8969_v38 }
 0xb23   : > { %10624 = vmatmul.mubr.msk.f32.gmra.mrb[32].mxu0 %vm297_vm0, %v10610_v30  ;;  %10639 = vmatmul.mubr.msk.f32.gmra.mrb[98].mxu1 %vm297_vm0, %v12809_v31 }
 0xb24   : > { %v10613_v34 = vpop.f32.mrb[94].mxu0  ;;  %10641 = vmatprep.mubr.msk.f32.mxu1 %vm297_vm0, %v12814_v33  ;;  %10664 = vmatpush3.msk.msra.mxu0 %vm316_vm1, %v12536_v18 }
 0xb25   : > { %v6340_v37 = vpop.f32.mrb[95].mxu0  ;;  %11106 = vmatprep.subr.bf16.mxu0 %v12781_v22  ;;  %10649 = vmatpush3.msk.msra.mxu1 %vm316_vm1, %v8969_v38 }
 0xb26   : > { %10626 = vmatprep.mubr.msk.f32.mxu0 %vm297_vm0, %v6340_v37  ;;  %11110 = vmatprep.subr.bf16.mxu1 %v11775_v2 }
 0xb27   : > { %10627 = vmatmul.mubr.msk.f32.gmra.mrb[34].mxu0 %vm297_vm0, %v10613_v34  ;;  %10642 = vmatmul.mubr.msk.f32.gmra.mrb[100].mxu1 %vm297_vm0, %v12826_v35 }
 0xb28   : > { %10665 = vmatprep.mubr.msk.f32.mxu0 %vm297_vm0, %v12788_v24 }
 0xb2b   : > { %10666 = vmatmul.mubr.msk.f32.vlgmr.msra.gmra.mrb[96].mxu0 %vm297_vm0, %v12796_v26 }
 0xb2c   : > { %10668 = vmatprep.mubr.msk.f32.mxu0 %vm297_vm0, %v12799_v29  ;;  %11108 = vmatpush3.bf16.msra.mxu0 %v12781_v22 }
 0xb2d   : > { %10678 = vmatprep.subr.msk.mxu0 %vm316_vm1, %v8969_v38 }
 0xb2f   : > { %10669 = vmatmul.mubr.msk.f32.gmra.mrb[98].mxu0 %vm297_vm0, %v12809_v31 }
 0xb30   : > { %10671 = vmatprep.mubr.msk.f32.mxu0 %vm297_vm0, %v12814_v33  ;;  %10679 = vmatpush3.msk.msra.mxu0 %vm316_vm1, %v8969_v38 }
 0xb31   : > { %11118 = vmatprep.subr.bf16.mxu0 %v11846_v21 }
 0xb33   : > { %10672 = vmatmul.mubr.msk.f32.gmra.mrb[100].mxu0 %vm297_vm0, %v12826_v35 }
 0xbf2   : > { %v10637_v39 = vpop.f32.mrb[96].mxu1 }
 0xbf3   : > { %v6563_v40 = vpop.f32.mrb[97].mxu1 }
 0xbf4   : > { %10650 = vmatprep.mubr.msk.f32.mxu1 %vm297_vm0, %v6563_v40 }
 0xbf5   : > { %10651 = vmatmul.mubr.msk.f32.vlgmr.msra.gmra.mrb[18].mxu1 %vm297_vm0, %v10637_v39 }
 0xbf6   : > { %v10640_v9 = vpop.f32.mrb[98].mxu1  ;;  %11112 = vmatpush3.bf16.msra.mxu1 %v11775_v2 }
 0xbf7   : > { %v6573_v41 = vpop.f32.mrb[99].mxu1  ;;  %10693 = vmatprep.subr.msk.mxu1 %vm316_vm1, %v12440_v51 }
 0xbf8   : > { %10653 = vmatprep.mubr.msk.f32.mxu1 %vm297_vm0, %v6573_v41 }
 0xbf9   : > { %10654 = vmatmul.mubr.msk.f32.gmra.mrb[20].mxu1 %vm297_vm0, %v10640_v9 }
 0xbfa   : > { %v10643_v42 = vpop.f32.mrb[100].mxu1  ;;  %10694 = vmatpush3.msk.msra.mxu1 %vm316_vm1, %v12440_v51 }
 0xbfb   : > { %v6583_v43 = vpop.f32.mrb[101].mxu1  ;;  %11114 = vmatprep.subr.bf16.mxu1 %v12781_v22 }
 0xbfc   : > { %10656 = vmatprep.mubr.msk.f32.mxu1 %vm297_vm0, %v6583_v43 }
 0xbfd   : > { %10657 = vmatmul.mubr.msk.f32.gmra.mrb[22].mxu1 %vm297_vm0, %v10643_v42 }
 0xbfe   : > { %v10667_v44 = vpop.f32.mrb[96].mxu0  ;;  %10695 = vmatprep.mubr.msk.f32.mxu1 %vm297_vm0, %v12788_v24 }
 0xbff   : > { %v6780_v45 = vpop.f32.mrb[97].mxu0 }
 0xc00   : > { %10680 = vmatprep.mubr.msk.f32.mxu0 %vm297_vm0, %v6780_v45 }
 0xc01   : > { %10681 = vmatmul.mubr.msk.f32.vlgmr.msra.gmra.mrb[18].mxu0 %vm297_vm0, %v10667_v44  ;;  %10696 = vmatmul.mubr.msk.f32.vlgmr.msra.gmra.mrb[102].mxu1 %vm297_vm0, %v12796_v26 }
 0xc02   : > { %v10670_v46 = vpop.f32.mrb[98].mxu0  ;;  %11120 = vmatpush3.bf16.msra.mxu0 %v11846_v21  ;;  %10698 = vmatprep.mubr.msk.f32.mxu1 %vm297_vm0, %v12799_v29 }
 0xc03   : > { %v6790_v20 = vpop.f32.mrb[99].mxu0  ;;  %10723 = vmatprep.subr.msk.mxu0 %vm316_vm1, %v12602_v36  ;;  %11116 = vmatpush3.bf16.msra.mxu1 %v12781_v22 }
 0xc04   : > { %10683 = vmatprep.mubr.msk.f32.mxu0 %vm297_vm0, %v6790_v20  ;;  %10708 = vmatprep.subr.msk.mxu1 %vm316_vm1, %v8969_v38 }
 0xc05   : > { %10684 = vmatmul.mubr.msk.f32.gmra.mrb[20].mxu0 %vm297_vm0, %v10670_v46  ;;  %10699 = vmatmul.mubr.msk.f32.gmra.mrb[104].mxu1 %vm297_vm0, %v12809_v31 }
 0xc06   : > { %v10673_v47 = vpop.f32.mrb[100].mxu0  ;;  %10701 = vmatprep.mubr.msk.f32.mxu1 %vm297_vm0, %v12814_v33  ;;  %10724 = vmatpush3.msk.msra.mxu0 %vm316_vm1, %v12602_v36 }
 0xc07   : > { %v6800_v48 = vpop.f32.mrb[101].mxu0  ;;  %10709 = vmatpush3.msk.msra.mxu1 %vm316_vm1, %v8969_v38  ;;  %11122 = vmatprep.subr.bf16.mxu0 %v12781_v22 }
 0xc08   : > { %10686 = vmatprep.mubr.msk.f32.mxu0 %vm297_vm0, %v6800_v48  ;;  %11126 = vmatprep.subr.bf16.mxu1 %v11790_v7 }
 0xc09   : > { %10687 = vmatmul.mubr.msk.f32.gmra.mrb[22].mxu0 %vm297_vm0, %v10673_v47  ;;  %10702 = vmatmul.mubr.msk.f32.gmra.mrb[106].mxu1 %vm297_vm0, %v12826_v35 }
 0xc0a   : > { %10725 = vmatprep.mubr.msk.f32.mxu0 %vm297_vm0, %v12788_v24 }
 0xc0d   : > { %10726 = vmatmul.mubr.msk.f32.vlgmr.msra.gmra.mrb[102].mxu0 %vm297_vm0, %v12796_v26 }
 0xc0e   : > { %10728 = vmatprep.mubr.msk.f32.mxu0 %vm297_vm0, %v12799_v29  ;;  %11124 = vmatpush3.bf16.msra.mxu0 %v12781_v22 }
 0xc0f   : > { %10738 = vmatprep.subr.msk.mxu0 %vm316_vm1, %v8969_v38 }
 0xc11   : > { %10729 = vmatmul.mubr.msk.f32.gmra.mrb[104].mxu0 %vm297_vm0, %v12809_v31 }
 0xc12   : > { %10731 = vmatprep.mubr.msk.f32.mxu0 %vm297_vm0, %v12814_v33  ;;  %10739 = vmatpush3.msk.msra.mxu0 %vm316_vm1, %v8969_v38 }
 0xc13   : > { %11134 = vmatprep.subr.bf16.mxu0 %v11819_v14 }
 0xc15   : > { %10732 = vmatmul.mubr.msk.f32.gmra.mrb[106].mxu0 %vm297_vm0, %v12826_v35 }
 0xcd4   : > { %v10697_v49 = vpop.f32.mrb[102].mxu1 }
 0xcd5   : > { %v6994_v50 = vpop.f32.mrb[103].mxu1 }
 0xcd6   : > { %10710 = vmatprep.mubr.msk.f32.mxu1 %vm297_vm0, %v6994_v50 }
 0xcd7   : > { %10711 = vmatmul.mubr.msk.f32.vlgmr.msra.gmra.mrb[30].mxu1 %vm297_vm0, %v10697_v49 }
 0xcd8   : > { %v10700_v54 = vpop.f32.mrb[104].mxu1  ;;  %11128 = vmatpush3.bf16.msra.mxu1 %v11790_v7 }
 0xcd9   : > { %v7004_v55 = vpop.f32.mrb[105].mxu1  ;;  %10753 = vmatprep.subr.msk.mxu1 %vm316_vm1, %v12501_v1 }
 0xcda   : > { %10713 = vmatprep.mubr.msk.f32.mxu1 %vm297_vm0, %v7004_v55 }
 0xcdb   : > { %10714 = vmatmul.mubr.msk.f32.gmra.mrb[32].mxu1 %vm297_vm0, %v10700_v54 }
 0xcdc   : > { %v10703_v57 = vpop.f32.mrb[106].mxu1  ;;  %10754 = vmatpush3.msk.msra.mxu1 %vm316_vm1, %v12501_v1 }
 0xcdd   : > { %v7014_v58 = vpop.f32.mrb[107].mxu1  ;;  %11130 = vmatprep.subr.bf16.mxu1 %v12916_v56 }
 0xcde   : > { %10716 = vmatprep.mubr.msk.f32.mxu1 %vm297_vm0, %v7014_v58 }
 0xcdf   : > { %10717 = vmatmul.mubr.msk.f32.gmra.mrb[34].mxu1 %vm297_vm0, %v10703_v57 }
 0xce0   : > { %v10727_v7 = vpop.f32.mrb[102].mxu0  ;;  %10755 = vmatprep.mubr.msk.f32.mxu1 %vm297_vm0, %v12923_v59 }
 0xce1   : > { %v7208_v60 = vpop.f32.mrb[103].mxu0 }
 0xce2   : > { %10740 = vmatprep.mubr.msk.f32.mxu0 %vm297_vm0, %v7208_v60 }
 0xce3   : > { %10741 = vmatmul.mubr.msk.f32.vlgmr.msra.gmra.mrb[30].mxu0 %vm297_vm0, %v10727_v7  ;;  %10756 = vmatmul.mubr.msk.f32.vlgmr.msra.gmra.mrb[108].mxu1 %vm297_vm0, %v12931_v27 }
 0xce4   : > { %v10730_v1 = vpop.f32.mrb[104].mxu0  ;;  %11136 = vmatpush3.bf16.msra.mxu0 %v11819_v14  ;;  %10758 = vmatprep.mubr.msk.f32.mxu1 %vm297_vm0, %v12934_v61 }
 0xce5   : > { %v7218_v63 = vpop.f32.mrb[105].mxu0  ;;  %10783 = vmatprep.subr.msk.mxu0 %vm316_vm1, %v12536_v18  ;;  %11132 = vmatpush3.bf16.msra.mxu1 %v12916_v56 }
 0xce6   : > { %10743 = vmatprep.mubr.msk.f32.mxu0 %vm297_vm0, %v7218_v63 }
 0xce7   : > { %10744 = vmatmul.mubr.msk.f32.gmra.mrb[32].mxu0 %vm297_vm0, %v10730_v1  ;;  %10759 = vmatmul.mubr.msk.f32.gmra.mrb[110].mxu1 %vm297_vm0, %v12944_v62 }
 0xce8   : > { %v10733_v14 = vpop.f32.mrb[106].mxu0  ;;  %10761 = vmatprep.mubr.msk.f32.mxu1 %vm297_vm0, %v12949_v0  ;;  %10784 = vmatpush3.msk.msra.mxu0 %vm316_vm1, %v12536_v18  ;;  %v9034_v18 = vld [vmem:[%s11757_s11 + $0xd0] sm:$0x3] }
 0xce9   : > { %v7228_v4 = vpop.f32.mrb[107].mxu0  ;;  %11138 = vmatprep.subr.bf16.mxu0 %v12916_v56  ;;  %10768 = vmatprep.subr.msk.mxu1 %vm316_vm1, %v9034_v18 }
 0xcea   : > { %10746 = vmatprep.mubr.msk.f32.mxu0 %vm297_vm0, %v7228_v4  ;;  %10769 = vmatpush3.msk.msra.mxu1 %vm316_vm1, %v9034_v18 }
 0xceb   : > { %10747 = vmatmul.mubr.msk.f32.gmra.mrb[34].mxu0 %vm297_vm0, %v10733_v14  ;;  %10762 = vmatmul.mubr.msk.f32.gmra.mrb[112].mxu1 %vm297_vm0, %v12961_v3 }
 0xcec   : > { %10785 = vmatprep.mubr.msk.f32.mxu0 %vm297_vm0, %v12923_v59  ;;  %11142 = vmatprep.subr.bf16.mxu1 %v11775_v2 }
 0xcef   : > { %10786 = vmatmul.mubr.msk.f32.vlgmr.msra.gmra.mrb[108].mxu0 %vm297_vm0, %v12931_v27 }
 0xcf0   : > { %10788 = vmatprep.mubr.msk.f32.mxu0 %vm297_vm0, %v12934_v61  ;;  %11140 = vmatpush3.bf16.msra.mxu0 %v12916_v56 }
 0xcf1   : > { %10798 = vmatprep.subr.msk.mxu0 %vm316_vm1, %v9034_v18 }
 0xcf3   : > { %10789 = vmatmul.mubr.msk.f32.gmra.mrb[110].mxu0 %vm297_vm0, %v12944_v62 }
 0xcf4   : > { %10791 = vmatprep.mubr.msk.f32.mxu0 %vm297_vm0, %v12949_v0  ;;  %10799 = vmatpush3.msk.msra.mxu0 %vm316_vm1, %v9034_v18 }
 0xcf5   : > { %11150 = vmatprep.subr.bf16.mxu0 %v11846_v21 }
 0xcf7   : > { %10792 = vmatmul.mubr.msk.f32.gmra.mrb[112].mxu0 %vm297_vm0, %v12961_v3 }
 0xdb6   : > { %v10757_v6 = vpop.f32.mrb[108].mxu1 }
 0xdb7   : > { %v7451_v8 = vpop.f32.mrb[109].mxu1 }
 0xdb8   : > { %10770 = vmatprep.mubr.msk.f32.mxu1 %vm297_vm0, %v7451_v8 }
 0xdb9   : > { %10771 = vmatmul.mubr.msk.f32.vlgmr.msra.gmra.mrb[18].mxu1 %vm297_vm0, %v10757_v6 }
 0xdba   : > { %v10760_v10 = vpop.f32.mrb[110].mxu1  ;;  %11144 = vmatpush3.bf16.msra.mxu1 %v11775_v2 }
 0xdbb   : > { %v7461_v11 = vpop.f32.mrb[111].mxu1  ;;  %10813 = vmatprep.subr.msk.mxu1 %vm316_vm1, %v12440_v51 }
 0xdbc   : > { %10773 = vmatprep.mubr.msk.f32.mxu1 %vm297_vm0, %v7461_v11 }
 0xdbd   : > { %10774 = vmatmul.mubr.msk.f32.gmra.mrb[20].mxu1 %vm297_vm0, %v10760_v10 }
 0xdbe   : > { %v10763_v12 = vpop.f32.mrb[112].mxu1  ;;  %10814 = vmatpush3.msk.msra.mxu1 %vm316_vm1, %v12440_v51 }
 0xdbf   : > { %v7471_v13 = vpop.f32.mrb[113].mxu1  ;;  %11146 = vmatprep.subr.bf16.mxu1 %v12916_v56 }
 0xdc0   : > { %10776 = vmatprep.mubr.msk.f32.mxu1 %vm297_vm0, %v7471_v13 }
 0xdc1   : > { %10777 = vmatmul.mubr.msk.f32.gmra.mrb[22].mxu1 %vm297_vm0, %v10763_v12 }
 0xdc2   : > { %v10787_v2 = vpop.f32.mrb[108].mxu0  ;;  %10815 = vmatprep.mubr.msk.f32.mxu1 %vm297_vm0, %v12923_v59 }
 0xdc3   : > { %v7668_v15 = vpop.f32.mrb[109].mxu0 }
 0xdc4   : > { %10800 = vmatprep.mubr.msk.f32.mxu0 %vm297_vm0, %v7668_v15 }
 0xdc5   : > { %10801 = vmatmul.mubr.msk.f32.vlgmr.msra.gmra.mrb[18].mxu0 %vm297_vm0, %v10787_v2  ;;  %10816 = vmatmul.mubr.msk.f32.vlgmr.msra.gmra.mrb[114].mxu1 %vm297_vm0, %v12931_v27 }
 0xdc6   : > { %v10790_v51 = vpop.f32.mrb[110].mxu0  ;;  %11152 = vmatpush3.bf16.msra.mxu0 %v11846_v21  ;;  %10818 = vmatprep.mubr.msk.f32.mxu1 %vm297_vm0, %v12934_v61 }
 0xdc7   : > { %v7678_v16 = vpop.f32.mrb[111].mxu0  ;;  %10843 = vmatprep.subr.msk.mxu0 %vm316_vm1, %v12602_v36  ;;  %11148 = vmatpush3.bf16.msra.mxu1 %v12916_v56 }
 0xdc8   : > { %10803 = vmatprep.mubr.msk.f32.mxu0 %vm297_vm0, %v7678_v16  ;;  %10828 = vmatprep.subr.msk.mxu1 %vm316_vm1, %v9034_v18 }
 0xdc9   : > { %10804 = vmatmul.mubr.msk.f32.gmra.mrb[20].mxu0 %vm297_vm0, %v10790_v51  ;;  %10819 = vmatmul.mubr.msk.f32.gmra.mrb[116].mxu1 %vm297_vm0, %v12944_v62 }
 0xdca   : > { %v10793_v17 = vpop.f32.mrb[112].mxu0  ;;  %10821 = vmatprep.mubr.msk.f32.mxu1 %vm297_vm0, %v12949_v0  ;;  %10844 = vmatpush3.msk.msra.mxu0 %vm316_vm1, %v12602_v36 }
 0xdcb   : > { %v7688_v21 = vpop.f32.mrb[113].mxu0  ;;  %10829 = vmatpush3.msk.msra.mxu1 %vm316_vm1, %v9034_v18  ;;  %11154 = vmatprep.subr.bf16.mxu0 %v12916_v56 }
 0xdcc   : > { %10806 = vmatprep.mubr.msk.f32.mxu0 %vm297_vm0, %v7688_v21 }
 0xdcd   : > { %10807 = vmatmul.mubr.msk.f32.gmra.mrb[22].mxu0 %vm297_vm0, %v10793_v17  ;;  %10822 = vmatmul.mubr.msk.f32.gmra.mrb[118].mxu1 %vm297_vm0, %v12961_v3 }
 0xdce   : > { %10845 = vmatprep.mubr.msk.f32.mxu0 %vm297_vm0, %v12923_v59 }
 0xdd1   : > { %10846 = vmatmul.mubr.msk.f32.vlgmr.msra.gmra.mrb[114].mxu0 %vm297_vm0, %v12931_v27 }
 0xdd2   : > { %10848 = vmatprep.mubr.msk.f32.mxu0 %vm297_vm0, %v12934_v61  ;;  %11156 = vmatpush3.bf16.msra.mxu0 %v12916_v56 }
 0xdd3   : > { %10858 = vmatprep.subr.msk.mxu0 %vm316_vm1, %v9034_v18 }
 0xdd5   : > { %10849 = vmatmul.mubr.msk.f32.gmra.mrb[116].mxu0 %vm297_vm0, %v12944_v62 }
 0xdd6   : > { %10851 = vmatprep.mubr.msk.f32.mxu0 %vm297_vm0, %v12949_v0  ;;  %10859 = vmatpush3.msk.msra.mxu0 %vm316_vm1, %v9034_v18 }
 0xdd9   : > { %10852 = vmatmul.mubr.msk.f32.gmra.mrb[118].mxu0 %vm297_vm0, %v12961_v3 }
 0xe8c   : > { %v10772_v36 = vpop.f32.mrb[18].mxu1 }
 0xe8d   : > { %v9118_v19 = vpack.c.bf16 %v10772_v36, %v10772_v36  ;;  %v7567_v22 = vpop.f32.mrb[19].mxu1 }
 0xe8e   : > { %v9117_v5 = vpack.c.bf16 %v7567_v22, %v7567_v22 }
 0xe8f   : > { %8269 = vst [vmem:[%s13048_s8 + $0x10] sm:$0xf] %v9118_v19 }
 0xe90   : > { %8268 = vst [vmem:[%s13048_s8] sm:$0xf] %v9117_v5  ;;  %v10775_v23 = vpop.f32.mrb[20].mxu1 }
 0xe91   : > { %v9120_v24 = vpack.c.bf16 %v10775_v23, %v10775_v23  ;;  %v7577_v25 = vpop.f32.mrb[21].mxu1 }
 0xe92   : > { %v9119_v26 = vpack.c.bf16 %v7577_v25, %v7577_v25 }
 0xe93   : > { %8271 = vst [vmem:[%s13048_s8 + $0x30] sm:$0xf] %v9120_v24 }
 0xe94   : > { %8270 = vst [vmem:[%s13048_s8 + $0x20] sm:$0xf] %v9119_v26  ;;  %v10778_v28 = vpop.f32.mrb[22].mxu1 }
 0xe95   : > { %v9122_v29 = vpack.c.bf16 %v10778_v28, %v10778_v28  ;;  %v7587_v30 = vpop.f32.mrb[23].mxu1 }
 0xe96   : > { %v9121_v31 = vpack.c.bf16 %v7587_v30, %v7587_v30 }
 0xe97   : > { %8273 = vst [vmem:[%s13048_s8 + $0x50] sm:$0xf] %v9122_v29 }
 0xe98   : > { %8272 = vst [vmem:[%s13048_s8 + $0x40] sm:$0xf] %v9121_v31  ;;  %v10802_v32 = vpop.f32.mrb[18].mxu0  ;;  %v10817_v33 = vpop.f32.mrb[114].mxu1 }
 0xe99   : > { %v9124_v34 = vpack.c.bf16 %v10802_v32, %v10802_v32  ;;  %v7781_v35 = vpop.f32.mrb[19].mxu0  ;;  %v7882_v37 = vpop.f32.mrb[115].mxu1 }
 0xe9a   : > { %v9123_v38 = vpack.c.bf16 %v7781_v35, %v7781_v35  ;;  %10830 = vmatprep.mubr.msk.f32.mxu1 %vm297_vm0, %v7882_v37 }
 0xe9b   : > { %8299 = vst [vmem:[%s13048_s8 + $0x14] sm:$0xf] %v9124_v34  ;;  %10831 = vmatmul.mubr.msk.f32.vlgmr.msra.gmra.mrb[30].mxu1 %vm297_vm0, %v10817_v33 }
 0xe9c   : > { %8298 = vst [vmem:[%s13048_s8 + $0x4] sm:$0xf] %v9123_v38  ;;  %v10805_v39 = vpop.f32.mrb[20].mxu0  ;;  %v10820_v40 = vpop.f32.mrb[116].mxu1 }
 0xe9d   : > { %v9126_v9 = vpack.c.bf16 %v10805_v39, %v10805_v39  ;;  %v7791_v41 = vpop.f32.mrb[21].mxu0  ;;  %v7892_v42 = vpop.f32.mrb[117].mxu1 }
 0xe9e   : > { %v9125_v43 = vpack.c.bf16 %v7791_v41, %v7791_v41  ;;  %10833 = vmatprep.mubr.msk.f32.mxu1 %vm297_vm0, %v7892_v42 }
 0xe9f   : > { %8301 = vst [vmem:[%s13048_s8 + $0x34] sm:$0xf] %v9126_v9  ;;  %10834 = vmatmul.mubr.msk.f32.gmra.mrb[32].mxu1 %vm297_vm0, %v10820_v40 }
 0xea0   : > { %8300 = vst [vmem:[%s13048_s8 + $0x24] sm:$0xf] %v9125_v43  ;;  %v10808_v44 = vpop.f32.mrb[22].mxu0  ;;  %v10823_v45 = vpop.f32.mrb[118].mxu1 }
 0xea1   : > { %v9128_v46 = vpack.c.bf16 %v10808_v44, %v10808_v44  ;;  %v7801_v20 = vpop.f32.mrb[23].mxu0  ;;  %v7902_v47 = vpop.f32.mrb[119].mxu1 }
 0xea2   : > { %v9127_v48 = vpack.c.bf16 %v7801_v20, %v7801_v20  ;;  %10836 = vmatprep.mubr.msk.f32.mxu1 %vm297_vm0, %v7902_v47 }
 0xea3   : > { %8303 = vst [vmem:[%s13048_s8 + $0x54] sm:$0xf] %v9128_v46  ;;  %10837 = vmatmul.mubr.msk.f32.gmra.mrb[34].mxu1 %vm297_vm0, %v10823_v45 }
 0xea4   : > { %8302 = vst [vmem:[%s13048_s8 + $0x44] sm:$0xf] %v9127_v48  ;;  %v10847_v49 = vpop.f32.mrb[114].mxu0 }
 0xea5   : > { %v8096_v50 = vpop.f32.mrb[115].mxu0 }
 0xea6   : > { %10860 = vmatprep.mubr.msk.f32.mxu0 %vm297_vm0, %v8096_v50 }
 0xea7   : > { %10861 = vmatmul.mubr.msk.f32.vlgmr.msra.gmra.mrb[30].mxu0 %vm297_vm0, %v10847_v49 }
 0xea8   : > { %v10850_v52 = vpop.f32.mrb[116].mxu0 }
 0xea9   : > { %v8106_v53 = vpop.f32.mrb[117].mxu0 }
 0xeaa   : > { %10863 = vmatprep.mubr.msk.f32.mxu0 %vm297_vm0, %v8106_v53 }
 0xeab   : > { %10864 = vmatmul.mubr.msk.f32.gmra.mrb[32].mxu0 %vm297_vm0, %v10850_v52 }
 0xeac   : > { %v10853_v54 = vpop.f32.mrb[118].mxu0 }
 0xead   : > { %v8116_v55 = vpop.f32.mrb[119].mxu0 }
 0xeae   : > { %10866 = vmatprep.mubr.msk.f32.mxu0 %vm297_vm0, %v8116_v55 }
 0xeaf   : > { %10867 = vmatmul.mubr.msk.f32.gmra.mrb[34].mxu0 %vm297_vm0, %v10853_v54 }
 0xf6e   : > { %v10832_v56 = vpop.f32.mrb[30].mxu1 }
 0xf6f   : > { %v9130_v57 = vpack.c.bf16 %v10832_v56, %v10832_v56  ;;  %v7995_v58 = vpop.f32.mrb[31].mxu1 }
 0xf70   : > { %v9129_v59 = vpack.c.bf16 %v7995_v58, %v7995_v58 }
 0xf71   : > { %8329 = vst [vmem:[%s13048_s8 + $0x18] sm:$0xf] %v9130_v57 }
 0xf72   : > { %8328 = vst [vmem:[%s13048_s8 + $0x8] sm:$0xf] %v9129_v59  ;;  %v10835_v7 = vpop.f32.mrb[32].mxu1 }
 0xf73   : > { %v9132_v27 = vpack.c.bf16 %v10835_v7, %v10835_v7  ;;  %v8005_v60 = vpop.f32.mrb[33].mxu1 }
 0xf74   : > { %v9131_v61 = vpack.c.bf16 %v8005_v60, %v8005_v60 }
 0xf75   : > { %8331 = vst [vmem:[%s13048_s8 + $0x38] sm:$0xf] %v9132_v27 }
 0xf76   : > { %8330 = vst [vmem:[%s13048_s8 + $0x28] sm:$0xf] %v9131_v61  ;;  %v10838_v1 = vpop.f32.mrb[34].mxu1 }
 0xf77   : > { %v9134_v62 = vpack.c.bf16 %v10838_v1, %v10838_v1  ;;  %v8015_v63 = vpop.f32.mrb[35].mxu1 }
 0xf78   : > { %v9133_v0 = vpack.c.bf16 %v8015_v63, %v8015_v63 }
 0xf79   : > { %8333 = vst [vmem:[%s13048_s8 + $0x58] sm:$0xf] %v9134_v62 }
 0xf7a   : > { %8332 = vst [vmem:[%s13048_s8 + $0x48] sm:$0xf] %v9133_v0  ;;  %v10862_v14 = vpop.f32.mrb[30].mxu0 }
 0xf7b   : > { %v9136_v3 = vpack.c.bf16 %v10862_v14, %v10862_v14  ;;  %v8209_v4 = vpop.f32.mrb[31].mxu0 }
 0xf7c   : > { %v9135_v18 = vpack.c.bf16 %v8209_v4, %v8209_v4 }
 0xf7d   : > { %8359 = vst [vmem:[%s13048_s8 + $0x1c] sm:$0xf] %v9136_v3 }
 0xf7e   : > { %8358 = vst [vmem:[%s13048_s8 + $0xc] sm:$0xf] %v9135_v18  ;;  %v10865_v6 = vpop.f32.mrb[32].mxu0 }
 0xf7f   : > { %v9138_v8 = vpack.c.bf16 %v10865_v6, %v10865_v6  ;;  %v8219_v10 = vpop.f32.mrb[33].mxu0 }
 0xf80   : > { %v9137_v11 = vpack.c.bf16 %v8219_v10, %v8219_v10 }
 0xf81   : > { %8361 = vst [vmem:[%s13048_s8 + $0x3c] sm:$0xf] %v9138_v8 }
 0xf82   : > { %8360 = vst [vmem:[%s13048_s8 + $0x2c] sm:$0xf] %v9137_v11  ;;  %v10868_v12 = vpop.f32.mrb[34].mxu0 }
 0xf83   : > { %v9140_v13 = vpack.c.bf16 %v10868_v12, %v10868_v12  ;;  %v8229_v2 = vpop.f32.mrb[35].mxu0 }
 0xf84   : > { %v9139_v15 = vpack.c.bf16 %v8229_v2, %v8229_v2 }
 0xf85   : > { %8363 = vst [vmem:[%s13048_s8 + $0x5c] sm:$0xf] %v9140_v13 }
 0xf86   : > { %8362 = vst [vmem:[%s13048_s8 + $0x4c] sm:$0xf] %v9139_v15 }
 0xf87 PF: > { %s19_s19 = sadd.s32 1, %s11570_s19   ;;  %s13119_s12 = smov %s11546_s13 }
 0xf88   : > { %p16_p5 = scmp.ge.s32.totalorder %s19_s19, 12   ;;  %s13120_s13 = smov %s11550_s14 }
 0xf89   : > { %s13121_s14 = smov %s11663_s29  ;;  %s13122_s15 = smov %s11562_s17 }
 0xf8a   : > { %s13123_s16 = smov %s11566_s18  ;;  %s13124_s17 = smov %s13127_s21 }
 0xf8b   : > { %s13125_s18 = smov %s13131_s22  ;;  %18 = sbr.rel (!%p16_p5) target bundleno = 7 (0x7), region = 107 }
 0xf92   :  { %8393 = vsyncpa [#allocation3], 1 }
 0xf93   :  { %8395 = vsyncpa [#allocation3 + $0x1], 1 }
 0xf94   :  { %8396 = vsyncpa [#allocation5], 1 }
 0xf95   :  { %8398 = vsyncpa [#allocation5 + $0x1], 1 }

// kernel: adaptive_angle_conv_forward.3
= control target key start
LH: loop header
LB: loop body
LE: loop exit
PB: predicated region body
PF: predicated region fallthrough
CT: control target
= control target key end

     0   :  { %s13916_s9 = smov 0   ;;  %s13918_s10 = smov 0   ;;  %s16039_s0 = inlined_call_operand.vmem [shape: bf16[9,8,4], index: 0, kind: input, shape index: {}]   ;;  %s16040_s1 = inlined_call_operand.vmem [shape: bf16[5,2,48,4,128], index: 1, kind: input, shape index: {}]   ;;  %s16041_s2 = inlined_call_operand.vmem [shape: f32[5,2,46,8,128], index: 2, kind: output, shape index: {}]  }
   0x1   :  { %s13920_s11 = smov 0   ;;  %s13922_s12 = smov 0  }
   0x2   :  { %s13924_s13 = smov 0   ;;  %s13926_s14 = smov 0  }
   0x3   :  { %s13928_s15 = smov 0  }
   0x4 LB: > { %s24_s16 = sadd.s32 1, %s13882_s12  ;;  %s27_s17 = sadd.s32 1, %s13886_s13  ;;  %s13894_s15 = sphi %s13928_s15, %s12_s15   ;;  %s13890_s14 = sphi %s13926_s14, %s16047_s14   ;;  %s13886_s13 = sphi %s13924_s13, %s16046_s13   ;;  %s13882_s12 = sphi %s13922_s12, %s16045_s12   ;;  %s13878_s11 = sphi %s13920_s11, %s16044_s11   ;;  %s13874_s10 = sphi %s13918_s10, %s16043_s10   ;;  %s13870_s9 = sphi %s13916_s9, %s16042_s9  }
   0x5   : > { %p25_p0 = scmp.ge.s32.totalorder %s24_s16, 2  ;;  %p11010_p1 = scmp.ge.s32.totalorder %s13894_s15, 1 }
   0x6   : > { %p141_p2 = scmp.lt.s32.totalorder %s13894_s15, 21  ;;  %s31_s18 = sadd.s32 1, %s13890_s14 }
   0x7   : > { %s16049_s16 = smov (%p25_p0, %s24_s16), 0  ;;  %s16051_s17 = smov (!%p25_p0, %s27_s17), %s13886_s13 }
   0x8   : > { %p142_p3 = pnand %p11010_p1, %p141_p2  ;;  %p29_p4 = scmp.ge.s32.totalorder %s16051_s17, 2 }
   0x9   : > { %p175_p6 = scmp.lt.s32.totalorder (!%p142_p3), %s13878_s11, 4  ;;  %p177_p7 = scmp.lt.s32.totalorder (!%p142_p3), %s13874_s10, 1  ;;  %v232_v0 = vlaneseq (!%p142_p3)  ;;  %v13896_v1 = vmov (!%p142_p3), 1983009808   ;;  %v13897_v3 = vmov (!%p142_p3), 0.0   ;;  %vm13898_vm0 = vmmov (!%p142_p3), 0  }
   0xa   : > { %s16053_s17 = smov (%p29_p4, %s16051_s17), 0  ;;  %s16055_s18 = smov (!%p29_p4, %s31_s18), %s13890_s14 }
   0xb   : > { %p33_p5 = scmp.ge.s32.totalorder %s16055_s18, 5  ;;  %145 = sbr.rel (%p142_p3) target bundleno = 1187 (0x4a3), region = 28  ;;  %v230_v2 = vunpack.c.l.s4 (!%p142_p3), %v13896_v1  ;;  %11857 = vmatprep.subr.bf16.mxu0 (!%p142_p3), %v13897_v3  ;;  %11809 = vmatprep.subr.bf16.mxu1 (!%p142_p3), %v13897_v3  ;;  %v233_v5 = vshrl.u32 (!%p142_p3), %v232_v0, 7  ;;  %vm242_vm1 = vcmask (!%p142_p3), 1041408   ;;  %vm238_vm2 = vcmask (!%p142_p3), 31744  }
   0xc   : > { %11859 = vmatprep.mubr.msk.bf16.mxu0 (!%p142_p3), %vm13898_vm0, %v13897_v3  ;;  %11811 = vmatprep.mubr.msk.bf16.mxu1 (!%p142_p3), %vm13898_vm0, %v13897_v3  ;;  %s11394_s21 = smul.u32 (!%p142_p3), 46, %s13870_s9  ;;  %s13899_s28 = smov (!%p142_p3), 127   ;;  %vm10834_vm3 = vcmask (!%p142_p3), 375808  }
   0xd   : > { %s16057_s18 = smov (%p33_p5, %s16055_s18), 0  ;;  %v231_v4 = vunpack.c.0.s8 (!%p142_p3), %v230_v2  ;;  %s13900_s29 = smov (!%p142_p3), 126  }
   0xe   : > { %s184_s30 = smul.u32 (!%p142_p3), 23, %s13870_s9 }
   0xf   : > { %v13977_v6 = vsub.s32 (!%p142_p3), %v231_v4, %v233_v5 }
  0x10   : > { %p189_p8 = scmp.lt.s32.totalorder (!%p142_p3), %s184_s30, 45 }
  0x12   : > { %s16059_s11 = smov (!%p175_p6, %s13878_s11), 4  ;;  %s16061_s10 = smov (!%p177_p7, %s13874_s10), 1 }
  0x13   : > { %s13776_s19 = smul.u32 96, %s16059_s11  ;;  %s16063_s30 = smov (!%p189_p8, %s184_s30), 45 }
  0x14   : > { %s13775_s20 = smul.u32 48, %s16061_s10 }
  0x15   : > { %s13777_s3 = smul.u32 46, %s16061_s10 }
  0x16   : > { %s181_s22 = sadd.s32 %s13776_s19, %s13775_s20  ;;  %s13778_s4 = smul.u32 92, %s16059_s11 }
  0x17   : > { %s11011_s23 = sshll.u32 %s181_s22, 1  ;;  %s192_s5 = sadd.s32 %s13777_s3, %s16063_s30 }
  0x18   : > { %s183_s26 = scalar_lea.vmem %s16040_s1, %s11011_s23  ;;  %s194_s6 = sadd.s32 %s13778_s4, %s192_s5 }
  0x19   : > { %s13982_s27 = scalar_lea.vmem %s183_s26, %s11394_s21  ;;  %s11012_s7 = sshll.u32 %s194_s6, 3 }
  0x1a   : > { %v13985_v7 = vld [vmem:[%s13982_s27 + $0x10] sm:$0x3]  ;;  %v13988_v8 = vld [vmem:[%s13982_s27 + $0x14] sm:$0x3]  ;;  %v13991_v9 = vld [vmem:[%s13982_s27] sm:$0x3]  ;;  %s15966_s20 = scalar_lea.vmem %s16041_s2, %s11012_s7 }
  0x1b   : > { %v664_v10 = vrot.slane %v13985_v7, %v13977_v6  ;;  %v770_v11 = vrot.slane %v13988_v8, %v13977_v6  ;;  %v13998_v12 = vld [vmem:[%s13982_s27 + $0x2] sm:$0x3]  ;;  %v235_v13 = vrot.slane %v13991_v9, %v13977_v6  ;;  %v14007_v15 = vld [vmem:[%s13982_s27 + $0x18] sm:$0x3]  ;;  %v14010_v16 = vld [vmem:[%s13982_s27 + $0x4] sm:$0x3] }
  0x1c   : > { %v293_v14 = vrot.slane %v13998_v12, %v13977_v6  ;;  %v876_v17 = vrot.slane %v14007_v15, %v13977_v6  ;;  %v346_v18 = vrot.slane %v14010_v16, %v13977_v6  ;;  %v14019_v19 = vld [vmem:[%s13982_s27 + $0x1c] sm:$0x3]  ;;  %v14022_v20 = vld [vmem:[%s13982_s27 + $0x6] sm:$0x3]  ;;  %v14031_v23 = vld [vmem:[%s13982_s27 + $0x20] sm:$0x3] }
  0x1d   : > { %665 = vrot.lane.b32.xlu0 %v664_v10, %s13899_s28  ;;  %771 = vrot.lane.b32.xlu1 %v770_v11, %s13899_s28  ;;  %v982_v21 = vrot.slane %v14019_v19, %v13977_v6  ;;  %v399_v22 = vrot.slane %v14022_v20, %v13977_v6  ;;  %v14034_v24 = vld [vmem:[%s13982_s27 + $0x8] sm:$0x3]  ;;  %v1088_v25 = vrot.slane %v14031_v23, %v13977_v6  ;;  %v14043_v27 = vld [vmem:[%s13982_s27 + $0x24] sm:$0x3] }
  0x1e   : > { %v452_v26 = vrot.slane %v14034_v24, %v13977_v6  ;;  %v14046_v28 = vld [vmem:[%s13982_s27 + $0xa] sm:$0x3]  ;;  %v1194_v29 = vrot.slane %v14043_v27, %v13977_v6  ;;  %v14055_v31 = vld [vmem:[%s13982_s27 + $0x28] sm:$0x3]  ;;  %v14058_v32 = vld [vmem:[%s13982_s27 + $0xc] sm:$0x3] }
  0x1f   : > { %v505_v30 = vrot.slane %v14046_v28, %v13977_v6  ;;  %v1300_v33 = vrot.slane %v14055_v31, %v13977_v6  ;;  %v558_v34 = vrot.slane %v14058_v32, %v13977_v6  ;;  %v14067_v35 = vld [vmem:[%s13982_s27 + $0x2c] sm:$0x3]  ;;  %v14070_v36 = vld [vmem:[%s13982_s27 + $0xe] sm:$0x3]  ;;  %v14079_v39 = vld [vmem:[%s13982_s27 + $0x12] sm:$0x3] }
  0x20   : > { %v1406_v37 = vrot.slane %v14067_v35, %v13977_v6  ;;  %v611_v38 = vrot.slane %v14070_v36, %v13977_v6  ;;  %v14082_v40 = vld [vmem:[%s13982_s27 + $0x16] sm:$0x3]  ;;  %v717_v41 = vrot.slane %v14079_v39, %v13977_v6  ;;  %v14091_v43 = vld [vmem:[%s13982_s27 + $0x1a] sm:$0x3]  ;;  %v14094_v44 = vld [vmem:[%s13982_s27 + $0x1e] sm:$0x3] }
  0x21   : > { %236 = vrot.lane.b32.xlu0 %v235_v13, %s13899_s28  ;;  %294 = vrot.lane.b32.xlu1 %v293_v14, %s13899_s28  ;;  %v823_v42 = vrot.slane %v14082_v40, %v13977_v6  ;;  %v929_v45 = vrot.slane %v14091_v43, %v13977_v6  ;;  %v1035_v46 = vrot.slane %v14094_v44, %v13977_v6  ;;  %v14103_v47 = vld [vmem:[%s13982_s27 + $0x22] sm:$0x3]  ;;  %v14106_v48 = vld [vmem:[%s13982_s27 + $0x26] sm:$0x3] }
  0x22   : > { %v1141_v49 = vrot.slane %v14103_v47, %v13977_v6  ;;  %v1247_v50 = vrot.slane %v14106_v48, %v13977_v6  ;;  %v14115_v51 = vld [vmem:[%s13982_s27 + $0x2a] sm:$0x3]  ;;  %v11062_v53 = vld.sshfl [vmem:[%s13982_s27] sm:$0x3 pattern:$0x76325410] }
  0x23   : > { %v1353_v52 = vrot.slane %v14115_v51, %v13977_v6  ;;  %v11066_v54 = vld.sshfl [vmem:[%s13982_s27 + $0x4] sm:$0x3 pattern:$0x76325410] }
  0x24   : > { %v11070_v55 = vld.sshfl [vmem:[%s13982_s27 + $0x8] sm:$0x3 pattern:$0x76325410]  ;;  %v14167_v11 = vld [vmem:[%s16039_s0 + $0x4] sm:$0xf] }
  0x25   : > { %877 = vrot.lane.b32.xlu0 %v876_v17, %s13899_s28  ;;  %347 = vrot.lane.b32.xlu1 %v346_v18, %s13899_s28  ;;  %v11074_v56 = vld.sshfl [vmem:[%s13982_s27 + $0xc] sm:$0x3 pattern:$0x76325410] }
  0x26   : > { %v11078_v57 = vld.sshfl [vmem:[%s13982_s27 + $0x10] sm:$0x3 pattern:$0x76325410] }
  0x27   : > { %v11082_v58 = vld.sshfl [vmem:[%s13982_s27 + $0x14] sm:$0x3 pattern:$0x76325410] }
  0x28   : > { %v11086_v59 = vld.sshfl [vmem:[%s13982_s27 + $0x18] sm:$0x3 pattern:$0x76325410] }
  0x29   : > { %983 = vrot.lane.b32.xlu0 %v982_v21, %s13899_s28  ;;  %400 = vrot.lane.b32.xlu1 %v399_v22, %s13899_s28  ;;  %v11090_v60 = vld.sshfl [vmem:[%s13982_s27 + $0x1c] sm:$0x3 pattern:$0x76325410] }
  0x2a   : > { %v14139_v61 = vld.sshfl [vmem:[%s13982_s27 + $0x2] sm:$0x3 pattern:$0x76325410] }
  0x2b   : > { %v11094_v62 = vld.sshfl [vmem:[%s13982_s27 + $0x20] sm:$0x3 pattern:$0x76325410] }
  0x2c   : > { %v14146_v63 = vld.sshfl [vmem:[%s13982_s27 + $0x6] sm:$0x3 pattern:$0x76325410] }
  0x2d   : > { %1089 = vrot.lane.b32.xlu0 %v1088_v25, %s13899_s28  ;;  %453 = vrot.lane.b32.xlu1 %v452_v26, %s13899_s28  ;;  %v11098_v0 = vld.sshfl [vmem:[%s13982_s27 + $0x24] sm:$0x3 pattern:$0x76325410] }
  0x2e   : > { %v14153_v1 = vld.sshfl [vmem:[%s13982_s27 + $0xa] sm:$0x3 pattern:$0x76325410] }
  0x2f   : > { %v11102_v2 = vld.sshfl [vmem:[%s13982_s27 + $0x28] sm:$0x3 pattern:$0x76325410] }
  0x30   : > { %v14160_v4 = vld.sshfl [vmem:[%s13982_s27 + $0xe] sm:$0x3 pattern:$0x76325410] }
  0x31   : > { %1195 = vrot.lane.b32.xlu0 %v1194_v29, %s13899_s28  ;;  %506 = vrot.lane.b32.xlu1 %v505_v30, %s13899_s28  ;;  %v11106_v14 = vld.sshfl [vmem:[%s13982_s27 + $0x2c] sm:$0x3 pattern:$0x76325410] }
  0x32   : > { %v14173_v17 = vld.sshfl [vmem:[%s13982_s27 + $0x12] sm:$0x3 pattern:$0x76325410] }
  0x33   : > { %v14190_v30 = vld.sshfl [vmem:[%s13982_s27 + $0x16] sm:$0x3 pattern:$0x76325410] }
  0x35   : > { %1301 = vrot.lane.b32.xlu0 %v1300_v33, %s13899_s28  ;;  %559 = vrot.lane.b32.xlu1 %v558_v34, %s13899_s28 }
  0x39   : > { %1407 = vrot.lane.b32.xlu0 %v1406_v37, %s13899_s28  ;;  %612 = vrot.lane.b32.xlu1 %v611_v38, %s13899_s28 }
  0x3d   : > { %718 = vrot.lane.b32.xlu0 %v717_v41, %s13899_s28  ;;  %824 = vrot.lane.b32.xlu1 %v823_v42, %s13899_s28  ;;  %v14207_v41 = vld.sshfl [vmem:[%s13982_s27 + $0x1a] sm:$0x3 pattern:$0x76325410] }
  0x41   : > { %930 = vrot.lane.b32.xlu0 %v929_v45, %s13899_s28  ;;  %1036 = vrot.lane.b32.xlu1 %v1035_v46, %s13899_s28 }
  0x45   : > { %1142 = vrot.lane.b32.xlu0 %v1141_v49, %s13899_s28  ;;  %1248 = vrot.lane.b32.xlu1 %v1247_v50, %s13899_s28  ;;  %v14224_v50 = vld.sshfl [vmem:[%s13982_s27 + $0x1e] sm:$0x3 pattern:$0x76325410] }
  0x49   : > { %1354 = vrot.lane.b32.xlu0 %v1353_v52, %s13899_s28  ;;  %2477 = vrot.lane.b32.xlu1 %v11062_v53, %s13900_s29 }
  0x4d   : > { %2586 = vrot.lane.b32.xlu0 %v11066_v54, %s13900_s29  ;;  %2692 = vrot.lane.b32.xlu1 %v11070_v55, %s13900_s29 }
  0x51   : > { %2798 = vrot.lane.b32.xlu0 %v11074_v56, %s13900_s29  ;;  %2904 = vrot.lane.b32.xlu1 %v11078_v57, %s13900_s29  ;;  %v14241_v56 = vld.sshfl [vmem:[%s13982_s27 + $0x22] sm:$0x3 pattern:$0x76325410] }
  0x55   : > { %3010 = vrot.lane.b32.xlu0 %v11082_v58, %s13900_s29  ;;  %3116 = vrot.lane.b32.xlu1 %v11086_v59, %s13900_s29 }
  0x59   : > { %3222 = vrot.lane.b32.xlu1 %v11090_v60, %s13900_s29  ;;  %2533 = vrot.lane.b32.xlu0 %v14139_v61, %s13900_s29 }
  0x5d   : > { %3328 = vrot.lane.b32.xlu1 %v11094_v62, %s13900_s29  ;;  %2639 = vrot.lane.b32.xlu0 %v14146_v63, %s13900_s29  ;;  %v14258_v62 = vld.sshfl [vmem:[%s13982_s27 + $0x26] sm:$0x3 pattern:$0x76325410] }
  0x61   : > { %3434 = vrot.lane.b32.xlu1 %v11098_v0, %s13900_s29  ;;  %2745 = vrot.lane.b32.xlu0 %v14153_v1, %s13900_s29 }
  0x65   : > { %3540 = vrot.lane.b32.xlu1 %v11102_v2, %s13900_s29  ;;  %2851 = vrot.lane.b32.xlu0 %v14160_v4, %s13900_s29 }
  0x69   : > { %3646 = vrot.lane.b32.xlu1 %v11106_v14, %s13900_s29  ;;  %2957 = vrot.lane.b32.xlu0 %v14173_v17, %s13900_s29 }
  0x6d   : > { %3063 = vrot.lane.b32.xlu0 %v14190_v30, %s13900_s29  ;;  %3169 = vrot.lane.b32.xlu1 %v14207_v41, %s13900_s29 }
  0x71   : > { %3275 = vrot.lane.b32.xlu0 %v14224_v50, %s13900_s29  ;;  %3381 = vrot.lane.b32.xlu1 %v14241_v56, %s13900_s29 }
  0x75   : > { %3487 = vrot.lane.b32.xlu0 %v14258_v62, %s13900_s29 }
  0x8f   : > { %v666_v5 = vpop.permute.xlu0 %665  ;;  %v772_v10 = vpop.permute.xlu1 %771 }
  0x90   : > { %v668_v13 = vsel %vm242_vm1, %v666_v5, 0  ;;  %v774_v18 = vsel %vm242_vm1, %v772_v10, 0 }
  0x91   : > { %11858 = vmatpush3.bf16.msra.mxu0 %v668_v13  ;;  %v14275_v13 = vld.sshfl [vmem:[%s13982_s27 + $0x2a] sm:$0x3 pattern:$0x76325410] }
  0x92   : > { %11869 = vmatprep.subr.bf16.mxu0 %v13897_v3  ;;  %3593 = vrot.lane.b32.xlu1 %v14275_v13, %s13900_s29 }
  0x93   : > { %v237_v21 = vpop.permute.xlu0 %236  ;;  %v295_v22 = vpop.permute.xlu1 %294 }
  0x94   : > { %11860 = vmatmul.mubr.msk.bf16.vlgmr.msra.gmra.mrb[0].mxu0 %vm238_vm2, %v14167_v11  ;;  %v244_v25 = vsel %vm242_vm1, %v237_v21, 0  ;;  %v297_v26 = vsel %vm242_vm1, %v295_v22, 0  ;;  %v1456_v22 = vsel %vm242_vm1, %v13991_v9, 0  ;;  %v14307_v9 = vld [vmem:[%s16039_s0] sm:$0xf] }
  0x95   : > { %11810 = vmatpush3.bf16.msra.mxu1 %v244_v25  ;;  %11870 = vmatpush3.bf16.msra.mxu0 %v774_v18 }
  0x96   : > { %11871 = vmatprep.mubr.msk.bf16.mxu0 %vm13898_vm0, %v13897_v3  ;;  %11815 = vmatprep.subr.bf16.mxu1 %v13897_v3 }
  0x97   : > { %v878_v29 = vpop.permute.xlu0 %877  ;;  %11881 = vmatprep.subr.bf16.mxu0 %v13897_v3  ;;  %v348_v34 = vpop.permute.xlu1 %347 }
  0x98   : > { %11812 = vmatmul.mubr.msk.bf16.vlgmr.msra.gmra.mrb[0].mxu1 %vm238_vm2, %v14167_v11  ;;  %v880_v33 = vsel %vm242_vm1, %v878_v29, 0  ;;  %v350_v37 = vsel %vm242_vm1, %v348_v34, 0  ;;  %v1542_v29 = vsel %vm242_vm1, %v14010_v16, 0  ;;  %v1628_v16 = vsel %vm242_vm1, %v14034_v24, 0 }
  0x99   : > { %11816 = vmatpush3.bf16.msra.mxu1 %v297_v26  ;;  %11817 = vmatprep.mubr.msk.bf16.mxu1 %vm13898_vm0, %v13897_v3  ;;  %v1714_v24 = vsel %vm242_vm1, %v14058_v32, 0  ;;  %v1800_v32 = vsel %vm242_vm1, %v13985_v7, 0  ;;  %v1886_v7 = vsel %vm242_vm1, %v13988_v8, 0 }
  0x9a   : > { %11821 = vmatprep.subr.bf16.mxu1 %v13897_v3 }
  0x9b   : > { %v984_v38 = vpop.permute.xlu0 %983  ;;  %v401_v45 = vpop.permute.xlu1 %400 }
  0x9c   : > { %11872 = vmatmul.mubr.msk.bf16.vlgmr.msra.gmra.mrb[4].mxu0 %vm238_vm2, %v14167_v11  ;;  %v986_v42 = vsel %vm242_vm1, %v984_v38, 0  ;;  %v403_v46 = vsel %vm242_vm1, %v401_v45, 0 }
  0x9d   : > { %11882 = vmatpush3.bf16.msra.mxu0 %v880_v33  ;;  %11883 = vmatprep.mubr.msk.bf16.mxu0 %vm13898_vm0, %v13897_v3 }
  0x9e   : > { %11893 = vmatprep.subr.bf16.mxu0 %v13897_v3 }
  0x9f   : > { %v1090_v49 = vpop.permute.xlu0 %1089  ;;  %v454_v53 = vpop.permute.xlu1 %453 }
  0xa0   : > { %11818 = vmatmul.mubr.msk.bf16.vlgmr.msra.gmra.mrb[4].mxu1 %vm238_vm2, %v14167_v11  ;;  %v1092_v52 = vsel %vm242_vm1, %v1090_v49, 0  ;;  %v456_v54 = vsel %vm242_vm1, %v454_v53, 0 }
  0xa1   : > { %11822 = vmatpush3.bf16.msra.mxu1 %v350_v37  ;;  %11823 = vmatprep.mubr.msk.bf16.mxu1 %vm13898_vm0, %v13897_v3 }
  0xa2   : > { %11827 = vmatprep.subr.bf16.mxu1 %v13897_v3 }
  0xa3   : > { %v1196_v55 = vpop.permute.xlu0 %1195  ;;  %v507_v58 = vpop.permute.xlu1 %506 }
  0xa4   : > { %11884 = vmatmul.mubr.msk.bf16.vlgmr.msra.gmra.mrb[8].mxu0 %vm238_vm2, %v14167_v11  ;;  %v1198_v57 = vsel %vm242_vm1, %v1196_v55, 0  ;;  %v509_v59 = vsel %vm242_vm1, %v507_v58, 0  ;;  %v1972_v55 = vsel %vm242_vm1, %v14007_v15, 0  ;;  %v14394_v15 = vld [vmem:[%s13982_s27 + $0x6] sm:$0x3] }
  0xa5   : > { %11894 = vmatpush3.bf16.msra.mxu0 %v986_v42  ;;  %11895 = vmatprep.mubr.msk.bf16.mxu0 %vm13898_vm0, %v13897_v3 }
  0xa6   : > { %11905 = vmatprep.subr.bf16.mxu0 %v13897_v3 }
  0xa7   : > { %v1302_v60 = vpop.permute.xlu0 %1301  ;;  %v560_v2 = vpop.permute.xlu1 %559 }
  0xa8   : > { %11824 = vmatmul.mubr.msk.bf16.vlgmr.msra.gmra.mrb[8].mxu1 %vm238_vm2, %v14167_v11  ;;  %v1304_v0 = vsel %vm242_vm1, %v1302_v60, 0  ;;  %v562_v5 = vsel %vm242_vm1, %v560_v2, 0  ;;  %v2058_v60 = vsel %vm242_vm1, %v14019_v19, 0  ;;  %v14414_v19 = vld [vmem:[%s13982_s27 + $0xa] sm:$0x3] }
  0xa9   : > { %11828 = vmatpush3.bf16.msra.mxu1 %v403_v46  ;;  %11829 = vmatprep.mubr.msk.bf16.mxu1 %vm13898_vm0, %v13897_v3  ;;  %v4981_v2 = vrot.slane %v14414_v19, %v13977_v6 }
  0xaa   : > { %11833 = vmatprep.subr.bf16.mxu1 %v13897_v3 }
  0xab   : > { %v1408_v10 = vpop.permute.xlu0 %1407  ;;  %v613_v18 = vpop.permute.xlu1 %612 }
  0xac   : > { %11896 = vmatmul.mubr.msk.bf16.vlgmr.msra.gmra.mrb[12].mxu0 %vm238_vm2, %v14167_v11  ;;  %v1410_v14 = vsel %vm242_vm1, %v1408_v10, 0  ;;  %v615_v21 = vsel %vm242_vm1, %v613_v18, 0  ;;  %v2230_v10 = vsel %vm242_vm1, %v14043_v27, 0  ;;  %v14454_v27 = vld [vmem:[%s13982_s27 + $0x12] sm:$0x3]  ;;  %v2316_v18 = vsel %vm242_vm1, %v14055_v31, 0 }
  0xad   : > { %11906 = vmatpush3.bf16.msra.mxu0 %v1092_v52  ;;  %11907 = vmatprep.mubr.msk.bf16.mxu0 %vm13898_vm0, %v13897_v3 }
  0xae   : > { %11917 = vmatprep.subr.bf16.mxu0 %v13897_v3 }
  0xaf   : > { %v719_v25 = vpop.permute.xlu0 %718  ;;  %v825_v33 = vpop.permute.xlu1 %824 }
  0xb0   : > { %11830 = vmatmul.mubr.msk.bf16.vlgmr.msra.gmra.mrb[12].mxu1 %vm238_vm2, %v14167_v11  ;;  %v721_v26 = vsel %vm242_vm1, %v719_v25, 0  ;;  %v827_v34 = vsel %vm242_vm1, %v825_v33, 0 }
  0xb1   : > { %11834 = vmatpush3.bf16.msra.mxu1 %v456_v54  ;;  %11835 = vmatprep.mubr.msk.bf16.mxu1 %vm13898_vm0, %v13897_v3  ;;  %v14375_v54 = vld [vmem:[%s13982_s27 + $0x2] sm:$0x3] }
  0xb2   : > { %11839 = vmatprep.subr.bf16.mxu1 %v13897_v3  ;;  %v4766_v8 = vrot.slane %v14375_v54, %v13977_v6 }
  0xb3   : > { %v931_v37 = vpop.permute.xlu0 %930  ;;  %v1037_v42 = vpop.permute.xlu1 %1036 }
  0xb4   : > { %11908 = vmatmul.mubr.msk.bf16.vlgmr.msra.gmra.mrb[16].mxu0 %vm238_vm2, %v14167_v11  ;;  %v933_v38 = vsel %vm242_vm1, %v931_v37, 0  ;;  %v1039_v45 = vsel %vm242_vm1, %v1037_v42, 0  ;;  %4767 = vrot.lane.b32.xlu0 %v4766_v8, %s13899_s28  ;;  %v1929_v37 = vsel %vm242_vm1, %v14082_v40, 0  ;;  %v14560_v8 = vld [vmem:[%s13982_s27 + $0x22] sm:$0x3] }
  0xb5   : > { %11918 = vmatpush3.bf16.msra.mxu0 %v1198_v57  ;;  %11919 = vmatprep.mubr.msk.bf16.mxu0 %vm13898_vm0, %v13897_v3 }
  0xb6   : > { %11929 = vmatprep.subr.bf16.mxu0 %v13897_v3 }
  0xb7   : > { %v1143_v46 = vpop.permute.xlu0 %1142  ;;  %v1249_v52 = vpop.permute.xlu1 %1248 }
  0xb8   : > { %11836 = vmatmul.mubr.msk.bf16.vlgmr.msra.gmra.mrb[16].mxu1 %vm238_vm2, %v14167_v11  ;;  %v1145_v49 = vsel %vm242_vm1, %v1143_v46, 0  ;;  %v1251_v53 = vsel %vm242_vm1, %v1249_v52, 0  ;;  %4982 = vrot.lane.b32.xlu0 %v4981_v2, %s13899_s28 }
  0xb9   : > { %11840 = vmatpush3.bf16.msra.mxu1 %v509_v59  ;;  %11841 = vmatprep.mubr.msk.bf16.mxu1 %vm13898_vm0, %v13897_v3  ;;  %v4875_v59 = vrot.slane %v14394_v15, %v13977_v6 }
  0xba   : > { %11845 = vmatprep.subr.bf16.mxu1 %v13897_v3 }
  0xbb   : > { %v1355_v57 = vpop.permute.xlu0 %1354  ;;  %4876 = vrot.lane.b32.xlu1 %v4875_v59, %s13899_s28 }
  0xbc   : > { %11920 = vmatmul.mubr.msk.bf16.vlgmr.msra.gmra.mrb[20].mxu0 %vm238_vm2, %v14167_v11  ;;  %v1357_v58 = vsel %vm242_vm1, %v1355_v57, 0  ;;  %v2101_v57 = vsel %vm242_vm1, %v14094_v44, 0 }
  0xbd   : > { %11930 = vmatpush3.bf16.msra.mxu0 %v1304_v0  ;;  %11931 = vmatprep.mubr.msk.bf16.mxu0 %vm13898_vm0, %v13897_v3  ;;  %v1499_v0 = vsel %vm242_vm1, %v13998_v12, 0  ;;  %v1585_v12 = vsel %vm242_vm1, %v14022_v20, 0  ;;  %v1671_v20 = vsel %vm242_vm1, %v14046_v28, 0  ;;  %v1757_v28 = vsel %vm242_vm1, %v14070_v36, 0 }
  0xbe   : > { %11941 = vmatprep.subr.bf16.mxu0 %v13897_v3  ;;  %v2402_v36 = vsel %vm242_vm1, %v14067_v35, 0  ;;  %v2478_v35 = vpop.permute.xlu1 %2477 }
  0xc0   : > { %11842 = vmatmul.mubr.msk.bf16.vlgmr.msra.gmra.mrb[20].mxu1 %vm238_vm2, %v14167_v11 }
  0xc1   : > { %11846 = vmatpush3.bf16.msra.mxu1 %v562_v5  ;;  %11847 = vmatprep.mubr.msk.bf16.mxu1 %vm13898_vm0, %v13897_v3  ;;  %v2144_v5 = vsel %vm242_vm1, %v14031_v23, 0  ;;  %v14434_v23 = vld [vmem:[%s13982_s27 + $0xe] sm:$0x3] }
  0xc2   : > { %11851 = vmatprep.subr.bf16.mxu1 %v13897_v3  ;;  %v2693_v52 = vpop.permute.xlu1 %2692 }
  0xc4   : > { %11932 = vmatmul.mubr.msk.bf16.vlgmr.msra.gmra.mrb[24].mxu0 %vm238_vm2, %v14167_v11 }
  0xc5   : > { %11942 = vmatpush3.bf16.msra.mxu0 %v1410_v14  ;;  %11943 = vmatprep.mubr.msk.bf16.mxu0 %vm13898_vm0, %v13897_v3  ;;  %v5193_v14 = vrot.slane %v14454_v27, %v13977_v6 }
  0xc6   : > { %11947 = vmatprep.subr.bf16.mxu0 %v13897_v3 }
  0xc7   : > { %5194 = vrot.lane.b32.xlu0 %v5193_v14, %s13899_s28 }
  0xc8   : > { %11848 = vmatmul.mubr.msk.bf16.vlgmr.msra.gmra.mrb[24].mxu1 %vm238_vm2, %v14167_v11 }
  0xc9   : > { %11852 = vmatpush3.bf16.msra.mxu1 %v615_v21  ;;  %11853 = vmatprep.mubr.msk.bf16.mxu1 %vm13898_vm0, %v13897_v3  ;;  %v14472_v21 = vld [vmem:[%s13982_s27 + $0x4] sm:$0x3] }
  0xca   : > { %11863 = vmatprep.subr.bf16.mxu1 %v13897_v3  ;;  %v4822_v31 = vrot.slane %v14472_v21, %v13977_v6 }
  0xcc   : > { %11944 = vmatmul.mubr.msk.bf16.vlgmr.msra.gmra.mrb[28].mxu0 %vm238_vm2, %v14167_v11 }
  0xcd   : > { %11948 = vmatpush3.bf16.msra.mxu0 %v1456_v22  ;;  %11949 = vmatprep.mubr.msk.bf16.mxu0 %vm13898_vm0, %v13897_v3  ;;  %v14479_v22 = vld [vmem:[%s13982_s27 + $0x16] sm:$0x3] }
  0xce   : > { %11959 = vmatprep.subr.bf16.mxu0 %v13897_v3  ;;  %v5299_v25 = vrot.slane %v14479_v22, %v13977_v6 }
  0xd0   : > { %11854 = vmatmul.mubr.msk.bf16.vlgmr.msra.gmra.mrb[28].mxu1 %vm238_vm2, %v14167_v11  ;;  %5300 = vrot.lane.b32.xlu0 %v5299_v25, %s13899_s28 }
  0xd1   : > { %11864 = vmatpush3.bf16.msra.mxu1 %v721_v26  ;;  %11865 = vmatprep.mubr.msk.bf16.mxu1 %vm13898_vm0, %v13897_v3  ;;  %v1843_v26 = vsel %vm242_vm1, %v14079_v39, 0 }
  0xd2   : > { %11875 = vmatprep.subr.bf16.mxu1 %v13897_v3 }
  0xd4   : > { %11950 = vmatmul.mubr.msk.bf16.vlgmr.msra.gmra.mrb[32].mxu0 %vm238_vm2, %v14307_v9 }
  0xd5   : > { %11960 = vmatpush3.bf16.msra.mxu0 %v1542_v29  ;;  %11961 = vmatprep.mubr.msk.bf16.mxu0 %vm13898_vm0, %v13897_v3  ;;  %v14498_v29 = vld [vmem:[%s13982_s27 + $0x8] sm:$0x3] }
  0xd6   : > { %11971 = vmatprep.subr.bf16.mxu0 %v13897_v3  ;;  %v4928_v33 = vrot.slane %v14498_v29, %v13977_v6 }
  0xd8   : > { %11866 = vmatmul.mubr.msk.bf16.vlgmr.msra.gmra.mrb[32].mxu1 %vm238_vm2, %v14167_v11 }
  0xd9   : > { %11876 = vmatpush3.bf16.msra.mxu1 %v827_v34  ;;  %11877 = vmatprep.mubr.msk.bf16.mxu1 %vm13898_vm0, %v13897_v3  ;;  %v14505_v34 = vld [vmem:[%s13982_s27 + $0x1a] sm:$0x3] }
  0xda   : > { %11887 = vmatprep.subr.bf16.mxu1 %v13897_v3  ;;  %v5405_v39 = vrot.slane %v14505_v34, %v13977_v6 }
  0xdc   : > { %11962 = vmatmul.mubr.msk.bf16.vlgmr.msra.gmra.mrb[36].mxu0 %vm238_vm2, %v14307_v9  ;;  %5406 = vrot.lane.b32.xlu0 %v5405_v39, %s13899_s28 }
  0xdd   : > { %11972 = vmatpush3.bf16.msra.mxu0 %v1628_v16  ;;  %11973 = vmatprep.mubr.msk.bf16.mxu0 %vm13898_vm0, %v13897_v3  ;;  %v2483_v16 = vsel %vm242_vm1, %v2478_v35, 0  ;;  %v2359_v35 = vsel %vm242_vm1, %v14115_v51, 0 }
  0xde   : > { %11983 = vmatprep.subr.bf16.mxu0 %v13897_v3 }
  0xe0   : > { %11878 = vmatmul.mubr.msk.bf16.vlgmr.msra.gmra.mrb[36].mxu1 %vm238_vm2, %v14167_v11 }
  0xe1   : > { %11888 = vmatpush3.bf16.msra.mxu1 %v933_v38  ;;  %11889 = vmatprep.mubr.msk.bf16.mxu1 %vm13898_vm0, %v13897_v3  ;;  %v14523_v38 = vld [vmem:[%s13982_s27 + $0xc] sm:$0x3] }
  0xe2   : > { %11899 = vmatprep.subr.bf16.mxu1 %v13897_v3  ;;  %v5034_v42 = vrot.slane %v14523_v38, %v13977_v6 }
  0xe4   : > { %11974 = vmatmul.mubr.msk.bf16.vlgmr.msra.gmra.mrb[40].mxu0 %vm238_vm2, %v14307_v9 }
  0xe5   : > { %11984 = vmatpush3.bf16.msra.mxu0 %v1714_v24  ;;  %11985 = vmatprep.mubr.msk.bf16.mxu0 %vm13898_vm0, %v13897_v3  ;;  %v2587_v24 = vpop.permute.xlu0 %2586 }
  0xe6   : > { %11995 = vmatprep.subr.bf16.mxu0 %v13897_v3  ;;  %v2589_v46 = vsel %vm242_vm1, %v2587_v24, 0  ;;  %v14675_v24 = vld [vmem:[%s13982_s27 + $0x24] sm:$0x3] }
  0xe8   : > { %11890 = vmatmul.mubr.msk.bf16.vlgmr.msra.gmra.mrb[40].mxu1 %vm238_vm2, %v14167_v11 }
  0xe9   : > { %11900 = vmatpush3.bf16.msra.mxu1 %v1039_v45  ;;  %11901 = vmatprep.mubr.msk.bf16.mxu1 %vm13898_vm0, %v13897_v3  ;;  %v14530_v45 = vld [vmem:[%s13982_s27 + $0x1e] sm:$0x3]  ;;  %v2799_v59 = vpop.permute.xlu0 %2798 }
  0xea   : > { %11911 = vmatprep.subr.bf16.mxu1 %v13897_v3  ;;  %v5511_v40 = vrot.slane %v14530_v45, %v13977_v6  ;;  %v2801_v2 = vsel %vm242_vm1, %v2799_v59, 0 }
  0xec   : > { %11986 = vmatmul.mubr.msk.bf16.vlgmr.msra.gmra.mrb[44].mxu0 %vm238_vm2, %v14307_v9  ;;  %5512 = vrot.lane.b32.xlu0 %v5511_v40, %s13899_s28  ;;  %v5670_v40 = vrot.slane %v14675_v24, %v13977_v6 }
  0xed   : > { %11996 = vmatpush3.bf16.msra.mxu0 %v1800_v32  ;;  %11997 = vmatprep.mubr.msk.bf16.mxu0 %vm13898_vm0, %v13897_v3  ;;  %v14535_v32 = vld [vmem:[%s16039_s0 + $0x8] sm:$0xf] }
  0xee   : > { %12007 = vmatprep.subr.bf16.mxu0 %v13897_v3 }
  0xf0   : > { %11902 = vmatmul.mubr.msk.bf16.vlgmr.msra.gmra.mrb[44].mxu1 %vm238_vm2, %v14167_v11 }
  0xf1   : > { %11912 = vmatpush3.bf16.msra.mxu1 %v1145_v49  ;;  %11913 = vmatprep.mubr.msk.bf16.mxu1 %vm13898_vm0, %v13897_v3  ;;  %v2015_v49 = vsel %vm242_vm1, %v14091_v43, 0  ;;  %v5617_v43 = vrot.slane %v14560_v8, %v13977_v6 }
  0xf2   : > { %11923 = vmatprep.subr.bf16.mxu1 %v13897_v3 }
  0xf3   : > { %5618 = vrot.lane.b32.xlu0 %v5617_v43, %s13899_s28 }
  0xf4   : > { %11998 = vmatmul.mubr.msk.bf16.vlgmr.msra.gmra.mrb[0].mxu0 %vm238_vm2, %v14307_v9 }
  0xf5   : > { %12008 = vmatpush3.bf16.msra.mxu0 %v1886_v7  ;;  %12009 = vmatprep.mubr.msk.bf16.mxu0 %vm13898_vm0, %v13897_v3  ;;  %v14553_v7 = vld [vmem:[%s13982_s27 + $0x10] sm:$0x3] }
  0xf6   : > { %12019 = vmatprep.subr.bf16.mxu0 %v13897_v3 }
  0xf8   : > { %11914 = vmatmul.mubr.msk.bf16.vlgmr.msra.gmra.mrb[48].mxu1 %vm238_vm2, %v14167_v11 }
  0xf9   : > { %11924 = vmatpush3.bf16.msra.mxu1 %v1251_v53  ;;  %11925 = vmatprep.mubr.msk.bf16.mxu1 %vm13898_vm0, %v13897_v3  ;;  %v5140_v53 = vrot.slane %v14553_v7, %v13977_v6 }
  0xfa   : > { %11935 = vmatprep.subr.bf16.mxu1 %v13897_v3 }
  0xfc   : > { %12010 = vmatmul.mubr.msk.bf16.vlgmr.msra.gmra.mrb[4].mxu0 %vm238_vm2, %v14307_v9 }
  0xfd   : > { %12020 = vmatpush3.bf16.msra.mxu0 %v1972_v55  ;;  %12021 = vmatprep.mubr.msk.bf16.mxu0 %vm13898_vm0, %v13897_v3  ;;  %v2695_v55 = vsel %vm242_vm1, %v2693_v52, 0 }
  0xfe   : > { %12031 = vmatprep.subr.bf16.mxu0 %v13897_v3 }
 0x100   : > { %11926 = vmatmul.mubr.msk.bf16.vlgmr.msra.gmra.mrb[52].mxu1 %vm238_vm2, %v14167_v11 }
 0x101   : > { %11936 = vmatpush3.bf16.msra.mxu1 %v1357_v58  ;;  %11937 = vmatprep.mubr.msk.bf16.mxu1 %vm13898_vm0, %v13897_v3  ;;  %v14578_v58 = vld [vmem:[%s13982_s27 + $0x14] sm:$0x3] }
 0x102   : > { %11953 = vmatprep.subr.bf16.mxu1 %v13897_v3 }
 0x104   : > { %12022 = vmatmul.mubr.msk.bf16.vlgmr.msra.gmra.mrb[8].mxu0 %vm238_vm2, %v14307_v9 }
 0x105   : > { %12032 = vmatpush3.bf16.msra.mxu0 %v2058_v60  ;;  %12033 = vmatprep.mubr.msk.bf16.mxu0 %vm13898_vm0, %v13897_v3  ;;  %v5246_v60 = vrot.slane %v14578_v58, %v13977_v6 }
 0x106   : > { %12043 = vmatprep.subr.bf16.mxu0 %v13897_v3 }
 0x108   : > { %11938 = vmatmul.mubr.msk.bf16.vlgmr.msra.gmra.mrb[56].mxu1 %vm238_vm2, %v14167_v11  ;;  %v5087_v11 = vrot.slane %v14434_v23, %v13977_v6 }
 0x109   : > { %11954 = vmatpush3.bf16.msra.mxu1 %v1499_v0  ;;  %11955 = vmatprep.mubr.msk.bf16.mxu1 %vm13898_vm0, %v13897_v3  ;;  %v14585_v0 = vld [vmem:[%s13982_s27 + $0x26] sm:$0x3] }
 0x10a   : > { %11965 = vmatprep.subr.bf16.mxu1 %v13897_v3  ;;  %5088 = vrot.lane.b32.xlu1 %v5087_v11, %s13899_s28  ;;  %v5723_v44 = vrot.slane %v14585_v0, %v13977_v6  ;;  %v2905_v11 = vpop.permute.xlu1 %2904 }
 0x10b   : > { %v2907_v14 = vsel %vm242_vm1, %v2905_v11, 0 }
 0x10c   : > { %12034 = vmatmul.mubr.msk.bf16.vlgmr.msra.gmra.mrb[12].mxu0 %vm238_vm2, %v14307_v9  ;;  %5724 = vrot.lane.b32.xlu0 %v5723_v44, %s13899_s28 }
 0x10d   : > { %12044 = vmatpush3.bf16.msra.mxu0 %v2144_v5  ;;  %12045 = vmatprep.mubr.msk.bf16.mxu0 %vm13898_vm0, %v13897_v3  ;;  %v2187_v5 = vsel %vm242_vm1, %v14103_v47, 0 }
 0x10e   : > { %12055 = vmatprep.subr.bf16.mxu0 %v13897_v3  ;;  %4823 = vrot.lane.b32.xlu1 %v4822_v31, %s13899_s28  ;;  %v3011_v31 = vpop.permute.xlu0 %3010  ;;  %v3117_v39 = vpop.permute.xlu1 %3116 }
 0x110   : > { %11956 = vmatmul.mubr.msk.bf16.vlgmr.msra.gmra.mrb[4].mxu1 %vm238_vm2, %v14307_v9 }
 0x111   : > { %11966 = vmatpush3.bf16.msra.mxu1 %v1585_v12  ;;  %11967 = vmatprep.mubr.msk.bf16.mxu1 %vm13898_vm0, %v13897_v3  ;;  %v14603_v12 = vld [vmem:[%s13982_s27 + $0x18] sm:$0x3] }
 0x112   : > { %11977 = vmatprep.subr.bf16.mxu1 %v13897_v3  ;;  %4929 = vrot.lane.b32.xlu1 %v4928_v33, %s13899_s28  ;;  %v14653_v33 = vld [vmem:[%s13982_s27 + $0x20] sm:$0x3]  ;;  %v2534_v51 = vpop.permute.xlu0 %2533 }
 0x114   : > { %12046 = vmatmul.mubr.msk.bf16.vlgmr.msra.gmra.mrb[16].mxu0 %vm238_vm2, %v14307_v9 }
 0x115   : > { %12056 = vmatpush3.bf16.msra.mxu0 %v2230_v10  ;;  %12057 = vmatprep.mubr.msk.bf16.mxu0 %vm13898_vm0, %v13897_v3  ;;  %v5352_v10 = vrot.slane %v14603_v12, %v13977_v6 }
 0x116   : > { %12067 = vmatprep.subr.bf16.mxu0 %v13897_v3  ;;  %5035 = vrot.lane.b32.xlu1 %v5034_v42, %s13899_s28  ;;  %v3223_v42 = vpop.permute.xlu1 %3222 }
 0x118   : > { %11968 = vmatmul.mubr.msk.bf16.vlgmr.msra.gmra.mrb[12].mxu1 %vm238_vm2, %v14307_v9 }
 0x119   : > { %11978 = vmatpush3.bf16.msra.mxu1 %v1671_v20  ;;  %11979 = vmatprep.mubr.msk.bf16.mxu1 %vm13898_vm0, %v13897_v3  ;;  %v14610_v20 = vld [vmem:[%s13982_s27 + $0x2a] sm:$0x3] }
 0x11a   : > { %11989 = vmatprep.subr.bf16.mxu1 %v13897_v3  ;;  %5141 = vrot.lane.b32.xlu1 %v5140_v53, %s13899_s28  ;;  %v5829_v47 = vrot.slane %v14610_v20, %v13977_v6 }
 0x11c   : > { %12058 = vmatmul.mubr.msk.bf16.vlgmr.msra.gmra.mrb[20].mxu0 %vm238_vm2, %v14307_v9  ;;  %5830 = vrot.lane.b32.xlu0 %v5829_v47, %s13899_s28 }
 0x11d   : > { %12068 = vmatpush3.bf16.msra.mxu0 %v2316_v18  ;;  %12069 = vmatprep.mubr.msk.bf16.mxu0 %vm13898_vm0, %v13897_v3  ;;  %v2273_v18 = vsel %vm242_vm1, %v14106_v48, 0  ;;  %v3013_v48 = vsel %vm242_vm1, %v3011_v31, 0 }
 0x11e   : > { %12079 = vmatprep.subr.bf16.mxu0 %v13897_v3  ;;  %5247 = vrot.lane.b32.xlu1 %v5246_v60, %s13899_s28  ;;  %v14721_v60 = vld [vmem:[%s13982_s27 + $0x2c] sm:$0x3] }
 0x120   : > { %11980 = vmatmul.mubr.msk.bf16.vlgmr.msra.gmra.mrb[20].mxu1 %vm238_vm2, %v14307_v9 }
 0x121   : > { %11990 = vmatpush3.bf16.msra.mxu1 %v1757_v28  ;;  %11991 = vmatprep.mubr.msk.bf16.mxu1 %vm13898_vm0, %v13897_v3  ;;  %v14628_v28 = vld [vmem:[%s13982_s27 + $0x1c] sm:$0x3] }
 0x122   : > { %12001 = vmatprep.subr.bf16.mxu1 %v13897_v3  ;;  %5353 = vrot.lane.b32.xlu1 %v5352_v10, %s13899_s28  ;;  %v5458_v25 = vrot.slane %v14628_v28, %v13977_v6  ;;  %v14747_v10 = vld.sshfl [vmem:[%s13982_s27 + $0x4] sm:$0x3 pattern:$0x76325410] }
 0x124   : > { %12070 = vmatmul.mubr.msk.bf16.vlgmr.msra.gmra.mrb[24].mxu0 %vm238_vm2, %v14307_v9 }
 0x125   : > { %12080 = vmatpush3.bf16.msra.mxu0 %v2402_v36  ;;  %12081 = vmatprep.mubr.msk.bf16.mxu0 %vm13898_vm0, %v13897_v3  ;;  %v14635_v36 = vld [vmem:[%s13982_s27 + $0x2e] sm:$0x3] }
 0x126   : > { %12085 = vmatprep.subr.bf16.mxu0 %v13897_v3  ;;  %5459 = vrot.lane.b32.xlu1 %v5458_v25, %s13899_s28 }
 0x128   : > { %11992 = vmatmul.mubr.msk.bf16.vlgmr.msra.gmra.mrb[28].mxu1 %vm238_vm2, %v14307_v9 }
 0x129   : > { %12002 = vmatpush3.bf16.msra.mxu1 %v1843_v26  ;;  %12003 = vmatprep.mubr.msk.bf16.mxu1 %vm13898_vm0, %v13897_v3  ;;  %v5935_v26 = vrot.slane %v14635_v36, %v13977_v6 }
 0x12a   : > { %12013 = vmatprep.subr.bf16.mxu1 %v13897_v3 }
 0x12b   : > { %5936 = vrot.lane.b32.xlu0 %v5935_v26, %s13899_s28 }
 0x12c   : > { %12082 = vmatmul.mubr.msk.bf16.vlgmr.msra.gmra.mrb[28].mxu0 %vm238_vm2, %v14307_v9 }
 0x12d   : > { %12086 = vmatpush3.bf16.msra.mxu0 %v2483_v16  ;;  %12087 = vmatprep.mubr.msk.bf16.mxu0 %vm13898_vm0, %v13897_v3  ;;  %v5564_v16 = vrot.slane %v14653_v33, %v13977_v6 }
 0x12e   : > { %12097 = vmatprep.subr.bf16.mxu0 %v13897_v3 }
 0x12f   : > { %6037 = vrot.lane.b32.xlu0 %v14139_v61, %s13900_s29  ;;  %5565 = vrot.lane.b32.xlu1 %v5564_v16, %s13899_s28  ;;  %v2536_v61 = vsel %vm242_vm1, %v2534_v51, 0  ;;  %v3746_v16 = vsel %vm242_vm1, %v14375_v54, 0 }
 0x130   : > { %12004 = vmatmul.mubr.msk.bf16.vlgmr.msra.gmra.mrb[32].mxu1 %vm238_vm2, %v14307_v9 }
 0x131   : > { %12014 = vmatpush3.bf16.msra.mxu1 %v1929_v37  ;;  %12015 = vmatprep.mubr.msk.bf16.mxu1 %vm13898_vm0, %v13897_v3  ;;  %v3119_v37 = vsel %vm242_vm1, %v3117_v39, 0  ;;  %v14787_v39 = vld.sshfl [vmem:[%s13982_s27 + $0xc] sm:$0x3 pattern:$0x76325410] }
 0x132   : > { %12025 = vmatprep.subr.bf16.mxu1 %v13897_v3 }
 0x133   : > { %6146 = vrot.lane.b32.xlu0 %v14146_v63, %s13900_s29  ;;  %v3225_v63 = vsel %vm242_vm1, %v3223_v42, 0  ;;  %5671 = vrot.lane.b32.xlu1 %v5670_v40, %s13899_s28 }
 0x134   : > { %12088 = vmatmul.mubr.msk.bf16.vlgmr.msra.gmra.mrb[32].mxu0 %vm238_vm2, %v14535_v32 }
 0x135   : > { %12098 = vmatpush3.bf16.msra.mxu0 %v2589_v46  ;;  %12099 = vmatprep.mubr.msk.bf16.mxu0 %vm13898_vm0, %v13897_v3  ;;  %v2640_v46 = vpop.permute.xlu0 %2639 }
 0x136   : > { %12109 = vmatprep.subr.bf16.mxu0 %v13897_v3 }
 0x137   : > { %6252 = vrot.lane.b32.xlu0 %v14153_v1, %s13900_s29  ;;  %v2642_v1 = vsel %vm242_vm1, %v2640_v46, 0  ;;  %v14812_v46 = vld [vmem:[%s16039_s0 + $0xc] sm:$0xf] }
 0x138   : > { %12016 = vmatmul.mubr.msk.bf16.vlgmr.msra.gmra.mrb[36].mxu1 %vm238_vm2, %v14307_v9 }
 0x139   : > { %12026 = vmatpush3.bf16.msra.mxu1 %v2015_v49  ;;  %12027 = vmatprep.mubr.msk.bf16.mxu1 %vm13898_vm0, %v13897_v3  ;;  %v3329_v49 = vpop.permute.xlu1 %3328  ;;  %v2746_v43 = vpop.permute.xlu0 %2745 }
 0x13a   : > { %12037 = vmatprep.subr.bf16.mxu1 %v13897_v3  ;;  %v2748_v59 = vsel %vm242_vm1, %v2746_v43, 0 }
 0x13b   : > { %6358 = vrot.lane.b32.xlu0 %v14160_v4, %s13900_s29  ;;  %v3331_v4 = vsel %vm242_vm1, %v3329_v49, 0 }
 0x13c   : > { %12100 = vmatmul.mubr.msk.bf16.vlgmr.msra.gmra.mrb[36].mxu0 %vm238_vm2, %v14535_v32 }
 0x13d   : > { %12110 = vmatpush3.bf16.msra.mxu0 %v2695_v55  ;;  %12111 = vmatprep.mubr.msk.bf16.mxu0 %vm13898_vm0, %v13897_v3  ;;  %v3435_v44 = vpop.permute.xlu1 %3434 }
 0x13e   : > { %12121 = vmatprep.subr.bf16.mxu0 %v13897_v3 }
 0x13f   : > { %6464 = vrot.lane.b32.xlu0 %v14173_v17, %s13900_s29 }
 0x140   : > { %12028 = vmatmul.mubr.msk.bf16.vlgmr.msra.gmra.mrb[40].mxu1 %vm238_vm2, %v14307_v9 }
 0x141   : > { %12038 = vmatpush3.bf16.msra.mxu1 %v2101_v57  ;;  %12039 = vmatprep.mubr.msk.bf16.mxu1 %vm13898_vm0, %v13897_v3  ;;  %v3541_v11 = vpop.permute.xlu1 %3540 }
 0x142   : > { %12049 = vmatprep.subr.bf16.mxu1 %v13897_v3 }
 0x143   : > { %6570 = vrot.lane.b32.xlu0 %v14190_v30, %s13900_s29  ;;  %v5882_v30 = vrot.slane %v14721_v60, %v13977_v6 }
 0x144   : > { %12112 = vmatmul.mubr.msk.bf16.vlgmr.msra.gmra.mrb[40].mxu0 %vm238_vm2, %v14535_v32 }
 0x145   : > { %12122 = vmatpush3.bf16.msra.mxu0 %v2801_v2  ;;  %12123 = vmatprep.mubr.msk.bf16.mxu0 %vm13898_vm0, %v13897_v3  ;;  %v3437_v2 = vsel %vm242_vm1, %v3435_v44, 0  ;;  %v3647_v26 = vpop.permute.xlu1 %3646  ;;  %v14850_v44 = vld.sshfl [vmem:[%s13982_s27 + $0x18] sm:$0x3 pattern:$0x76325410] }
 0x146   : > { %12133 = vmatprep.subr.bf16.mxu0 %v13897_v3 }
 0x147   : > { %6676 = vrot.lane.b32.xlu0 %v14207_v41, %s13900_s29 }
 0x148   : > { %12040 = vmatmul.mubr.msk.bf16.vlgmr.msra.gmra.mrb[44].mxu1 %vm238_vm2, %v14307_v9 }
 0x149   : > { %12050 = vmatpush3.bf16.msra.mxu1 %v2187_v5  ;;  %12051 = vmatprep.mubr.msk.bf16.mxu1 %vm13898_vm0, %v13897_v3  ;;  %v2852_v5 = vpop.permute.xlu0 %2851  ;;  %v3170_v51 = vpop.permute.xlu1 %3169 }
 0x14a   : > { %12061 = vmatprep.subr.bf16.mxu1 %v13897_v3  ;;  %v2854_v41 = vsel %vm242_vm1, %v2852_v5, 0  ;;  %v3172_v54 = vsel %vm242_vm1, %v3170_v51, 0 }
 0x14b   : > { %6782 = vrot.lane.b32.xlu0 %v14224_v50, %s13900_s29  ;;  %v3543_v50 = vsel %vm242_vm1, %v3541_v11, 0 }
 0x14c   : > { %12124 = vmatmul.mubr.msk.bf16.vlgmr.msra.gmra.mrb[44].mxu0 %vm238_vm2, %v14535_v32 }
 0x14d   : > { %12134 = vmatpush3.bf16.msra.mxu0 %v2907_v14  ;;  %12135 = vmatprep.mubr.msk.bf16.mxu0 %vm13898_vm0, %v13897_v3 }
 0x14e   : > { %12145 = vmatprep.subr.bf16.mxu0 %v13897_v3 }
 0x14f   : > { %6888 = vrot.lane.b32.xlu0 %v14241_v56, %s13900_s29  ;;  %v2958_v56 = vpop.permute.xlu0 %2957 }
 0x150   : > { %12052 = vmatmul.mubr.msk.bf16.vlgmr.msra.gmra.mrb[48].mxu1 %vm238_vm2, %v14307_v9  ;;  %v2960_v25 = vsel %vm242_vm1, %v2958_v56, 0  ;;  %v11248_v56 = vld.sshfl [vmem:[%s13982_s27 + $0x2e] sm:$0x3 pattern:$0x76325410] }
 0x151   : > { %12062 = vmatpush3.bf16.msra.mxu1 %v2273_v18  ;;  %12063 = vmatprep.mubr.msk.bf16.mxu1 %vm13898_vm0, %v13897_v3 }
 0x152   : > { %12073 = vmatprep.subr.bf16.mxu1 %v13897_v3 }
 0x153   : > { %6994 = vrot.lane.b32.xlu0 %v14258_v62, %s13900_s29  ;;  %v14770_v62 = vld.sshfl [vmem:[%s13982_s27 + $0x8] sm:$0x3 pattern:$0x76325410] }
 0x154   : > { %12136 = vmatmul.mubr.msk.bf16.vlgmr.msra.gmra.mrb[0].mxu0 %vm238_vm2, %v14535_v32 }
 0x155   : > { %12146 = vmatpush3.bf16.msra.mxu0 %v3013_v48  ;;  %12147 = vmatprep.mubr.msk.bf16.mxu0 %vm13898_vm0, %v13897_v3  ;;  %v3649_v48 = vsel %vm242_vm1, %v3647_v26, 0 }
 0x156   : > { %12157 = vmatprep.subr.bf16.mxu0 %v13897_v3 }
 0x157   : > { %7100 = vrot.lane.b32.xlu0 %v14275_v13, %s13900_s29 }
 0x158   : > { %12064 = vmatmul.mubr.msk.bf16.vlgmr.msra.gmra.mrb[52].mxu1 %vm238_vm2, %v14307_v9 }
 0x159   : > { %12074 = vmatpush3.bf16.msra.mxu1 %v2359_v35  ;;  %12075 = vmatprep.mubr.msk.bf16.mxu1 %vm13898_vm0, %v13897_v3  ;;  %v3064_v35 = vpop.permute.xlu0 %3063 }
 0x15a   : > { %12091 = vmatprep.subr.bf16.mxu1 %v13897_v3  ;;  %v3066_v13 = vsel %vm242_vm1, %v3064_v35, 0  ;;  %v15021_v35 = vld [vmem:[%s16039_s0 + $0x10] sm:$0xf] }
 0x15b   : > { %7206 = vrot.lane.b32.xlu0 %v11248_v56, %s13900_s29 }
 0x15c   : > { %12148 = vmatmul.mubr.msk.bf16.vlgmr.msra.gmra.mrb[4].mxu0 %vm238_vm2, %v14535_v32 }
 0x15d   : > { %12158 = vmatpush3.bf16.msra.mxu0 %v3119_v37  ;;  %12159 = vmatprep.mubr.msk.bf16.mxu0 %vm13898_vm0, %v13897_v3  ;;  %v3276_v49 = vpop.permute.xlu0 %3275 }
 0x15e   : > { %12169 = vmatprep.subr.bf16.mxu0 %v13897_v3 }
 0x160   : > { %12076 = vmatmul.mubr.msk.bf16.vlgmr.msra.gmra.mrb[56].mxu1 %vm238_vm2, %v14307_v9  ;;  %v14697_v9 = vld [vmem:[%s13982_s27 + $0x28] sm:$0x3] }
 0x161   : > { %12092 = vmatpush3.bf16.msra.mxu1 %v2536_v61  ;;  %12093 = vmatprep.mubr.msk.bf16.mxu1 %vm13898_vm0, %v13897_v3  ;;  %v5776_v52 = vrot.slane %v14697_v9, %v13977_v6 }
 0x162   : > { %12103 = vmatprep.subr.bf16.mxu1 %v13897_v3 }
 0x163   : > { %5777 = vrot.lane.b32.xlu1 %v5776_v52, %s13899_s28  ;;  %v3278_v52 = vsel %vm242_vm1, %v3276_v49, 0 }
 0x164   : > { %12160 = vmatmul.mubr.msk.bf16.vlgmr.msra.gmra.mrb[8].mxu0 %vm238_vm2, %v14535_v32 }
 0x165   : > { %12170 = vmatpush3.bf16.msra.mxu0 %v3225_v63  ;;  %12171 = vmatprep.mubr.msk.bf16.mxu0 %vm13898_vm0, %v13897_v3  ;;  %v14807_v63 = vld.sshfl [vmem:[%s13982_s27 + $0x10] sm:$0x3 pattern:$0x76325410] }
 0x166   : > { %12181 = vmatprep.subr.bf16.mxu0 %v13897_v3 }
 0x167   : > { %5883 = vrot.lane.b32.xlu1 %v5882_v30, %s13899_s28  ;;  %v4004_v30 = vsel %vm242_vm1, %v14434_v23, 0  ;;  %v14868_v23 = vld.sshfl [vmem:[%s13982_s27 + $0x1c] sm:$0x3 pattern:$0x76325410] }
 0x168   : > { %12094 = vmatmul.mubr.msk.bf16.vlgmr.msra.gmra.mrb[4].mxu1 %vm238_vm2, %v14535_v32 }
 0x169   : > { %12104 = vmatpush3.bf16.msra.mxu1 %v2642_v1  ;;  %12105 = vmatprep.mubr.msk.bf16.mxu1 %vm13898_vm0, %v13897_v3  ;;  %v3832_v1 = vsel %vm242_vm1, %v14394_v15, 0  ;;  %v14830_v15 = vld.sshfl [vmem:[%s13982_s27 + $0x14] sm:$0x3 pattern:$0x76325410] }
 0x16a   : > { %12115 = vmatprep.subr.bf16.mxu1 %v13897_v3 }
 0x16b   : > { %v14710_v53 = vpop.f32.mrb[0].mxu1  ;;  %6093 = vrot.lane.b32.xlu1 %v14747_v10, %s13900_s29 }
 0x16c   : > { %12172 = vmatmul.mubr.msk.bf16.vlgmr.msra.gmra.mrb[12].mxu0 %vm238_vm2, %v14535_v32  ;;  %v11813_v17 = vpop.f32.mrb[1].mxu1 }
 0x16d   : > { %12182 = vmatpush3.bf16.msra.mxu0 %v3331_v4  ;;  %v283_v55 = vpop.f32.mrb[2].mxu1  ;;  %12183 = vmatprep.mubr.msk.bf16.mxu0 %vm13898_vm0, %v13897_v3  ;;  %v3918_v4 = vsel %vm242_vm1, %v14414_v19, 0  ;;  %v3382_v17 = vpop.permute.xlu1 %3381 }
 0x16e   : > { %v11814_v57 = vpop.f32.mrb[3].mxu1  ;;  %12193 = vmatprep.subr.bf16.mxu0 %v13897_v3  ;;  %v3384_v19 = vsel %vm242_vm1, %v3382_v17, 0 }
 0x16f   : > { %6199 = vrot.lane.b32.xlu1 %v14770_v62, %s13900_s29 }
 0x170   : > { %12106 = vmatmul.mubr.msk.bf16.vlgmr.msra.gmra.mrb[12].mxu1 %vm238_vm2, %v14535_v32 }
 0x171   : > { %12116 = vmatpush3.bf16.msra.mxu1 %v2748_v59  ;;  %12117 = vmatprep.mubr.msk.bf16.mxu1 %vm13898_vm0, %v13897_v3  ;;  %v3594_v11 = vpop.permute.xlu1 %3593 }
 0x172   : > { %12127 = vmatprep.subr.bf16.mxu1 %v13897_v3 }
 0x173   : > { %6305 = vrot.lane.b32.xlu1 %v14787_v39, %s13900_s29 }
 0x174   : > { %12184 = vmatmul.mubr.msk.bf16.vlgmr.msra.gmra.mrb[16].mxu0 %vm238_vm2, %v14535_v32 }
 0x175   : > { %12194 = vmatpush3.bf16.msra.mxu0 %v3437_v2  ;;  %12195 = vmatprep.mubr.msk.bf16.mxu0 %vm13898_vm0, %v13897_v3  ;;  %v3488_v2 = vpop.permute.xlu0 %3487 }
 0x176   : > { %12205 = vmatprep.subr.bf16.mxu0 %v13897_v3  ;;  %v3490_v5 = vsel %vm242_vm1, %v3488_v2, 0 }
 0x177   : > { %6411 = vrot.lane.b32.xlu1 %v14807_v63, %s13900_s29 }
 0x178   : > { %12118 = vmatmul.mubr.msk.bf16.vlgmr.msra.gmra.mrb[20].mxu1 %vm238_vm2, %v14535_v32 }
 0x179   : > { %12128 = vmatpush3.bf16.msra.mxu1 %v2854_v41  ;;  %12129 = vmatprep.mubr.msk.bf16.mxu1 %vm13898_vm0, %v13897_v3  ;;  %v4090_v41 = vsel %vm242_vm1, %v14454_v27, 0  ;;  %v14886_v27 = vld.sshfl [vmem:[%s13982_s27 + $0x20] sm:$0x3 pattern:$0x76325410]  ;;  %v4768_v26 = vpop.permute.xlu0 %4767 }
 0x17a   : > { %12139 = vmatprep.subr.bf16.mxu1 %v13897_v3 }
 0x17b   : > { %v14755_v47 = vpop.f32.mrb[8].mxu1  ;;  %6517 = vrot.lane.b32.xlu1 %v14830_v15, %s13900_s29 }
 0x17c   : > { %12196 = vmatmul.mubr.msk.bf16.vlgmr.msra.gmra.mrb[20].mxu0 %vm238_vm2, %v14535_v32  ;;  %v11825_v14 = vpop.f32.mrb[9].mxu1 }
 0x17d   : > { %12206 = vmatpush3.bf16.msra.mxu0 %v3543_v50  ;;  %v389_v18 = vpop.f32.mrb[10].mxu1  ;;  %12207 = vmatprep.mubr.msk.bf16.mxu0 %vm13898_vm0, %v13897_v3  ;;  %v3596_v50 = vsel %vm242_vm1, %v3594_v11, 0  ;;  %v4176_v14 = vsel %vm242_vm1, %v14479_v22, 0  ;;  %v3789_v22 = vsel %vm242_vm1, %v14472_v21, 0  ;;  %v3875_v21 = vsel %vm242_vm1, %v14498_v29, 0 }
 0x17e   : > { %v11826_v31 = vpop.f32.mrb[11].mxu1  ;;  %12217 = vmatprep.subr.bf16.mxu0 %v13897_v3  ;;  %v14907_v18 = vld.sshfl [vmem:[%s13982_s27 + $0x24] sm:$0x3 pattern:$0x76325410]  ;;  %v3961_v29 = vsel %vm242_vm1, %v14523_v38, 0 }
 0x17f   : > { %6623 = vrot.lane.b32.xlu1 %v14850_v44, %s13900_s29  ;;  %v4262_v31 = vsel %vm242_vm1, %v14505_v34, 0  ;;  %v14926_v34 = vld.sshfl [vmem:[%s13982_s27 + $0x28] sm:$0x3 pattern:$0x76325410]  ;;  %v4047_v38 = vsel %vm242_vm1, %v14553_v7, 0 }
 0x180   : > { %12130 = vmatmul.mubr.msk.bf16.vlgmr.msra.gmra.mrb[28].mxu1 %vm238_vm2, %v14535_v32  ;;  %7047 = vrot.lane.b32.xlu0 %v14926_v34, %s13900_s29  ;;  %v4133_v7 = vsel %vm242_vm1, %v14578_v58, 0  ;;  %v4219_v58 = vsel %vm242_vm1, %v14603_v12, 0  ;;  %v4305_v12 = vsel %vm242_vm1, %v14628_v28, 0  ;;  %v4391_v28 = vsel %vm242_vm1, %v14653_v33, 0 }
 0x181   : > { %12140 = vmatpush3.bf16.msra.mxu1 %v2960_v25  ;;  %12141 = vmatprep.mubr.msk.bf16.mxu1 %vm13898_vm0, %v13897_v3  ;;  %v4434_v25 = vsel %vm242_vm1, %v14560_v8, 0  ;;  %v4520_v8 = vsel %vm242_vm1, %v14585_v0, 0  ;;  %v4606_v0 = vsel %vm242_vm1, %v14610_v20, 0  ;;  %v4692_v20 = vsel %vm242_vm1, %v14635_v36, 0 }
 0x182   : > { %12151 = vmatprep.subr.bf16.mxu1 %v13897_v3  ;;  %v4773_v36 = vsel %vm242_vm1, %v4768_v26, 0  ;;  %v4477_v33 = vsel %vm242_vm1, %v14675_v24, 0  ;;  %v4563_v24 = vsel %vm242_vm1, %v14697_v9, 0  ;;  %v4649_v9 = vsel %vm242_vm1, %v14721_v60, 0 }
 0x183   : > { %6729 = vrot.lane.b32.xlu1 %v14868_v23, %s13900_s29 }
 0x184   : > { %12208 = vmatmul.mubr.msk.bf16.vlgmr.msra.gmra.mrb[24].mxu0 %vm238_vm2, %v14535_v32 }
 0x185   : > { %12218 = vmatpush3.bf16.msra.mxu0 %v3649_v48  ;;  %12219 = vmatprep.mubr.msk.bf16.mxu0 %vm13898_vm0, %v13897_v3  ;;  %v4877_v48 = vpop.permute.xlu1 %4876 }
 0x186   : > { %12223 = vmatprep.subr.bf16.mxu0 %v13897_v3 }
 0x187   : > { %6835 = vrot.lane.b32.xlu1 %v14886_v27, %s13900_s29 }
 0x188   : > { %12142 = vmatmul.mubr.msk.bf16.vlgmr.msra.gmra.mrb[32].mxu1 %vm238_vm2, %v14535_v32 }
 0x189   : > { %12152 = vmatpush3.bf16.msra.mxu1 %v3066_v13  ;;  %12153 = vmatprep.mubr.msk.bf16.mxu1 %vm13898_vm0, %v13897_v3  ;;  %v4879_v13 = vsel %vm242_vm1, %v4877_v48, 0 }
 0x18a   : > { %12163 = vmatprep.subr.bf16.mxu1 %v13897_v3 }
 0x18b   : > { %v14796_v37 = vpop.f32.mrb[16].mxu1  ;;  %6941 = vrot.lane.b32.xlu1 %v14907_v18, %s13900_s29 }
 0x18c   : > { %12220 = vmatmul.mubr.msk.bf16.vlgmr.msra.gmra.mrb[28].mxu0 %vm238_vm2, %v14535_v32  ;;  %v11837_v61 = vpop.f32.mrb[17].mxu1 }
 0x18d   : > { %12224 = vmatpush3.bf16.msra.mxu0 %v3746_v16  ;;  %v495_v42 = vpop.f32.mrb[18].mxu1  ;;  %12225 = vmatprep.mubr.msk.bf16.mxu0 %vm13898_vm0, %v13897_v3  ;;  %v4983_v16 = vpop.permute.xlu0 %4982 }
 0x18e   : > { %v11838_v40 = vpop.f32.mrb[19].mxu1  ;;  %12235 = vmatprep.subr.bf16.mxu0 %v13897_v3  ;;  %v4985_v51 = vsel %vm242_vm1, %v4983_v16, 0  ;;  %v5089_v61 = vpop.permute.xlu1 %5088 }
 0x18f   : > { %v5091_v42 = vsel %vm242_vm1, %v5089_v61, 0 }
 0x190   : > { %12154 = vmatmul.mubr.msk.bf16.vlgmr.msra.gmra.mrb[36].mxu1 %vm238_vm2, %v14535_v32 }
 0x191   : > { %12164 = vmatpush3.bf16.msra.mxu1 %v3172_v54  ;;  %12165 = vmatprep.mubr.msk.bf16.mxu1 %vm13898_vm0, %v13897_v3  ;;  %v5195_v40 = vpop.permute.xlu0 %5194 }
 0x192   : > { %12175 = vmatprep.subr.bf16.mxu1 %v13897_v3  ;;  %v5197_v54 = vsel %vm242_vm1, %v5195_v40, 0 }
 0x194   : > { %12226 = vmatmul.mubr.msk.bf16.vlgmr.msra.gmra.mrb[32].mxu0 %vm238_vm2, %v14812_v46 }
 0x195   : > { %12236 = vmatpush3.bf16.msra.mxu0 %v3832_v1  ;;  %12237 = vmatprep.mubr.msk.bf16.mxu0 %vm13898_vm0, %v13897_v3  ;;  %v4824_v1 = vpop.permute.xlu1 %4823  ;;  %v5301_v49 = vpop.permute.xlu0 %5300 }
 0x196   : > { %12247 = vmatprep.subr.bf16.mxu0 %v13897_v3  ;;  %v4826_v60 = vsel %vm242_vm1, %v4824_v1, 0 }
 0x198   : > { %12166 = vmatmul.mubr.msk.bf16.vlgmr.msra.gmra.mrb[40].mxu1 %vm238_vm2, %v14535_v32 }
 0x199   : > { %12176 = vmatpush3.bf16.msra.mxu1 %v3278_v52  ;;  %12177 = vmatprep.mubr.msk.bf16.mxu1 %vm13898_vm0, %v13897_v3  ;;  %v5303_v52 = vsel %vm242_vm1, %v5301_v49, 0 }
 0x19a   : > { %12187 = vmatprep.subr.bf16.mxu1 %v13897_v3 }
 0x19b   : > { %v14839_v43 = vpop.f32.mrb[24].mxu1 }
 0x19c   : > { %12238 = vmatmul.mubr.msk.bf16.vlgmr.msra.gmra.mrb[36].mxu0 %vm238_vm2, %v14812_v46  ;;  %v11849_v55 = vpop.f32.mrb[25].mxu1 }
 0x19d   : > { %12248 = vmatpush3.bf16.msra.mxu0 %v3918_v4  ;;  %v601_v57 = vpop.f32.mrb[26].mxu1  ;;  %12249 = vmatprep.mubr.msk.bf16.mxu0 %vm13898_vm0, %v13897_v3  ;;  %v4930_v4 = vpop.permute.xlu1 %4929  ;;  %v15087_v55 = vld [vmem:[%s13982_s27 + $0x4] sm:$0x3] }
 0x19e   : > { %v11850_v59 = vpop.f32.mrb[27].mxu1  ;;  %12259 = vmatprep.subr.bf16.mxu0 %v13897_v3  ;;  %v4932_v17 = vsel %vm242_vm1, %v4930_v4, 0  ;;  %v8326_v57 = vrot.slane %v15087_v55, %v13977_v6  ;;  %v15217_v4 = vld [vmem:[%s13982_s27 + $0x16] sm:$0x3] }
 0x1a0   : > { %12178 = vmatmul.mubr.msk.bf16.vlgmr.msra.gmra.mrb[44].mxu1 %vm238_vm2, %v14535_v32  ;;  %8327 = vrot.lane.b32.xlu0 %v8326_v57, %s13899_s28  ;;  %v15224_v57 = vld [vmem:[%s13982_s27 + $0x1c] sm:$0x3] }
 0x1a1   : > { %12188 = vmatpush3.bf16.msra.mxu1 %v3384_v19  ;;  %12189 = vmatprep.mubr.msk.bf16.mxu1 %vm13898_vm0, %v13897_v3  ;;  %v5036_v19 = vpop.permute.xlu1 %5035 }
 0x1a2   : > { %12199 = vmatprep.subr.bf16.mxu1 %v13897_v3 }
 0x1a4   : > { %12250 = vmatmul.mubr.msk.bf16.vlgmr.msra.gmra.mrb[40].mxu0 %vm238_vm2, %v14812_v46 }
 0x1a5   : > { %12260 = vmatpush3.bf16.msra.mxu0 %v4004_v30  ;;  %12261 = vmatprep.mubr.msk.bf16.mxu0 %vm13898_vm0, %v13897_v3  ;;  %v5038_v30 = vsel %vm242_vm1, %v5036_v19, 0 }
 0x1a6   : > { %12271 = vmatprep.subr.bf16.mxu0 %v13897_v3 }
 0x1a8   : > { %12190 = vmatmul.mubr.msk.bf16.vlgmr.msra.gmra.mrb[48].mxu1 %vm238_vm2, %v14535_v32 }
 0x1a9   : > { %12200 = vmatpush3.bf16.msra.mxu1 %v3490_v5  ;;  %12201 = vmatprep.mubr.msk.bf16.mxu1 %vm13898_vm0, %v13897_v3  ;;  %v15105_v5 = vld [vmem:[%s13982_s27 + $0x8] sm:$0x3] }
 0x1aa   : > { %12211 = vmatprep.subr.bf16.mxu1 %v13897_v3 }
 0x1ac   : > { %12262 = vmatmul.mubr.msk.bf16.vlgmr.msra.gmra.mrb[44].mxu0 %vm238_vm2, %v14812_v46 }
 0x1ad   : > { %12272 = vmatpush3.bf16.msra.mxu0 %v4090_v41  ;;  %12273 = vmatprep.mubr.msk.bf16.mxu0 %vm13898_vm0, %v13897_v3  ;;  %v8435_v41 = vrot.slane %v15105_v5, %v13977_v6 }
 0x1ae   : > { %12283 = vmatprep.subr.bf16.mxu0 %v13897_v3 }
 0x1b0   : > { %12202 = vmatmul.mubr.msk.bf16.vlgmr.msra.gmra.mrb[52].mxu1 %vm238_vm2, %v14535_v32 }
 0x1b1   : > { %12212 = vmatpush3.bf16.msra.mxu1 %v3596_v50  ;;  %12213 = vmatprep.mubr.msk.bf16.mxu1 %vm13898_vm0, %v13897_v3  ;;  %v5142_v50 = vpop.permute.xlu1 %5141 }
 0x1b2   : > { %12229 = vmatprep.subr.bf16.mxu1 %v13897_v3  ;;  %v5144_v56 = vsel %vm242_vm1, %v5142_v50, 0 }
 0x1b4   : > { %12274 = vmatmul.mubr.msk.bf16.vlgmr.msra.gmra.mrb[0].mxu0 %vm238_vm2, %v14812_v46 }
 0x1b5   : > { %12284 = vmatpush3.bf16.msra.mxu0 %v4176_v14  ;;  %12285 = vmatprep.mubr.msk.bf16.mxu0 %vm13898_vm0, %v13897_v3  ;;  %v15121_v14 = vld [vmem:[%s13982_s27 + $0x6] sm:$0x3] }
 0x1b6   : > { %12295 = vmatprep.subr.bf16.mxu0 %v13897_v3 }
 0x1b8   : > { %12214 = vmatmul.mubr.msk.bf16.vlgmr.msra.gmra.mrb[56].mxu1 %vm238_vm2, %v14535_v32  ;;  %v4348_v32 = vsel %vm242_vm1, %v14530_v45, 0  ;;  %v14945_v45 = vld.sshfl [vmem:[%s13982_s27 + $0x2c] sm:$0x3 pattern:$0x76325410] }
 0x1b9   : > { %12230 = vmatpush3.bf16.msra.mxu1 %v3789_v22  ;;  %12231 = vmatprep.mubr.msk.bf16.mxu1 %vm13898_vm0, %v13897_v3 }
 0x1ba   : > { %12241 = vmatprep.subr.bf16.mxu1 %v13897_v3  ;;  %7153 = vrot.lane.b32.xlu1 %v14945_v45, %s13900_s29 }
 0x1bc   : > { %12286 = vmatmul.mubr.msk.bf16.vlgmr.msra.gmra.mrb[4].mxu0 %vm238_vm2, %v14812_v46 }
 0x1bd   : > { %12296 = vmatpush3.bf16.msra.mxu0 %v4262_v31  ;;  %12297 = vmatprep.mubr.msk.bf16.mxu0 %vm13898_vm0, %v13897_v3  ;;  %v8382_v31 = vrot.slane %v15121_v14, %v13977_v6 }
 0x1be   : > { %12307 = vmatprep.subr.bf16.mxu0 %v13897_v3  ;;  %8436 = vrot.lane.b32.xlu1 %v8435_v41, %s13899_s28  ;;  %v15241_v41 = vld [vmem:[%s13982_s27 + $0x1a] sm:$0x3] }
 0x1bf   : > { %8383 = vrot.lane.b32.xlu0 %v8382_v31, %s13899_s28  ;;  %v8912_v50 = vrot.slane %v15241_v41, %v13977_v6 }
 0x1c0   : > { %12232 = vmatmul.mubr.msk.bf16.vlgmr.msra.gmra.mrb[4].mxu1 %vm238_vm2, %v14812_v46 }
 0x1c1   : > { %12242 = vmatpush3.bf16.msra.mxu1 %v3875_v21  ;;  %12243 = vmatprep.mubr.msk.bf16.mxu1 %vm13898_vm0, %v13897_v3  ;;  %v15128_v21 = vld [vmem:[%s13982_s27 + $0xc] sm:$0x3] }
 0x1c2   : > { %12253 = vmatprep.subr.bf16.mxu1 %v13897_v3 }
 0x1c4   : > { %12298 = vmatmul.mubr.msk.bf16.vlgmr.msra.gmra.mrb[8].mxu0 %vm238_vm2, %v14812_v46 }
 0x1c5   : > { %12308 = vmatpush3.bf16.msra.mxu0 %v4348_v32  ;;  %12309 = vmatprep.mubr.msk.bf16.mxu0 %vm13898_vm0, %v13897_v3  ;;  %v8541_v32 = vrot.slane %v15128_v21, %v13977_v6 }
 0x1c6   : > { %12319 = vmatprep.subr.bf16.mxu0 %v13897_v3 }
 0x1c7   : > { %8542 = vrot.lane.b32.xlu1 %v8541_v32, %s13899_s28 }
 0x1c8   : > { %12244 = vmatmul.mubr.msk.bf16.vlgmr.msra.gmra.mrb[12].mxu1 %vm238_vm2, %v14812_v46 }
 0x1c9   : > { %12254 = vmatpush3.bf16.msra.mxu1 %v3961_v29  ;;  %12255 = vmatprep.mubr.msk.bf16.mxu1 %vm13898_vm0, %v13897_v3 }
 0x1ca   : > { %12265 = vmatprep.subr.bf16.mxu1 %v13897_v3 }
 0x1cc   : > { %12310 = vmatmul.mubr.msk.bf16.vlgmr.msra.gmra.mrb[12].mxu0 %vm238_vm2, %v14812_v46 }
 0x1cd   : > { %12320 = vmatpush3.bf16.msra.mxu0 %v4434_v25  ;;  %12321 = vmatprep.mubr.msk.bf16.mxu0 %vm13898_vm0, %v13897_v3  ;;  %v5248_v25 = vpop.permute.xlu1 %5247 }
 0x1ce   : > { %12331 = vmatprep.subr.bf16.mxu0 %v13897_v3 }
 0x1d0   : > { %12256 = vmatmul.mubr.msk.bf16.vlgmr.msra.gmra.mrb[20].mxu1 %vm238_vm2, %v14812_v46 }
 0x1d1   : > { %12266 = vmatpush3.bf16.msra.mxu1 %v4047_v38  ;;  %12267 = vmatprep.mubr.msk.bf16.mxu1 %vm13898_vm0, %v13897_v3  ;;  %v5250_v38 = vsel %vm242_vm1, %v5248_v25, 0  ;;  %v5354_v26 = vpop.permute.xlu1 %5353 }
 0x1d2   : > { %12277 = vmatprep.subr.bf16.mxu1 %v13897_v3 }
 0x1d4   : > { %12322 = vmatmul.mubr.msk.bf16.vlgmr.msra.gmra.mrb[16].mxu0 %vm238_vm2, %v14812_v46 }
 0x1d5   : > { %12332 = vmatpush3.bf16.msra.mxu0 %v4520_v8  ;;  %12333 = vmatprep.mubr.msk.bf16.mxu0 %vm13898_vm0, %v13897_v3  ;;  %v15145_v8 = vld [vmem:[%s13982_s27 + $0xa] sm:$0x3] }
 0x1d6   : > { %12343 = vmatprep.subr.bf16.mxu0 %v13897_v3 }
 0x1d8   : > { %12268 = vmatmul.mubr.msk.bf16.vlgmr.msra.gmra.mrb[28].mxu1 %vm238_vm2, %v14812_v46 }
 0x1d9   : > { %12278 = vmatpush3.bf16.msra.mxu1 %v4133_v7  ;;  %12279 = vmatprep.mubr.msk.bf16.mxu1 %vm13898_vm0, %v13897_v3 }
 0x1da   : > { %12289 = vmatprep.subr.bf16.mxu1 %v13897_v3 }
 0x1dc   : > { %12334 = vmatmul.mubr.msk.bf16.vlgmr.msra.gmra.mrb[20].mxu0 %vm238_vm2, %v14812_v46 }
 0x1dd   : > { %12344 = vmatpush3.bf16.msra.mxu0 %v4606_v0  ;;  %12345 = vmatprep.mubr.msk.bf16.mxu0 %vm13898_vm0, %v13897_v3  ;;  %v8488_v0 = vrot.slane %v15145_v8, %v13977_v6 }
 0x1de   : > { %12355 = vmatprep.subr.bf16.mxu0 %v13897_v3 }
 0x1df   : > { %8489 = vrot.lane.b32.xlu0 %v8488_v0, %s13899_s28 }
 0x1e0   : > { %12280 = vmatmul.mubr.msk.bf16.vlgmr.msra.gmra.mrb[32].mxu1 %vm238_vm2, %v14812_v46 }
 0x1e1   : > { %12290 = vmatpush3.bf16.msra.mxu1 %v4219_v58  ;;  %12291 = vmatprep.mubr.msk.bf16.mxu1 %vm13898_vm0, %v13897_v3  ;;  %v15152_v58 = vld [vmem:[%s13982_s27 + $0x10] sm:$0x3] }
 0x1e2   : > { %12301 = vmatprep.subr.bf16.mxu1 %v13897_v3 }
 0x1e4   : > { %12346 = vmatmul.mubr.msk.bf16.vlgmr.msra.gmra.mrb[24].mxu0 %vm238_vm2, %v14812_v46 }
 0x1e5   : > { %12356 = vmatpush3.bf16.msra.mxu0 %v4692_v20  ;;  %12357 = vmatprep.mubr.msk.bf16.mxu0 %vm13898_vm0, %v13897_v3  ;;  %v8647_v20 = vrot.slane %v15152_v58, %v13977_v6 }
 0x1e6   : > { %12361 = vmatprep.subr.bf16.mxu0 %v13897_v3 }
 0x1e7   : > { %8648 = vrot.lane.b32.xlu1 %v8647_v20, %s13899_s28  ;;  %v15277_v20 = vld [vmem:[%s13982_s27 + $0x24] sm:$0x3] }
 0x1e8   : > { %12292 = vmatmul.mubr.msk.bf16.vlgmr.msra.gmra.mrb[36].mxu1 %vm238_vm2, %v14812_v46 }
 0x1e9   : > { %12302 = vmatpush3.bf16.msra.mxu1 %v4305_v12  ;;  %12303 = vmatprep.mubr.msk.bf16.mxu1 %vm13898_vm0, %v13897_v3 }
 0x1ea   : > { %12313 = vmatprep.subr.bf16.mxu1 %v13897_v3 }
 0x1ec   : > { %12358 = vmatmul.mubr.msk.bf16.vlgmr.msra.gmra.mrb[28].mxu0 %vm238_vm2, %v14812_v46 }
 0x1ed   : > { %12362 = vmatpush3.bf16.msra.mxu0 %v4773_v36  ;;  %12363 = vmatprep.mubr.msk.bf16.mxu0 %vm13898_vm0, %v13897_v3  ;;  %v5356_v36 = vsel %vm242_vm1, %v5354_v26, 0 }
 0x1ee   : > { %12373 = vmatprep.subr.bf16.mxu0 %v13897_v3 }
 0x1f0   : > { %12304 = vmatmul.mubr.msk.bf16.vlgmr.msra.gmra.mrb[40].mxu1 %vm238_vm2, %v14812_v46 }
 0x1f1   : > { %12314 = vmatpush3.bf16.msra.mxu1 %v4391_v28  ;;  %12315 = vmatprep.mubr.msk.bf16.mxu1 %vm13898_vm0, %v13897_v3  ;;  %v15169_v28 = vld [vmem:[%s13982_s27 + $0xe] sm:$0x3] }
 0x1f2   : > { %12325 = vmatprep.subr.bf16.mxu1 %v13897_v3 }
 0x1f4   : > { %12364 = vmatmul.mubr.msk.bf16.vlgmr.msra.gmra.mrb[32].mxu0 %vm238_vm2, %v15021_v35 }
 0x1f5   : > { %12374 = vmatpush3.bf16.msra.mxu0 %v4879_v13  ;;  %12375 = vmatprep.mubr.msk.bf16.mxu0 %vm13898_vm0, %v13897_v3  ;;  %v8594_v13 = vrot.slane %v15169_v28, %v13977_v6 }
 0x1f6   : > { %12385 = vmatprep.subr.bf16.mxu0 %v13897_v3 }
 0x1f7   : > { %8595 = vrot.lane.b32.xlu0 %v8594_v13, %s13899_s28  ;;  %v15294_v13 = vld [vmem:[%s13982_s27 + $0x22] sm:$0x3] }
 0x1f8   : > { %12316 = vmatmul.mubr.msk.bf16.vlgmr.msra.gmra.mrb[44].mxu1 %vm238_vm2, %v14812_v46 }
 0x1f9   : > { %12326 = vmatpush3.bf16.msra.mxu1 %v4477_v33  ;;  %12327 = vmatprep.mubr.msk.bf16.mxu1 %vm13898_vm0, %v13897_v3  ;;  %v15176_v33 = vld [vmem:[%s13982_s27 + $0x14] sm:$0x3] }
 0x1fa   : > { %12337 = vmatprep.subr.bf16.mxu1 %v13897_v3  ;;  %v8753_v16 = vrot.slane %v15176_v33, %v13977_v6 }
 0x1fc   : > { %12376 = vmatmul.mubr.msk.bf16.vlgmr.msra.gmra.mrb[36].mxu0 %vm238_vm2, %v15021_v35  ;;  %8754 = vrot.lane.b32.xlu1 %v8753_v16, %s13899_s28 }
 0x1fd   : > { %12386 = vmatpush3.bf16.msra.mxu0 %v4985_v51  ;;  %12387 = vmatprep.mubr.msk.bf16.mxu0 %vm13898_vm0, %v13897_v3 }
 0x1fe   : > { %12397 = vmatprep.subr.bf16.mxu0 %v13897_v3 }
 0x200   : > { %12328 = vmatmul.mubr.msk.bf16.vlgmr.msra.gmra.mrb[48].mxu1 %vm238_vm2, %v14812_v46 }
 0x201   : > { %12338 = vmatpush3.bf16.msra.mxu1 %v4563_v24  ;;  %12339 = vmatprep.mubr.msk.bf16.mxu1 %vm13898_vm0, %v13897_v3  ;;  %v5460_v24 = vpop.permute.xlu1 %5459 }
 0x202   : > { %12349 = vmatprep.subr.bf16.mxu1 %v13897_v3  ;;  %v5462_v61 = vsel %vm242_vm1, %v5460_v24, 0  ;;  %v15301_v24 = vld [vmem:[%s13982_s27 + $0x28] sm:$0x3] }
 0x204   : > { %12388 = vmatmul.mubr.msk.bf16.vlgmr.msra.gmra.mrb[40].mxu0 %vm238_vm2, %v15021_v35 }
 0x205   : > { %12398 = vmatpush3.bf16.msra.mxu0 %v5091_v42  ;;  %12399 = vmatprep.mubr.msk.bf16.mxu0 %vm13898_vm0, %v13897_v3  ;;  %v15193_v42 = vld [vmem:[%s13982_s27 + $0x12] sm:$0x3]  ;;  %v5566_v49 = vpop.permute.xlu1 %5565 }
 0x206   : > { %12409 = vmatprep.subr.bf16.mxu0 %v13897_v3  ;;  %v8700_v40 = vrot.slane %v15193_v42, %v13977_v6 }
 0x208   : > { %12340 = vmatmul.mubr.msk.bf16.vlgmr.msra.gmra.mrb[52].mxu1 %vm238_vm2, %v14812_v46  ;;  %8701 = vrot.lane.b32.xlu0 %v8700_v40, %s13899_s28 }
 0x209   : > { %12350 = vmatpush3.bf16.msra.mxu1 %v4649_v9  ;;  %12351 = vmatprep.mubr.msk.bf16.mxu1 %vm13898_vm0, %v13897_v3 }
 0x20a   : > { %12367 = vmatprep.subr.bf16.mxu1 %v13897_v3 }
 0x20c   : > { %12400 = vmatmul.mubr.msk.bf16.vlgmr.msra.gmra.mrb[44].mxu0 %vm238_vm2, %v15021_v35 }
 0x20d   : > { %12410 = vmatpush3.bf16.msra.mxu0 %v5197_v54  ;;  %12411 = vmatprep.mubr.msk.bf16.mxu0 %vm13898_vm0, %v13897_v3  ;;  %v15200_v54 = vld [vmem:[%s13982_s27 + $0x18] sm:$0x3] }
 0x20e   : > { %12421 = vmatprep.subr.bf16.mxu0 %v13897_v3  ;;  %v8859_v1 = vrot.slane %v15200_v54, %v13977_v6 }
 0x210   : > { %12352 = vmatmul.mubr.msk.bf16.vlgmr.msra.gmra.mrb[56].mxu1 %vm238_vm2, %v14812_v46  ;;  %v5407_v46 = vpop.permute.xlu0 %5406  ;;  %8860 = vrot.lane.b32.xlu1 %v8859_v1, %s13899_s28 }
 0x211   : > { %12368 = vmatpush3.bf16.msra.mxu1 %v4826_v60  ;;  %12369 = vmatprep.mubr.msk.bf16.mxu1 %vm13898_vm0, %v13897_v3  ;;  %v5409_v59 = vsel %vm242_vm1, %v5407_v46, 0  ;;  %v8806_v46 = vrot.slane %v15217_v4, %v13977_v6 }
 0x212   : > { %12379 = vmatprep.subr.bf16.mxu1 %v13897_v3 }
 0x213   : > { %8807 = vrot.lane.b32.xlu0 %v8806_v46, %s13899_s28 }
 0x214   : > { %12412 = vmatmul.mubr.msk.bf16.vlgmr.msra.gmra.mrb[0].mxu0 %vm238_vm2, %v15021_v35  ;;  %v5513_v2 = vpop.permute.xlu0 %5512 }
 0x215   : > { %12422 = vmatpush3.bf16.msra.mxu0 %v5303_v52  ;;  %12423 = vmatprep.mubr.msk.bf16.mxu0 %vm13898_vm0, %v13897_v3  ;;  %v5515_v11 = vsel %vm242_vm1, %v5513_v2, 0  ;;  %v5568_v52 = vsel %vm242_vm1, %v5566_v49, 0 }
 0x216   : > { %12433 = vmatprep.subr.bf16.mxu0 %v13897_v3 }
 0x217   : > { %8913 = vrot.lane.b32.xlu0 %v8912_v50, %s13899_s28  ;;  %v15349_v50 = vld [vmem:[%s13982_s27 + $0x30] sm:$0x3] }
 0x218   : > { %12370 = vmatmul.mubr.msk.bf16.vlgmr.msra.gmra.mrb[4].mxu1 %vm238_vm2, %v15021_v35  ;;  %v5619_v22 = vpop.permute.xlu0 %5618 }
 0x219   : > { %12380 = vmatpush3.bf16.msra.mxu1 %v4932_v17  ;;  %12381 = vmatprep.mubr.msk.bf16.mxu1 %vm13898_vm0, %v13897_v3  ;;  %v5621_v29 = vsel %vm242_vm1, %v5619_v22, 0  ;;  %v15253_v22 = vld [vmem:[%s16039_s0 + $0x14] sm:$0xf] }
 0x21a   : > { %12391 = vmatprep.subr.bf16.mxu1 %v13897_v3 }
 0x21c   : > { %12424 = vmatmul.mubr.msk.bf16.vlgmr.msra.gmra.mrb[4].mxu0 %vm238_vm2, %v15021_v35  ;;  %v5725_v7 = vpop.permute.xlu0 %5724 }
 0x21d   : > { %12434 = vmatpush3.bf16.msra.mxu0 %v5409_v59  ;;  %12435 = vmatprep.mubr.msk.bf16.mxu0 %vm13898_vm0, %v13897_v3  ;;  %v5727_v12 = vsel %vm242_vm1, %v5725_v7, 0  ;;  %v8965_v59 = vrot.slane %v15224_v57, %v13977_v6 }
 0x21e   : > { %12445 = vmatprep.subr.bf16.mxu0 %v13897_v3 }
 0x21f   : > { %8966 = vrot.lane.b32.xlu1 %v8965_v59, %s13899_s28 }
 0x220   : > { %12382 = vmatmul.mubr.msk.bf16.vlgmr.msra.gmra.mrb[12].mxu1 %vm238_vm2, %v15021_v35  ;;  %v5831_v48 = vpop.permute.xlu0 %5830 }
 0x221   : > { %12392 = vmatpush3.bf16.msra.mxu1 %v5038_v30  ;;  %12393 = vmatprep.mubr.msk.bf16.mxu1 %vm13898_vm0, %v13897_v3  ;;  %v5833_v51 = vsel %vm242_vm1, %v5831_v48, 0  ;;  %v5672_v30 = vpop.permute.xlu1 %5671 }
 0x222   : > { %12403 = vmatprep.subr.bf16.mxu1 %v13897_v3  ;;  %v5674_v2 = vsel %vm242_vm1, %v5672_v30, 0  ;;  %v15342_v30 = vld [vmem:[%s13982_s27 + $0x2a] sm:$0x3] }
 0x224   : > { %12436 = vmatmul.mubr.msk.bf16.vlgmr.msra.gmra.mrb[8].mxu0 %vm238_vm2, %v15021_v35  ;;  %v5937_v9 = vpop.permute.xlu0 %5936 }
 0x225   : > { %12446 = vmatpush3.bf16.msra.mxu0 %v5515_v11  ;;  %12447 = vmatprep.mubr.msk.bf16.mxu0 %vm13898_vm0, %v13897_v3  ;;  %v5939_v60 = vsel %vm242_vm1, %v5937_v9, 0 }
 0x226   : > { %12457 = vmatprep.subr.bf16.mxu0 %v13897_v3 }
 0x228   : > { %12394 = vmatmul.mubr.msk.bf16.vlgmr.msra.gmra.mrb[20].mxu1 %vm238_vm2, %v15021_v35  ;;  %v6038_v17 = vpop.permute.xlu0 %6037 }
 0x229   : > { %12404 = vmatpush3.bf16.msra.mxu1 %v5144_v56  ;;  %12405 = vmatprep.mubr.msk.bf16.mxu1 %vm13898_vm0, %v13897_v3  ;;  %v6043_v19 = vsel %vm242_vm1, %v6038_v17, 0  ;;  %v15248_v56 = vld [vmem:[%s13982_s27 + $0x20] sm:$0x3]  ;;  %v15325_v17 = vld [vmem:[%s13982_s27 + $0x2c] sm:$0x3] }
 0x22a   : > { %12415 = vmatprep.subr.bf16.mxu1 %v13897_v3  ;;  %v9071_v31 = vrot.slane %v15248_v56, %v13977_v6  ;;  %v9389_v46 = vrot.slane %v15325_v17, %v13977_v6 }
 0x22c   : > { %12448 = vmatmul.mubr.msk.bf16.vlgmr.msra.gmra.mrb[12].mxu0 %vm238_vm2, %v15021_v35  ;;  %v6147_v11 = vpop.permute.xlu0 %6146  ;;  %9072 = vrot.lane.b32.xlu1 %v9071_v31, %s13899_s28  ;;  %v9495_v31 = vrot.slane %v15349_v50, %v13977_v6 }
 0x22d   : > { %12458 = vmatpush3.bf16.msra.mxu0 %v5621_v29  ;;  %12459 = vmatprep.mubr.msk.bf16.mxu0 %vm13898_vm0, %v13897_v3  ;;  %v6149_v32 = vsel %vm242_vm1, %v6147_v11, 0  ;;  %v5778_v29 = vpop.permute.xlu1 %5777  ;;  %v9336_v11 = vrot.slane %v15342_v30, %v13977_v6 }
 0x22e   : > { %12469 = vmatprep.subr.bf16.mxu0 %v13897_v3  ;;  %v5780_v25 = vsel %vm242_vm1, %v5778_v29, 0 }
 0x230   : > { %12406 = vmatmul.mubr.msk.bf16.vlgmr.msra.gmra.mrb[28].mxu1 %vm238_vm2, %v15021_v35  ;;  %v6253_v7 = vpop.permute.xlu0 %6252 }
 0x231   : > { %12416 = vmatpush3.bf16.msra.mxu1 %v5250_v38  ;;  %12417 = vmatprep.mubr.msk.bf16.mxu1 %vm13898_vm0, %v13897_v3  ;;  %v15270_v38 = vld [vmem:[%s13982_s27 + $0x1e] sm:$0x3]  ;;  %v6255_v26 = vsel %vm242_vm1, %v6253_v7, 0  ;;  %v15366_v7 = vld [vmem:[%s13982_s27 + $0x2e] sm:$0x3] }
 0x232   : > { %12427 = vmatprep.subr.bf16.mxu1 %v13897_v3  ;;  %v9018_v0 = vrot.slane %v15270_v38, %v13977_v6 }
 0x234   : > { %12460 = vmatmul.mubr.msk.bf16.vlgmr.msra.gmra.mrb[16].mxu0 %vm238_vm2, %v15021_v35  ;;  %9019 = vrot.lane.b32.xlu0 %v9018_v0, %s13899_s28  ;;  %v6359_v16 = vpop.permute.xlu0 %6358 }
 0x235   : > { %12470 = vmatpush3.bf16.msra.mxu0 %v5727_v12  ;;  %12471 = vmatprep.mubr.msk.bf16.mxu0 %vm13898_vm0, %v13897_v3  ;;  %v9177_v12 = vrot.slane %v15277_v20, %v13977_v6  ;;  %v6361_v9 = vsel %vm242_vm1, %v6359_v16, 0 }
 0x236   : > { %12481 = vmatprep.subr.bf16.mxu0 %v13897_v3 }
 0x237   : > { %9178 = vrot.lane.b32.xlu1 %v9177_v12, %s13899_s28  ;;  %v9442_v12 = vrot.slane %v15366_v7, %v13977_v6 }
 0x238   : > { %12418 = vmatmul.mubr.msk.bf16.vlgmr.msra.gmra.mrb[32].mxu1 %vm238_vm2, %v15021_v35  ;;  %v6465_v49 = vpop.permute.xlu0 %6464 }
 0x239   : > { %12428 = vmatpush3.bf16.msra.mxu1 %v5356_v36  ;;  %12429 = vmatprep.mubr.msk.bf16.mxu1 %vm13898_vm0, %v13897_v3  ;;  %v5884_v36 = vpop.permute.xlu1 %5883  ;;  %v6467_v59 = vsel %vm242_vm1, %v6465_v49, 0 }
 0x23a   : > { %12439 = vmatprep.subr.bf16.mxu1 %v13897_v3  ;;  %v5886_v48 = vsel %vm242_vm1, %v5884_v36, 0 }
 0x23c   : > { %12472 = vmatmul.mubr.msk.bf16.vlgmr.msra.gmra.mrb[20].mxu0 %vm238_vm2, %v15021_v35 }
 0x23d   : > { %12482 = vmatpush3.bf16.msra.mxu0 %v5833_v51  ;;  %12483 = vmatprep.mubr.msk.bf16.mxu0 %vm13898_vm0, %v13897_v3  ;;  %v9124_v51 = vrot.slane %v15294_v13, %v13977_v6  ;;  %v6094_v40 = vpop.permute.xlu1 %6093 }
 0x23e   : > { %12493 = vmatprep.subr.bf16.mxu0 %v13897_v3  ;;  %v6096_v1 = vsel %vm242_vm1, %v6094_v40, 0 }
 0x23f   : > { %9125 = vrot.lane.b32.xlu0 %v9124_v51, %s13899_s28 }
 0x240   : > { %12430 = vmatmul.mubr.msk.bf16.vlgmr.msra.gmra.mrb[36].mxu1 %vm238_vm2, %v15021_v35 }
 0x241   : > { %12440 = vmatpush3.bf16.msra.mxu1 %v5462_v61  ;;  %12441 = vmatprep.mubr.msk.bf16.mxu1 %vm13898_vm0, %v13897_v3  ;;  %v9283_v61 = vrot.slane %v15301_v24, %v13977_v6 }
 0x242   : > { %12451 = vmatprep.subr.bf16.mxu1 %v13897_v3 }
 0x243   : > { %9284 = vrot.lane.b32.xlu1 %v9283_v61, %s13899_s28  ;;  %v11352_v61 = vld.sshfl [vmem:[%s13982_s27 + $0xa] sm:$0x3 pattern:$0x76325410] }
 0x244   : > { %12484 = vmatmul.mubr.msk.bf16.vlgmr.msra.gmra.mrb[24].mxu0 %vm238_vm2, %v15021_v35 }
 0x245   : > { %12494 = vmatpush3.bf16.msra.mxu0 %v5939_v60  ;;  %12495 = vmatprep.mubr.msk.bf16.mxu0 %vm13898_vm0, %v13897_v3  ;;  %v15318_v60 = vld [vmem:[%s13982_s27 + $0x26] sm:$0x3] }
 0x246   : > { %12499 = vmatprep.subr.bf16.mxu0 %v13897_v3 }
 0x247   : > { %9390 = vrot.lane.b32.xlu1 %v9389_v46, %s13899_s28  ;;  %v11360_v46 = vld.sshfl [vmem:[%s13982_s27 + $0x12] sm:$0x3 pattern:$0x76325410] }
 0x248   : > { %12442 = vmatmul.mubr.msk.bf16.vlgmr.msra.gmra.mrb[40].mxu1 %vm238_vm2, %v15021_v35 }
 0x249   : > { %12452 = vmatpush3.bf16.msra.mxu1 %v5568_v52  ;;  %12453 = vmatprep.mubr.msk.bf16.mxu1 %vm13898_vm0, %v13897_v3  ;;  %v9230_v52 = vrot.slane %v15318_v60, %v13977_v6 }
 0x24a   : > { %12463 = vmatprep.subr.bf16.mxu1 %v13897_v3 }
 0x24b   : > { %9231 = vrot.lane.b32.xlu0 %v9230_v52, %s13899_s28  ;;  %9496 = vrot.lane.b32.xlu1 %v9495_v31, %s13899_s28  ;;  %v7306_v31 = vsel %vm242_vm1, %v15087_v55, 0  ;;  %v11372_v55 = vld.sshfl [vmem:[%s13982_s27 + $0x1e] sm:$0x3 pattern:$0x76325410] }
 0x24c   : > { %12496 = vmatmul.mubr.msk.bf16.vlgmr.msra.gmra.mrb[28].mxu0 %vm238_vm2, %v15021_v35 }
 0x24d   : > { %12500 = vmatpush3.bf16.msra.mxu0 %v6043_v19  ;;  %12501 = vmatprep.mubr.msk.bf16.mxu0 %vm13898_vm0, %v13897_v3  ;;  %v6200_v19 = vpop.permute.xlu1 %6199 }
 0x24e   : > { %12511 = vmatprep.subr.bf16.mxu0 %v13897_v3 }
 0x24f   : > { %9337 = vrot.lane.b32.xlu0 %v9336_v11, %s13899_s28  ;;  %9597 = vrot.lane.b32.xlu1 %v14747_v10, %s13900_s29  ;;  %v11368_v11 = vld.sshfl [vmem:[%s13982_s27 + $0x1a] sm:$0x3 pattern:$0x76325410] }
 0x250   : > { %12454 = vmatmul.mubr.msk.bf16.vlgmr.msra.gmra.mrb[44].mxu1 %vm238_vm2, %v15021_v35 }
 0x251   : > { %12464 = vmatpush3.bf16.msra.mxu1 %v5674_v2  ;;  %12465 = vmatprep.mubr.msk.bf16.mxu1 %vm13898_vm0, %v13897_v3  ;;  %v6571_v2 = vpop.permute.xlu0 %6570  ;;  %v6306_v29 = vpop.permute.xlu1 %6305 }
 0x252   : > { %12475 = vmatprep.subr.bf16.mxu1 %v13897_v3 }
 0x253   : > { %9443 = vrot.lane.b32.xlu0 %v9442_v12, %s13899_s28  ;;  %9706 = vrot.lane.b32.xlu1 %v14770_v62, %s13900_s29 }
 0x254   : > { %12502 = vmatmul.mubr.msk.bf16.vlgmr.msra.gmra.mrb[32].mxu0 %vm238_vm2, %v15253_v22 }
 0x255   : > { %12512 = vmatpush3.bf16.msra.mxu0 %v6149_v32  ;;  %12513 = vmatprep.mubr.msk.bf16.mxu0 %vm13898_vm0, %v13897_v3  ;;  %v6573_v32 = vsel %vm242_vm1, %v6571_v2, 0  ;;  %v6677_v0 = vpop.permute.xlu0 %6676  ;;  %v6412_v36 = vpop.permute.xlu1 %6411 }
 0x256   : > { %12523 = vmatprep.subr.bf16.mxu0 %v13897_v3  ;;  %v6414_v6 = vsel %vm242_vm1, %v6412_v36, 0  ;;  %v7478_v36 = vsel %vm242_vm1, %v15128_v21, 0  ;;  %v11380_v21 = vld.sshfl [vmem:[%s13982_s27 + $0x26] sm:$0x3 pattern:$0x76325410] }
 0x257   : > { %9812 = vrot.lane.b32.xlu1 %v14787_v39, %s13900_s29 }
 0x258   : > { %12466 = vmatmul.mubr.msk.bf16.vlgmr.msra.gmra.mrb[48].mxu1 %vm238_vm2, %v15021_v35 }
 0x259   : > { %12476 = vmatpush3.bf16.msra.mxu1 %v5780_v25  ;;  %12477 = vmatprep.mubr.msk.bf16.mxu1 %vm13898_vm0, %v13897_v3  ;;  %v6308_v25 = vsel %vm242_vm1, %v6306_v29, 0  ;;  %v6783_v10 = vpop.permute.xlu0 %6782  ;;  %v6518_v16 = vpop.permute.xlu1 %6517 }
 0x25a   : > { %12487 = vmatprep.subr.bf16.mxu1 %v13897_v3  ;;  %v6785_v62 = vsel %vm242_vm1, %v6783_v10, 0  ;;  %v6520_v39 = vsel %vm242_vm1, %v6518_v16, 0  ;;  %v7564_v10 = vsel %vm242_vm1, %v15152_v58, 0 }
 0x25b   : > { %9918 = vrot.lane.b32.xlu1 %v14807_v63, %s13900_s29  ;;  %v11384_v58 = vld.sshfl [vmem:[%s13982_s27 + $0x2a] sm:$0x3 pattern:$0x76325410] }
 0x25c   : > { %12514 = vmatmul.mubr.msk.bf16.vlgmr.msra.gmra.mrb[36].mxu0 %vm238_vm2, %v15253_v22 }
 0x25d   : > { %12524 = vmatpush3.bf16.msra.mxu0 %v6255_v26  ;;  %12525 = vmatprep.mubr.msk.bf16.mxu0 %vm13898_vm0, %v13897_v3  ;;  %v6679_v26 = vsel %vm242_vm1, %v6677_v0, 0  ;;  %v6889_v51 = vpop.permute.xlu0 %6888  ;;  %v7392_v0 = vsel %vm242_vm1, %v15105_v5, 0  ;;  %v11376_v5 = vld.sshfl [vmem:[%s13982_s27 + $0x22] sm:$0x3 pattern:$0x76325410] }
 0x25e   : > { %12535 = vmatprep.subr.bf16.mxu0 %v13897_v3  ;;  %v6891_v63 = vsel %vm242_vm1, %v6889_v51, 0  ;;  %v15678_v51 = vld [vmem:[%s16039_s0 + $0x1c] sm:$0xf] }
 0x25f   : > { %10024 = vrot.lane.b32.xlu1 %v14830_v15, %s13900_s29 }
 0x260   : > { %12478 = vmatmul.mubr.msk.bf16.vlgmr.msra.gmra.mrb[52].mxu1 %vm238_vm2, %v15021_v35 }
 0x261   : > { %12488 = vmatpush3.bf16.msra.mxu1 %v5886_v48  ;;  %12489 = vmatprep.mubr.msk.bf16.mxu1 %vm13898_vm0, %v13897_v3  ;;  %v11348_v48 = vld.sshfl [vmem:[%s13982_s27 + $0x6] sm:$0x3 pattern:$0x76325410]  ;;  %v6995_v40 = vpop.permute.xlu0 %6994 }
 0x262   : > { %12505 = vmatprep.subr.bf16.mxu1 %v13897_v3  ;;  %9653 = vrot.lane.b32.xlu0 %v11348_v48, %s13900_s29  ;;  %v11388_v48 = vld.sshfl [vmem:[%s13982_s27 + $0x2e] sm:$0x3 pattern:$0x76325410] }
 0x263   : > { %10130 = vrot.lane.b32.xlu1 %v14850_v44, %s13900_s29  ;;  %v6997_v44 = vsel %vm242_vm1, %v6995_v40, 0 }
 0x264   : > { %12526 = vmatmul.mubr.msk.bf16.vlgmr.msra.gmra.mrb[40].mxu0 %vm238_vm2, %v15253_v22 }
 0x265   : > { %12536 = vmatpush3.bf16.msra.mxu0 %v6361_v9  ;;  %12537 = vmatprep.mubr.msk.bf16.mxu0 %vm13898_vm0, %v13897_v3  ;;  %v6624_v9 = vpop.permute.xlu1 %6623  ;;  %v7101_v52 = vpop.permute.xlu0 %7100 }
 0x266   : > { %12547 = vmatprep.subr.bf16.mxu0 %v13897_v3  ;;  %9759 = vrot.lane.b32.xlu0 %v11352_v61, %s13900_s29  ;;  %v6626_v15 = vsel %vm242_vm1, %v6624_v9, 0 }
 0x267   : > { %10236 = vrot.lane.b32.xlu1 %v14868_v23, %s13900_s29 }
 0x268   : > { %12490 = vmatmul.mubr.msk.bf16.vlgmr.msra.gmra.mrb[56].mxu1 %vm238_vm2, %v15021_v35  ;;  %v6202_v35 = vsel %vm242_vm1, %v6200_v19, 0 }
 0x269   : > { %12506 = vmatpush3.bf16.msra.mxu1 %v6096_v1  ;;  %12507 = vmatprep.mubr.msk.bf16.mxu1 %vm13898_vm0, %v13897_v3  ;;  %v11356_v1 = vld.sshfl [vmem:[%s13982_s27 + $0xe] sm:$0x3 pattern:$0x76325410]  ;;  %v6730_v49 = vpop.permute.xlu1 %6729  ;;  %v7207_v19 = vpop.permute.xlu0 %7206 }
 0x26a   : > { %12517 = vmatprep.subr.bf16.mxu1 %v13897_v3  ;;  %9865 = vrot.lane.b32.xlu0 %v11356_v1, %s13900_s29  ;;  %v6732_v23 = vsel %vm242_vm1, %v6730_v49, 0 }
 0x26b   : > { %10342 = vrot.lane.b32.xlu1 %v14886_v27, %s13900_s29  ;;  %v7103_v27 = vsel %vm242_vm1, %v7101_v52, 0 }
 0x26c   : > { %12538 = vmatmul.mubr.msk.bf16.vlgmr.msra.gmra.mrb[44].mxu0 %vm238_vm2, %v15253_v22 }
 0x26d   : > { %12548 = vmatpush3.bf16.msra.mxu0 %v6467_v59  ;;  %12549 = vmatprep.mubr.msk.bf16.mxu0 %vm13898_vm0, %v13897_v3  ;;  %v6836_v59 = vpop.permute.xlu1 %6835 }
 0x26e   : > { %12559 = vmatprep.subr.bf16.mxu0 %v13897_v3  ;;  %9971 = vrot.lane.b32.xlu0 %v11360_v46, %s13900_s29 }
 0x26f   : > { %10448 = vrot.lane.b32.xlu1 %v14907_v18, %s13900_s29  ;;  %v6838_v18 = vsel %vm242_vm1, %v6836_v59, 0 }
 0x270   : > { %12508 = vmatmul.mubr.msk.bf16.vlgmr.msra.gmra.mrb[4].mxu1 %vm238_vm2, %v15253_v22 }
 0x271   : > { %12518 = vmatpush3.bf16.msra.mxu1 %v6202_v35  ;;  %12519 = vmatprep.mubr.msk.bf16.mxu1 %vm13898_vm0, %v13897_v3  ;;  %v7209_v35 = vsel %vm242_vm1, %v7207_v19, 0  ;;  %v6942_v2 = vpop.permute.xlu1 %6941 }
 0x272   : > { %12529 = vmatprep.subr.bf16.mxu1 %v13897_v3 }
 0x273   : > { %10554 = vrot.lane.b32.xlu1 %v14926_v34, %s13900_s29  ;;  %v11364_v34 = vld.sshfl [vmem:[%s13982_s27 + $0x16] sm:$0x3 pattern:$0x76325410] }
 0x274   : > { %12550 = vmatmul.mubr.msk.bf16.vlgmr.msra.gmra.mrb[0].mxu0 %vm238_vm2, %v15253_v22  ;;  %10077 = vrot.lane.b32.xlu0 %v11364_v34, %s13900_s29 }
 0x275   : > { %12560 = vmatpush3.bf16.msra.mxu0 %v6573_v32  ;;  %12561 = vmatprep.mubr.msk.bf16.mxu0 %vm13898_vm0, %v13897_v3  ;;  %v7048_v32 = vpop.permute.xlu0 %7047  ;;  %v7154_v12 = vpop.permute.xlu1 %7153 }
 0x276   : > { %12571 = vmatprep.subr.bf16.mxu0 %v13897_v3  ;;  %v7050_v29 = vsel %vm242_vm1, %v7048_v32, 0 }
 0x277   : > { %10660 = vrot.lane.b32.xlu1 %v14945_v45, %s13900_s29  ;;  %v6944_v45 = vsel %vm242_vm1, %v6942_v2, 0 }
 0x278   : > { %12520 = vmatmul.mubr.msk.bf16.vlgmr.msra.gmra.mrb[12].mxu1 %vm238_vm2, %v15253_v22  ;;  %10183 = vrot.lane.b32.xlu0 %v11368_v11, %s13900_s29 }
 0x279   : > { %12530 = vmatpush3.bf16.msra.mxu1 %v6308_v25  ;;  %12531 = vmatprep.mubr.msk.bf16.mxu1 %vm13898_vm0, %v13897_v3  ;;  %v15496_v25 = vld [vmem:[%s16039_s0 + $0x18] sm:$0xf]  ;;  %v8328_v16 = vpop.permute.xlu0 %8327 }
 0x27a   : > { %12541 = vmatprep.subr.bf16.mxu1 %v13897_v3 }
 0x27c   : > { %12562 = vmatmul.mubr.msk.bf16.vlgmr.msra.gmra.mrb[4].mxu0 %vm238_vm2, %v15253_v22  ;;  %10289 = vrot.lane.b32.xlu0 %v11372_v55, %s13900_s29 }
 0x27d   : > { %12572 = vmatpush3.bf16.msra.mxu0 %v6679_v26  ;;  %12573 = vmatprep.mubr.msk.bf16.mxu0 %vm13898_vm0, %v13897_v3  ;;  %v7156_v26 = vsel %vm242_vm1, %v7154_v12, 0 }
 0x27e   : > { %12583 = vmatprep.subr.bf16.mxu0 %v13897_v3 }
 0x280   : > { %12532 = vmatmul.mubr.msk.bf16.vlgmr.msra.gmra.mrb[20].mxu1 %vm238_vm2, %v15253_v22  ;;  %10395 = vrot.lane.b32.xlu0 %v11376_v5, %s13900_s29 }
 0x281   : > { %12542 = vmatpush3.bf16.msra.mxu1 %v6414_v6  ;;  %12543 = vmatprep.mubr.msk.bf16.mxu1 %vm13898_vm0, %v13897_v3  ;;  %v7349_v6 = vsel %vm242_vm1, %v15121_v14, 0  ;;  %v7435_v14 = vsel %vm242_vm1, %v15145_v8, 0  ;;  %v7521_v8 = vsel %vm242_vm1, %v15169_v28, 0  ;;  %v7607_v28 = vsel %vm242_vm1, %v15193_v42, 0 }
 0x282   : > { %12553 = vmatprep.subr.bf16.mxu1 %v13897_v3  ;;  %v7693_v42 = vsel %vm242_vm1, %v15217_v4, 0  ;;  %v7779_v4 = vsel %vm242_vm1, %v15241_v41, 0  ;;  %v7865_v41 = vsel %vm242_vm1, %v15270_v38, 0  ;;  %v7951_v38 = vsel %vm242_vm1, %v15294_v13, 0 }
 0x283   : > { %v8037_v13 = vsel %vm242_vm1, %v15318_v60, 0  ;;  %v8123_v60 = vsel %vm242_vm1, %v15342_v30, 0  ;;  %v8209_v30 = vsel %vm242_vm1, %v15366_v7, 0 }
 0x284   : > { %12574 = vmatmul.mubr.msk.bf16.vlgmr.msra.gmra.mrb[8].mxu0 %vm238_vm2, %v15253_v22  ;;  %10501 = vrot.lane.b32.xlu0 %v11380_v21, %s13900_s29 }
 0x285   : > { %12584 = vmatpush3.bf16.msra.mxu0 %v6785_v62  ;;  %12585 = vmatprep.mubr.msk.bf16.mxu0 %vm13898_vm0, %v13897_v3  ;;  %v7736_v62 = vsel %vm242_vm1, %v15200_v54, 0  ;;  %v7822_v54 = vsel %vm242_vm1, %v15224_v57, 0  ;;  %v7908_v57 = vsel %vm242_vm1, %v15248_v56, 0  ;;  %v7994_v56 = vsel %vm242_vm1, %v15277_v20, 0 }
 0x286   : > { %12595 = vmatprep.subr.bf16.mxu0 %v13897_v3  ;;  %v8080_v20 = vsel %vm242_vm1, %v15301_v24, 0  ;;  %v8166_v24 = vsel %vm242_vm1, %v15325_v17, 0  ;;  %v8252_v17 = vsel %vm242_vm1, %v15349_v50, 0  ;;  %v8333_v50 = vsel %vm242_vm1, %v8328_v16, 0 }
 0x288   : > { %12544 = vmatmul.mubr.msk.bf16.vlgmr.msra.gmra.mrb[28].mxu1 %vm238_vm2, %v15253_v22  ;;  %10607 = vrot.lane.b32.xlu0 %v11384_v58, %s13900_s29 }
 0x289   : > { %12554 = vmatpush3.bf16.msra.mxu1 %v6520_v39  ;;  %12555 = vmatprep.mubr.msk.bf16.mxu1 %vm13898_vm0, %v13897_v3  ;;  %v8437_v39 = vpop.permute.xlu1 %8436 }
 0x28a   : > { %12565 = vmatprep.subr.bf16.mxu1 %v13897_v3  ;;  %v8439_v61 = vsel %vm242_vm1, %v8437_v39, 0 }
 0x28c   : > { %12586 = vmatmul.mubr.msk.bf16.vlgmr.msra.gmra.mrb[12].mxu0 %vm238_vm2, %v15253_v22  ;;  %10713 = vrot.lane.b32.xlu0 %v11388_v48, %s13900_s29 }
 0x28d   : > { %12596 = vmatpush3.bf16.msra.mxu0 %v6891_v63  ;;  %12597 = vmatprep.mubr.msk.bf16.mxu0 %vm13898_vm0, %v13897_v3  ;;  %v8384_v63 = vpop.permute.xlu0 %8383  ;;  %v8543_v9 = vpop.permute.xlu1 %8542 }
 0x28e   : > { %12607 = vmatprep.subr.bf16.mxu0 %v13897_v3  ;;  %v8386_v7 = vsel %vm242_vm1, %v8384_v63, 0 }
 0x290   : > { %12556 = vmatmul.mubr.msk.bf16.vlgmr.msra.gmra.mrb[32].mxu1 %vm238_vm2, %v15253_v22 }
 0x291   : > { %12566 = vmatpush3.bf16.msra.mxu1 %v6626_v15  ;;  %12567 = vmatprep.mubr.msk.bf16.mxu1 %vm13898_vm0, %v13897_v3  ;;  %v8545_v15 = vsel %vm242_vm1, %v8543_v9, 0  ;;  %v8490_v40 = vpop.permute.xlu0 %8489 }
 0x292   : > { %12577 = vmatprep.subr.bf16.mxu1 %v13897_v3  ;;  %v8492_v1 = vsel %vm242_vm1, %v8490_v40, 0 }
 0x294   : > { %12598 = vmatmul.mubr.msk.bf16.vlgmr.msra.gmra.mrb[16].mxu0 %vm238_vm2, %v15253_v22 }
 0x295   : > { %12608 = vmatpush3.bf16.msra.mxu0 %v6997_v44  ;;  %12609 = vmatprep.mubr.msk.bf16.mxu0 %vm13898_vm0, %v13897_v3  ;;  %v8649_v44 = vpop.permute.xlu1 %8648 }
 0x296   : > { %12619 = vmatprep.subr.bf16.mxu0 %v13897_v3  ;;  %v8651_v49 = vsel %vm242_vm1, %v8649_v44, 0 }
 0x298   : > { %12568 = vmatmul.mubr.msk.bf16.vlgmr.msra.gmra.mrb[36].mxu1 %vm238_vm2, %v15253_v22 }
 0x299   : > { %12578 = vmatpush3.bf16.msra.mxu1 %v6732_v23  ;;  %12579 = vmatprep.mubr.msk.bf16.mxu1 %vm13898_vm0, %v13897_v3  ;;  %v8596_v23 = vpop.permute.xlu0 %8595  ;;  %v8755_v46 = vpop.permute.xlu1 %8754 }
 0x29a   : > { %12589 = vmatprep.subr.bf16.mxu1 %v13897_v3  ;;  %v8598_v52 = vsel %vm242_vm1, %v8596_v23, 0 }
 0x29c   : > { %12610 = vmatmul.mubr.msk.bf16.vlgmr.msra.gmra.mrb[20].mxu0 %vm238_vm2, %v15253_v22 }
 0x29d   : > { %12620 = vmatpush3.bf16.msra.mxu0 %v7103_v27  ;;  %12621 = vmatprep.mubr.msk.bf16.mxu0 %vm13898_vm0, %v13897_v3  ;;  %v8757_v27 = vsel %vm242_vm1, %v8755_v46, 0  ;;  %v8702_v59 = vpop.permute.xlu0 %8701  ;;  %v8861_v19 = vpop.permute.xlu1 %8860 }
 0x29e   : > { %12631 = vmatprep.subr.bf16.mxu0 %v13897_v3  ;;  %v8863_v34 = vsel %vm242_vm1, %v8861_v19, 0 }
 0x2a0   : > { %12580 = vmatmul.mubr.msk.bf16.vlgmr.msra.gmra.mrb[40].mxu1 %vm238_vm2, %v15253_v22 }
 0x2a1   : > { %12590 = vmatpush3.bf16.msra.mxu1 %v6838_v18  ;;  %12591 = vmatprep.mubr.msk.bf16.mxu1 %vm13898_vm0, %v13897_v3  ;;  %v8704_v18 = vsel %vm242_vm1, %v8702_v59, 0 }
 0x2a2   : > { %12601 = vmatprep.subr.bf16.mxu1 %v13897_v3 }
 0x2a4   : > { %12622 = vmatmul.mubr.msk.bf16.vlgmr.msra.gmra.mrb[24].mxu0 %vm238_vm2, %v15253_v22 }
 0x2a5   : > { %12632 = vmatpush3.bf16.msra.mxu0 %v7209_v35  ;;  %12633 = vmatprep.mubr.msk.bf16.mxu0 %vm13898_vm0, %v13897_v3  ;;  %v8808_v35 = vpop.permute.xlu0 %8807 }
 0x2a6   : > { %12637 = vmatprep.subr.bf16.mxu0 %v13897_v3  ;;  %v8810_v2 = vsel %vm242_vm1, %v8808_v35, 0 }
 0x2a8   : > { %12592 = vmatmul.mubr.msk.bf16.vlgmr.msra.gmra.mrb[44].mxu1 %vm238_vm2, %v15253_v22 }
 0x2a9   : > { %12602 = vmatpush3.bf16.msra.mxu1 %v6944_v45  ;;  %12603 = vmatprep.mubr.msk.bf16.mxu1 %vm13898_vm0, %v13897_v3  ;;  %v8967_v45 = vpop.permute.xlu1 %8966 }
 0x2aa   : > { %12613 = vmatprep.subr.bf16.mxu1 %v13897_v3  ;;  %v8969_v11 = vsel %vm242_vm1, %v8967_v45, 0 }
 0x2ac   : > { %12634 = vmatmul.mubr.msk.bf16.vlgmr.msra.gmra.mrb[28].mxu0 %vm238_vm2, %v15253_v22 }
 0x2ad   : > { %12638 = vmatpush3.bf16.msra.mxu0 %v7306_v31  ;;  %12639 = vmatprep.mubr.msk.bf16.mxu0 %vm13898_vm0, %v13897_v3  ;;  %v8914_v31 = vpop.permute.xlu0 %8913 }
 0x2ae   : > { %12649 = vmatprep.subr.bf16.mxu0 %v13897_v3  ;;  %v8916_v32 = vsel %vm242_vm1, %v8914_v31, 0 }
 0x2b0   : > { %12604 = vmatmul.mubr.msk.bf16.vlgmr.msra.gmra.mrb[48].mxu1 %vm238_vm2, %v15253_v22 }
 0x2b1   : > { %12614 = vmatpush3.bf16.msra.mxu1 %v7050_v29  ;;  %12615 = vmatprep.mubr.msk.bf16.mxu1 %vm13898_vm0, %v13897_v3  ;;  %v9073_v29 = vpop.permute.xlu1 %9072 }
 0x2b2   : > { %12625 = vmatprep.subr.bf16.mxu1 %v13897_v3  ;;  %v9075_v55 = vsel %vm242_vm1, %v9073_v29, 0 }
 0x2b4   : > { %12640 = vmatmul.mubr.msk.bf16.vlgmr.msra.gmra.mrb[32].mxu0 %vm238_vm2, %v15496_v25 }
 0x2b5   : > { %12650 = vmatpush3.bf16.msra.mxu0 %v7392_v0  ;;  %12651 = vmatprep.mubr.msk.bf16.mxu0 %vm13898_vm0, %v13897_v3  ;;  %v9179_v12 = vpop.permute.xlu1 %9178 }
 0x2b6   : > { %12661 = vmatprep.subr.bf16.mxu0 %v13897_v3 }
 0x2b8   : > { %12616 = vmatmul.mubr.msk.bf16.vlgmr.msra.gmra.mrb[52].mxu1 %vm238_vm2, %v15253_v22 }
 0x2b9   : > { %12626 = vmatpush3.bf16.msra.mxu1 %v7156_v26  ;;  %12627 = vmatprep.mubr.msk.bf16.mxu1 %vm13898_vm0, %v13897_v3  ;;  %v9181_v26 = vsel %vm242_vm1, %v9179_v12, 0 }
 0x2ba   : > { %12643 = vmatprep.subr.bf16.mxu1 %v13897_v3 }
 0x2bc   : > { %12652 = vmatmul.mubr.msk.bf16.vlgmr.msra.gmra.mrb[36].mxu0 %vm238_vm2, %v15496_v25 }
 0x2bd   : > { %12662 = vmatpush3.bf16.msra.mxu0 %v7478_v36  ;;  %12663 = vmatprep.mubr.msk.bf16.mxu0 %vm13898_vm0, %v13897_v3 }
 0x2be   : > { %12673 = vmatprep.subr.bf16.mxu0 %v13897_v3 }
 0x2c0   : > { %12628 = vmatmul.mubr.msk.bf16.vlgmr.msra.gmra.mrb[56].mxu1 %vm238_vm2, %v15253_v22  ;;  %v7650_v22 = vsel %vm242_vm1, %v15176_v33, 0  ;;  %v11390_v33 = vld.sshfl [vmem:[%s13982_s27 + $0x30] sm:$0x3 pattern:$0x76325410] }
 0x2c1   : > { %12644 = vmatpush3.bf16.msra.mxu1 %v7349_v6  ;;  %12645 = vmatprep.mubr.msk.bf16.mxu1 %vm13898_vm0, %v13897_v3  ;;  %v9285_v6 = vpop.permute.xlu1 %9284 }
 0x2c2   : > { %12655 = vmatprep.subr.bf16.mxu1 %v13897_v3  ;;  %10766 = vrot.lane.b32.xlu1 %v11390_v33, %s13900_s29  ;;  %v9287_v21 = vsel %vm242_vm1, %v9285_v6, 0 }
 0x2c4   : > { %12664 = vmatmul.mubr.msk.bf16.vlgmr.msra.gmra.mrb[40].mxu0 %vm238_vm2, %v15496_v25 }
 0x2c5   : > { %12674 = vmatpush3.bf16.msra.mxu0 %v7564_v10  ;;  %12675 = vmatprep.mubr.msk.bf16.mxu0 %vm13898_vm0, %v13897_v3  ;;  %v9391_v58 = vpop.permute.xlu1 %9390 }
 0x2c6   : > { %12685 = vmatprep.subr.bf16.mxu0 %v13897_v3 }
 0x2c8   : > { %12646 = vmatmul.mubr.msk.bf16.vlgmr.msra.gmra.mrb[4].mxu1 %vm238_vm2, %v15496_v25 }
 0x2c9   : > { %12656 = vmatpush3.bf16.msra.mxu1 %v7435_v14  ;;  %12657 = vmatprep.mubr.msk.bf16.mxu1 %vm13898_vm0, %v13897_v3  ;;  %v9497_v48 = vpop.permute.xlu1 %9496 }
 0x2ca   : > { %12667 = vmatprep.subr.bf16.mxu1 %v13897_v3 }
 0x2cc   : > { %12676 = vmatmul.mubr.msk.bf16.vlgmr.msra.gmra.mrb[44].mxu0 %vm238_vm2, %v15496_v25 }
 0x2cd   : > { %12686 = vmatpush3.bf16.msra.mxu0 %v7650_v22  ;;  %12687 = vmatprep.mubr.msk.bf16.mxu0 %vm13898_vm0, %v13897_v3  ;;  %v9393_v22 = vsel %vm242_vm1, %v9391_v58, 0 }
 0x2ce   : > { %12697 = vmatprep.subr.bf16.mxu0 %v13897_v3 }
 0x2d0   : > { %12658 = vmatmul.mubr.msk.bf16.vlgmr.msra.gmra.mrb[12].mxu1 %vm238_vm2, %v15496_v25 }
 0x2d1   : > { %12668 = vmatpush3.bf16.msra.mxu1 %v7521_v8  ;;  %12669 = vmatprep.mubr.msk.bf16.mxu1 %vm13898_vm0, %v13897_v3 }
 0x2d2   : > { %12679 = vmatprep.subr.bf16.mxu1 %v13897_v3 }
 0x2d4   : > { %12688 = vmatmul.mubr.msk.bf16.vlgmr.msra.gmra.mrb[0].mxu0 %vm238_vm2, %v15496_v25 }
 0x2d5   : > { %12698 = vmatpush3.bf16.msra.mxu0 %v7736_v62  ;;  %12699 = vmatprep.mubr.msk.bf16.mxu0 %vm13898_vm0, %v13897_v3  ;;  %v9499_v62 = vsel %vm242_vm1, %v9497_v48, 0 }
 0x2d6   : > { %12709 = vmatprep.subr.bf16.mxu0 %v13897_v3 }
 0x2d8   : > { %12670 = vmatmul.mubr.msk.bf16.vlgmr.msra.gmra.mrb[20].mxu1 %vm238_vm2, %v15496_v25 }
 0x2d9   : > { %12680 = vmatpush3.bf16.msra.mxu1 %v7607_v28  ;;  %12681 = vmatprep.mubr.msk.bf16.mxu1 %vm13898_vm0, %v13897_v3 }
 0x2da   : > { %12691 = vmatprep.subr.bf16.mxu1 %v13897_v3 }
 0x2dc   : > { %12700 = vmatmul.mubr.msk.bf16.vlgmr.msra.gmra.mrb[4].mxu0 %vm238_vm2, %v15496_v25 }
 0x2dd   : > { %12710 = vmatpush3.bf16.msra.mxu0 %v7822_v54  ;;  %12711 = vmatprep.mubr.msk.bf16.mxu0 %vm13898_vm0, %v13897_v3 }
 0x2de   : > { %12721 = vmatprep.subr.bf16.mxu0 %v13897_v3 }
 0x2e0   : > { %12682 = vmatmul.mubr.msk.bf16.vlgmr.msra.gmra.mrb[28].mxu1 %vm238_vm2, %v15496_v25 }
 0x2e1   : > { %12692 = vmatpush3.bf16.msra.mxu1 %v7693_v42  ;;  %12693 = vmatprep.mubr.msk.bf16.mxu1 %vm13898_vm0, %v13897_v3  ;;  %v9598_v42 = vpop.permute.xlu1 %9597 }
 0x2e2   : > { %12703 = vmatprep.subr.bf16.mxu1 %v13897_v3 }
 0x2e4   : > { %12712 = vmatmul.mubr.msk.bf16.vlgmr.msra.gmra.mrb[8].mxu0 %vm238_vm2, %v15496_v25 }
 0x2e5   : > { %12722 = vmatpush3.bf16.msra.mxu0 %v7908_v57  ;;  %12723 = vmatprep.mubr.msk.bf16.mxu0 %vm13898_vm0, %v13897_v3  ;;  %v9603_v57 = vsel %vm242_vm1, %v9598_v42, 0 }
 0x2e6   : > { %12733 = vmatprep.subr.bf16.mxu0 %v13897_v3 }
 0x2e8   : > { %12694 = vmatmul.mubr.msk.bf16.vlgmr.msra.gmra.mrb[32].mxu1 %vm238_vm2, %v15496_v25 }
 0x2e9   : > { %12704 = vmatpush3.bf16.msra.mxu1 %v7779_v4  ;;  %12705 = vmatprep.mubr.msk.bf16.mxu1 %vm13898_vm0, %v13897_v3 }
 0x2ea   : > { %12715 = vmatprep.subr.bf16.mxu1 %v13897_v3 }
 0x2ec   : > { %12724 = vmatmul.mubr.msk.bf16.vlgmr.msra.gmra.mrb[12].mxu0 %vm238_vm2, %v15496_v25 }
 0x2ed   : > { %12734 = vmatpush3.bf16.msra.mxu0 %v7994_v56  ;;  %12735 = vmatprep.mubr.msk.bf16.mxu0 %vm13898_vm0, %v13897_v3 }
 0x2ee   : > { %12745 = vmatprep.subr.bf16.mxu0 %v13897_v3 }
 0x2f0   : > { %12706 = vmatmul.mubr.msk.bf16.vlgmr.msra.gmra.mrb[36].mxu1 %vm238_vm2, %v15496_v25 }
 0x2f1   : > { %12716 = vmatpush3.bf16.msra.mxu1 %v7865_v41  ;;  %12717 = vmatprep.mubr.msk.bf16.mxu1 %vm13898_vm0, %v13897_v3  ;;  %v9707_v41 = vpop.permute.xlu1 %9706 }
 0x2f2   : > { %12727 = vmatprep.subr.bf16.mxu1 %v13897_v3 }
 0x2f4   : > { %12736 = vmatmul.mubr.msk.bf16.vlgmr.msra.gmra.mrb[16].mxu0 %vm238_vm2, %v15496_v25 }
 0x2f5   : > { %12746 = vmatpush3.bf16.msra.mxu0 %v8080_v20  ;;  %12747 = vmatprep.mubr.msk.bf16.mxu0 %vm13898_vm0, %v13897_v3  ;;  %v15827_v20 = vld [vmem:[%s16039_s0 + $0x20] sm:$0xf] }
 0x2f6   : > { %12757 = vmatprep.subr.bf16.mxu0 %v13897_v3 }
 0x2f8   : > { %12718 = vmatmul.mubr.msk.bf16.vlgmr.msra.gmra.mrb[40].mxu1 %vm238_vm2, %v15496_v25 }
 0x2f9   : > { %12728 = vmatpush3.bf16.msra.mxu1 %v7951_v38  ;;  %12729 = vmatprep.mubr.msk.bf16.mxu1 %vm13898_vm0, %v13897_v3  ;;  %v9709_v38 = vsel %vm242_vm1, %v9707_v41, 0 }
 0x2fa   : > { %12739 = vmatprep.subr.bf16.mxu1 %v13897_v3 }
 0x2fc   : > { %12748 = vmatmul.mubr.msk.bf16.vlgmr.msra.gmra.mrb[20].mxu0 %vm238_vm2, %v15496_v25 }
 0x2fd   : > { %12758 = vmatpush3.bf16.msra.mxu0 %v8166_v24  ;;  %12759 = vmatprep.mubr.msk.bf16.mxu0 %vm13898_vm0, %v13897_v3 }
 0x2fe   : > { %12769 = vmatprep.subr.bf16.mxu0 %v13897_v3 }
 0x300   : > { %12730 = vmatmul.mubr.msk.bf16.vlgmr.msra.gmra.mrb[44].mxu1 %vm238_vm2, %v15496_v25 }
 0x301   : > { %12740 = vmatpush3.bf16.msra.mxu1 %v8037_v13  ;;  %12741 = vmatprep.mubr.msk.bf16.mxu1 %vm13898_vm0, %v13897_v3 }
 0x302   : > { %12751 = vmatprep.subr.bf16.mxu1 %v13897_v3 }
 0x304   : > { %12760 = vmatmul.mubr.msk.bf16.vlgmr.msra.gmra.mrb[24].mxu0 %vm238_vm2, %v15496_v25 }
 0x305   : > { %12770 = vmatpush3.bf16.msra.mxu0 %v8252_v17  ;;  %12771 = vmatprep.mubr.msk.bf16.mxu0 %vm13898_vm0, %v13897_v3  ;;  %v9813_v17 = vpop.permute.xlu1 %9812 }
 0x306   : > { %12775 = vmatprep.subr.bf16.mxu0 %v13897_v3 }
 0x308   : > { %12742 = vmatmul.mubr.msk.bf16.vlgmr.msra.gmra.mrb[48].mxu1 %vm238_vm2, %v15496_v25 }
 0x309   : > { %12752 = vmatpush3.bf16.msra.mxu1 %v8123_v60  ;;  %12753 = vmatprep.mubr.msk.bf16.mxu1 %vm13898_vm0, %v13897_v3  ;;  %v9815_v60 = vsel %vm242_vm1, %v9813_v17, 0 }
 0x30a   : > { %12763 = vmatprep.subr.bf16.mxu1 %v13897_v3 }
 0x30c   : > { %12772 = vmatmul.mubr.msk.bf16.vlgmr.msra.gmra.mrb[28].mxu0 %vm238_vm2, %v15496_v25 }
 0x30d   : > { %12776 = vmatpush3.bf16.msra.mxu0 %v8333_v50  ;;  %12777 = vmatprep.mubr.msk.bf16.mxu0 %vm13898_vm0, %v13897_v3 }
 0x30e   : > { %12787 = vmatprep.subr.bf16.mxu0 %v13897_v3 }
 0x310   : > { %12754 = vmatmul.mubr.msk.bf16.vlgmr.msra.gmra.mrb[52].mxu1 %vm238_vm2, %v15496_v25 }
 0x311   : > { %12764 = vmatpush3.bf16.msra.mxu1 %v8209_v30  ;;  %12765 = vmatprep.mubr.msk.bf16.mxu1 %vm13898_vm0, %v13897_v3  ;;  %v9919_v30 = vpop.permute.xlu1 %9918 }
 0x312   : > { %12781 = vmatprep.subr.bf16.mxu1 %v13897_v3  ;;  %v9921_v39 = vsel %vm242_vm1, %v9919_v30, 0 }
 0x314   : > { %12778 = vmatmul.mubr.msk.bf16.vlgmr.msra.gmra.mrb[32].mxu0 %vm238_vm2, %v15678_v51 }
 0x315   : > { %12788 = vmatpush3.bf16.msra.mxu0 %v8439_v61  ;;  %12789 = vmatprep.mubr.msk.bf16.mxu0 %vm13898_vm0, %v13897_v3  ;;  %v10025_v63 = vpop.permute.xlu1 %10024 }
 0x316   : > { %12799 = vmatprep.subr.bf16.mxu0 %v13897_v3 }
 0x318   : > { %12766 = vmatmul.mubr.msk.bf16.vlgmr.msra.gmra.mrb[56].mxu1 %vm238_vm2, %v15496_v25  ;;  %v9020_v25 = vpop.permute.xlu0 %9019 }
 0x319   : > { %12782 = vmatpush3.bf16.msra.mxu1 %v8386_v7  ;;  %12783 = vmatprep.mubr.msk.bf16.mxu1 %vm13898_vm0, %v13897_v3  ;;  %v9022_v0 = vsel %vm242_vm1, %v9020_v25, 0  ;;  %v10027_v7 = vsel %vm242_vm1, %v10025_v63, 0  ;;  %v10131_v40 = vpop.permute.xlu1 %10130 }
 0x31a   : > { %12793 = vmatprep.subr.bf16.mxu1 %v13897_v3 }
 0x31c   : > { %12790 = vmatmul.mubr.msk.bf16.vlgmr.msra.gmra.mrb[36].mxu0 %vm238_vm2, %v15678_v51  ;;  %v9126_v5 = vpop.permute.xlu0 %9125 }
 0x31d   : > { %12800 = vmatpush3.bf16.msra.mxu0 %v8545_v15  ;;  %12801 = vmatprep.mubr.msk.bf16.mxu0 %vm13898_vm0, %v13897_v3  ;;  %v9128_v36 = vsel %vm242_vm1, %v9126_v5, 0  ;;  %v10237_v23 = vpop.permute.xlu1 %10236 }
 0x31e   : > { %12811 = vmatprep.subr.bf16.mxu0 %v13897_v3 }
 0x320   : > { %12784 = vmatmul.mubr.msk.bf16.vlgmr.msra.gmra.mrb[4].mxu1 %vm238_vm2, %v15678_v51  ;;  %v9232_v10 = vpop.permute.xlu0 %9231 }
 0x321   : > { %12794 = vmatpush3.bf16.msra.mxu1 %v8492_v1  ;;  %12795 = vmatprep.mubr.msk.bf16.mxu1 %vm13898_vm0, %v13897_v3  ;;  %v9234_v14 = vsel %vm242_vm1, %v9232_v10, 0  ;;  %v10133_v1 = vsel %vm242_vm1, %v10131_v40, 0  ;;  %v10343_v59 = vpop.permute.xlu1 %10342 }
 0x322   : > { %12805 = vmatprep.subr.bf16.mxu1 %v13897_v3 }
 0x324   : > { %12802 = vmatmul.mubr.msk.bf16.vlgmr.msra.gmra.mrb[40].mxu0 %vm238_vm2, %v15678_v51  ;;  %v9338_v8 = vpop.permute.xlu0 %9337 }
 0x325   : > { %12812 = vmatpush3.bf16.msra.mxu0 %v8651_v49  ;;  %12813 = vmatprep.mubr.msk.bf16.mxu0 %vm13898_vm0, %v13897_v3  ;;  %v9340_v33 = vsel %vm242_vm1, %v9338_v8, 0  ;;  %v10449_v35 = vpop.permute.xlu1 %10448 }
 0x326   : > { %12823 = vmatprep.subr.bf16.mxu0 %v13897_v3 }
 0x328   : > { %12796 = vmatmul.mubr.msk.bf16.vlgmr.msra.gmra.mrb[12].mxu1 %vm238_vm2, %v15678_v51  ;;  %v9444_v28 = vpop.permute.xlu0 %9443 }
 0x329   : > { %12806 = vmatpush3.bf16.msra.mxu1 %v8598_v52  ;;  %12807 = vmatprep.mubr.msk.bf16.mxu1 %vm13898_vm0, %v13897_v3  ;;  %v9446_v54 = vsel %vm242_vm1, %v9444_v28, 0  ;;  %v10239_v52 = vsel %vm242_vm1, %v10237_v23, 0  ;;  %v10555_v31 = vpop.permute.xlu1 %10554 }
 0x32a   : > { %12817 = vmatprep.subr.bf16.mxu1 %v13897_v3 }
 0x32c   : > { %12814 = vmatmul.mubr.msk.bf16.vlgmr.msra.gmra.mrb[44].mxu0 %vm238_vm2, %v15678_v51  ;;  %v9654_v4 = vpop.permute.xlu0 %9653 }
 0x32d   : > { %12824 = vmatpush3.bf16.msra.mxu0 %v8757_v27  ;;  %12825 = vmatprep.mubr.msk.bf16.mxu0 %vm13898_vm0, %v13897_v3  ;;  %v9656_v56 = vsel %vm242_vm1, %v9654_v4, 0  ;;  %v10661_v25 = vpop.permute.xlu1 %10660 }
 0x32e   : > { %12835 = vmatprep.subr.bf16.mxu0 %v13897_v3 }
 0x330   : > { %12808 = vmatmul.mubr.msk.bf16.vlgmr.msra.gmra.mrb[20].mxu1 %vm238_vm2, %v15678_v51  ;;  %v9760_v24 = vpop.permute.xlu0 %9759 }
 0x331   : > { %12818 = vmatpush3.bf16.msra.mxu1 %v8704_v18  ;;  %12819 = vmatprep.mubr.msk.bf16.mxu1 %vm13898_vm0, %v13897_v3  ;;  %v9762_v13 = vsel %vm242_vm1, %v9760_v24, 0  ;;  %v10345_v18 = vsel %vm242_vm1, %v10343_v59, 0 }
 0x332   : > { %12829 = vmatprep.subr.bf16.mxu1 %v13897_v3 }
 0x334   : > { %12826 = vmatmul.mubr.msk.bf16.vlgmr.msra.gmra.mrb[0].mxu0 %vm238_vm2, %v15678_v51  ;;  %v9866_v16 = vpop.permute.xlu0 %9865  ;;  %v10767_v5 = vpop.permute.xlu1 %10766 }
 0x335   : > { %12836 = vmatpush3.bf16.msra.mxu0 %v8863_v34  ;;  %12837 = vmatprep.mubr.msk.bf16.mxu0 %vm13898_vm0, %v13897_v3  ;;  %v9868_v50 = vsel %vm242_vm1, %v9866_v16, 0 }
 0x336   : > { %12847 = vmatprep.subr.bf16.mxu0 %v13897_v3 }
 0x338   : > { %12820 = vmatmul.mubr.msk.bf16.vlgmr.msra.gmra.mrb[28].mxu1 %vm238_vm2, %v15678_v51 }
 0x339   : > { %12830 = vmatpush3.bf16.msra.mxu1 %v8810_v2  ;;  %12831 = vmatprep.mubr.msk.bf16.mxu1 %vm13898_vm0, %v13897_v3  ;;  %v10451_v2 = vsel %vm242_vm1, %v10449_v35, 0 }
 0x33a   : > { %12841 = vmatprep.subr.bf16.mxu1 %v13897_v3 }
 0x33c   : > { %12838 = vmatmul.mubr.msk.bf16.vlgmr.msra.gmra.mrb[4].mxu0 %vm238_vm2, %v15678_v51 }
 0x33d   : > { %12848 = vmatpush3.bf16.msra.mxu0 %v8969_v11  ;;  %12849 = vmatprep.mubr.msk.bf16.mxu0 %vm13898_vm0, %v13897_v3 }
 0x33e   : > { %12859 = vmatprep.subr.bf16.mxu0 %v13897_v3 }
 0x340   : > { %12832 = vmatmul.mubr.msk.bf16.vlgmr.msra.gmra.mrb[32].mxu1 %vm238_vm2, %v15678_v51 }
 0x341   : > { %12842 = vmatpush3.bf16.msra.mxu1 %v8916_v32  ;;  %12843 = vmatprep.mubr.msk.bf16.mxu1 %vm13898_vm0, %v13897_v3  ;;  %v10557_v32 = vsel %vm242_vm1, %v10555_v31, 0 }
 0x342   : > { %12853 = vmatprep.subr.bf16.mxu1 %v13897_v3 }
 0x344   : > { %12850 = vmatmul.mubr.msk.bf16.vlgmr.msra.gmra.mrb[8].mxu0 %vm238_vm2, %v15678_v51 }
 0x345   : > { %12860 = vmatpush3.bf16.msra.mxu0 %v9075_v55  ;;  %12861 = vmatprep.mubr.msk.bf16.mxu0 %vm13898_vm0, %v13897_v3 }
 0x346   : > { %12871 = vmatprep.subr.bf16.mxu0 %v13897_v3 }
 0x348   : > { %12844 = vmatmul.mubr.msk.bf16.vlgmr.msra.gmra.mrb[36].mxu1 %vm238_vm2, %v15678_v51 }
 0x349   : > { %12854 = vmatpush3.bf16.msra.mxu1 %v9022_v0  ;;  %12855 = vmatprep.mubr.msk.bf16.mxu1 %vm13898_vm0, %v13897_v3  ;;  %v10663_v0 = vsel %vm242_vm1, %v10661_v25, 0 }
 0x34a   : > { %12865 = vmatprep.subr.bf16.mxu1 %v13897_v3 }
 0x34c   : > { %12862 = vmatmul.mubr.msk.bf16.vlgmr.msra.gmra.mrb[12].mxu0 %vm238_vm2, %v15678_v51 }
 0x34d   : > { %12872 = vmatpush3.bf16.msra.mxu0 %v9181_v26  ;;  %12873 = vmatprep.mubr.msk.bf16.mxu0 %vm13898_vm0, %v13897_v3 }
 0x34e   : > { %12883 = vmatprep.subr.bf16.mxu0 %v13897_v3 }
 0x350   : > { %12856 = vmatmul.mubr.msk.bf16.vlgmr.msra.gmra.mrb[40].mxu1 %vm238_vm2, %v15678_v51 }
 0x351   : > { %12866 = vmatpush3.bf16.msra.mxu1 %v9128_v36  ;;  %12867 = vmatprep.mubr.msk.bf16.mxu1 %vm13898_vm0, %v13897_v3  ;;  %v10769_v36 = vsel %vm242_vm1, %v10767_v5, 0 }
 0x352   : > { %12877 = vmatprep.subr.bf16.mxu1 %v13897_v3 }
 0x354   : > { %12874 = vmatmul.mubr.msk.bf16.vlgmr.msra.gmra.mrb[16].mxu0 %vm238_vm2, %v15678_v51 }
 0x355   : > { %12884 = vmatpush3.bf16.msra.mxu0 %v9287_v21  ;;  %12885 = vmatprep.mubr.msk.bf16.mxu0 %vm13898_vm0, %v13897_v3 }
 0x356   : > { %12895 = vmatprep.subr.bf16.mxu0 %v13897_v3 }
 0x358   : > { %12868 = vmatmul.mubr.msk.bf16.vlgmr.msra.gmra.mrb[44].mxu1 %vm238_vm2, %v15678_v51 }
 0x359   : > { %12878 = vmatpush3.bf16.msra.mxu1 %v9234_v14  ;;  %12879 = vmatprep.mubr.msk.bf16.mxu1 %vm13898_vm0, %v13897_v3 }
 0x35a   : > { %12889 = vmatprep.subr.bf16.mxu1 %v13897_v3 }
 0x35c   : > { %12886 = vmatmul.mubr.msk.bf16.vlgmr.msra.gmra.mrb[20].mxu0 %vm238_vm2, %v15678_v51 }
 0x35d   : > { %12896 = vmatpush3.bf16.msra.mxu0 %v9393_v22  ;;  %12897 = vmatprep.mubr.msk.bf16.mxu0 %vm13898_vm0, %v13897_v3 }
 0x35e   : > { %12907 = vmatprep.subr.bf16.mxu0 %v13897_v3 }
 0x360   : > { %12880 = vmatmul.mubr.msk.bf16.vlgmr.msra.gmra.mrb[48].mxu1 %vm238_vm2, %v15678_v51 }
 0x361   : > { %12890 = vmatpush3.bf16.msra.mxu1 %v9340_v33  ;;  %12891 = vmatprep.mubr.msk.bf16.mxu1 %vm13898_vm0, %v13897_v3 }
 0x362   : > { %12901 = vmatprep.subr.bf16.mxu1 %v13897_v3 }
 0x364   : > { %12898 = vmatmul.mubr.msk.bf16.vlgmr.msra.gmra.mrb[24].mxu0 %vm238_vm2, %v15678_v51 }
 0x365   : > { %12908 = vmatpush3.bf16.msra.mxu0 %v9499_v62  ;;  %12909 = vmatprep.mubr.msk.bf16.mxu0 %vm13898_vm0, %v13897_v3 }
 0x366   : > { %12913 = vmatprep.subr.bf16.mxu0 %v13897_v3 }
 0x368   : > { %12892 = vmatmul.mubr.msk.bf16.vlgmr.msra.gmra.mrb[52].mxu1 %vm238_vm2, %v15678_v51 }
 0x369   : > { %12902 = vmatpush3.bf16.msra.mxu1 %v9446_v54  ;;  %12903 = vmatprep.mubr.msk.bf16.mxu1 %vm13898_vm0, %v13897_v3 }
 0x36a   : > { %12919 = vmatprep.subr.bf16.mxu1 %v13897_v3 }
 0x36c   : > { %12910 = vmatmul.mubr.msk.bf16.vlgmr.msra.gmra.mrb[28].mxu0 %vm238_vm2, %v15678_v51 }
 0x36d   : > { %12914 = vmatpush3.bf16.msra.mxu0 %v9603_v57  ;;  %12915 = vmatprep.mubr.msk.bf16.mxu0 %vm13898_vm0, %v13897_v3 }
 0x36e   : > { %12925 = vmatprep.subr.bf16.mxu0 %v13897_v3 }
 0x370   : > { %12904 = vmatmul.mubr.msk.bf16.vlgmr.msra.gmra.mrb[56].mxu1 %vm238_vm2, %v15678_v51  ;;  %v9972_v51 = vpop.permute.xlu0 %9971 }
 0x371   : > { %12920 = vmatpush3.bf16.msra.mxu1 %v9656_v56  ;;  %12921 = vmatprep.mubr.msk.bf16.mxu1 %vm13898_vm0, %v13897_v3  ;;  %v9974_v61 = vsel %vm242_vm1, %v9972_v51, 0 }
 0x372   : > { %12931 = vmatprep.subr.bf16.mxu1 %v13897_v3 }
 0x374   : > { %12916 = vmatmul.mubr.msk.bf16.vlgmr.msra.gmra.mrb[32].mxu0 %vm238_vm2, %v15827_v20  ;;  %v10078_v9 = vpop.permute.xlu0 %10077 }
 0x375   : > { %12926 = vmatpush3.bf16.msra.mxu0 %v9709_v38  ;;  %12927 = vmatprep.mubr.msk.bf16.mxu0 %vm13898_vm0, %v13897_v3  ;;  %v10080_v15 = vsel %vm242_vm1, %v10078_v9, 0 }
 0x376   : > { %12937 = vmatprep.subr.bf16.mxu0 %v13897_v3 }
 0x378   : > { %12922 = vmatmul.mubr.msk.bf16.vlgmr.msra.gmra.mrb[4].mxu1 %vm238_vm2, %v15827_v20  ;;  %v10184_v44 = vpop.permute.xlu0 %10183 }
 0x379   : > { %12932 = vmatpush3.bf16.msra.mxu1 %v9762_v13  ;;  %12933 = vmatprep.mubr.msk.bf16.mxu1 %vm13898_vm0, %v13897_v3  ;;  %v10186_v49 = vsel %vm242_vm1, %v10184_v44, 0 }
 0x37a   : > { %12943 = vmatprep.subr.bf16.mxu1 %v13897_v3 }
 0x37c   : > { %12928 = vmatmul.mubr.msk.bf16.vlgmr.msra.gmra.mrb[36].mxu0 %vm238_vm2, %v15827_v20  ;;  %v10290_v46 = vpop.permute.xlu0 %10289 }
 0x37d   : > { %12938 = vmatpush3.bf16.msra.mxu0 %v9815_v60  ;;  %12939 = vmatprep.mubr.msk.bf16.mxu0 %vm13898_vm0, %v13897_v3  ;;  %v10292_v27 = vsel %vm242_vm1, %v10290_v46, 0 }
 0x37e   : > { %12949 = vmatprep.subr.bf16.mxu0 %v13897_v3 }
 0x380   : > { %12934 = vmatmul.mubr.msk.bf16.vlgmr.msra.gmra.mrb[12].mxu1 %vm238_vm2, %v15827_v20  ;;  %v10396_v19 = vpop.permute.xlu0 %10395 }
 0x381   : > { %12944 = vmatpush3.bf16.msra.mxu1 %v9868_v50  ;;  %12945 = vmatprep.mubr.msk.bf16.mxu1 %vm13898_vm0, %v13897_v3  ;;  %v10398_v34 = vsel %vm242_vm1, %v10396_v19, 0 }
 0x382   : > { %12955 = vmatprep.subr.bf16.mxu1 %v13897_v3 }
 0x384   : > { %12940 = vmatmul.mubr.msk.bf16.vlgmr.msra.gmra.mrb[40].mxu0 %vm238_vm2, %v15827_v20  ;;  %v10502_v45 = vpop.permute.xlu0 %10501 }
 0x385   : > { %12950 = vmatpush3.bf16.msra.mxu0 %v9921_v39  ;;  %12951 = vmatprep.mubr.msk.bf16.mxu0 %vm13898_vm0, %v13897_v3  ;;  %v10504_v11 = vsel %vm242_vm1, %v10502_v45, 0 }
 0x386   : > { %12961 = vmatprep.subr.bf16.mxu0 %v13897_v3 }
 0x388   : > { %12946 = vmatmul.mubr.msk.bf16.vlgmr.msra.gmra.mrb[20].mxu1 %vm238_vm2, %v15827_v20  ;;  %v10608_v29 = vpop.permute.xlu0 %10607 }
 0x389   : > { %12956 = vmatpush3.bf16.msra.mxu1 %v9974_v61  ;;  %12957 = vmatprep.mubr.msk.bf16.mxu1 %vm13898_vm0, %v13897_v3  ;;  %v10610_v55 = vsel %vm242_vm1, %v10608_v29, 0 }
 0x38a   : > { %12967 = vmatprep.subr.bf16.mxu1 %v13897_v3 }
 0x38c   : > { %12952 = vmatmul.mubr.msk.bf16.vlgmr.msra.gmra.mrb[44].mxu0 %vm238_vm2, %v15827_v20  ;;  %v10714_v12 = vpop.permute.xlu0 %10713 }
 0x38d   : > { %12962 = vmatpush3.bf16.msra.mxu0 %v10027_v7  ;;  %12963 = vmatprep.mubr.msk.bf16.mxu0 %vm13898_vm0, %v13897_v3  ;;  %v10716_v26 = vsel %vm242_vm1, %v10714_v12, 0 }
 0x38e   : > { %12973 = vmatprep.subr.bf16.mxu0 %v13897_v3 }
 0x390   : > { %12958 = vmatmul.mubr.msk.bf16.vlgmr.msra.gmra.mrb[28].mxu1 %vm238_vm2, %v15827_v20 }
 0x391   : > { %12968 = vmatpush3.bf16.msra.mxu1 %v10080_v15  ;;  %12969 = vmatprep.mubr.msk.bf16.mxu1 %vm13898_vm0, %v13897_v3 }
 0x392   : > { %12979 = vmatprep.subr.bf16.mxu1 %v13897_v3 }
 0x394   : > { %12964 = vmatmul.mubr.msk.bf16.vlgmr.msra.gmra.mrb[0].mxu0 %vm238_vm2, %v15827_v20 }
 0x395   : > { %12974 = vmatpush3.bf16.msra.mxu0 %v10133_v1  ;;  %12975 = vmatprep.mubr.msk.bf16.mxu0 %vm13898_vm0, %v13897_v3 }
 0x396   : > { %12985 = vmatprep.subr.bf16.mxu0 %v13897_v3 }
 0x398   : > { %12970 = vmatmul.mubr.msk.bf16.vlgmr.msra.gmra.mrb[32].mxu1 %vm238_vm2, %v15827_v20 }
 0x399   : > { %12980 = vmatpush3.bf16.msra.mxu1 %v10186_v49  ;;  %12981 = vmatprep.mubr.msk.bf16.mxu1 %vm13898_vm0, %v13897_v3 }
 0x39a   : > { %12991 = vmatprep.subr.bf16.mxu1 %v13897_v3 }
 0x39c   : > { %12976 = vmatmul.mubr.msk.bf16.vlgmr.msra.gmra.mrb[4].mxu0 %vm238_vm2, %v15827_v20 }
 0x39d   : > { %12986 = vmatpush3.bf16.msra.mxu0 %v10239_v52  ;;  %12987 = vmatprep.mubr.msk.bf16.mxu0 %vm13898_vm0, %v13897_v3 }
 0x39e   : > { %12997 = vmatprep.subr.bf16.mxu0 %v13897_v3 }
 0x3a0   : > { %12982 = vmatmul.mubr.msk.bf16.vlgmr.msra.gmra.mrb[36].mxu1 %vm238_vm2, %v15827_v20 }
 0x3a1   : > { %12992 = vmatpush3.bf16.msra.mxu1 %v10292_v27  ;;  %12993 = vmatprep.mubr.msk.bf16.mxu1 %vm13898_vm0, %v13897_v3 }
 0x3a2   : > { %13003 = vmatprep.subr.bf16.mxu1 %v13897_v3 }
 0x3a4   : > { %12988 = vmatmul.mubr.msk.bf16.vlgmr.msra.gmra.mrb[8].mxu0 %vm238_vm2, %v15827_v20 }
 0x3a5   : > { %12998 = vmatpush3.bf16.msra.mxu0 %v10345_v18  ;;  %12999 = vmatprep.mubr.msk.bf16.mxu0 %vm13898_vm0, %v13897_v3 }
 0x3a6   : > { %13009 = vmatprep.subr.bf16.mxu0 %v13897_v3 }
 0x3a8   : > { %12994 = vmatmul.mubr.msk.bf16.vlgmr.msra.gmra.mrb[40].mxu1 %vm238_vm2, %v15827_v20 }
 0x3a9   : > { %13004 = vmatpush3.bf16.msra.mxu1 %v10398_v34  ;;  %13005 = vmatprep.mubr.msk.bf16.mxu1 %vm13898_vm0, %v13897_v3 }
 0x3aa   : > { %13015 = vmatprep.subr.bf16.mxu1 %v13897_v3 }
 0x3ac   : > { %13000 = vmatmul.mubr.msk.bf16.vlgmr.msra.gmra.mrb[12].mxu0 %vm238_vm2, %v15827_v20 }
 0x3ad   : > { %13010 = vmatpush3.bf16.msra.mxu0 %v10451_v2  ;;  %13011 = vmatprep.mubr.msk.bf16.mxu0 %vm13898_vm0, %v13897_v3 }
 0x3ae   : > { %13021 = vmatprep.subr.bf16.mxu0 %v13897_v3 }
 0x3b0   : > { %13006 = vmatmul.mubr.msk.bf16.vlgmr.msra.gmra.mrb[44].mxu1 %vm238_vm2, %v15827_v20 }
 0x3b1   : > { %13016 = vmatpush3.bf16.msra.mxu1 %v10504_v11  ;;  %13017 = vmatprep.mubr.msk.bf16.mxu1 %vm13898_vm0, %v13897_v3 }
 0x3b2   : > { %13027 = vmatprep.subr.bf16.mxu1 %v13897_v3 }
 0x3b4   : > { %13012 = vmatmul.mubr.msk.bf16.vlgmr.msra.gmra.mrb[16].mxu0 %vm238_vm2, %v15827_v20 }
 0x3b5   : > { %13022 = vmatpush3.bf16.msra.mxu0 %v10557_v32  ;;  %13023 = vmatprep.mubr.msk.bf16.mxu0 %vm13898_vm0, %v13897_v3 }
 0x3b6   : > { %13033 = vmatprep.subr.bf16.mxu0 %v13897_v3 }
 0x3b8   : > { %13018 = vmatmul.mubr.msk.bf16.vlgmr.msra.gmra.mrb[48].mxu1 %vm238_vm2, %v15827_v20 }
 0x3b9   : > { %13028 = vmatpush3.bf16.msra.mxu1 %v10610_v55  ;;  %13029 = vmatprep.mubr.msk.bf16.mxu1 %vm13898_vm0, %v13897_v3 }
 0x3ba   : > { %13039 = vmatprep.subr.bf16.mxu1 %v13897_v3 }
 0x3bc   : > { %13024 = vmatmul.mubr.msk.bf16.vlgmr.msra.gmra.mrb[20].mxu0 %vm238_vm2, %v15827_v20 }
 0x3bd   : > { %13034 = vmatpush3.bf16.msra.mxu0 %v10663_v0  ;;  %13035 = vmatprep.mubr.msk.bf16.mxu0 %vm13898_vm0, %v13897_v3 }
 0x3be   : > { %13045 = vmatprep.subr.bf16.mxu0 %v13897_v3 }
 0x3c0   : > { %13030 = vmatmul.mubr.msk.bf16.vlgmr.msra.gmra.mrb[52].mxu1 %vm238_vm2, %v15827_v20 }
 0x3c1   : > { %13040 = vmatpush3.bf16.msra.mxu1 %v10716_v26  ;;  %13041 = vmatprep.mubr.msk.bf16.mxu1 %vm13898_vm0, %v13897_v3 }
 0x3c4   : > { %13036 = vmatmul.mubr.msk.bf16.vlgmr.msra.gmra.mrb[24].mxu0 %vm238_vm2, %v15827_v20 }
 0x3c5   : > { %13046 = vmatpush3.bf16.msra.mxu0 %v10769_v36  ;;  %13047 = vmatprep.mubr.msk.bf16.mxu0 %vm13898_vm0, %v13897_v3 }
 0x3c8   : > { %13042 = vmatmul.mubr.msk.bf16.vlgmr.msra.gmra.mrb[56].mxu1 %vm238_vm2, %v15827_v20 }
 0x3cc   : > { %13048 = vmatmul.mubr.msk.bf16.vlgmr.msra.gmra.mrb[28].mxu0 %vm238_vm2, %v15827_v20 }
 0x447   : > { %v9639_v6 = vpop.f32.mrb[32].mxu0 }
 0x448   : > { %v13051_v3 = vadd.f32 %v9639_v6, %v14710_v53  ;;  %v12917_v21 = vpop.f32.mrb[33].mxu0 }
 0x449   : > { %v9642_v10 = vpop.f32.mrb[34].mxu0 }
 0x44a   : > { %v10835_v14 = vsel %vm10834_vm3, %v13051_v3, 0.0  ;;  %v12918_v58 = vpop.f32.mrb[35].mxu0 }
 0x44b   : > { %10858 = vst [vmem:[%s15966_s20] sm:$0xff] %v10835_v14  ;;  %v9692_v22 = vpop.f32.mrb[4].mxu1 }
 0x44c   : > { %v10836_v8 = vsel %vm10834_vm3, %v9692_v22, 0.0  ;;  %v12923_v33 = vpop.f32.mrb[5].mxu1 }
 0x44d   : > { %10859 = vst [vmem:[%s15966_s20 + $0x8] sm:$0xff] %v10836_v8  ;;  %v9695_v48 = vpop.f32.mrb[6].mxu1 }
 0x44e   : > { %v12924_v62 = vpop.f32.mrb[7].mxu1 }
 0x44f   : > { %v9745_v28 = vpop.f32.mrb[36].mxu0 }
 0x450   : > { %v13052_v54 = vadd.f32 %v9745_v28, %v14755_v47  ;;  %v12929_v42 = vpop.f32.mrb[37].mxu0 }
 0x451   : > { %v9748_v53 = vpop.f32.mrb[38].mxu0 }
 0x452   : > { %v10837_v57 = vsel %vm10834_vm3, %v13052_v54, 0.0  ;;  %v12930_v4 = vpop.f32.mrb[39].mxu0 }
 0x453   : > { %10860 = vst [vmem:[%s15966_s20 + $0x10] sm:$0xff] %v10837_v57  ;;  %v9798_v56 = vpop.f32.mrb[12].mxu1 }
 0x454   : > { %v10838_v41 = vsel %vm10834_vm3, %v9798_v56, 0.0  ;;  %v12935_v20 = vpop.f32.mrb[13].mxu1 }
 0x455   : > { %10861 = vst [vmem:[%s15966_s20 + $0x18] sm:$0xff] %v10838_v41  ;;  %v9801_v38 = vpop.f32.mrb[14].mxu1 }
 0x456   : > { %v12936_v24 = vpop.f32.mrb[15].mxu1 }
 0x457   : > { %v9851_v13 = vpop.f32.mrb[40].mxu0 }
 0x458   : > { %v13053_v17 = vadd.f32 %v9851_v13, %v14796_v37  ;;  %v12941_v60 = vpop.f32.mrb[41].mxu0 }
 0x459   : > { %v9854_v47 = vpop.f32.mrb[42].mxu0 }
 0x45a   : > { %v10839_v16 = vsel %vm10834_vm3, %v13053_v17, 0.0  ;;  %v12942_v50 = vpop.f32.mrb[43].mxu0 }
 0x45b   : > { %10862 = vst [vmem:[%s15966_s20 + $0x20] sm:$0xff] %v10839_v16  ;;  %v9904_v30 = vpop.f32.mrb[20].mxu1 }
 0x45c   : > { %v10840_v39 = vsel %vm10834_vm3, %v9904_v30, 0.0  ;;  %v12947_v51 = vpop.f32.mrb[21].mxu1 }
 0x45d   : > { %10863 = vst [vmem:[%s15966_s20 + $0x28] sm:$0xff] %v10840_v39  ;;  %v9907_v61 = vpop.f32.mrb[22].mxu1 }
 0x45e   : > { %v12948_v63 = vpop.f32.mrb[23].mxu1 }
 0x45f   : > { %v9957_v7 = vpop.f32.mrb[44].mxu0 }
 0x460   : > { %v13054_v9 = vadd.f32 %v9957_v7, %v14839_v43  ;;  %v12953_v37 = vpop.f32.mrb[45].mxu0 }
 0x461   : > { %v9960_v15 = vpop.f32.mrb[46].mxu0 }
 0x462   : > { %v10841_v40 = vsel %vm10834_vm3, %v13054_v9, 0.0  ;;  %v12954_v1 = vpop.f32.mrb[47].mxu0 }
 0x463   : > { %10864 = vst [vmem:[%s15966_s20 + $0x30] sm:$0xff] %v10841_v40  ;;  %v10010_v44 = vpop.f32.mrb[28].mxu1 }
 0x464   : > { %v10842_v49 = vsel %vm10834_vm3, %v10010_v44, 0.0  ;;  %v12959_v23 = vpop.f32.mrb[29].mxu1 }
 0x465   : > { %10865 = vst [vmem:[%s15966_s20 + $0x38] sm:$0xff] %v10842_v49  ;;  %v10013_v52 = vpop.f32.mrb[30].mxu1 }
 0x466   : > { %v12960_v46 = vpop.f32.mrb[31].mxu1 }
 0x467   : > { %v10063_v27 = vpop.f32.mrb[0].mxu0 }
 0x468   : > { %v10843_v59 = vsel %vm10834_vm3, %v10063_v27, 0.0  ;;  %v12965_v18 = vpop.f32.mrb[1].mxu0 }
 0x469   : > { %10866 = vst [vmem:[%s15966_s20 + $0x40] sm:$0xff] %v10843_v59  ;;  %v10066_v43 = vpop.f32.mrb[2].mxu0 }
 0x46a   : > { %v12966_v19 = vpop.f32.mrb[3].mxu0 }
 0x46b   : > { %v10116_v34 = vpop.f32.mrb[32].mxu1 }
 0x46c   : > { %v10844_v35 = vsel %vm10834_vm3, %v10116_v34, 0.0  ;;  %v12971_v2 = vpop.f32.mrb[33].mxu1 }
 0x46d   : > { %10867 = vst [vmem:[%s15966_s20 + $0x48] sm:$0xff] %v10844_v35  ;;  %v10119_v45 = vpop.f32.mrb[34].mxu1 }
 0x46e   : > { %v12972_v11 = vpop.f32.mrb[35].mxu1 }
 0x46f   : > { %v10169_v31 = vpop.f32.mrb[4].mxu0 }
 0x470   : > { %v10845_v32 = vsel %vm10834_vm3, %v10169_v31, 0.0  ;;  %v12977_v29 = vpop.f32.mrb[5].mxu0 }
 0x471   : > { %10868 = vst [vmem:[%s15966_s20 + $0x50] sm:$0xff] %v10845_v32  ;;  %v10172_v55 = vpop.f32.mrb[6].mxu0 }
 0x472   : > { %v12978_v25 = vpop.f32.mrb[7].mxu0 }
 0x473   : > { %v10222_v0 = vpop.f32.mrb[36].mxu1 }
 0x474   : > { %v10846_v12 = vsel %vm10834_vm3, %v10222_v0, 0.0  ;;  %v12983_v26 = vpop.f32.mrb[37].mxu1 }
 0x475   : > { %10869 = vst [vmem:[%s15966_s20 + $0x58] sm:$0xff] %v10846_v12  ;;  %v10225_v5 = vpop.f32.mrb[38].mxu1 }
 0x476   : > { %v12984_v36 = vpop.f32.mrb[39].mxu1 }
 0x477   : > { %v10275_v6 = vpop.f32.mrb[8].mxu0 }
 0x478   : > { %v10847_v3 = vsel %vm10834_vm3, %v10275_v6, 0.0  ;;  %v12989_v21 = vpop.f32.mrb[9].mxu0 }
 0x479   : > { %10870 = vst [vmem:[%s15966_s20 + $0x60] sm:$0xff] %v10847_v3  ;;  %v10278_v10 = vpop.f32.mrb[10].mxu0 }
 0x47a   : > { %v12990_v14 = vpop.f32.mrb[11].mxu0 }
 0x47b   : > { %v10328_v58 = vpop.f32.mrb[40].mxu1 }
 0x47c   : > { %v10848_v22 = vsel %vm10834_vm3, %v10328_v58, 0.0  ;;  %v12995_v8 = vpop.f32.mrb[41].mxu1 }
 0x47d   : > { %10871 = vst [vmem:[%s15966_s20 + $0x68] sm:$0xff] %v10848_v22  ;;  %v10331_v33 = vpop.f32.mrb[42].mxu1 }
 0x47e   : > { %v12996_v48 = vpop.f32.mrb[43].mxu1 }
 0x47f   : > { %v10381_v62 = vpop.f32.mrb[12].mxu0 }
 0x480   : > { %v10849_v28 = vsel %vm10834_vm3, %v10381_v62, 0.0  ;;  %v13001_v54 = vpop.f32.mrb[13].mxu0 }
 0x481   : > { %10872 = vst [vmem:[%s15966_s20 + $0x70] sm:$0xff] %v10849_v28  ;;  %v10384_v42 = vpop.f32.mrb[14].mxu0 }
 0x482   : > { %v13002_v53 = vpop.f32.mrb[15].mxu0 }
 0x483   : > { %v10434_v57 = vpop.f32.mrb[44].mxu1 }
 0x484   : > { %v10850_v4 = vsel %vm10834_vm3, %v10434_v57, 0.0  ;;  %v13007_v56 = vpop.f32.mrb[45].mxu1 }
 0x485   : > { %10873 = vst [vmem:[%s15966_s20 + $0x78] sm:$0xff] %v10850_v4  ;;  %v10437_v41 = vpop.f32.mrb[46].mxu1 }
 0x486   : > { %v13008_v20 = vpop.f32.mrb[47].mxu1 }
 0x487   : > { %v10487_v38 = vpop.f32.mrb[16].mxu0 }
 0x488   : > { %v10851_v24 = vsel %vm10834_vm3, %v10487_v38, 0.0  ;;  %v13013_v13 = vpop.f32.mrb[17].mxu0 }
 0x489   : > { %10874 = vst [vmem:[%s15966_s20 + $0x80] sm:$0xff] %v10851_v24  ;;  %v10490_v17 = vpop.f32.mrb[18].mxu0 }
 0x48a   : > { %v13014_v60 = vpop.f32.mrb[19].mxu0 }
 0x48b   : > { %v10540_v47 = vpop.f32.mrb[48].mxu1 }
 0x48c   : > { %v10852_v16 = vsel %vm10834_vm3, %v10540_v47, 0.0  ;;  %v13019_v50 = vpop.f32.mrb[49].mxu1 }
 0x48d   : > { %10875 = vst [vmem:[%s15966_s20 + $0x88] sm:$0xff] %v10852_v16  ;;  %v10543_v30 = vpop.f32.mrb[50].mxu1 }
 0x48e   : > { %v13020_v39 = vpop.f32.mrb[51].mxu1 }
 0x48f   : > { %v10593_v51 = vpop.f32.mrb[20].mxu0 }
 0x490   : > { %v10853_v61 = vsel %vm10834_vm3, %v10593_v51, 0.0  ;;  %v13025_v63 = vpop.f32.mrb[21].mxu0 }
 0x491   : > { %10876 = vst [vmem:[%s15966_s20 + $0x90] sm:$0xff] %v10853_v61  ;;  %v10596_v7 = vpop.f32.mrb[22].mxu0 }
 0x492   : > { %v13026_v9 = vpop.f32.mrb[23].mxu0 }
 0x493   : > { %v10646_v37 = vpop.f32.mrb[52].mxu1 }
 0x494   : > { %v10854_v15 = vsel %vm10834_vm3, %v10646_v37, 0.0  ;;  %v13031_v40 = vpop.f32.mrb[53].mxu1 }
 0x495   : > { %10877 = vst [vmem:[%s15966_s20 + $0x98] sm:$0xff] %v10854_v15  ;;  %v10649_v1 = vpop.f32.mrb[54].mxu1 }
 0x496   : > { %v13032_v44 = vpop.f32.mrb[55].mxu1 }
 0x497   : > { %v10699_v49 = vpop.f32.mrb[24].mxu0 }
 0x498   : > { %v10855_v23 = vsel %vm10834_vm3, %v10699_v49, 0.0  ;;  %v13037_v52 = vpop.f32.mrb[25].mxu0 }
 0x499   : > { %10878 = vst [vmem:[%s15966_s20 + $0xa0] sm:$0xff] %v10855_v23  ;;  %v10702_v46 = vpop.f32.mrb[26].mxu0 }
 0x49a   : > { %v13038_v27 = vpop.f32.mrb[27].mxu0 }
 0x49b   : > { %v10752_v59 = vpop.f32.mrb[56].mxu1 }
 0x49c   : > { %v10856_v18 = vsel %vm10834_vm3, %v10752_v59, 0.0  ;;  %v13043_v43 = vpop.f32.mrb[57].mxu1 }
 0x49d   : > { %10879 = vst [vmem:[%s15966_s20 + $0xa8] sm:$0xff] %v10856_v18  ;;  %v10755_v19 = vpop.f32.mrb[58].mxu1 }
 0x49e   : > { %v13044_v34 = vpop.f32.mrb[59].mxu1 }
 0x49f   : > { %v10805_v35 = vpop.f32.mrb[28].mxu0 }
 0x4a0   : > { %v10857_v2 = vsel %vm10834_vm3, %v10805_v35, 0.0  ;;  %v13049_v45 = vpop.f32.mrb[29].mxu0 }
 0x4a1   : > { %10880 = vst [vmem:[%s15966_s20 + $0xb0] sm:$0xff] %v10857_v2  ;;  %v10808_v11 = vpop.f32.mrb[30].mxu0 }
 0x4a2   : > { %v13050_v31 = vpop.f32.mrb[31].mxu0 }
 0x4a3 PF: > { %s12_s15 = sadd.s32 1, %s13894_s15   ;;  %s16042_s9 = smov %s13882_s12 }
 0x4a4   : > { %p9_p9 = scmp.ge.s32.totalorder %s12_s15, 22   ;;  %s16043_s10 = smov %s13886_s13 }
 0x4a5   : > { %s16044_s11 = smov %s13890_s14  ;;  %s16045_s12 = smov %s16049_s16 }
 0x4a6   : > { %s16046_s13 = smov %s16053_s17  ;;  %s16047_s14 = smov %s16057_s18 }
 0x4a7   :  { %11 = sbr.rel (!%p9_p9) target bundleno = 4 (0x4), region = 69 }

</bundles_post_ra>
